<compile_context>
chip_gen: v7x
topology: tpu7x:2x2x1
jax: 0.10.0
libtpu: 0.0.40
codegen_flags: <defaults>
</compile_context>

<pallas_src>
import functools

import numpy as np
import jax
import jax.numpy as jnp
from jax.experimental import pallas as pl
from jax.experimental.pallas import tpu as pltpu


# --------------------------------------------------------------------------
# Precomputed constants (numpy, built once at prep time)
# --------------------------------------------------------------------------
def _tap_masks_np(H, W):
    """(9, H*W) validity masks for 3x3 'same' taps (dy,dx) in row-major order."""
    yy, xx = np.mgrid[0:H, 0:W]
    m = np.zeros((9, H * W), np.float32)
    t = 0
    for dy in (-1, 0, 1):
        for dx in (-1, 0, 1):
            valid = ((yy + dy >= 0) & (yy + dy < H) &
                     (xx + dx >= 0) & (xx + dx < W))
            m[t] = valid.reshape(-1).astype(np.float32)
            t += 1
    return m


def _parity_scatter_np(h, w):
    """(4*h*w, H*W) 0/1 matrix: parity-blocked low-res lanes -> full-res lanes."""
    H, W = 2 * h, 2 * w
    S = np.zeros((4 * h * w, H * W), np.float32)
    for r in (0, 1):
        for s in (0, 1):
            p = r * 2 + s
            for m in range(h):
                for n in range(w):
                    S[p * h * w + m * w + n, (2 * m + r) * W + (2 * n + s)] = 1.0
    return S


def _upsample_1d_np(n_in, n_out):
    """PyTorch F.interpolate bilinear, align_corners=False, as (n_in, n_out) weights."""
    U = np.zeros((n_in, n_out), np.float32)
    for X in range(n_out):
        s = (X + 0.5) * n_in / n_out - 0.5
        x0 = int(np.floor(s))
        t = s - x0
        U[min(max(x0, 0), n_in - 1), X] += 1.0 - t
        U[min(max(x0 + 1, 0), n_in - 1), X] += t
    return U


def _upsample_matrix_np(h, w):
    Uh = _upsample_1d_np(h, 2 * h)                       # (h, H)
    Uw = _upsample_1d_np(w, 2 * w)                       # (w, W)
    return np.einsum('yY,xX->yxYX', Uh, Uw).reshape(h * w, 4 * h * w).astype(np.float32)


# --------------------------------------------------------------------------
# Weight packing (done once, outside the forward)
# --------------------------------------------------------------------------
def _conv_w_to_mat(w_oihw):
    """PyTorch (Cout, Cin, 3, 3) -> (Cout, 9*Cin), tap-major / channel-minor."""
    Cout, Cin, K, _ = w_oihw.shape
    return jnp.transpose(w_oihw, (0, 2, 3, 1)).reshape(Cout, K * K * Cin)


def _pack_deconv(w_flow, b_flow, w_hid, b_hid):
    """Pack both ConvTranspose2d(k=4,s=2,p=1) into parity-split 2x2 GEMM weights.

    Returns Wd (4, Cout_tot, 9*Cin_tot) indexed by parity p=r*2+s over the shared
    9-tap low-res im2col, and the concatenated bias (Cout_tot, 1)."""
    cin_f, cout_f = w_flow.shape[0], w_flow.shape[1]
    cin_h, cout_h = w_hid.shape[0], w_hid.shape[1]
    cin_t, cout_t = cin_f + cin_h, cout_f + cout_h
    Wd = jnp.zeros((4, cout_t, 9 * cin_t), jnp.float32)
    for r in (0, 1):
        for s in (0, 1):
            p = r * 2 + s
            for dy in (0, 1):
                for dx in (0, 1):
                    ey, ex = r + dy - 1, s + dx - 1
                    ky, kx = 3 - r - 2 * dy, 3 - s - 2 * dx
                    t = (ey + 1) * 3 + (ex + 1)
                    Wd = Wd.at[p, 0:cout_f,
                               t * cin_t:t * cin_t + cin_f].set(w_flow[:, :, ky, kx].T)
                    Wd = Wd.at[p, cout_f:cout_t,
                               t * cin_t + cin_f:t * cin_t + cin_t].set(w_hid[:, :, ky, kx].T)
    bd = jnp.concatenate([b_flow, b_hid]).reshape(cout_t, 1)
    return Wd, bd


# --------------------------------------------------------------------------
# In-kernel helpers (everything operates on (C, H*W) values, spatial on lanes)
# --------------------------------------------------------------------------
def _roll_lanes(x, off, n):
    """out[:, q] = x[:, (q + off) mod n]  (static circular lane shift)."""
    off = off % n
    if off == 0:
        return x
    if n % 128 == 0:
        # XLU lane rotate (frees VPU/load-store slots); jnp.roll convention.
        return pltpu.roll(x, shift=(-off) % n, axis=1)
    # Lane count not vreg-aligned (low-res path): proven concat fallback.
    return jnp.concatenate([x[:, off:], x[:, :off]], axis=1)


def _im2col_3x3(x_flat, masks, W, HW):
    """(Cin, HW) f32 -> (9*Cin, HW) bf16 im2col for a 3x3 'same' conv (zero pad)."""
    taps = []
    t = 0
    for dy in (-1, 0, 1):
        for dx in (-1, 0, 1):
            tap = _roll_lanes(x_flat, dy * W + dx, HW) * masks[t:t + 1, :]
            taps.append(tap.astype(jnp.bfloat16))
            t += 1
    return jnp.concatenate(taps, axis=0)


def _conv3x3(x_flat, w_mat_bf16, b, masks, W, HW, alpha=None):
    """3x3 same conv (+bias, optional PReLU) as one bf16 lane-dense GEMM."""
    ic = _im2col_3x3(x_flat, masks, W, HW)                      # (9*Cin, HW) bf16
    out = jnp.dot(w_mat_bf16, ic, preferred_element_type=jnp.float32) + b
    if alpha is not None:
        out = jnp.where(out >= 0.0, out, out * alpha)
    return out


def _bilinear_warp(img_bf16, sx, sy, px, py, tile_n):
    """grid_sample(bilinear, border, align_corners=True) as tiled weight matmuls.

    img_bf16 (C, HW_src); sx, sy (1, HW_out) clipped absolute source coords (f32);
    px, py (HW_src, 1) source-pixel coordinates (f32)."""
    hw_out = sx.shape[1]
    outs = []
    for q0 in range(0, hw_out, tile_n):
        q1 = min(q0 + tile_n, hw_out)
        wgt = (jnp.maximum(0.0, 1.0 - jnp.abs(sx[:, q0:q1] - px)) *
               jnp.maximum(0.0, 1.0 - jnp.abs(sy[:, q0:q1] - py)))    # (HW_src, T) f32
        outs.append(jnp.dot(img_bf16, wgt.astype(jnp.bfloat16),
                            preferred_element_type=jnp.float32))
    # TODO(synk): band the source rows per output tile (bounded flow) to cut MACs.
    return outs[0] if len(outs) == 1 else jnp.concatenate(outs, axis=1)


# --------------------------------------------------------------------------
# The fused kernel: one grid step = one batch element, all stages in VMEM
# --------------------------------------------------------------------------
def _jam_fused_kernel(img_ref, hid_ref, flw_ref, c0_ref, c1_ref,
                      wdec_ref, bdec_ref, sperm_ref, uup_ref,
                      mlow_ref, mfull_ref,
                      wc1_ref, bc1_ref, ac1_ref,
                      rw1_ref, rb1_ref, ra_ref, rw2_ref, rb2_ref,
                      wp_ref, bp_ref,
                      pred_ref, hidd_ref, uf0_ref, uf1_ref,
                      *, h, w, n_res, warp_tile):
    H, W = 2 * h, 2 * w
    hw, HW = h * w, H * W

    mlow = mlow_ref[...]                     # (9, hw) f32
    mfull = mfull_ref[...]                   # (9, HW) f32

    # ---- in-kernel coordinates (iota + float floor; no int div, no const DMA) ----
    inv_w = 1.0 / float(W)
    qf = jax.lax.broadcasted_iota(jnp.int32, (1, HW), 1).astype(jnp.float32)
    yy = jnp.floor((qf + 0.5) * inv_w)                              # (1, HW) out y
    xx = qf - yy * float(W)                                         # (1, HW) out x
    sf = jax.lax.broadcasted_iota(jnp.int32, (HW, 1), 0).astype(jnp.float32)
    py = jnp.floor((sf + 0.5) * inv_w)                              # (HW, 1) src y
    px = sf - py * float(W)                                         # (HW, 1) src x

    # ---- deconv_flow + deconv_hidden: one stacked parity sub-pixel GEMM ----
    low = jnp.concatenate([flw_ref[0], hid_ref[0]], axis=0)         # (Cl, hw) f32
    ic_low = _im2col_3x3(low, mlow, w, hw)                          # (9*Cl, hw) bf16
    cd = bdec_ref.shape[0]
    par = jnp.dot(wdec_ref[...], ic_low,
                  preferred_element_type=jnp.float32)               # (4*Cd, hw) f32
    dec_pb = jnp.concatenate([par[p * cd:(p + 1) * cd, :] for p in range(4)],
                             axis=1)                                # (Cd, 4*hw) f32
    dec = jnp.dot(dec_pb.astype(jnp.bfloat16), sperm_ref[...],
                  preferred_element_type=jnp.float32) + bdec_ref[...]   # (Cd, HW)
    upflow = dec[0:4]                                               # (4, HW)
    uphidden = dec[4:]                                              # (hidd_chs, HW)

    # ---- F.interpolate(img_last, x2, bilinear, align_corners=False) ----
    upimg = jnp.dot(img_ref[0].astype(jnp.bfloat16), uup_ref[...],
                    preferred_element_type=jnp.float32)             # (3, HW)

    # ---- add_temporal_offset (gamma = 1.0), fused (pure VPU) ----
    tau = (yy - float(H // 2)) / float(H) + 1e-4                    # (1, HW)
    uf0 = (1.0 - tau) * upflow[0:2]                                 # (2, HW)
    uf1 = (-tau) * upflow[2:4]                                      # (2, HW)

    # ---- warp(c_0, upflow_0), warp(c_1, upflow_1) ----
    sx0 = jnp.clip(xx + uf0[0:1], 0.0, W - 1.0)
    sy0 = jnp.clip(yy + uf0[1:2], 0.0, H - 1.0)
    warp0 = _bilinear_warp(c0_ref[0].astype(jnp.bfloat16), sx0, sy0, px, py, warp_tile)
    sx1 = jnp.clip(xx + uf1[0:1], 0.0, W - 1.0)
    sy1 = jnp.clip(yy + uf1[1:2], 0.0, H - 1.0)
    warp1 = _bilinear_warp(c1_ref[0].astype(jnp.bfloat16), sx1, sy1, px, py, warp_tile)

    # ---- conv stack, fully resident in VMEM ----
    x0 = jnp.concatenate([upimg, warp1, warp0, uphidden, uf0, uf1], axis=0)
    x = _conv3x3(x0, wc1_ref[...], bc1_ref[...], mfull, W, HW, alpha=ac1_ref[...])
    # TODO(synk): Cascade_resnet_blocks not in the provided snippet; using the
    # repo-standard block (conv3x3 -> PReLU -> conv3x3, residual add), n_blocks=3.
    for i in range(n_res):
        y = _conv3x3(x, rw1_ref[i], rb1_ref[i], mfull, W, HW, alpha=ra_ref[i])
        y = _conv3x3(y, rw2_ref[i], rb2_ref[i], mfull, W, HW)
        x = x + y
    pred = _conv3x3(x, wp_ref[...], bp_ref[...], mfull, W, HW)      # (3, HW)

    pred_ref[...] = pred[None]
    hidd_ref[...] = x[None]
    uf0_ref[...] = uf0[None]
    uf1_ref[...] = uf1[None]


# --------------------------------------------------------------------------
# Parameters (PyTorch-layout synthetic init) and kernel-ready packing
# --------------------------------------------------------------------------
def init_params(key, in_chs_last, in_chs, hidd_chs):
    def nrm(k, shape, scale=0.1):
        return scale * jax.random.normal(k, shape, jnp.float32)

    keys = iter(jax.random.split(key, 32))
    cmid = in_chs * 2
    cin_cr = in_chs * 2 + 4 + 3 + hidd_chs
    p = {}
    p['deconv_flow_w'] = nrm(next(keys), (4, 4, 4, 4))               # (Cin,Cout,4,4)
    p['deconv_flow_b'] = nrm(next(keys), (4,))
    p['deconv_hidden_w'] = nrm(next(keys), (2 * in_chs_last, hidd_chs, 4, 4))
    p['deconv_hidden_b'] = nrm(next(keys), (hidd_chs,))
    p['convrelu_w'] = nrm(next(keys), (cmid, cin_cr, 3, 3))          # OIHW
    p['convrelu_b'] = nrm(next(keys), (cmid,))
    p['convrelu_a'] = jnp.full((cmid,), 0.25, jnp.float32)
    for i in range(3):
        p[f'res{i}_w1'] = nrm(next(keys), (cmid, cmid, 3, 3))
        p[f'res{i}_b1'] = nrm(next(keys), (cmid,))
        p[f'res{i}_a'] = jnp.full((cmid,), 0.25, jnp.float32)
        p[f'res{i}_w2'] = nrm(next(keys), (cmid, cmid, 3, 3))
        p[f'res{i}_b2'] = nrm(next(keys), (cmid,))
    p['pred_w'] = nrm(next(keys), (3, cmid, 3, 3))
    p['pred_b'] = nrm(next(keys), (3,))
    return p


def prepare_kernel_params(p, h, w):
    """Pack PyTorch-layout params + grid constants into kernel-ready arrays (once).

    All matmul weight matrices are stored bf16 (MXU-native); biases/alphas/masks
    stay f32.  sperm/uup bilinear weights are exact multiples of 1/16, so the
    bf16 cast of those two is lossless."""
    H, W = 2 * h, 2 * w
    bf16 = jnp.bfloat16
    kp = {}
    Wd, bd = _pack_deconv(p['deconv_flow_w'], p['deconv_flow_b'],
                          p['deconv_hidden_w'], p['deconv_hidden_b'])
    kp['wdec'] = Wd.reshape(4 * Wd.shape[1], Wd.shape[2]).astype(bf16)   # (4*Cd, 9*Cl)
    kp['bdec'] = bd
    kp['sperm'] = jnp.asarray(_parity_scatter_np(h, w)).astype(bf16)
    kp['uup'] = jnp.asarray(_upsample_matrix_np(h, w)).astype(bf16)
    kp['mlow'] = jnp.asarray(_tap_masks_np(h, w))
    kp['mfull'] = jnp.asarray(_tap_masks_np(H, W))
    kp['wc1'] = _conv_w_to_mat(p['convrelu_w']).astype(bf16)
    kp['bc1'] = p['convrelu_b'].reshape(-1, 1)
    kp['ac1'] = p['convrelu_a'].reshape(-1, 1)
    kp['rw1'] = jnp.stack([_conv_w_to_mat(p[f'res{i}_w1']) for i in range(3)]).astype(bf16)
    kp['rb1'] = jnp.stack([p[f'res{i}_b1'].reshape(-1, 1) for i in range(3)])
    kp['ra'] = jnp.stack([p[f'res{i}_a'].reshape(-1, 1) for i in range(3)])
    kp['rw2'] = jnp.stack([_conv_w_to_mat(p[f'res{i}_w2']) for i in range(3)]).astype(bf16)
    kp['rb2'] = jnp.stack([p[f'res{i}_b2'].reshape(-1, 1) for i in range(3)])
    kp['wp'] = _conv_w_to_mat(p['pred_w']).astype(bf16)
    kp['bp'] = p['pred_b'].reshape(-1, 1)
    return kp


_CONST_NAMES = ['wdec', 'bdec', 'sperm', 'uup', 'mlow', 'mfull',
                'wc1', 'bc1', 'ac1', 'rw1', 'rb1', 'ra', 'rw2', 'rb2', 'wp', 'bp']


# --------------------------------------------------------------------------
# Forward pass (mirrors JAMDecorder_bottom_level.forward; NCHW in / NCHW out)
# --------------------------------------------------------------------------
def jam_decoder_bottom_forward(kparams, img_last, hidden_last,
                               flow_0_last, flow_1_last, c_0, c_1):
    B, _, h, w = img_last.shape
    H, W = 2 * h, 2 * w
    hw, HW = h * w, H * W
    c_in = c_0.shape[1]
    chid = hidden_last.shape[1]
    cmid = kparams['wc1'].shape[0]

    # Free reshapes: NCHW -> (B, C, H*W) flat-lane layout (no transposes).
    img_f = img_last.reshape(B, 3, hw)
    hid_f = hidden_last.reshape(B, chid, hw)
    flw_f = jnp.concatenate([flow_0_last, flow_1_last], axis=1).reshape(B, 4, hw)
    c0_f = c_0.reshape(B, c_in, HW)
    c1_f = c_1.reshape(B, c_in, HW)

    consts = [kparams[n] for n in _CONST_NAMES]

    def bspec(*trail):
        n = len(trail)
        return pl.BlockSpec((1,) + tuple(trail), lambda b, n=n: (b,) + (0,) * n)

    def cspec(a):
        n = a.ndim
        # Constant index_map: DMA'd once, resident in VMEM across the batch grid.
        # TODO(synk): single-buffer with pipeline_mode=pl.Buffered(1) once
        # validated on-target (saves one copy of every constant in VMEM).
        return pl.BlockSpec(a.shape, lambda b, n=n: (0,) * n)

    in_specs = ([bspec(3, hw), bspec(chid, hw), bspec(4, hw),
                 bspec(c_in, HW), bspec(c_in, HW)] +
                [cspec(a) for a in consts])
    out_shape = (jax.ShapeDtypeStruct((B, 3, HW), jnp.float32),
                 jax.ShapeDtypeStruct((B, cmid, HW), jnp.float32),
                 jax.ShapeDtypeStruct((B, 2, HW), jnp.float32),
                 jax.ShapeDtypeStruct((B, 2, HW), jnp.float32))
    out_specs = (bspec(3, HW), bspec(cmid, HW), bspec(2, HW), bspec(2, HW))

    kern = functools.partial(_jam_fused_kernel, h=h, w=w, n_res=3, warp_tile=1024)
    pred, xh, uf0, uf1 = pl.pallas_call(
        kern,
        out_shape=out_shape,
        grid=(B,),
        in_specs=in_specs,
        out_specs=out_specs,
        compiler_params=pltpu.CompilerParams(
            dimension_semantics=("parallel",),
            vmem_limit_bytes=48 * 1024 * 1024),
    )(img_f, hid_f, flw_f, c0_f, c1_f, *consts)

    img_pred = pred.reshape(B, 3, H, W)
    x_hidd = xh.reshape(B, cmid, H, W)
    upflow_0 = uf0.reshape(B, 2, H, W)
    upflow_1 = uf1.reshape(B, 2, H, W)
    return img_pred, x_hidd, upflow_0, upflow_1, upflow_0, upflow_1


# --------------------------------------------------------------------------
if __name__ == "__main__":
    B, in_chs_last, in_chs, hidd_chs = 2, 4, 4, 5
    h, w = 8, 8                      # low-res inputs; decoder outputs 2h x 2w
    H, W = 2 * h, 2 * w

    key = jax.random.PRNGKey(0)
    kparam_key, kx = jax.random.split(key)
    params = init_params(kparam_key, in_chs_last, in_chs, hidd_chs)
    kparams = prepare_kernel_params(params, h, w)

    ks = jax.random.split(kx, 6)
    img_last = jax.random.normal(ks[0], (B, 3, h, w), jnp.float32)
    hidden_last = jax.random.normal(ks[1], (B, 2 * in_chs_last, h, w), jnp.float32)
    flow_0_last = jax.random.normal(ks[2], (B, 2, h, w), jnp.float32)
    flow_1_last = jax.random.normal(ks[3], (B, 2, h, w), jnp.float32)
    c_0 = jax.random.normal(ks[4], (B, in_chs, H, W), jnp.float32)
    c_1 = jax.random.normal(ks[5], (B, in_chs, H, W), jnp.float32)

    fwd = jax.jit(functools.partial(jam_decoder_bottom_forward, kparams))
    outs = fwd(img_last, hidden_last, flow_0_last, flow_1_last, c_0, c_1)
    jax.block_until_ready(outs)
    print("KERNEL_OK")
</pallas_src>

<mosaic_0001>
module attributes {stable_mosaic.version = 11 : i64} {
  func.func @_jam_fused_kernel(%arg0: i32, %arg1: memref<1x3x64xf32, #tpu.memory_space<vmem>>, %arg2: memref<1x8x64xf32, #tpu.memory_space<vmem>>, %arg3: memref<1x4x64xf32, #tpu.memory_space<vmem>>, %arg4: memref<1x4x256xf32, #tpu.memory_space<vmem>>, %arg5: memref<1x4x256xf32, #tpu.memory_space<vmem>>, %arg6: memref<36x108xbf16, #tpu.memory_space<vmem>>, %arg7: memref<9x1xf32, #tpu.memory_space<vmem>>, %arg8: memref<256x256xbf16, #tpu.memory_space<vmem>>, %arg9: memref<64x256xbf16, #tpu.memory_space<vmem>>, %arg10: memref<9x64xf32, #tpu.memory_space<vmem>>, %arg11: memref<9x256xf32, #tpu.memory_space<vmem>>, %arg12: memref<8x180xbf16, #tpu.memory_space<vmem>>, %arg13: memref<8x1xf32, #tpu.memory_space<vmem>>, %arg14: memref<8x1xf32, #tpu.memory_space<vmem>>, %arg15: memref<3x8x72xbf16, #tpu.memory_space<vmem>>, %arg16: memref<3x8x1xf32, #tpu.memory_space<vmem>>, %arg17: memref<3x8x1xf32, #tpu.memory_space<vmem>>, %arg18: memref<3x8x72xbf16, #tpu.memory_space<vmem>>, %arg19: memref<3x8x1xf32, #tpu.memory_space<vmem>>, %arg20: memref<3x72xbf16, #tpu.memory_space<vmem>>, %arg21: memref<3x1xf32, #tpu.memory_space<vmem>>, %arg22: memref<1x3x256xf32, #tpu.memory_space<vmem>>, %arg23: memref<1x8x256xf32, #tpu.memory_space<vmem>>, %arg24: memref<1x2x256xf32, #tpu.memory_space<vmem>>, %arg25: memref<1x2x256xf32, #tpu.memory_space<vmem>>) attributes {dimension_semantics = [#tpu.dimension_semantics<parallel>], iteration_bounds = array<i64: 2>, scalar_prefetch = 0 : i64, scratch_operands = 0 : i64, tpu.core_type = #tpu.core_type<tc>, window_params = [{transform_indices = @transform_0, window_bounds = array<i64: 1, 3, 64>}, {transform_indices = @transform_1, window_bounds = array<i64: 1, 8, 64>}, {transform_indices = @transform_2, window_bounds = array<i64: 1, 4, 64>}, {transform_indices = @transform_3, window_bounds = array<i64: 1, 4, 256>}, {transform_indices = @transform_4, window_bounds = array<i64: 1, 4, 256>}, {pipeline_mode = #tpu.pipeline_mode<synchronous>, transform_indices = @transform_5, window_bounds = array<i64: 36, 108>}, {pipeline_mode = #tpu.pipeline_mode<synchronous>, transform_indices = @transform_6, window_bounds = array<i64: 9, 1>}, {pipeline_mode = #tpu.pipeline_mode<synchronous>, transform_indices = @transform_7, window_bounds = array<i64: 256, 256>}, {pipeline_mode = #tpu.pipeline_mode<synchronous>, transform_indices = @transform_8, window_bounds = array<i64: 64, 256>}, {pipeline_mode = #tpu.pipeline_mode<synchronous>, transform_indices = @transform_9, window_bounds = array<i64: 9, 64>}, {pipeline_mode = #tpu.pipeline_mode<synchronous>, transform_indices = @transform_10, window_bounds = array<i64: 9, 256>}, {pipeline_mode = #tpu.pipeline_mode<synchronous>, transform_indices = @transform_11, window_bounds = array<i64: 8, 180>}, {pipeline_mode = #tpu.pipeline_mode<synchronous>, transform_indices = @transform_12, window_bounds = array<i64: 8, 1>}, {pipeline_mode = #tpu.pipeline_mode<synchronous>, transform_indices = @transform_13, window_bounds = array<i64: 8, 1>}, {pipeline_mode = #tpu.pipeline_mode<synchronous>, transform_indices = @transform_14, window_bounds = array<i64: 3, 8, 72>}, {pipeline_mode = #tpu.pipeline_mode<synchronous>, transform_indices = @transform_15, window_bounds = array<i64: 3, 8, 1>}, {pipeline_mode = #tpu.pipeline_mode<synchronous>, transform_indices = @transform_16, window_bounds = array<i64: 3, 8, 1>}, {pipeline_mode = #tpu.pipeline_mode<synchronous>, transform_indices = @transform_17, window_bounds = array<i64: 3, 8, 72>}, {pipeline_mode = #tpu.pipeline_mode<synchronous>, transform_indices = @transform_18, window_bounds = array<i64: 3, 8, 1>}, {pipeline_mode = #tpu.pipeline_mode<synchronous>, transform_indices = @transform_19, window_bounds = array<i64: 3, 72>}, {pipeline_mode = #tpu.pipeline_mode<synchronous>, transform_indices = @transform_20, window_bounds = array<i64: 3, 1>}, {transform_indices = @transform_21, window_bounds = array<i64: 1, 3, 256>}, {transform_indices = @transform_22, window_bounds = array<i64: 1, 8, 256>}, {transform_indices = @transform_23, window_bounds = array<i64: 1, 2, 256>}, {transform_indices = @transform_24, window_bounds = array<i64: 1, 2, 256>}]} {
    %c0 = arith.constant 0 : index
    %c0_0 = arith.constant 0 : index
    %0 = vector.load %arg10[%c0, %c0_0] : memref<9x64xf32, #tpu.memory_space<vmem>>, vector<9x64xf32>
    %c0_1 = arith.constant 0 : index
    %c0_2 = arith.constant 0 : index
    %1 = vector.load %arg11[%c0_1, %c0_2] : memref<9x256xf32, #tpu.memory_space<vmem>>, vector<9x256xf32>
    %2 = tpu.iota {dimensions = array<i32: 1>} : vector<1x256xi32>
    %3 = arith.sitofp %2 : vector<1x256xi32> to vector<1x256xf32>
    %cst = arith.constant 5.000000e-01 : f32
    %4 = vector.broadcast %cst : f32 to vector<1x256xf32>
    %5 = arith.addf %3, %4 : vector<1x256xf32>
    %cst_3 = arith.constant 6.250000e-02 : f32
    %6 = vector.broadcast %cst_3 : f32 to vector<1x256xf32>
    %7 = arith.mulf %5, %6 : vector<1x256xf32>
    %8 = math.floor %7 : vector<1x256xf32>
    %cst_4 = arith.constant 1.600000e+01 : f32
    %9 = vector.broadcast %cst_4 : f32 to vector<1x256xf32>
    %10 = arith.mulf %8, %9 : vector<1x256xf32>
    %11 = arith.subf %3, %10 : vector<1x256xf32>
    %12 = tpu.iota {dimensions = array<i32: 0>} : vector<256x1xi32>
    %13 = arith.sitofp %12 : vector<256x1xi32> to vector<256x1xf32>
    %cst_5 = arith.constant 5.000000e-01 : f32
    %14 = vector.broadcast %cst_5 : f32 to vector<256x1xf32>
    %15 = arith.addf %13, %14 : vector<256x1xf32>
    %cst_6 = arith.constant 6.250000e-02 : f32
    %16 = vector.broadcast %cst_6 : f32 to vector<256x1xf32>
    %17 = arith.mulf %15, %16 : vector<256x1xf32>
    %18 = math.floor %17 : vector<256x1xf32>
    %cst_7 = arith.constant 1.600000e+01 : f32
    %19 = vector.broadcast %cst_7 : f32 to vector<256x1xf32>
    %20 = arith.mulf %18, %19 : vector<256x1xf32>
    %21 = arith.subf %13, %20 : vector<256x1xf32>
    %c0_8 = arith.constant 0 : index
    %c0_9 = arith.constant 0 : index
    %c0_10 = arith.constant 0 : index
    %22 = vector.load %arg3[%c0_8, %c0_9, %c0_10] : memref<1x4x64xf32, #tpu.memory_space<vmem>>, vector<1x4x64xf32>
    %23 = vector.shape_cast %22 : vector<1x4x64xf32> to vector<4x64xf32>
    %c0_11 = arith.constant 0 : index
    %c0_12 = arith.constant 0 : index
    %c0_13 = arith.constant 0 : index
    %24 = vector.load %arg2[%c0_11, %c0_12, %c0_13] : memref<1x8x64xf32, #tpu.memory_space<vmem>>, vector<1x8x64xf32>
    %25 = vector.shape_cast %24 : vector<1x8x64xf32> to vector<8x64xf32>
    %26 = tpu.concatenate %23, %25 in 0 : vector<4x64xf32>, vector<8x64xf32> -> vector<12x64xf32>
    %27 = vector.extract_strided_slice %26 {offsets = [0, 55], sizes = [12, 9], strides = [1, 1]} : vector<12x64xf32> to vector<12x9xf32>
    %28 = vector.extract_strided_slice %26 {offsets = [0, 0], sizes = [12, 55], strides = [1, 1]} : vector<12x64xf32> to vector<12x55xf32>
    %29 = tpu.concatenate %27, %28 in 1 : vector<12x9xf32>, vector<12x55xf32> -> vector<12x64xf32>
    %30 = vector.extract_strided_slice %0 {offsets = [0, 0], sizes = [1, 64], strides = [1, 1]} : vector<9x64xf32> to vector<1x64xf32>
    %31 = vector.broadcast %30 : vector<1x64xf32> to vector<12x64xf32>
    %32 = arith.mulf %29, %31 : vector<12x64xf32>
    %33 = arith.truncf %32 : vector<12x64xf32> to vector<12x64xbf16>
    %34 = vector.extract_strided_slice %26 {offsets = [0, 56], sizes = [12, 8], strides = [1, 1]} : vector<12x64xf32> to vector<12x8xf32>
    %35 = vector.extract_strided_slice %26 {offsets = [0, 0], sizes = [12, 56], strides = [1, 1]} : vector<12x64xf32> to vector<12x56xf32>
    %36 = tpu.concatenate %34, %35 in 1 : vector<12x8xf32>, vector<12x56xf32> -> vector<12x64xf32>
    %37 = vector.extract_strided_slice %0 {offsets = [1, 0], sizes = [1, 64], strides = [1, 1]} : vector<9x64xf32> to vector<1x64xf32>
    %38 = vector.broadcast %37 : vector<1x64xf32> to vector<12x64xf32>
    %39 = arith.mulf %36, %38 : vector<12x64xf32>
    %40 = arith.truncf %39 : vector<12x64xf32> to vector<12x64xbf16>
    %41 = vector.extract_strided_slice %26 {offsets = [0, 57], sizes = [12, 7], strides = [1, 1]} : vector<12x64xf32> to vector<12x7xf32>
    %42 = vector.extract_strided_slice %26 {offsets = [0, 0], sizes = [12, 57], strides = [1, 1]} : vector<12x64xf32> to vector<12x57xf32>
    %43 = tpu.concatenate %41, %42 in 1 : vector<12x7xf32>, vector<12x57xf32> -> vector<12x64xf32>
    %44 = vector.extract_strided_slice %0 {offsets = [2, 0], sizes = [1, 64], strides = [1, 1]} : vector<9x64xf32> to vector<1x64xf32>
    %45 = vector.broadcast %44 : vector<1x64xf32> to vector<12x64xf32>
    %46 = arith.mulf %43, %45 : vector<12x64xf32>
    %47 = arith.truncf %46 : vector<12x64xf32> to vector<12x64xbf16>
    %48 = vector.extract_strided_slice %26 {offsets = [0, 63], sizes = [12, 1], strides = [1, 1]} : vector<12x64xf32> to vector<12x1xf32>
    %49 = vector.extract_strided_slice %26 {offsets = [0, 0], sizes = [12, 63], strides = [1, 1]} : vector<12x64xf32> to vector<12x63xf32>
    %50 = tpu.concatenate %48, %49 in 1 : vector<12x1xf32>, vector<12x63xf32> -> vector<12x64xf32>
    %51 = vector.extract_strided_slice %0 {offsets = [3, 0], sizes = [1, 64], strides = [1, 1]} : vector<9x64xf32> to vector<1x64xf32>
    %52 = vector.broadcast %51 : vector<1x64xf32> to vector<12x64xf32>
    %53 = arith.mulf %50, %52 : vector<12x64xf32>
    %54 = arith.truncf %53 : vector<12x64xf32> to vector<12x64xbf16>
    %55 = vector.extract_strided_slice %0 {offsets = [4, 0], sizes = [1, 64], strides = [1, 1]} : vector<9x64xf32> to vector<1x64xf32>
    %56 = vector.broadcast %55 : vector<1x64xf32> to vector<12x64xf32>
    %57 = arith.mulf %26, %56 : vector<12x64xf32>
    %58 = arith.truncf %57 : vector<12x64xf32> to vector<12x64xbf16>
    %59 = vector.extract_strided_slice %26 {offsets = [0, 1], sizes = [12, 63], strides = [1, 1]} : vector<12x64xf32> to vector<12x63xf32>
    %60 = vector.extract_strided_slice %26 {offsets = [0, 0], sizes = [12, 1], strides = [1, 1]} : vector<12x64xf32> to vector<12x1xf32>
    %61 = tpu.concatenate %59, %60 in 1 : vector<12x63xf32>, vector<12x1xf32> -> vector<12x64xf32>
    %62 = vector.extract_strided_slice %0 {offsets = [5, 0], sizes = [1, 64], strides = [1, 1]} : vector<9x64xf32> to vector<1x64xf32>
    %63 = vector.broadcast %62 : vector<1x64xf32> to vector<12x64xf32>
    %64 = arith.mulf %61, %63 : vector<12x64xf32>
    %65 = arith.truncf %64 : vector<12x64xf32> to vector<12x64xbf16>
    %66 = vector.extract_strided_slice %26 {offsets = [0, 7], sizes = [12, 57], strides = [1, 1]} : vector<12x64xf32> to vector<12x57xf32>
    %67 = vector.extract_strided_slice %26 {offsets = [0, 0], sizes = [12, 7], strides = [1, 1]} : vector<12x64xf32> to vector<12x7xf32>
    %68 = tpu.concatenate %66, %67 in 1 : vector<12x57xf32>, vector<12x7xf32> -> vector<12x64xf32>
    %69 = vector.extract_strided_slice %0 {offsets = [6, 0], sizes = [1, 64], strides = [1, 1]} : vector<9x64xf32> to vector<1x64xf32>
    %70 = vector.broadcast %69 : vector<1x64xf32> to vector<12x64xf32>
    %71 = arith.mulf %68, %70 : vector<12x64xf32>
    %72 = arith.truncf %71 : vector<12x64xf32> to vector<12x64xbf16>
    %73 = vector.extract_strided_slice %26 {offsets = [0, 8], sizes = [12, 56], strides = [1, 1]} : vector<12x64xf32> to vector<12x56xf32>
    %74 = vector.extract_strided_slice %26 {offsets = [0, 0], sizes = [12, 8], strides = [1, 1]} : vector<12x64xf32> to vector<12x8xf32>
    %75 = tpu.concatenate %73, %74 in 1 : vector<12x56xf32>, vector<12x8xf32> -> vector<12x64xf32>
    %76 = vector.extract_strided_slice %0 {offsets = [7, 0], sizes = [1, 64], strides = [1, 1]} : vector<9x64xf32> to vector<1x64xf32>
    %77 = vector.broadcast %76 : vector<1x64xf32> to vector<12x64xf32>
    %78 = arith.mulf %75, %77 : vector<12x64xf32>
    %79 = arith.truncf %78 : vector<12x64xf32> to vector<12x64xbf16>
    %80 = vector.extract_strided_slice %26 {offsets = [0, 9], sizes = [12, 55], strides = [1, 1]} : vector<12x64xf32> to vector<12x55xf32>
    %81 = vector.extract_strided_slice %26 {offsets = [0, 0], sizes = [12, 9], strides = [1, 1]} : vector<12x64xf32> to vector<12x9xf32>
    %82 = tpu.concatenate %80, %81 in 1 : vector<12x55xf32>, vector<12x9xf32> -> vector<12x64xf32>
    %83 = vector.extract_strided_slice %0 {offsets = [8, 0], sizes = [1, 64], strides = [1, 1]} : vector<9x64xf32> to vector<1x64xf32>
    %84 = vector.broadcast %83 : vector<1x64xf32> to vector<12x64xf32>
    %85 = arith.mulf %82, %84 : vector<12x64xf32>
    %86 = arith.truncf %85 : vector<12x64xf32> to vector<12x64xbf16>
    %87 = tpu.concatenate %33, %40, %47, %54, %58, %65, %72, %79, %86 in 0 : vector<12x64xbf16>, vector<12x64xbf16>, vector<12x64xbf16>, vector<12x64xbf16>, vector<12x64xbf16>, vector<12x64xbf16>, vector<12x64xbf16>, vector<12x64xbf16>, vector<12x64xbf16> -> vector<108x64xbf16>
    %c0_14 = arith.constant 0 : index
    %c0_15 = arith.constant 0 : index
    %88 = vector.load %arg6[%c0_14, %c0_15] : memref<36x108xbf16, #tpu.memory_space<vmem>>, vector<36x108xbf16>
    %cst_16 = arith.constant dense<0.000000e+00> : vector<36x64xf32>
    %89 = tpu.matmul %88, %87, %cst_16 {dimension_numbers = #tpu.dot_dimension_numbers<[1], [0], [0], [1], [0, 0, 1, 1], [], []>} : vector<36x108xbf16>, vector<108x64xbf16>, vector<36x64xf32> -> vector<36x64xf32>
    %90 = vector.extract_strided_slice %89 {offsets = [0, 0], sizes = [9, 64], strides = [1, 1]} : vector<36x64xf32> to vector<9x64xf32>
    %91 = vector.extract_strided_slice %89 {offsets = [9, 0], sizes = [9, 64], strides = [1, 1]} : vector<36x64xf32> to vector<9x64xf32>
    %92 = vector.extract_strided_slice %89 {offsets = [18, 0], sizes = [9, 64], strides = [1, 1]} : vector<36x64xf32> to vector<9x64xf32>
    %93 = vector.extract_strided_slice %89 {offsets = [27, 0], sizes = [9, 64], strides = [1, 1]} : vector<36x64xf32> to vector<9x64xf32>
    %94 = tpu.concatenate %90, %91, %92, %93 in 1 : vector<9x64xf32>, vector<9x64xf32>, vector<9x64xf32>, vector<9x64xf32> -> vector<9x256xf32>
    %95 = arith.truncf %94 : vector<9x256xf32> to vector<9x256xbf16>
    %c0_17 = arith.constant 0 : index
    %c0_18 = arith.constant 0 : index
    %96 = vector.load %arg8[%c0_17, %c0_18] : memref<256x256xbf16, #tpu.memory_space<vmem>>, vector<256x256xbf16>
    %cst_19 = arith.constant dense<0.000000e+00> : vector<9x256xf32>
    %97 = tpu.matmul %95, %96, %cst_19 {dimension_numbers = #tpu.dot_dimension_numbers<[1], [0], [0], [1], [0, 0, 1, 1], [], []>} : vector<9x256xbf16>, vector<256x256xbf16>, vector<9x256xf32> -> vector<9x256xf32>
    %c0_20 = arith.constant 0 : index
    %c0_21 = arith.constant 0 : index
    %98 = vector.load %arg7[%c0_20, %c0_21] : memref<9x1xf32, #tpu.memory_space<vmem>>, vector<9x1xf32>
    %99 = vector.broadcast %98 : vector<9x1xf32> to vector<9x256xf32>
    %100 = arith.addf %97, %99 : vector<9x256xf32>
    %101 = vector.extract_strided_slice %100 {offsets = [0, 0], sizes = [4, 256], strides = [1, 1]} : vector<9x256xf32> to vector<4x256xf32>
    %102 = vector.extract_strided_slice %100 {offsets = [4, 0], sizes = [5, 256], strides = [1, 1]} : vector<9x256xf32> to vector<5x256xf32>
    %c0_22 = arith.constant 0 : index
    %c0_23 = arith.constant 0 : index
    %c0_24 = arith.constant 0 : index
    %103 = vector.load %arg1[%c0_22, %c0_23, %c0_24] : memref<1x3x64xf32, #tpu.memory_space<vmem>>, vector<1x3x64xf32>
    %104 = vector.shape_cast %103 : vector<1x3x64xf32> to vector<3x64xf32>
    %105 = arith.truncf %104 : vector<3x64xf32> to vector<3x64xbf16>
    %c0_25 = arith.constant 0 : index
    %c0_26 = arith.constant 0 : index
    %106 = vector.load %arg9[%c0_25, %c0_26] : memref<64x256xbf16, #tpu.memory_space<vmem>>, vector<64x256xbf16>
    %cst_27 = arith.constant dense<0.000000e+00> : vector<3x256xf32>
    %107 = tpu.matmul %105, %106, %cst_27 {dimension_numbers = #tpu.dot_dimension_numbers<[1], [0], [0], [1], [0, 0, 1, 1], [], []>} : vector<3x64xbf16>, vector<64x256xbf16>, vector<3x256xf32> -> vector<3x256xf32>
    %cst_28 = arith.constant 8.000000e+00 : f32
    %108 = vector.broadcast %cst_28 : f32 to vector<1x256xf32>
    %109 = arith.subf %8, %108 : vector<1x256xf32>
    %cst_29 = arith.constant 1.600000e+01 : f32
    %110 = vector.broadcast %cst_29 : f32 to vector<1x256xf32>
    %111 = arith.divf %109, %110 : vector<1x256xf32>
    %cst_30 = arith.constant 9.99999974E-5 : f32
    %112 = vector.broadcast %cst_30 : f32 to vector<1x256xf32>
    %113 = arith.addf %111, %112 : vector<1x256xf32>
    %cst_31 = arith.constant 1.000000e+00 : f32
    %114 = vector.broadcast %cst_31 : f32 to vector<1x256xf32>
    %115 = arith.subf %114, %113 : vector<1x256xf32>
    %116 = vector.extract_strided_slice %101 {offsets = [0, 0], sizes = [2, 256], strides = [1, 1]} : vector<4x256xf32> to vector<2x256xf32>
    %117 = vector.broadcast %115 : vector<1x256xf32> to vector<2x256xf32>
    %118 = arith.mulf %117, %116 : vector<2x256xf32>
    %cst_32 = arith.constant 0.000000e+00 : f32
    %119 = vector.broadcast %cst_32 : f32 to vector<1x256xf32>
    %120 = arith.subf %119, %113 : vector<1x256xf32>
    %121 = vector.extract_strided_slice %101 {offsets = [2, 0], sizes = [2, 256], strides = [1, 1]} : vector<4x256xf32> to vector<2x256xf32>
    %122 = vector.broadcast %120 : vector<1x256xf32> to vector<2x256xf32>
    %123 = arith.mulf %122, %121 : vector<2x256xf32>
    %124 = vector.extract_strided_slice %118 {offsets = [0, 0], sizes = [1, 256], strides = [1, 1]} : vector<2x256xf32> to vector<1x256xf32>
    %125 = arith.addf %11, %124 : vector<1x256xf32>
    %cst_33 = arith.constant 0.000000e+00 : f32
    %cst_34 = arith.constant 1.500000e+01 : f32
    %126 = vector.broadcast %cst_33 : f32 to vector<1x256xf32>
    %127 = arith.maximumf %126, %125 : vector<1x256xf32>
    %128 = vector.broadcast %cst_34 : f32 to vector<1x256xf32>
    %129 = arith.minimumf %128, %127 : vector<1x256xf32>
    %130 = vector.extract_strided_slice %118 {offsets = [1, 0], sizes = [1, 256], strides = [1, 1]} : vector<2x256xf32> to vector<1x256xf32>
    %131 = arith.addf %8, %130 : vector<1x256xf32>
    %cst_35 = arith.constant 0.000000e+00 : f32
    %cst_36 = arith.constant 1.500000e+01 : f32
    %132 = vector.broadcast %cst_35 : f32 to vector<1x256xf32>
    %133 = arith.maximumf %132, %131 : vector<1x256xf32>
    %134 = vector.broadcast %cst_36 : f32 to vector<1x256xf32>
    %135 = arith.minimumf %134, %133 : vector<1x256xf32>
    %c0_37 = arith.constant 0 : index
    %c0_38 = arith.constant 0 : index
    %c0_39 = arith.constant 0 : index
    %136 = vector.load %arg4[%c0_37, %c0_38, %c0_39] : memref<1x4x256xf32, #tpu.memory_space<vmem>>, vector<1x4x256xf32>
    %137 = vector.shape_cast %136 : vector<1x4x256xf32> to vector<4x256xf32>
    %138 = arith.truncf %137 : vector<4x256xf32> to vector<4x256xbf16>
    %139 = vector.broadcast %129 : vector<1x256xf32> to vector<256x256xf32>
    %140 = vector.broadcast %21 : vector<256x1xf32> to vector<256x256xf32>
    %141 = arith.subf %139, %140 : vector<256x256xf32>
    %142 = math.absf %141 : vector<256x256xf32>
    %cst_40 = arith.constant 1.000000e+00 : f32
    %143 = vector.broadcast %cst_40 : f32 to vector<256x256xf32>
    %144 = arith.subf %143, %142 : vector<256x256xf32>
    %cst_41 = arith.constant 0.000000e+00 : f32
    %145 = vector.broadcast %cst_41 : f32 to vector<256x256xf32>
    %146 = arith.maximumf %145, %144 : vector<256x256xf32>
    %147 = vector.broadcast %135 : vector<1x256xf32> to vector<256x256xf32>
    %148 = vector.broadcast %18 : vector<256x1xf32> to vector<256x256xf32>
    %149 = arith.subf %147, %148 : vector<256x256xf32>
    %150 = math.absf %149 : vector<256x256xf32>
    %cst_42 = arith.constant 1.000000e+00 : f32
    %151 = vector.broadcast %cst_42 : f32 to vector<256x256xf32>
    %152 = arith.subf %151, %150 : vector<256x256xf32>
    %cst_43 = arith.constant 0.000000e+00 : f32
    %153 = vector.broadcast %cst_43 : f32 to vector<256x256xf32>
    %154 = arith.maximumf %153, %152 : vector<256x256xf32>
    %155 = arith.mulf %146, %154 : vector<256x256xf32>
    %156 = arith.truncf %155 : vector<256x256xf32> to vector<256x256xbf16>
    %cst_44 = arith.constant dense<0.000000e+00> : vector<4x256xf32>
    %157 = tpu.matmul %138, %156, %cst_44 {dimension_numbers = #tpu.dot_dimension_numbers<[1], [0], [0], [1], [0, 0, 1, 1], [], []>} : vector<4x256xbf16>, vector<256x256xbf16>, vector<4x256xf32> -> vector<4x256xf32>
    %158 = vector.extract_strided_slice %123 {offsets = [0, 0], sizes = [1, 256], strides = [1, 1]} : vector<2x256xf32> to vector<1x256xf32>
    %159 = arith.addf %11, %158 : vector<1x256xf32>
    %cst_45 = arith.constant 0.000000e+00 : f32
    %cst_46 = arith.constant 1.500000e+01 : f32
    %160 = vector.broadcast %cst_45 : f32 to vector<1x256xf32>
    %161 = arith.maximumf %160, %159 : vector<1x256xf32>
    %162 = vector.broadcast %cst_46 : f32 to vector<1x256xf32>
    %163 = arith.minimumf %162, %161 : vector<1x256xf32>
    %164 = vector.extract_strided_slice %123 {offsets = [1, 0], sizes = [1, 256], strides = [1, 1]} : vector<2x256xf32> to vector<1x256xf32>
    %165 = arith.addf %8, %164 : vector<1x256xf32>
    %cst_47 = arith.constant 0.000000e+00 : f32
    %cst_48 = arith.constant 1.500000e+01 : f32
    %166 = vector.broadcast %cst_47 : f32 to vector<1x256xf32>
    %167 = arith.maximumf %166, %165 : vector<1x256xf32>
    %168 = vector.broadcast %cst_48 : f32 to vector<1x256xf32>
    %169 = arith.minimumf %168, %167 : vector<1x256xf32>
    %c0_49 = arith.constant 0 : index
    %c0_50 = arith.constant 0 : index
    %c0_51 = arith.constant 0 : index
    %170 = vector.load %arg5[%c0_49, %c0_50, %c0_51] : memref<1x4x256xf32, #tpu.memory_space<vmem>>, vector<1x4x256xf32>
    %171 = vector.shape_cast %170 : vector<1x4x256xf32> to vector<4x256xf32>
    %172 = arith.truncf %171 : vector<4x256xf32> to vector<4x256xbf16>
    %173 = vector.broadcast %163 : vector<1x256xf32> to vector<256x256xf32>
    %174 = vector.broadcast %21 : vector<256x1xf32> to vector<256x256xf32>
    %175 = arith.subf %173, %174 : vector<256x256xf32>
    %176 = math.absf %175 : vector<256x256xf32>
    %cst_52 = arith.constant 1.000000e+00 : f32
    %177 = vector.broadcast %cst_52 : f32 to vector<256x256xf32>
    %178 = arith.subf %177, %176 : vector<256x256xf32>
    %cst_53 = arith.constant 0.000000e+00 : f32
    %179 = vector.broadcast %cst_53 : f32 to vector<256x256xf32>
    %180 = arith.maximumf %179, %178 : vector<256x256xf32>
    %181 = vector.broadcast %169 : vector<1x256xf32> to vector<256x256xf32>
    %182 = vector.broadcast %18 : vector<256x1xf32> to vector<256x256xf32>
    %183 = arith.subf %181, %182 : vector<256x256xf32>
    %184 = math.absf %183 : vector<256x256xf32>
    %cst_54 = arith.constant 1.000000e+00 : f32
    %185 = vector.broadcast %cst_54 : f32 to vector<256x256xf32>
    %186 = arith.subf %185, %184 : vector<256x256xf32>
    %cst_55 = arith.constant 0.000000e+00 : f32
    %187 = vector.broadcast %cst_55 : f32 to vector<256x256xf32>
    %188 = arith.maximumf %187, %186 : vector<256x256xf32>
    %189 = arith.mulf %180, %188 : vector<256x256xf32>
    %190 = arith.truncf %189 : vector<256x256xf32> to vector<256x256xbf16>
    %cst_56 = arith.constant dense<0.000000e+00> : vector<4x256xf32>
    %191 = tpu.matmul %172, %190, %cst_56 {dimension_numbers = #tpu.dot_dimension_numbers<[1], [0], [0], [1], [0, 0, 1, 1], [], []>} : vector<4x256xbf16>, vector<256x256xbf16>, vector<4x256xf32> -> vector<4x256xf32>
    %192 = tpu.concatenate %107, %191, %157, %102, %118, %123 in 0 : vector<3x256xf32>, vector<4x256xf32>, vector<4x256xf32>, vector<5x256xf32>, vector<2x256xf32>, vector<2x256xf32> -> vector<20x256xf32>
    %c0_57 = arith.constant 0 : index
    %c0_58 = arith.constant 0 : index
    %193 = vector.load %arg12[%c0_57, %c0_58] : memref<8x180xbf16, #tpu.memory_space<vmem>>, vector<8x180xbf16>
    %c0_59 = arith.constant 0 : index
    %c0_60 = arith.constant 0 : index
    %194 = vector.load %arg13[%c0_59, %c0_60] : memref<8x1xf32, #tpu.memory_space<vmem>>, vector<8x1xf32>
    %c0_61 = arith.constant 0 : index
    %c0_62 = arith.constant 0 : index
    %195 = vector.load %arg14[%c0_61, %c0_62] : memref<8x1xf32, #tpu.memory_space<vmem>>, vector<8x1xf32>
    %c17_i32 = arith.constant 17 : i32
    %196 = tpu.dynamic_rotate %192 by %c17_i32 dim 1 : vector<20x256xf32>, i32 -> vector<20x256xf32>
    %197 = vector.extract_strided_slice %1 {offsets = [0, 0], sizes = [1, 256], strides = [1, 1]} : vector<9x256xf32> to vector<1x256xf32>
    %198 = vector.broadcast %197 : vector<1x256xf32> to vector<20x256xf32>
    %199 = arith.mulf %196, %198 : vector<20x256xf32>
    %200 = arith.truncf %199 : vector<20x256xf32> to vector<20x256xbf16>
    %c16_i32 = arith.constant 16 : i32
    %201 = tpu.dynamic_rotate %192 by %c16_i32 dim 1 : vector<20x256xf32>, i32 -> vector<20x256xf32>
    %202 = vector.extract_strided_slice %1 {offsets = [1, 0], sizes = [1, 256], strides = [1, 1]} : vector<9x256xf32> to vector<1x256xf32>
    %203 = vector.broadcast %202 : vector<1x256xf32> to vector<20x256xf32>
    %204 = arith.mulf %201, %203 : vector<20x256xf32>
    %205 = arith.truncf %204 : vector<20x256xf32> to vector<20x256xbf16>
    %c15_i32 = arith.constant 15 : i32
    %206 = tpu.dynamic_rotate %192 by %c15_i32 dim 1 : vector<20x256xf32>, i32 -> vector<20x256xf32>
    %207 = vector.extract_strided_slice %1 {offsets = [2, 0], sizes = [1, 256], strides = [1, 1]} : vector<9x256xf32> to vector<1x256xf32>
    %208 = vector.broadcast %207 : vector<1x256xf32> to vector<20x256xf32>
    %209 = arith.mulf %206, %208 : vector<20x256xf32>
    %210 = arith.truncf %209 : vector<20x256xf32> to vector<20x256xbf16>
    %c1_i32 = arith.constant 1 : i32
    %211 = tpu.dynamic_rotate %192 by %c1_i32 dim 1 : vector<20x256xf32>, i32 -> vector<20x256xf32>
    %212 = vector.extract_strided_slice %1 {offsets = [3, 0], sizes = [1, 256], strides = [1, 1]} : vector<9x256xf32> to vector<1x256xf32>
    %213 = vector.broadcast %212 : vector<1x256xf32> to vector<20x256xf32>
    %214 = arith.mulf %211, %213 : vector<20x256xf32>
    %215 = arith.truncf %214 : vector<20x256xf32> to vector<20x256xbf16>
    %216 = vector.extract_strided_slice %1 {offsets = [4, 0], sizes = [1, 256], strides = [1, 1]} : vector<9x256xf32> to vector<1x256xf32>
    %217 = vector.broadcast %216 : vector<1x256xf32> to vector<20x256xf32>
    %218 = arith.mulf %192, %217 : vector<20x256xf32>
    %219 = arith.truncf %218 : vector<20x256xf32> to vector<20x256xbf16>
    %c255_i32 = arith.constant 255 : i32
    %220 = tpu.dynamic_rotate %192 by %c255_i32 dim 1 : vector<20x256xf32>, i32 -> vector<20x256xf32>
    %221 = vector.extract_strided_slice %1 {offsets = [5, 0], sizes = [1, 256], strides = [1, 1]} : vector<9x256xf32> to vector<1x256xf32>
    %222 = vector.broadcast %221 : vector<1x256xf32> to vector<20x256xf32>
    %223 = arith.mulf %220, %222 : vector<20x256xf32>
    %224 = arith.truncf %223 : vector<20x256xf32> to vector<20x256xbf16>
    %c241_i32 = arith.constant 241 : i32
    %225 = tpu.dynamic_rotate %192 by %c241_i32 dim 1 : vector<20x256xf32>, i32 -> vector<20x256xf32>
    %226 = vector.extract_strided_slice %1 {offsets = [6, 0], sizes = [1, 256], strides = [1, 1]} : vector<9x256xf32> to vector<1x256xf32>
    %227 = vector.broadcast %226 : vector<1x256xf32> to vector<20x256xf32>
    %228 = arith.mulf %225, %227 : vector<20x256xf32>
    %229 = arith.truncf %228 : vector<20x256xf32> to vector<20x256xbf16>
    %c240_i32 = arith.constant 240 : i32
    %230 = tpu.dynamic_rotate %192 by %c240_i32 dim 1 : vector<20x256xf32>, i32 -> vector<20x256xf32>
    %231 = vector.extract_strided_slice %1 {offsets = [7, 0], sizes = [1, 256], strides = [1, 1]} : vector<9x256xf32> to vector<1x256xf32>
    %232 = vector.broadcast %231 : vector<1x256xf32> to vector<20x256xf32>
    %233 = arith.mulf %230, %232 : vector<20x256xf32>
    %234 = arith.truncf %233 : vector<20x256xf32> to vector<20x256xbf16>
    %c239_i32 = arith.constant 239 : i32
    %235 = tpu.dynamic_rotate %192 by %c239_i32 dim 1 : vector<20x256xf32>, i32 -> vector<20x256xf32>
    %236 = vector.extract_strided_slice %1 {offsets = [8, 0], sizes = [1, 256], strides = [1, 1]} : vector<9x256xf32> to vector<1x256xf32>
    %237 = vector.broadcast %236 : vector<1x256xf32> to vector<20x256xf32>
    %238 = arith.mulf %235, %237 : vector<20x256xf32>
    %239 = arith.truncf %238 : vector<20x256xf32> to vector<20x256xbf16>
    %240 = tpu.concatenate %200, %205, %210, %215, %219, %224, %229, %234, %239 in 0 : vector<20x256xbf16>, vector<20x256xbf16>, vector<20x256xbf16>, vector<20x256xbf16>, vector<20x256xbf16>, vector<20x256xbf16>, vector<20x256xbf16>, vector<20x256xbf16>, vector<20x256xbf16> -> vector<180x256xbf16>
    %cst_63 = arith.constant dense<0.000000e+00> : vector<8x256xf32>
    %241 = tpu.matmul %193, %240, %cst_63 {dimension_numbers = #tpu.dot_dimension_numbers<[1], [0], [0], [1], [0, 0, 1, 1], [], []>} : vector<8x180xbf16>, vector<180x256xbf16>, vector<8x256xf32> -> vector<8x256xf32>
    %242 = vector.broadcast %194 : vector<8x1xf32> to vector<8x256xf32>
    %243 = arith.addf %241, %242 : vector<8x256xf32>
    %cst_64 = arith.constant 0.000000e+00 : f32
    %244 = vector.broadcast %cst_64 : f32 to vector<8x256xf32>
    %245 = arith.cmpf oge, %243, %244 : vector<8x256xf32>
    %246 = vector.broadcast %195 : vector<8x1xf32> to vector<8x256xf32>
    %247 = arith.mulf %243, %246 : vector<8x256xf32>
    %248 = arith.select %245, %243, %247 : vector<8x256xi1>, vector<8x256xf32>
    %c0_65 = arith.constant 0 : index
    %c0_66 = arith.constant 0 : index
    %c0_67 = arith.constant 0 : index
    %249 = vector.load %arg15[%c0_65, %c0_66, %c0_67] : memref<3x8x72xbf16, #tpu.memory_space<vmem>>, vector<1x8x72xbf16>
    %250 = vector.shape_cast %249 : vector<1x8x72xbf16> to vector<8x72xbf16>
    %c0_68 = arith.constant 0 : index
    %c0_69 = arith.constant 0 : index
    %c0_70 = arith.constant 0 : index
    %251 = vector.load %arg16[%c0_68, %c0_69, %c0_70] : memref<3x8x1xf32, #tpu.memory_space<vmem>>, vector<1x8x1xf32>
    %252 = vector.shape_cast %251 : vector<1x8x1xf32> to vector<8x1xf32>
    %c0_71 = arith.constant 0 : index
    %c0_72 = arith.constant 0 : index
    %c0_73 = arith.constant 0 : index
    %253 = vector.load %arg17[%c0_71, %c0_72, %c0_73] : memref<3x8x1xf32, #tpu.memory_space<vmem>>, vector<1x8x1xf32>
    %254 = vector.shape_cast %253 : vector<1x8x1xf32> to vector<8x1xf32>
    %c17_i32_74 = arith.constant 17 : i32
    %255 = tpu.dynamic_rotate %248 by %c17_i32_74 dim 1 : vector<8x256xf32>, i32 -> vector<8x256xf32>
    %256 = vector.extract_strided_slice %1 {offsets = [0, 0], sizes = [1, 256], strides = [1, 1]} : vector<9x256xf32> to vector<1x256xf32>
    %257 = vector.broadcast %256 : vector<1x256xf32> to vector<8x256xf32>
    %258 = arith.mulf %255, %257 : vector<8x256xf32>
    %259 = arith.truncf %258 : vector<8x256xf32> to vector<8x256xbf16>
    %c16_i32_75 = arith.constant 16 : i32
    %260 = tpu.dynamic_rotate %248 by %c16_i32_75 dim 1 : vector<8x256xf32>, i32 -> vector<8x256xf32>
    %261 = vector.extract_strided_slice %1 {offsets = [1, 0], sizes = [1, 256], strides = [1, 1]} : vector<9x256xf32> to vector<1x256xf32>
    %262 = vector.broadcast %261 : vector<1x256xf32> to vector<8x256xf32>
    %263 = arith.mulf %260, %262 : vector<8x256xf32>
    %264 = arith.truncf %263 : vector<8x256xf32> to vector<8x256xbf16>
    %c15_i32_76 = arith.constant 15 : i32
    %265 = tpu.dynamic_rotate %248 by %c15_i32_76 dim 1 : vector<8x256xf32>, i32 -> vector<8x256xf32>
    %266 = vector.extract_strided_slice %1 {offsets = [2, 0], sizes = [1, 256], strides = [1, 1]} : vector<9x256xf32> to vector<1x256xf32>
    %267 = vector.broadcast %266 : vector<1x256xf32> to vector<8x256xf32>
    %268 = arith.mulf %265, %267 : vector<8x256xf32>
    %269 = arith.truncf %268 : vector<8x256xf32> to vector<8x256xbf16>
    %c1_i32_77 = arith.constant 1 : i32
    %270 = tpu.dynamic_rotate %248 by %c1_i32_77 dim 1 : vector<8x256xf32>, i32 -> vector<8x256xf32>
    %271 = vector.extract_strided_slice %1 {offsets = [3, 0], sizes = [1, 256], strides = [1, 1]} : vector<9x256xf32> to vector<1x256xf32>
    %272 = vector.broadcast %271 : vector<1x256xf32> to vector<8x256xf32>
    %273 = arith.mulf %270, %272 : vector<8x256xf32>
    %274 = arith.truncf %273 : vector<8x256xf32> to vector<8x256xbf16>
    %275 = vector.extract_strided_slice %1 {offsets = [4, 0], sizes = [1, 256], strides = [1, 1]} : vector<9x256xf32> to vector<1x256xf32>
    %276 = vector.broadcast %275 : vector<1x256xf32> to vector<8x256xf32>
    %277 = arith.mulf %248, %276 : vector<8x256xf32>
    %278 = arith.truncf %277 : vector<8x256xf32> to vector<8x256xbf16>
    %c255_i32_78 = arith.constant 255 : i32
    %279 = tpu.dynamic_rotate %248 by %c255_i32_78 dim 1 : vector<8x256xf32>, i32 -> vector<8x256xf32>
    %280 = vector.extract_strided_slice %1 {offsets = [5, 0], sizes = [1, 256], strides = [1, 1]} : vector<9x256xf32> to vector<1x256xf32>
    %281 = vector.broadcast %280 : vector<1x256xf32> to vector<8x256xf32>
    %282 = arith.mulf %279, %281 : vector<8x256xf32>
    %283 = arith.truncf %282 : vector<8x256xf32> to vector<8x256xbf16>
    %c241_i32_79 = arith.constant 241 : i32
    %284 = tpu.dynamic_rotate %248 by %c241_i32_79 dim 1 : vector<8x256xf32>, i32 -> vector<8x256xf32>
    %285 = vector.extract_strided_slice %1 {offsets = [6, 0], sizes = [1, 256], strides = [1, 1]} : vector<9x256xf32> to vector<1x256xf32>
    %286 = vector.broadcast %285 : vector<1x256xf32> to vector<8x256xf32>
    %287 = arith.mulf %284, %286 : vector<8x256xf32>
    %288 = arith.truncf %287 : vector<8x256xf32> to vector<8x256xbf16>
    %c240_i32_80 = arith.constant 240 : i32
    %289 = tpu.dynamic_rotate %248 by %c240_i32_80 dim 1 : vector<8x256xf32>, i32 -> vector<8x256xf32>
    %290 = vector.extract_strided_slice %1 {offsets = [7, 0], sizes = [1, 256], strides = [1, 1]} : vector<9x256xf32> to vector<1x256xf32>
    %291 = vector.broadcast %290 : vector<1x256xf32> to vector<8x256xf32>
    %292 = arith.mulf %289, %291 : vector<8x256xf32>
    %293 = arith.truncf %292 : vector<8x256xf32> to vector<8x256xbf16>
    %c239_i32_81 = arith.constant 239 : i32
    %294 = tpu.dynamic_rotate %248 by %c239_i32_81 dim 1 : vector<8x256xf32>, i32 -> vector<8x256xf32>
    %295 = vector.extract_strided_slice %1 {offsets = [8, 0], sizes = [1, 256], strides = [1, 1]} : vector<9x256xf32> to vector<1x256xf32>
    %296 = vector.broadcast %295 : vector<1x256xf32> to vector<8x256xf32>
    %297 = arith.mulf %294, %296 : vector<8x256xf32>
    %298 = arith.truncf %297 : vector<8x256xf32> to vector<8x256xbf16>
    %299 = tpu.concatenate %259, %264, %269, %274, %278, %283, %288, %293, %298 in 0 : vector<8x256xbf16>, vector<8x256xbf16>, vector<8x256xbf16>, vector<8x256xbf16>, vector<8x256xbf16>, vector<8x256xbf16>, vector<8x256xbf16>, vector<8x256xbf16>, vector<8x256xbf16> -> vector<72x256xbf16>
    %cst_82 = arith.constant dense<0.000000e+00> : vector<8x256xf32>
    %300 = tpu.matmul %250, %299, %cst_82 {dimension_numbers = #tpu.dot_dimension_numbers<[1], [0], [0], [1], [0, 0, 1, 1], [], []>} : vector<8x72xbf16>, vector<72x256xbf16>, vector<8x256xf32> -> vector<8x256xf32>
    %301 = vector.broadcast %252 : vector<8x1xf32> to vector<8x256xf32>
    %302 = arith.addf %300, %301 : vector<8x256xf32>
    %cst_83 = arith.constant 0.000000e+00 : f32
    %303 = vector.broadcast %cst_83 : f32 to vector<8x256xf32>
    %304 = arith.cmpf oge, %302, %303 : vector<8x256xf32>
    %305 = vector.broadcast %254 : vector<8x1xf32> to vector<8x256xf32>
    %306 = arith.mulf %302, %305 : vector<8x256xf32>
    %307 = arith.select %304, %302, %306 : vector<8x256xi1>, vector<8x256xf32>
    %c0_84 = arith.constant 0 : index
    %c0_85 = arith.constant 0 : index
    %c0_86 = arith.constant 0 : index
    %308 = vector.load %arg18[%c0_84, %c0_85, %c0_86] : memref<3x8x72xbf16, #tpu.memory_space<vmem>>, vector<1x8x72xbf16>
    %309 = vector.shape_cast %308 : vector<1x8x72xbf16> to vector<8x72xbf16>
    %c0_87 = arith.constant 0 : index
    %c0_88 = arith.constant 0 : index
    %c0_89 = arith.constant 0 : index
    %310 = vector.load %arg19[%c0_87, %c0_88, %c0_89] : memref<3x8x1xf32, #tpu.memory_space<vmem>>, vector<1x8x1xf32>
    %311 = vector.shape_cast %310 : vector<1x8x1xf32> to vector<8x1xf32>
    %c17_i32_90 = arith.constant 17 : i32
    %312 = tpu.dynamic_rotate %307 by %c17_i32_90 dim 1 : vector<8x256xf32>, i32 -> vector<8x256xf32>
    %313 = vector.extract_strided_slice %1 {offsets = [0, 0], sizes = [1, 256], strides = [1, 1]} : vector<9x256xf32> to vector<1x256xf32>
    %314 = vector.broadcast %313 : vector<1x256xf32> to vector<8x256xf32>
    %315 = arith.mulf %312, %314 : vector<8x256xf32>
    %316 = arith.truncf %315 : vector<8x256xf32> to vector<8x256xbf16>
    %c16_i32_91 = arith.constant 16 : i32
    %317 = tpu.dynamic_rotate %307 by %c16_i32_91 dim 1 : vector<8x256xf32>, i32 -> vector<8x256xf32>
    %318 = vector.extract_strided_slice %1 {offsets = [1, 0], sizes = [1, 256], strides = [1, 1]} : vector<9x256xf32> to vector<1x256xf32>
    %319 = vector.broadcast %318 : vector<1x256xf32> to vector<8x256xf32>
    %320 = arith.mulf %317, %319 : vector<8x256xf32>
    %321 = arith.truncf %320 : vector<8x256xf32> to vector<8x256xbf16>
    %c15_i32_92 = arith.constant 15 : i32
    %322 = tpu.dynamic_rotate %307 by %c15_i32_92 dim 1 : vector<8x256xf32>, i32 -> vector<8x256xf32>
    %323 = vector.extract_strided_slice %1 {offsets = [2, 0], sizes = [1, 256], strides = [1, 1]} : vector<9x256xf32> to vector<1x256xf32>
    %324 = vector.broadcast %323 : vector<1x256xf32> to vector<8x256xf32>
    %325 = arith.mulf %322, %324 : vector<8x256xf32>
    %326 = arith.truncf %325 : vector<8x256xf32> to vector<8x256xbf16>
    %c1_i32_93 = arith.constant 1 : i32
    %327 = tpu.dynamic_rotate %307 by %c1_i32_93 dim 1 : vector<8x256xf32>, i32 -> vector<8x256xf32>
    %328 = vector.extract_strided_slice %1 {offsets = [3, 0], sizes = [1, 256], strides = [1, 1]} : vector<9x256xf32> to vector<1x256xf32>
    %329 = vector.broadcast %328 : vector<1x256xf32> to vector<8x256xf32>
    %330 = arith.mulf %327, %329 : vector<8x256xf32>
    %331 = arith.truncf %330 : vector<8x256xf32> to vector<8x256xbf16>
    %332 = vector.extract_strided_slice %1 {offsets = [4, 0], sizes = [1, 256], strides = [1, 1]} : vector<9x256xf32> to vector<1x256xf32>
    %333 = vector.broadcast %332 : vector<1x256xf32> to vector<8x256xf32>
    %334 = arith.mulf %307, %333 : vector<8x256xf32>
    %335 = arith.truncf %334 : vector<8x256xf32> to vector<8x256xbf16>
    %c255_i32_94 = arith.constant 255 : i32
    %336 = tpu.dynamic_rotate %307 by %c255_i32_94 dim 1 : vector<8x256xf32>, i32 -> vector<8x256xf32>
    %337 = vector.extract_strided_slice %1 {offsets = [5, 0], sizes = [1, 256], strides = [1, 1]} : vector<9x256xf32> to vector<1x256xf32>
    %338 = vector.broadcast %337 : vector<1x256xf32> to vector<8x256xf32>
    %339 = arith.mulf %336, %338 : vector<8x256xf32>
    %340 = arith.truncf %339 : vector<8x256xf32> to vector<8x256xbf16>
    %c241_i32_95 = arith.constant 241 : i32
    %341 = tpu.dynamic_rotate %307 by %c241_i32_95 dim 1 : vector<8x256xf32>, i32 -> vector<8x256xf32>
    %342 = vector.extract_strided_slice %1 {offsets = [6, 0], sizes = [1, 256], strides = [1, 1]} : vector<9x256xf32> to vector<1x256xf32>
    %343 = vector.broadcast %342 : vector<1x256xf32> to vector<8x256xf32>
    %344 = arith.mulf %341, %343 : vector<8x256xf32>
    %345 = arith.truncf %344 : vector<8x256xf32> to vector<8x256xbf16>
    %c240_i32_96 = arith.constant 240 : i32
    %346 = tpu.dynamic_rotate %307 by %c240_i32_96 dim 1 : vector<8x256xf32>, i32 -> vector<8x256xf32>
    %347 = vector.extract_strided_slice %1 {offsets = [7, 0], sizes = [1, 256], strides = [1, 1]} : vector<9x256xf32> to vector<1x256xf32>
    %348 = vector.broadcast %347 : vector<1x256xf32> to vector<8x256xf32>
    %349 = arith.mulf %346, %348 : vector<8x256xf32>
    %350 = arith.truncf %349 : vector<8x256xf32> to vector<8x256xbf16>
    %c239_i32_97 = arith.constant 239 : i32
    %351 = tpu.dynamic_rotate %307 by %c239_i32_97 dim 1 : vector<8x256xf32>, i32 -> vector<8x256xf32>
    %352 = vector.extract_strided_slice %1 {offsets = [8, 0], sizes = [1, 256], strides = [1, 1]} : vector<9x256xf32> to vector<1x256xf32>
    %353 = vector.broadcast %352 : vector<1x256xf32> to vector<8x256xf32>
    %354 = arith.mulf %351, %353 : vector<8x256xf32>
    %355 = arith.truncf %354 : vector<8x256xf32> to vector<8x256xbf16>
    %356 = tpu.concatenate %316, %321, %326, %331, %335, %340, %345, %350, %355 in 0 : vector<8x256xbf16>, vector<8x256xbf16>, vector<8x256xbf16>, vector<8x256xbf16>, vector<8x256xbf16>, vector<8x256xbf16>, vector<8x256xbf16>, vector<8x256xbf16>, vector<8x256xbf16> -> vector<72x256xbf16>
    %cst_98 = arith.constant dense<0.000000e+00> : vector<8x256xf32>
    %357 = tpu.matmul %309, %356, %cst_98 {dimension_numbers = #tpu.dot_dimension_numbers<[1], [0], [0], [1], [0, 0, 1, 1], [], []>} : vector<8x72xbf16>, vector<72x256xbf16>, vector<8x256xf32> -> vector<8x256xf32>
    %358 = vector.broadcast %311 : vector<8x1xf32> to vector<8x256xf32>
    %359 = arith.addf %357, %358 : vector<8x256xf32>
    %360 = arith.addf %248, %359 : vector<8x256xf32>
    %c1 = arith.constant 1 : index
    %c0_99 = arith.constant 0 : index
    %c0_100 = arith.constant 0 : index
    %361 = vector.load %arg15[%c1, %c0_99, %c0_100] : memref<3x8x72xbf16, #tpu.memory_space<vmem>>, vector<1x8x72xbf16>
    %362 = vector.shape_cast %361 : vector<1x8x72xbf16> to vector<8x72xbf16>
    %c1_101 = arith.constant 1 : index
    %c0_102 = arith.constant 0 : index
    %c0_103 = arith.constant 0 : index
    %363 = vector.load %arg16[%c1_101, %c0_102, %c0_103] : memref<3x8x1xf32, #tpu.memory_space<vmem>>, vector<1x8x1xf32>
    %364 = vector.shape_cast %363 : vector<1x8x1xf32> to vector<8x1xf32>
    %c1_104 = arith.constant 1 : index
    %c0_105 = arith.constant 0 : index
    %c0_106 = arith.constant 0 : index
    %365 = vector.load %arg17[%c1_104, %c0_105, %c0_106] : memref<3x8x1xf32, #tpu.memory_space<vmem>>, vector<1x8x1xf32>
    %366 = vector.shape_cast %365 : vector<1x8x1xf32> to vector<8x1xf32>
    %c17_i32_107 = arith.constant 17 : i32
    %367 = tpu.dynamic_rotate %360 by %c17_i32_107 dim 1 : vector<8x256xf32>, i32 -> vector<8x256xf32>
    %368 = vector.extract_strided_slice %1 {offsets = [0, 0], sizes = [1, 256], strides = [1, 1]} : vector<9x256xf32> to vector<1x256xf32>
    %369 = vector.broadcast %368 : vector<1x256xf32> to vector<8x256xf32>
    %370 = arith.mulf %367, %369 : vector<8x256xf32>
    %371 = arith.truncf %370 : vector<8x256xf32> to vector<8x256xbf16>
    %c16_i32_108 = arith.constant 16 : i32
    %372 = tpu.dynamic_rotate %360 by %c16_i32_108 dim 1 : vector<8x256xf32>, i32 -> vector<8x256xf32>
    %373 = vector.extract_strided_slice %1 {offsets = [1, 0], sizes = [1, 256], strides = [1, 1]} : vector<9x256xf32> to vector<1x256xf32>
    %374 = vector.broadcast %373 : vector<1x256xf32> to vector<8x256xf32>
    %375 = arith.mulf %372, %374 : vector<8x256xf32>
    %376 = arith.truncf %375 : vector<8x256xf32> to vector<8x256xbf16>
    %c15_i32_109 = arith.constant 15 : i32
    %377 = tpu.dynamic_rotate %360 by %c15_i32_109 dim 1 : vector<8x256xf32>, i32 -> vector<8x256xf32>
    %378 = vector.extract_strided_slice %1 {offsets = [2, 0], sizes = [1, 256], strides = [1, 1]} : vector<9x256xf32> to vector<1x256xf32>
    %379 = vector.broadcast %378 : vector<1x256xf32> to vector<8x256xf32>
    %380 = arith.mulf %377, %379 : vector<8x256xf32>
    %381 = arith.truncf %380 : vector<8x256xf32> to vector<8x256xbf16>
    %c1_i32_110 = arith.constant 1 : i32
    %382 = tpu.dynamic_rotate %360 by %c1_i32_110 dim 1 : vector<8x256xf32>, i32 -> vector<8x256xf32>
    %383 = vector.extract_strided_slice %1 {offsets = [3, 0], sizes = [1, 256], strides = [1, 1]} : vector<9x256xf32> to vector<1x256xf32>
    %384 = vector.broadcast %383 : vector<1x256xf32> to vector<8x256xf32>
    %385 = arith.mulf %382, %384 : vector<8x256xf32>
    %386 = arith.truncf %385 : vector<8x256xf32> to vector<8x256xbf16>
    %387 = vector.extract_strided_slice %1 {offsets = [4, 0], sizes = [1, 256], strides = [1, 1]} : vector<9x256xf32> to vector<1x256xf32>
    %388 = vector.broadcast %387 : vector<1x256xf32> to vector<8x256xf32>
    %389 = arith.mulf %360, %388 : vector<8x256xf32>
    %390 = arith.truncf %389 : vector<8x256xf32> to vector<8x256xbf16>
    %c255_i32_111 = arith.constant 255 : i32
    %391 = tpu.dynamic_rotate %360 by %c255_i32_111 dim 1 : vector<8x256xf32>, i32 -> vector<8x256xf32>
    %392 = vector.extract_strided_slice %1 {offsets = [5, 0], sizes = [1, 256], strides = [1, 1]} : vector<9x256xf32> to vector<1x256xf32>
    %393 = vector.broadcast %392 : vector<1x256xf32> to vector<8x256xf32>
    %394 = arith.mulf %391, %393 : vector<8x256xf32>
    %395 = arith.truncf %394 : vector<8x256xf32> to vector<8x256xbf16>
    %c241_i32_112 = arith.constant 241 : i32
    %396 = tpu.dynamic_rotate %360 by %c241_i32_112 dim 1 : vector<8x256xf32>, i32 -> vector<8x256xf32>
    %397 = vector.extract_strided_slice %1 {offsets = [6, 0], sizes = [1, 256], strides = [1, 1]} : vector<9x256xf32> to vector<1x256xf32>
    %398 = vector.broadcast %397 : vector<1x256xf32> to vector<8x256xf32>
    %399 = arith.mulf %396, %398 : vector<8x256xf32>
    %400 = arith.truncf %399 : vector<8x256xf32> to vector<8x256xbf16>
    %c240_i32_113 = arith.constant 240 : i32
    %401 = tpu.dynamic_rotate %360 by %c240_i32_113 dim 1 : vector<8x256xf32>, i32 -> vector<8x256xf32>
    %402 = vector.extract_strided_slice %1 {offsets = [7, 0], sizes = [1, 256], strides = [1, 1]} : vector<9x256xf32> to vector<1x256xf32>
    %403 = vector.broadcast %402 : vector<1x256xf32> to vector<8x256xf32>
    %404 = arith.mulf %401, %403 : vector<8x256xf32>
    %405 = arith.truncf %404 : vector<8x256xf32> to vector<8x256xbf16>
    %c239_i32_114 = arith.constant 239 : i32
    %406 = tpu.dynamic_rotate %360 by %c239_i32_114 dim 1 : vector<8x256xf32>, i32 -> vector<8x256xf32>
    %407 = vector.extract_strided_slice %1 {offsets = [8, 0], sizes = [1, 256], strides = [1, 1]} : vector<9x256xf32> to vector<1x256xf32>
    %408 = vector.broadcast %407 : vector<1x256xf32> to vector<8x256xf32>
    %409 = arith.mulf %406, %408 : vector<8x256xf32>
    %410 = arith.truncf %409 : vector<8x256xf32> to vector<8x256xbf16>
    %411 = tpu.concatenate %371, %376, %381, %386, %390, %395, %400, %405, %410 in 0 : vector<8x256xbf16>, vector<8x256xbf16>, vector<8x256xbf16>, vector<8x256xbf16>, vector<8x256xbf16>, vector<8x256xbf16>, vector<8x256xbf16>, vector<8x256xbf16>, vector<8x256xbf16> -> vector<72x256xbf16>
    %cst_115 = arith.constant dense<0.000000e+00> : vector<8x256xf32>
    %412 = tpu.matmul %362, %411, %cst_115 {dimension_numbers = #tpu.dot_dimension_numbers<[1], [0], [0], [1], [0, 0, 1, 1], [], []>} : vector<8x72xbf16>, vector<72x256xbf16>, vector<8x256xf32> -> vector<8x256xf32>
    %413 = vector.broadcast %364 : vector<8x1xf32> to vector<8x256xf32>
    %414 = arith.addf %412, %413 : vector<8x256xf32>
    %cst_116 = arith.constant 0.000000e+00 : f32
    %415 = vector.broadcast %cst_116 : f32 to vector<8x256xf32>
    %416 = arith.cmpf oge, %414, %415 : vector<8x256xf32>
    %417 = vector.broadcast %366 : vector<8x1xf32> to vector<8x256xf32>
    %418 = arith.mulf %414, %417 : vector<8x256xf32>
    %419 = arith.select %416, %414, %418 : vector<8x256xi1>, vector<8x256xf32>
    %c1_117 = arith.constant 1 : index
    %c0_118 = arith.constant 0 : index
    %c0_119 = arith.constant 0 : index
    %420 = vector.load %arg18[%c1_117, %c0_118, %c0_119] : memref<3x8x72xbf16, #tpu.memory_space<vmem>>, vector<1x8x72xbf16>
    %421 = vector.shape_cast %420 : vector<1x8x72xbf16> to vector<8x72xbf16>
    %c1_120 = arith.constant 1 : index
    %c0_121 = arith.constant 0 : index
    %c0_122 = arith.constant 0 : index
    %422 = vector.load %arg19[%c1_120, %c0_121, %c0_122] : memref<3x8x1xf32, #tpu.memory_space<vmem>>, vector<1x8x1xf32>
    %423 = vector.shape_cast %422 : vector<1x8x1xf32> to vector<8x1xf32>
    %c17_i32_123 = arith.constant 17 : i32
    %424 = tpu.dynamic_rotate %419 by %c17_i32_123 dim 1 : vector<8x256xf32>, i32 -> vector<8x256xf32>
    %425 = vector.extract_strided_slice %1 {offsets = [0, 0], sizes = [1, 256], strides = [1, 1]} : vector<9x256xf32> to vector<1x256xf32>
    %426 = vector.broadcast %425 : vector<1x256xf32> to vector<8x256xf32>
    %427 = arith.mulf %424, %426 : vector<8x256xf32>
    %428 = arith.truncf %427 : vector<8x256xf32> to vector<8x256xbf16>
    %c16_i32_124 = arith.constant 16 : i32
    %429 = tpu.dynamic_rotate %419 by %c16_i32_124 dim 1 : vector<8x256xf32>, i32 -> vector<8x256xf32>
    %430 = vector.extract_strided_slice %1 {offsets = [1, 0], sizes = [1, 256], strides = [1, 1]} : vector<9x256xf32> to vector<1x256xf32>
    %431 = vector.broadcast %430 : vector<1x256xf32> to vector<8x256xf32>
    %432 = arith.mulf %429, %431 : vector<8x256xf32>
    %433 = arith.truncf %432 : vector<8x256xf32> to vector<8x256xbf16>
    %c15_i32_125 = arith.constant 15 : i32
    %434 = tpu.dynamic_rotate %419 by %c15_i32_125 dim 1 : vector<8x256xf32>, i32 -> vector<8x256xf32>
    %435 = vector.extract_strided_slice %1 {offsets = [2, 0], sizes = [1, 256], strides = [1, 1]} : vector<9x256xf32> to vector<1x256xf32>
    %436 = vector.broadcast %435 : vector<1x256xf32> to vector<8x256xf32>
    %437 = arith.mulf %434, %436 : vector<8x256xf32>
    %438 = arith.truncf %437 : vector<8x256xf32> to vector<8x256xbf16>
    %c1_i32_126 = arith.constant 1 : i32
    %439 = tpu.dynamic_rotate %419 by %c1_i32_126 dim 1 : vector<8x256xf32>, i32 -> vector<8x256xf32>
    %440 = vector.extract_strided_slice %1 {offsets = [3, 0], sizes = [1, 256], strides = [1, 1]} : vector<9x256xf32> to vector<1x256xf32>
    %441 = vector.broadcast %440 : vector<1x256xf32> to vector<8x256xf32>
    %442 = arith.mulf %439, %441 : vector<8x256xf32>
    %443 = arith.truncf %442 : vector<8x256xf32> to vector<8x256xbf16>
    %444 = vector.extract_strided_slice %1 {offsets = [4, 0], sizes = [1, 256], strides = [1, 1]} : vector<9x256xf32> to vector<1x256xf32>
    %445 = vector.broadcast %444 : vector<1x256xf32> to vector<8x256xf32>
    %446 = arith.mulf %419, %445 : vector<8x256xf32>
    %447 = arith.truncf %446 : vector<8x256xf32> to vector<8x256xbf16>
    %c255_i32_127 = arith.constant 255 : i32
    %448 = tpu.dynamic_rotate %419 by %c255_i32_127 dim 1 : vector<8x256xf32>, i32 -> vector<8x256xf32>
    %449 = vector.extract_strided_slice %1 {offsets = [5, 0], sizes = [1, 256], strides = [1, 1]} : vector<9x256xf32> to vector<1x256xf32>
    %450 = vector.broadcast %449 : vector<1x256xf32> to vector<8x256xf32>
    %451 = arith.mulf %448, %450 : vector<8x256xf32>
    %452 = arith.truncf %451 : vector<8x256xf32> to vector<8x256xbf16>
    %c241_i32_128 = arith.constant 241 : i32
    %453 = tpu.dynamic_rotate %419 by %c241_i32_128 dim 1 : vector<8x256xf32>, i32 -> vector<8x256xf32>
    %454 = vector.extract_strided_slice %1 {offsets = [6, 0], sizes = [1, 256], strides = [1, 1]} : vector<9x256xf32> to vector<1x256xf32>
    %455 = vector.broadcast %454 : vector<1x256xf32> to vector<8x256xf32>
    %456 = arith.mulf %453, %455 : vector<8x256xf32>
    %457 = arith.truncf %456 : vector<8x256xf32> to vector<8x256xbf16>
    %c240_i32_129 = arith.constant 240 : i32
    %458 = tpu.dynamic_rotate %419 by %c240_i32_129 dim 1 : vector<8x256xf32>, i32 -> vector<8x256xf32>
    %459 = vector.extract_strided_slice %1 {offsets = [7, 0], sizes = [1, 256], strides = [1, 1]} : vector<9x256xf32> to vector<1x256xf32>
    %460 = vector.broadcast %459 : vector<1x256xf32> to vector<8x256xf32>
    %461 = arith.mulf %458, %460 : vector<8x256xf32>
    %462 = arith.truncf %461 : vector<8x256xf32> to vector<8x256xbf16>
    %c239_i32_130 = arith.constant 239 : i32
    %463 = tpu.dynamic_rotate %419 by %c239_i32_130 dim 1 : vector<8x256xf32>, i32 -> vector<8x256xf32>
    %464 = vector.extract_strided_slice %1 {offsets = [8, 0], sizes = [1, 256], strides = [1, 1]} : vector<9x256xf32> to vector<1x256xf32>
    %465 = vector.broadcast %464 : vector<1x256xf32> to vector<8x256xf32>
    %466 = arith.mulf %463, %465 : vector<8x256xf32>
    %467 = arith.truncf %466 : vector<8x256xf32> to vector<8x256xbf16>
    %468 = tpu.concatenate %428, %433, %438, %443, %447, %452, %457, %462, %467 in 0 : vector<8x256xbf16>, vector<8x256xbf16>, vector<8x256xbf16>, vector<8x256xbf16>, vector<8x256xbf16>, vector<8x256xbf16>, vector<8x256xbf16>, vector<8x256xbf16>, vector<8x256xbf16> -> vector<72x256xbf16>
    %cst_131 = arith.constant dense<0.000000e+00> : vector<8x256xf32>
    %469 = tpu.matmul %421, %468, %cst_131 {dimension_numbers = #tpu.dot_dimension_numbers<[1], [0], [0], [1], [0, 0, 1, 1], [], []>} : vector<8x72xbf16>, vector<72x256xbf16>, vector<8x256xf32> -> vector<8x256xf32>
    %470 = vector.broadcast %423 : vector<8x1xf32> to vector<8x256xf32>
    %471 = arith.addf %469, %470 : vector<8x256xf32>
    %472 = arith.addf %360, %471 : vector<8x256xf32>
    %c2 = arith.constant 2 : index
    %c0_132 = arith.constant 0 : index
    %c0_133 = arith.constant 0 : index
    %473 = vector.load %arg15[%c2, %c0_132, %c0_133] : memref<3x8x72xbf16, #tpu.memory_space<vmem>>, vector<1x8x72xbf16>
    %474 = vector.shape_cast %473 : vector<1x8x72xbf16> to vector<8x72xbf16>
    %c2_134 = arith.constant 2 : index
    %c0_135 = arith.constant 0 : index
    %c0_136 = arith.constant 0 : index
    %475 = vector.load %arg16[%c2_134, %c0_135, %c0_136] : memref<3x8x1xf32, #tpu.memory_space<vmem>>, vector<1x8x1xf32>
    %476 = vector.shape_cast %475 : vector<1x8x1xf32> to vector<8x1xf32>
    %c2_137 = arith.constant 2 : index
    %c0_138 = arith.constant 0 : index
    %c0_139 = arith.constant 0 : index
    %477 = vector.load %arg17[%c2_137, %c0_138, %c0_139] : memref<3x8x1xf32, #tpu.memory_space<vmem>>, vector<1x8x1xf32>
    %478 = vector.shape_cast %477 : vector<1x8x1xf32> to vector<8x1xf32>
    %c17_i32_140 = arith.constant 17 : i32
    %479 = tpu.dynamic_rotate %472 by %c17_i32_140 dim 1 : vector<8x256xf32>, i32 -> vector<8x256xf32>
    %480 = vector.extract_strided_slice %1 {offsets = [0, 0], sizes = [1, 256], strides = [1, 1]} : vector<9x256xf32> to vector<1x256xf32>
    %481 = vector.broadcast %480 : vector<1x256xf32> to vector<8x256xf32>
    %482 = arith.mulf %479, %481 : vector<8x256xf32>
    %483 = arith.truncf %482 : vector<8x256xf32> to vector<8x256xbf16>
    %c16_i32_141 = arith.constant 16 : i32
    %484 = tpu.dynamic_rotate %472 by %c16_i32_141 dim 1 : vector<8x256xf32>, i32 -> vector<8x256xf32>
    %485 = vector.extract_strided_slice %1 {offsets = [1, 0], sizes = [1, 256], strides = [1, 1]} : vector<9x256xf32> to vector<1x256xf32>
    %486 = vector.broadcast %485 : vector<1x256xf32> to vector<8x256xf32>
    %487 = arith.mulf %484, %486 : vector<8x256xf32>
    %488 = arith.truncf %487 : vector<8x256xf32> to vector<8x256xbf16>
    %c15_i32_142 = arith.constant 15 : i32
    %489 = tpu.dynamic_rotate %472 by %c15_i32_142 dim 1 : vector<8x256xf32>, i32 -> vector<8x256xf32>
    %490 = vector.extract_strided_slice %1 {offsets = [2, 0], sizes = [1, 256], strides = [1, 1]} : vector<9x256xf32> to vector<1x256xf32>
    %491 = vector.broadcast %490 : vector<1x256xf32> to vector<8x256xf32>
    %492 = arith.mulf %489, %491 : vector<8x256xf32>
    %493 = arith.truncf %492 : vector<8x256xf32> to vector<8x256xbf16>
    %c1_i32_143 = arith.constant 1 : i32
    %494 = tpu.dynamic_rotate %472 by %c1_i32_143 dim 1 : vector<8x256xf32>, i32 -> vector<8x256xf32>
    %495 = vector.extract_strided_slice %1 {offsets = [3, 0], sizes = [1, 256], strides = [1, 1]} : vector<9x256xf32> to vector<1x256xf32>
    %496 = vector.broadcast %495 : vector<1x256xf32> to vector<8x256xf32>
    %497 = arith.mulf %494, %496 : vector<8x256xf32>
    %498 = arith.truncf %497 : vector<8x256xf32> to vector<8x256xbf16>
    %499 = vector.extract_strided_slice %1 {offsets = [4, 0], sizes = [1, 256], strides = [1, 1]} : vector<9x256xf32> to vector<1x256xf32>
    %500 = vector.broadcast %499 : vector<1x256xf32> to vector<8x256xf32>
    %501 = arith.mulf %472, %500 : vector<8x256xf32>
    %502 = arith.truncf %501 : vector<8x256xf32> to vector<8x256xbf16>
    %c255_i32_144 = arith.constant 255 : i32
    %503 = tpu.dynamic_rotate %472 by %c255_i32_144 dim 1 : vector<8x256xf32>, i32 -> vector<8x256xf32>
    %504 = vector.extract_strided_slice %1 {offsets = [5, 0], sizes = [1, 256], strides = [1, 1]} : vector<9x256xf32> to vector<1x256xf32>
    %505 = vector.broadcast %504 : vector<1x256xf32> to vector<8x256xf32>
    %506 = arith.mulf %503, %505 : vector<8x256xf32>
    %507 = arith.truncf %506 : vector<8x256xf32> to vector<8x256xbf16>
    %c241_i32_145 = arith.constant 241 : i32
    %508 = tpu.dynamic_rotate %472 by %c241_i32_145 dim 1 : vector<8x256xf32>, i32 -> vector<8x256xf32>
    %509 = vector.extract_strided_slice %1 {offsets = [6, 0], sizes = [1, 256], strides = [1, 1]} : vector<9x256xf32> to vector<1x256xf32>
    %510 = vector.broadcast %509 : vector<1x256xf32> to vector<8x256xf32>
    %511 = arith.mulf %508, %510 : vector<8x256xf32>
    %512 = arith.truncf %511 : vector<8x256xf32> to vector<8x256xbf16>
    %c240_i32_146 = arith.constant 240 : i32
    %513 = tpu.dynamic_rotate %472 by %c240_i32_146 dim 1 : vector<8x256xf32>, i32 -> vector<8x256xf32>
    %514 = vector.extract_strided_slice %1 {offsets = [7, 0], sizes = [1, 256], strides = [1, 1]} : vector<9x256xf32> to vector<1x256xf32>
    %515 = vector.broadcast %514 : vector<1x256xf32> to vector<8x256xf32>
    %516 = arith.mulf %513, %515 : vector<8x256xf32>
    %517 = arith.truncf %516 : vector<8x256xf32> to vector<8x256xbf16>
    %c239_i32_147 = arith.constant 239 : i32
    %518 = tpu.dynamic_rotate %472 by %c239_i32_147 dim 1 : vector<8x256xf32>, i32 -> vector<8x256xf32>
    %519 = vector.extract_strided_slice %1 {offsets = [8, 0], sizes = [1, 256], strides = [1, 1]} : vector<9x256xf32> to vector<1x256xf32>
    %520 = vector.broadcast %519 : vector<1x256xf32> to vector<8x256xf32>
    %521 = arith.mulf %518, %520 : vector<8x256xf32>
    %522 = arith.truncf %521 : vector<8x256xf32> to vector<8x256xbf16>
    %523 = tpu.concatenate %483, %488, %493, %498, %502, %507, %512, %517, %522 in 0 : vector<8x256xbf16>, vector<8x256xbf16>, vector<8x256xbf16>, vector<8x256xbf16>, vector<8x256xbf16>, vector<8x256xbf16>, vector<8x256xbf16>, vector<8x256xbf16>, vector<8x256xbf16> -> vector<72x256xbf16>
    %cst_148 = arith.constant dense<0.000000e+00> : vector<8x256xf32>
    %524 = tpu.matmul %474, %523, %cst_148 {dimension_numbers = #tpu.dot_dimension_numbers<[1], [0], [0], [1], [0, 0, 1, 1], [], []>} : vector<8x72xbf16>, vector<72x256xbf16>, vector<8x256xf32> -> vector<8x256xf32>
    %525 = vector.broadcast %476 : vector<8x1xf32> to vector<8x256xf32>
    %526 = arith.addf %524, %525 : vector<8x256xf32>
    %cst_149 = arith.constant 0.000000e+00 : f32
    %527 = vector.broadcast %cst_149 : f32 to vector<8x256xf32>
    %528 = arith.cmpf oge, %526, %527 : vector<8x256xf32>
    %529 = vector.broadcast %478 : vector<8x1xf32> to vector<8x256xf32>
    %530 = arith.mulf %526, %529 : vector<8x256xf32>
    %531 = arith.select %528, %526, %530 : vector<8x256xi1>, vector<8x256xf32>
    %c2_150 = arith.constant 2 : index
    %c0_151 = arith.constant 0 : index
    %c0_152 = arith.constant 0 : index
    %532 = vector.load %arg18[%c2_150, %c0_151, %c0_152] : memref<3x8x72xbf16, #tpu.memory_space<vmem>>, vector<1x8x72xbf16>
    %533 = vector.shape_cast %532 : vector<1x8x72xbf16> to vector<8x72xbf16>
    %c2_153 = arith.constant 2 : index
    %c0_154 = arith.constant 0 : index
    %c0_155 = arith.constant 0 : index
    %534 = vector.load %arg19[%c2_153, %c0_154, %c0_155] : memref<3x8x1xf32, #tpu.memory_space<vmem>>, vector<1x8x1xf32>
    %535 = vector.shape_cast %534 : vector<1x8x1xf32> to vector<8x1xf32>
    %c17_i32_156 = arith.constant 17 : i32
    %536 = tpu.dynamic_rotate %531 by %c17_i32_156 dim 1 : vector<8x256xf32>, i32 -> vector<8x256xf32>
    %537 = vector.extract_strided_slice %1 {offsets = [0, 0], sizes = [1, 256], strides = [1, 1]} : vector<9x256xf32> to vector<1x256xf32>
    %538 = vector.broadcast %537 : vector<1x256xf32> to vector<8x256xf32>
    %539 = arith.mulf %536, %538 : vector<8x256xf32>
    %540 = arith.truncf %539 : vector<8x256xf32> to vector<8x256xbf16>
    %c16_i32_157 = arith.constant 16 : i32
    %541 = tpu.dynamic_rotate %531 by %c16_i32_157 dim 1 : vector<8x256xf32>, i32 -> vector<8x256xf32>
    %542 = vector.extract_strided_slice %1 {offsets = [1, 0], sizes = [1, 256], strides = [1, 1]} : vector<9x256xf32> to vector<1x256xf32>
    %543 = vector.broadcast %542 : vector<1x256xf32> to vector<8x256xf32>
    %544 = arith.mulf %541, %543 : vector<8x256xf32>
    %545 = arith.truncf %544 : vector<8x256xf32> to vector<8x256xbf16>
    %c15_i32_158 = arith.constant 15 : i32
    %546 = tpu.dynamic_rotate %531 by %c15_i32_158 dim 1 : vector<8x256xf32>, i32 -> vector<8x256xf32>
    %547 = vector.extract_strided_slice %1 {offsets = [2, 0], sizes = [1, 256], strides = [1, 1]} : vector<9x256xf32> to vector<1x256xf32>
    %548 = vector.broadcast %547 : vector<1x256xf32> to vector<8x256xf32>
    %549 = arith.mulf %546, %548 : vector<8x256xf32>
    %550 = arith.truncf %549 : vector<8x256xf32> to vector<8x256xbf16>
    %c1_i32_159 = arith.constant 1 : i32
    %551 = tpu.dynamic_rotate %531 by %c1_i32_159 dim 1 : vector<8x256xf32>, i32 -> vector<8x256xf32>
    %552 = vector.extract_strided_slice %1 {offsets = [3, 0], sizes = [1, 256], strides = [1, 1]} : vector<9x256xf32> to vector<1x256xf32>
    %553 = vector.broadcast %552 : vector<1x256xf32> to vector<8x256xf32>
    %554 = arith.mulf %551, %553 : vector<8x256xf32>
    %555 = arith.truncf %554 : vector<8x256xf32> to vector<8x256xbf16>
    %556 = vector.extract_strided_slice %1 {offsets = [4, 0], sizes = [1, 256], strides = [1, 1]} : vector<9x256xf32> to vector<1x256xf32>
    %557 = vector.broadcast %556 : vector<1x256xf32> to vector<8x256xf32>
    %558 = arith.mulf %531, %557 : vector<8x256xf32>
    %559 = arith.truncf %558 : vector<8x256xf32> to vector<8x256xbf16>
    %c255_i32_160 = arith.constant 255 : i32
    %560 = tpu.dynamic_rotate %531 by %c255_i32_160 dim 1 : vector<8x256xf32>, i32 -> vector<8x256xf32>
    %561 = vector.extract_strided_slice %1 {offsets = [5, 0], sizes = [1, 256], strides = [1, 1]} : vector<9x256xf32> to vector<1x256xf32>
    %562 = vector.broadcast %561 : vector<1x256xf32> to vector<8x256xf32>
    %563 = arith.mulf %560, %562 : vector<8x256xf32>
    %564 = arith.truncf %563 : vector<8x256xf32> to vector<8x256xbf16>
    %c241_i32_161 = arith.constant 241 : i32
    %565 = tpu.dynamic_rotate %531 by %c241_i32_161 dim 1 : vector<8x256xf32>, i32 -> vector<8x256xf32>
    %566 = vector.extract_strided_slice %1 {offsets = [6, 0], sizes = [1, 256], strides = [1, 1]} : vector<9x256xf32> to vector<1x256xf32>
    %567 = vector.broadcast %566 : vector<1x256xf32> to vector<8x256xf32>
    %568 = arith.mulf %565, %567 : vector<8x256xf32>
    %569 = arith.truncf %568 : vector<8x256xf32> to vector<8x256xbf16>
    %c240_i32_162 = arith.constant 240 : i32
    %570 = tpu.dynamic_rotate %531 by %c240_i32_162 dim 1 : vector<8x256xf32>, i32 -> vector<8x256xf32>
    %571 = vector.extract_strided_slice %1 {offsets = [7, 0], sizes = [1, 256], strides = [1, 1]} : vector<9x256xf32> to vector<1x256xf32>
    %572 = vector.broadcast %571 : vector<1x256xf32> to vector<8x256xf32>
    %573 = arith.mulf %570, %572 : vector<8x256xf32>
    %574 = arith.truncf %573 : vector<8x256xf32> to vector<8x256xbf16>
    %c239_i32_163 = arith.constant 239 : i32
    %575 = tpu.dynamic_rotate %531 by %c239_i32_163 dim 1 : vector<8x256xf32>, i32 -> vector<8x256xf32>
    %576 = vector.extract_strided_slice %1 {offsets = [8, 0], sizes = [1, 256], strides = [1, 1]} : vector<9x256xf32> to vector<1x256xf32>
    %577 = vector.broadcast %576 : vector<1x256xf32> to vector<8x256xf32>
    %578 = arith.mulf %575, %577 : vector<8x256xf32>
    %579 = arith.truncf %578 : vector<8x256xf32> to vector<8x256xbf16>
    %580 = tpu.concatenate %540, %545, %550, %555, %559, %564, %569, %574, %579 in 0 : vector<8x256xbf16>, vector<8x256xbf16>, vector<8x256xbf16>, vector<8x256xbf16>, vector<8x256xbf16>, vector<8x256xbf16>, vector<8x256xbf16>, vector<8x256xbf16>, vector<8x256xbf16> -> vector<72x256xbf16>
    %cst_164 = arith.constant dense<0.000000e+00> : vector<8x256xf32>
    %581 = tpu.matmul %533, %580, %cst_164 {dimension_numbers = #tpu.dot_dimension_numbers<[1], [0], [0], [1], [0, 0, 1, 1], [], []>} : vector<8x72xbf16>, vector<72x256xbf16>, vector<8x256xf32> -> vector<8x256xf32>
    %582 = vector.broadcast %535 : vector<8x1xf32> to vector<8x256xf32>
    %583 = arith.addf %581, %582 : vector<8x256xf32>
    %584 = arith.addf %472, %583 : vector<8x256xf32>
    %c0_165 = arith.constant 0 : index
    %c0_166 = arith.constant 0 : index
    %585 = vector.load %arg20[%c0_165, %c0_166] : memref<3x72xbf16, #tpu.memory_space<vmem>>, vector<3x72xbf16>
    %c0_167 = arith.constant 0 : index
    %c0_168 = arith.constant 0 : index
    %586 = vector.load %arg21[%c0_167, %c0_168] : memref<3x1xf32, #tpu.memory_space<vmem>>, vector<3x1xf32>
    %c17_i32_169 = arith.constant 17 : i32
    %587 = tpu.dynamic_rotate %584 by %c17_i32_169 dim 1 : vector<8x256xf32>, i32 -> vector<8x256xf32>
    %588 = vector.extract_strided_slice %1 {offsets = [0, 0], sizes = [1, 256], strides = [1, 1]} : vector<9x256xf32> to vector<1x256xf32>
    %589 = vector.broadcast %588 : vector<1x256xf32> to vector<8x256xf32>
    %590 = arith.mulf %587, %589 : vector<8x256xf32>
    %591 = arith.truncf %590 : vector<8x256xf32> to vector<8x256xbf16>
    %c16_i32_170 = arith.constant 16 : i32
    %592 = tpu.dynamic_rotate %584 by %c16_i32_170 dim 1 : vector<8x256xf32>, i32 -> vector<8x256xf32>
    %593 = vector.extract_strided_slice %1 {offsets = [1, 0], sizes = [1, 256], strides = [1, 1]} : vector<9x256xf32> to vector<1x256xf32>
    %594 = vector.broadcast %593 : vector<1x256xf32> to vector<8x256xf32>
    %595 = arith.mulf %592, %594 : vector<8x256xf32>
    %596 = arith.truncf %595 : vector<8x256xf32> to vector<8x256xbf16>
    %c15_i32_171 = arith.constant 15 : i32
    %597 = tpu.dynamic_rotate %584 by %c15_i32_171 dim 1 : vector<8x256xf32>, i32 -> vector<8x256xf32>
    %598 = vector.extract_strided_slice %1 {offsets = [2, 0], sizes = [1, 256], strides = [1, 1]} : vector<9x256xf32> to vector<1x256xf32>
    %599 = vector.broadcast %598 : vector<1x256xf32> to vector<8x256xf32>
    %600 = arith.mulf %597, %599 : vector<8x256xf32>
    %601 = arith.truncf %600 : vector<8x256xf32> to vector<8x256xbf16>
    %c1_i32_172 = arith.constant 1 : i32
    %602 = tpu.dynamic_rotate %584 by %c1_i32_172 dim 1 : vector<8x256xf32>, i32 -> vector<8x256xf32>
    %603 = vector.extract_strided_slice %1 {offsets = [3, 0], sizes = [1, 256], strides = [1, 1]} : vector<9x256xf32> to vector<1x256xf32>
    %604 = vector.broadcast %603 : vector<1x256xf32> to vector<8x256xf32>
    %605 = arith.mulf %602, %604 : vector<8x256xf32>
    %606 = arith.truncf %605 : vector<8x256xf32> to vector<8x256xbf16>
    %607 = vector.extract_strided_slice %1 {offsets = [4, 0], sizes = [1, 256], strides = [1, 1]} : vector<9x256xf32> to vector<1x256xf32>
    %608 = vector.broadcast %607 : vector<1x256xf32> to vector<8x256xf32>
    %609 = arith.mulf %584, %608 : vector<8x256xf32>
    %610 = arith.truncf %609 : vector<8x256xf32> to vector<8x256xbf16>
    %c255_i32_173 = arith.constant 255 : i32
    %611 = tpu.dynamic_rotate %584 by %c255_i32_173 dim 1 : vector<8x256xf32>, i32 -> vector<8x256xf32>
    %612 = vector.extract_strided_slice %1 {offsets = [5, 0], sizes = [1, 256], strides = [1, 1]} : vector<9x256xf32> to vector<1x256xf32>
    %613 = vector.broadcast %612 : vector<1x256xf32> to vector<8x256xf32>
    %614 = arith.mulf %611, %613 : vector<8x256xf32>
    %615 = arith.truncf %614 : vector<8x256xf32> to vector<8x256xbf16>
    %c241_i32_174 = arith.constant 241 : i32
    %616 = tpu.dynamic_rotate %584 by %c241_i32_174 dim 1 : vector<8x256xf32>, i32 -> vector<8x256xf32>
    %617 = vector.extract_strided_slice %1 {offsets = [6, 0], sizes = [1, 256], strides = [1, 1]} : vector<9x256xf32> to vector<1x256xf32>
    %618 = vector.broadcast %617 : vector<1x256xf32> to vector<8x256xf32>
    %619 = arith.mulf %616, %618 : vector<8x256xf32>
    %620 = arith.truncf %619 : vector<8x256xf32> to vector<8x256xbf16>
    %c240_i32_175 = arith.constant 240 : i32
    %621 = tpu.dynamic_rotate %584 by %c240_i32_175 dim 1 : vector<8x256xf32>, i32 -> vector<8x256xf32>
    %622 = vector.extract_strided_slice %1 {offsets = [7, 0], sizes = [1, 256], strides = [1, 1]} : vector<9x256xf32> to vector<1x256xf32>
    %623 = vector.broadcast %622 : vector<1x256xf32> to vector<8x256xf32>
    %624 = arith.mulf %621, %623 : vector<8x256xf32>
    %625 = arith.truncf %624 : vector<8x256xf32> to vector<8x256xbf16>
    %c239_i32_176 = arith.constant 239 : i32
    %626 = tpu.dynamic_rotate %584 by %c239_i32_176 dim 1 : vector<8x256xf32>, i32 -> vector<8x256xf32>
    %627 = vector.extract_strided_slice %1 {offsets = [8, 0], sizes = [1, 256], strides = [1, 1]} : vector<9x256xf32> to vector<1x256xf32>
    %628 = vector.broadcast %627 : vector<1x256xf32> to vector<8x256xf32>
    %629 = arith.mulf %626, %628 : vector<8x256xf32>
    %630 = arith.truncf %629 : vector<8x256xf32> to vector<8x256xbf16>
    %631 = tpu.concatenate %591, %596, %601, %606, %610, %615, %620, %625, %630 in 0 : vector<8x256xbf16>, vector<8x256xbf16>, vector<8x256xbf16>, vector<8x256xbf16>, vector<8x256xbf16>, vector<8x256xbf16>, vector<8x256xbf16>, vector<8x256xbf16>, vector<8x256xbf16> -> vector<72x256xbf16>
    %cst_177 = arith.constant dense<0.000000e+00> : vector<3x256xf32>
    %632 = tpu.matmul %585, %631, %cst_177 {dimension_numbers = #tpu.dot_dimension_numbers<[1], [0], [0], [1], [0, 0, 1, 1], [], []>} : vector<3x72xbf16>, vector<72x256xbf16>, vector<3x256xf32> -> vector<3x256xf32>
    %633 = vector.broadcast %586 : vector<3x1xf32> to vector<3x256xf32>
    %634 = arith.addf %632, %633 : vector<3x256xf32>
    %635 = vector.shape_cast %634 : vector<3x256xf32> to vector<1x3x256xf32>
    %c0_178 = arith.constant 0 : index
    %c0_179 = arith.constant 0 : index
    %c0_180 = arith.constant 0 : index
    %636 = vector.load %arg22[%c0_178, %c0_179, %c0_180] : memref<1x3x256xf32, #tpu.memory_space<vmem>>, vector<1x3x256xf32>
    tpu.vector_store %arg22[%c0_178, %c0_179, %c0_180], %635 {strides = array<i32>} : memref<1x3x256xf32, #tpu.memory_space<vmem>>, vector<1x3x256xf32>,
    %637 = vector.shape_cast %584 : vector<8x256xf32> to vector<1x8x256xf32>
    %c0_181 = arith.constant 0 : index
    %c0_182 = arith.constant 0 : index
    %c0_183 = arith.constant 0 : index
    %638 = vector.load %arg23[%c0_181, %c0_182, %c0_183] : memref<1x8x256xf32, #tpu.memory_space<vmem>>, vector<1x8x256xf32>
    tpu.vector_store %arg23[%c0_181, %c0_182, %c0_183], %637 {strides = array<i32>} : memref<1x8x256xf32, #tpu.memory_space<vmem>>, vector<1x8x256xf32>,
    %639 = vector.shape_cast %118 : vector<2x256xf32> to vector<1x2x256xf32>
    %c0_184 = arith.constant 0 : index
    %c0_185 = arith.constant 0 : index
    %c0_186 = arith.constant 0 : index
    %640 = vector.load %arg24[%c0_184, %c0_185, %c0_186] : memref<1x2x256xf32, #tpu.memory_space<vmem>>, vector<1x2x256xf32>
    tpu.vector_store %arg24[%c0_184, %c0_185, %c0_186], %639 {strides = array<i32>} : memref<1x2x256xf32, #tpu.memory_space<vmem>>, vector<1x2x256xf32>,
    %641 = vector.shape_cast %123 : vector<2x256xf32> to vector<1x2x256xf32>
    %c0_187 = arith.constant 0 : index
    %c0_188 = arith.constant 0 : index
    %c0_189 = arith.constant 0 : index
    %642 = vector.load %arg25[%c0_187, %c0_188, %c0_189] : memref<1x2x256xf32, #tpu.memory_space<vmem>>, vector<1x2x256xf32>
    tpu.vector_store %arg25[%c0_187, %c0_188, %c0_189], %641 {strides = array<i32>} : memref<1x2x256xf32, #tpu.memory_space<vmem>>, vector<1x2x256xf32>,
    return
  }
  func.func @transform_0(%arg0: i32) -> (i32, i32, i32) {
    %c0_i32 = arith.constant 0 : i32
    %c0_i32_0 = arith.constant 0 : i32
    %c0_i32_1 = arith.constant 0 : i32
    return %arg0, %c0_i32, %c0_i32_0 : i32, i32, i32
  }
  func.func @transform_1(%arg0: i32) -> (i32, i32, i32) {
    %c0_i32 = arith.constant 0 : i32
    %c0_i32_0 = arith.constant 0 : i32
    %c0_i32_1 = arith.constant 0 : i32
    return %arg0, %c0_i32, %c0_i32_0 : i32, i32, i32
  }
  func.func @transform_2(%arg0: i32) -> (i32, i32, i32) {
    %c0_i32 = arith.constant 0 : i32
    %c0_i32_0 = arith.constant 0 : i32
    %c0_i32_1 = arith.constant 0 : i32
    return %arg0, %c0_i32, %c0_i32_0 : i32, i32, i32
  }
  func.func @transform_3(%arg0: i32) -> (i32, i32, i32) {
    %c0_i32 = arith.constant 0 : i32
    %c0_i32_0 = arith.constant 0 : i32
    %c0_i32_1 = arith.constant 0 : i32
    return %arg0, %c0_i32, %c0_i32_0 : i32, i32, i32
  }
  func.func @transform_4(%arg0: i32) -> (i32, i32, i32) {
    %c0_i32 = arith.constant 0 : i32
    %c0_i32_0 = arith.constant 0 : i32
    %c0_i32_1 = arith.constant 0 : i32
    return %arg0, %c0_i32, %c0_i32_0 : i32, i32, i32
  }
  func.func @transform_5(%arg0: i32) -> (i32, i32) {
    %c0_i32 = arith.constant 0 : i32
    %c0_i32_0 = arith.constant 0 : i32
    %c0_i32_1 = arith.constant 0 : i32
    return %c0_i32, %c0_i32_0 : i32, i32
  }
  func.func @transform_6(%arg0: i32) -> (i32, i32) {
    %c0_i32 = arith.constant 0 : i32
    %c0_i32_0 = arith.constant 0 : i32
    %c0_i32_1 = arith.constant 0 : i32
    return %c0_i32, %c0_i32_0 : i32, i32
  }
  func.func @transform_7(%arg0: i32) -> (i32, i32) {
    %c0_i32 = arith.constant 0 : i32
    %c0_i32_0 = arith.constant 0 : i32
    %c0_i32_1 = arith.constant 0 : i32
    return %c0_i32, %c0_i32_0 : i32, i32
  }
  func.func @transform_8(%arg0: i32) -> (i32, i32) {
    %c0_i32 = arith.constant 0 : i32
    %c0_i32_0 = arith.constant 0 : i32
    %c0_i32_1 = arith.constant 0 : i32
    return %c0_i32, %c0_i32_0 : i32, i32
  }
  func.func @transform_9(%arg0: i32) -> (i32, i32) {
    %c0_i32 = arith.constant 0 : i32
    %c0_i32_0 = arith.constant 0 : i32
    %c0_i32_1 = arith.constant 0 : i32
    return %c0_i32, %c0_i32_0 : i32, i32
  }
  func.func @transform_10(%arg0: i32) -> (i32, i32) {
    %c0_i32 = arith.constant 0 : i32
    %c0_i32_0 = arith.constant 0 : i32
    %c0_i32_1 = arith.constant 0 : i32
    return %c0_i32, %c0_i32_0 : i32, i32
  }
  func.func @transform_11(%arg0: i32) -> (i32, i32) {
    %c0_i32 = arith.constant 0 : i32
    %c0_i32_0 = arith.constant 0 : i32
    %c0_i32_1 = arith.constant 0 : i32
    return %c0_i32, %c0_i32_0 : i32, i32
  }
  func.func @transform_12(%arg0: i32) -> (i32, i32) {
    %c0_i32 = arith.constant 0 : i32
    %c0_i32_0 = arith.constant 0 : i32
    %c0_i32_1 = arith.constant 0 : i32
    return %c0_i32, %c0_i32_0 : i32, i32
  }
  func.func @transform_13(%arg0: i32) -> (i32, i32) {
    %c0_i32 = arith.constant 0 : i32
    %c0_i32_0 = arith.constant 0 : i32
    %c0_i32_1 = arith.constant 0 : i32
    return %c0_i32, %c0_i32_0 : i32, i32
  }
  func.func @transform_14(%arg0: i32) -> (i32, i32, i32) {
    %c0_i32 = arith.constant 0 : i32
    %c0_i32_0 = arith.constant 0 : i32
    %c0_i32_1 = arith.constant 0 : i32
    %c0_i32_2 = arith.constant 0 : i32
    return %c0_i32, %c0_i32_0, %c0_i32_1 : i32, i32, i32
  }
  func.func @transform_15(%arg0: i32) -> (i32, i32, i32) {
    %c0_i32 = arith.constant 0 : i32
    %c0_i32_0 = arith.constant 0 : i32
    %c0_i32_1 = arith.constant 0 : i32
    %c0_i32_2 = arith.constant 0 : i32
    return %c0_i32, %c0_i32_0, %c0_i32_1 : i32, i32, i32
  }
  func.func @transform_16(%arg0: i32) -> (i32, i32, i32) {
    %c0_i32 = arith.constant 0 : i32
    %c0_i32_0 = arith.constant 0 : i32
    %c0_i32_1 = arith.constant 0 : i32
    %c0_i32_2 = arith.constant 0 : i32
    return %c0_i32, %c0_i32_0, %c0_i32_1 : i32, i32, i32
  }
  func.func @transform_17(%arg0: i32) -> (i32, i32, i32) {
    %c0_i32 = arith.constant 0 : i32
    %c0_i32_0 = arith.constant 0 : i32
    %c0_i32_1 = arith.constant 0 : i32
    %c0_i32_2 = arith.constant 0 : i32
    return %c0_i32, %c0_i32_0, %c0_i32_1 : i32, i32, i32
  }
  func.func @transform_18(%arg0: i32) -> (i32, i32, i32) {
    %c0_i32 = arith.constant 0 : i32
    %c0_i32_0 = arith.constant 0 : i32
    %c0_i32_1 = arith.constant 0 : i32
    %c0_i32_2 = arith.constant 0 : i32
    return %c0_i32, %c0_i32_0, %c0_i32_1 : i32, i32, i32
  }
  func.func @transform_19(%arg0: i32) -> (i32, i32) {
    %c0_i32 = arith.constant 0 : i32
    %c0_i32_0 = arith.constant 0 : i32
    %c0_i32_1 = arith.constant 0 : i32
    return %c0_i32, %c0_i32_0 : i32, i32
  }
  func.func @transform_20(%arg0: i32) -> (i32, i32) {
    %c0_i32 = arith.constant 0 : i32
    %c0_i32_0 = arith.constant 0 : i32
    %c0_i32_1 = arith.constant 0 : i32
    return %c0_i32, %c0_i32_0 : i32, i32
  }
  func.func @transform_21(%arg0: i32) -> (i32, i32, i32) {
    %c0_i32 = arith.constant 0 : i32
    %c0_i32_0 = arith.constant 0 : i32
    %c0_i32_1 = arith.constant 0 : i32
    return %arg0, %c0_i32, %c0_i32_0 : i32, i32, i32
  }
  func.func @transform_22(%arg0: i32) -> (i32, i32, i32) {
    %c0_i32 = arith.constant 0 : i32
    %c0_i32_0 = arith.constant 0 : i32
    %c0_i32_1 = arith.constant 0 : i32
    return %arg0, %c0_i32, %c0_i32_0 : i32, i32, i32
  }
  func.func @transform_23(%arg0: i32) -> (i32, i32, i32) {
    %c0_i32 = arith.constant 0 : i32
    %c0_i32_0 = arith.constant 0 : i32
    %c0_i32_1 = arith.constant 0 : i32
    return %arg0, %c0_i32, %c0_i32_0 : i32, i32, i32
  }
  func.func @transform_24(%arg0: i32) -> (i32, i32, i32) {
    %c0_i32 = arith.constant 0 : i32
    %c0_i32_0 = arith.constant 0 : i32
    %c0_i32_1 = arith.constant 0 : i32
    return %arg0, %c0_i32, %c0_i32_0 : i32, i32, i32
  }
}

</mosaic_0001>

<bundles_post_ra>
// kernel: jam_decoder_bottom_forward.1
= control target key start
LH: loop header
LB: loop body
LE: loop exit
PB: predicated region body
PF: predicated region fallthrough
CT: control target
= control target key end

     0   :  { %s8176_s0 = inlined_call_operand.vmem [shape: f32[2,3,64], index: 0, kind: input, shape index: {}]   ;;  %s8177_s1 = inlined_call_operand.vmem [shape: f32[2,8,64], index: 1, kind: input, shape index: {}]   ;;  %s8178_s2 = inlined_call_operand.vmem [shape: f32[2,4,64], index: 2, kind: input, shape index: {}]   ;;  %s8179_s3 = inlined_call_operand.vmem [shape: f32[2,4,256], index: 3, kind: input, shape index: {}]   ;;  %s8180_s4 = inlined_call_operand.vmem [shape: f32[2,4,256], index: 4, kind: input, shape index: {}]   ;;  %s8181_s5 = inlined_call_operand.vmem [shape: bf16[36,108], index: 5, kind: input, shape index: {}]   ;;  %s8182_s6 = inlined_call_operand.vmem [shape: f32[9,1], index: 6, kind: input, shape index: {}]   ;;  %s8183_s7 = inlined_call_operand.vmem [shape: bf16[256,256], index: 7, kind: input, shape index: {}]   ;;  %s8184_s8 = inlined_call_operand.vmem [shape: bf16[64,256], index: 8, kind: input, shape index: {}]   ;;  %s8185_s9 = inlined_call_operand.vmem [shape: f32[9,64], index: 9, kind: input, shape index: {}]   ;;  %s8186_s10 = inlined_call_operand.vmem [shape: f32[9,256], index: 10, kind: input, shape index: {}]   ;;  %s8187_s11 = inlined_call_operand.vmem [shape: bf16[8,180], index: 11, kind: input, shape index: {}]   ;;  %s8188_s12 = inlined_call_operand.vmem [shape: f32[8,1], index: 12, kind: input, shape index: {}]   ;;  %s8189_s13 = inlined_call_operand.vmem [shape: f32[8,1], index: 13, kind: input, shape index: {}]   ;;  %s8190_s14 = inlined_call_operand.vmem [shape: bf16[3,8,72], index: 14, kind: input, shape index: {}]   ;;  %s8191_s15 = inlined_call_operand.vmem [shape: f32[3,8,1], index: 15, kind: input, shape index: {}]   ;;  %s8192_s16 = inlined_call_operand.vmem [shape: f32[3,8,1], index: 16, kind: input, shape index: {}]   ;;  %s8193_s17 = inlined_call_operand.vmem [shape: bf16[3,8,72], index: 17, kind: input, shape index: {}]   ;;  %s8194_s18 = inlined_call_operand.vmem [shape: f32[3,8,1], index: 18, kind: input, shape index: {}]   ;;  %s8195_s19 = inlined_call_operand.vmem [shape: bf16[3,72], index: 19, kind: input, shape index: {}]   ;;  %s8196_s20 = inlined_call_operand.vmem [shape: f32[3,1], index: 20, kind: input, shape index: {}]   ;;  %s8197_s21 = inlined_call_operand.vmem [shape: f32[2,3,256], index: 21, kind: output, shape index: {0}]   ;;  %s8198_s22 = inlined_call_operand.vmem [shape: f32[2,8,256], index: 22, kind: output, shape index: {1}]   ;;  %s8199_s23 = inlined_call_operand.vmem [shape: f32[2,2,256], index: 23, kind: output, shape index: {2}]   ;;  %s8200_s24 = inlined_call_operand.vmem [shape: f32[2,2,256], index: 24, kind: output, shape index: {3}]  }
   0x1   :  { %8263 = sst [smem:[#allocation14_spill]] %s8176_s0 }
   0x2   :  { %8264 = sst [smem:[#allocation15_spill]] %s8177_s1 }
   0x3   :  { %8265 = sst [smem:[#allocation16_spill]] %s8178_s2 }
   0x4   :  { %8266 = sst [smem:[#allocation17_spill]] %s8179_s3 }
   0x5   :  { %8267 = sst [smem:[#allocation18_spill]] %s8180_s4 }
   0x6   :  { %8268 = sst [smem:[#allocation19_spill]] %s8181_s5  ;;  %s5732_s5 = smov 0  }
   0x7   :  { %8269 = sst [smem:[#allocation20_spill]] %s8182_s6 }
   0x8   :  { %8270 = sst [smem:[#allocation21_spill]] %s8183_s7 }
   0x9   :  { %8271 = sst [smem:[#allocation22_spill]] %s8184_s8 }
   0xa   :  { %8272 = sst [smem:[#allocation23_spill]] %s8185_s9 }
   0xb   :  { %8273 = sst [smem:[#allocation24_spill]] %s8186_s10 }
   0xc LB: > { %s5311_s26 = sadd.s32 4294967295, %s5578_s5   ;;  %p5315_p0 = scmp.ge.s32.totalorder %s5578_s5, 1  ;;  %s5578_s5 = sphi %s5732_s5, %s35_s5  }
   0xd   : > { %p706_p1 = scmp.lt.s32.totalorder %s5578_s5, 3 }
   0xf   : > { %p707_p2 = pnand %p5315_p0, %p706_p1 }
  0x11   : > { %710 = sbr.rel (%p707_p2) target bundleno = 4369 (0x1111), region = 104 }
  0x18   : > { %p804_p3 = scmp.lt.s32.totalorder %s5311_s26, 1  ;;  %s8274_s29 = sld [smem:[#allocation15_spill]]  ;;  %vm1098_vm0 = vcmask 1043456   ;;  %v5582_v4 = vmov 0.0   ;;  %v853_v5 = vlaneseq  ;;  %vm5595_vm1 = vmmov 0  }
  0x19   : > { %s8275_s3 = sld [smem:[#allocation16_spill]]  ;;  %s5580_s8 = smov 8   ;;  %5430 = vmatprep.subr.bf16.mxu0 %v5582_v4  ;;  %5444 = vmatprep.mubr.msk.bf16.mxu0 %vm5595_vm1, %v5582_v4  ;;  %vm1135_vm2 = vcmask 64512   ;;  %vm1113_vm3 = vcmask 72704   ;;  %vm1296_vm4 = vcmask 1045504   ;;  %vm1157_vm5 = vcmask 56320  }
  0x1a   : > { %s8336_s26 = smov (!%p804_p3, %s5311_s26), 1  ;;  %s5581_s4 = smov 72   ;;  %v5759_v6 = vshrl.u32 %v853_v5, 7  ;;  %vm1179_vm6 = vcmask 7168   ;;  %vm1304_vm7 = vcmask 1041408   ;;  %vm1208_vm8 = vcmask 515072  }
  0x1b   : > { %s5743_s27 = sshll.u32 %s8336_s26, 3  ;;  %s5746_s28 = sshll.u32 %s8336_s26, 2  ;;  %vm1230_vm9 = vcmask 465920   ;;  %vm1252_vm10 = vcmask 457728   ;;  %vm1274_vm11 = vcmask 449536   ;;  %vm1336_vm12 = vcmask 883712  }
  0x1c   : > { %s5583_s1 = smov 73   ;;  %s5584_s6 = smov 9   ;;  %8276 = vst [vmem:[#allocation2_spill] sm:$0xff] %v5759_v6  ;;  %v5762_v7 = vsub.s32 4, %v5759_v6  ;;  %v5784_v15 = vsub.s32 1, %v5759_v6  ;;  %v5789_v19 = vsub.s32 0, %v5759_v6 }
  0x1d   : > { %s5585_s2 = smov 71   ;;  %s8278_s9 = sld [smem:[#allocation23_spill]]  ;;  %v5794_v34 = vsub.s32 2, %v5759_v6  ;;  %v5801_v47 = vsub.s32 3, %v5759_v6  ;;  %v5807_v60 = vsub.s32 5, %v5759_v6  ;;  %vm1407_vm13 = vcmask 1046528  }
  0x1e   : > { %s811_s0 = scalar_lea.vmem %s8274_s29, %s5743_s27  ;;  %s5586_s29 = smov 7   ;;  %8277 = vst [vmem:[#allocation3_spill] sm:$0xff] %v5762_v7  ;;  %8279 = vst [vmem:[#allocation4_spill] sm:$0xff] %v5784_v15  ;;  %vm1424_vm14 = vcmask 1044480   ;;  %vm1434_vm15 = vcmask 523264  }
  0x1f   : > { %s815_s25 = scalar_lea.vmem %s8275_s3, %s5746_s28  ;;  %v1094_v0 = vld [vmem:[%s811_s0] sm:$0xff]  ;;  %s5587_s30 = smov 65   ;;  %8280 = vst [vmem:[#allocation5_spill] sm:$0xff] %v5789_v19  ;;  %8281 = vst [vmem:[#allocation6_spill] sm:$0xff] %v5794_v34 }
  0x20   : > { %v1096_v1 = vrot.slane %v1094_v0, 4  ;;  %v1093_v2 = vld [vmem:[%s815_s25] sm:$0xf]  ;;  %s8207_s3 = smov 1   ;;  %s8205_s25 = smov 127   ;;  %8282 = vst [vmem:[#allocation7_spill] sm:$0xff] %v5801_v47 }
  0x21   : > { %s5597_s0 = smov 55   ;;  %8283 = vst [vmem:[#allocation8_spill] sm:$0xff] %v5807_v60  ;;  %s8254_s7 = smov 17  }
  0x22   : > { %1131 = vrot.lane.b32.xlu1 %v1096_v1, %s5580_s8  ;;  %1125 = vrot.lane.b32.xlu0 %v1096_v1, %s5581_s4  ;;  %v1099_v3 = vsel %vm1098_vm0, %v1093_v2, %v1096_v1  ;;  %s8318_s10 = sld [smem:[#allocation24_spill]] }
  0x23   : > { %v5767_v8 = vld [vmem:[%s8278_s9] sm:$0xff] }
  0x24   : > { %v1192_v9 = vrot.slane %v5767_v8, %v5762_v7  ;;  %v1141_v18 = vrot.slane %v5767_v8, %v5784_v15  ;;  %v1119_v26 = vrot.slane %v5767_v8, %v5789_v19  ;;  %v1163_v40 = vrot.slane %v5767_v8, %v5794_v34 }
  0x25   : > { %v1185_v52 = vrot.slane %v5767_v8, %v5801_v47 }
  0x26   : > { %1103 = vrot.lane.b32.xlu1 %v1096_v1, %s5583_s1  ;;  %1123 = vrot.lane.b32.xlu0 %v1099_v3, %s5581_s4  ;;  %v5771_v10 = vmul.f32 %v1192_v9, %v1099_v3  ;;  %v5773_v11 = vmul.f32 %v1192_v9, %v1096_v1  ;;  %s5591_s4 = smov 121  }
  0x28   : > { %v1195_v12 = vpack.c.bf16 %v5773_v11, %v5771_v10 }
  0x2a   : > { %1129 = vrot.lane.b32.xlu1 %v1099_v3, %s5580_s8  ;;  %1101 = vrot.lane.b32.xlu0 %v1099_v3, %s5583_s1  ;;  %s5590_s8 = smov 63   ;;  %s5592_s1 = smov 57  }
  0x2e   : > { %1109 = vrot.lane.b32.xlu1 %v1096_v1, %s5584_s6  ;;  %1107 = vrot.lane.b32.xlu0 %v1099_v3, %s5584_s6  ;;  %s5593_s6 = smov 120  }
  0x32   : > { %1147 = vrot.lane.b32.xlu1 %v1096_v1, %s5585_s2  ;;  %1145 = vrot.lane.b32.xlu0 %v1099_v3, %s5585_s2  ;;  %s5594_s2 = smov 56  }
  0x36   : > { %1153 = vrot.lane.b32.xlu1 %v1096_v1, %s5586_s29  ;;  %1151 = vrot.lane.b32.xlu0 %v1099_v3, %s5586_s29  ;;  %s5596_s29 = smov 119  }
  0x3a   : > { %1169 = vrot.lane.b32.xlu1 %v1096_v1, %s5587_s30  ;;  %1167 = vrot.lane.b32.xlu0 %v1099_v3, %s5587_s30  ;;  %s8258_s30 = smov 16  }
  0x3e   : > { %1175 = vrot.lane.b32.xlu1 %v1096_v1, %s8207_s3  ;;  %1173 = vrot.lane.b32.xlu0 %v1099_v3, %s8207_s3  ;;  %s8316_s3 = sld [smem:[#allocation18_spill]] }
  0x42   : > { %1198 = vrot.lane.b32.xlu1 %v1096_v1, %s8205_s25  ;;  %1196 = vrot.lane.b32.xlu0 %v1099_v3, %s8205_s25  ;;  %s8289_s25 = sld [smem:[#allocation22_spill]] }
  0x46   : > { %1204 = vrot.lane.b32.xlu1 %v1096_v1, %s5590_s8  ;;  %1202 = vrot.lane.b32.xlu0 %v1099_v3, %s5590_s8  ;;  %s8287_s8 = sld [smem:[#allocation21_spill]] }
  0x4a   : > { %1220 = vrot.lane.b32.xlu1 %v1096_v1, %s5591_s4  ;;  %1218 = vrot.lane.b32.xlu0 %v1099_v3, %s5591_s4  ;;  %s5598_s4 = smov 64  }
  0x4e   : > { %1226 = vrot.lane.b32.xlu1 %v1096_v1, %s5592_s1  ;;  %1224 = vrot.lane.b32.xlu0 %v1099_v3, %s5592_s1  ;;  %s8286_s1 = sld [smem:[#allocation19_spill]] }
  0x52   : > { %1242 = vrot.lane.b32.xlu1 %v1096_v1, %s5593_s6  ;;  %1240 = vrot.lane.b32.xlu0 %v1099_v3, %s5593_s6  ;;  %s840_s6 = scalar_lea.vmem %s8199_s23, %s5746_s28 }
  0x56   : > { %1248 = vrot.lane.b32.xlu1 %v1096_v1, %s5594_s2  ;;  %1246 = vrot.lane.b32.xlu0 %v1099_v3, %s5594_s2  ;;  %s8288_s2 = sld [smem:[#allocation20_spill]] }
  0x5a   : > { %1264 = vrot.lane.b32.xlu1 %v1096_v1, %s5596_s29  ;;  %1262 = vrot.lane.b32.xlu0 %v1099_v3, %s5596_s29 }
  0x5e   : > { %1270 = vrot.lane.b32.xlu1 %v1096_v1, %s5597_s0  ;;  %1268 = vrot.lane.b32.xlu0 %v1099_v3, %s5597_s0  ;;  %v1214_v1 = vrot.slane %v5767_v8, %v5807_v60 }
  0x94   : > { %v1132_v13 = vpop.permute.xlu1 %1131  ;;  %v1126_v14 = vpop.permute.xlu0 %1125 }
  0x95   : > { %v1137_v20 = vsel %vm1135_vm2, %v1126_v14, %v1132_v13 }
  0x96   : > { %v1143_v24 = vmul.f32 %v1141_v18, %v1137_v20 }
  0x98   : > { %v1104_v16 = vpop.permute.xlu1 %1103  ;;  %v1124_v17 = vpop.permute.xlu0 %1123 }
  0x9c   : > { %v1130_v21 = vpop.permute.xlu1 %1129  ;;  %v1102_v22 = vpop.permute.xlu0 %1101 }
  0x9d   : > { %v1136_v23 = vsel %vm1135_vm2, %v1124_v17, %v1130_v21  ;;  %vm3639_vm2 = vcmask 424960  }
  0x9e   : > { %v1142_v25 = vmul.f32 %v1141_v18, %v1136_v23  ;;  %v5814_v18 = vsub.s32 6, %v5759_v6 }
  0xa0   : > { %v1144_v27 = vpack.c.bf16 %v1143_v24, %v1142_v25  ;;  %v1110_v28 = vpop.permute.xlu1 %1109  ;;  %v1108_v29 = vpop.permute.xlu0 %1107  ;;  %8284 = vst [vmem:[#allocation9_spill] sm:$0xff] %v5814_v18  ;;  %v1236_v24 = vrot.slane %v5767_v8, %v5814_v18 }
  0xa1   : > { %v1115_v30 = vsel %vm1113_vm3, %v1104_v16, %v1110_v28  ;;  %v1114_v31 = vsel %vm1113_vm3, %v1102_v22, %v1108_v29 }
  0xa2   : > { %v1121_v32 = vmul.f32 %v1119_v26, %v1115_v30  ;;  %v1120_v33 = vmul.f32 %v1119_v26, %v1114_v31  ;;  %v1285_v38 = vrot.slane %v1144_v27, 2 }
  0xa4   : > { %v1122_v35 = vpack.c.bf16 %v1121_v32, %v1120_v33  ;;  %v1148_v36 = vpop.permute.xlu1 %1147  ;;  %v1146_v37 = vpop.permute.xlu0 %1145  ;;  %v5824_v32 = vsub.s32 7, %v5759_v6 }
  0xa6   : > { %v1299_v39 = vsel %vm1296_vm4, %v1122_v35, %v1285_v38  ;;  %8285 = vst [vmem:[#allocation10_spill] sm:$0xff] %v5824_v32  ;;  %v1258_v10 = vrot.slane %v5767_v8, %v5824_v32  ;;  %v5331_v8 = vld [vmem:[%s8278_s9 + $0x8] ss:$0 sm:$0xff]  ;;  %s8252_s9 = smov 15  }
  0xa7   : > { %5431 = vmatpush3.bf16.msra.mxu0 %v1299_v39 }
  0xa8   : > { %v1154_v41 = vpop.permute.xlu1 %1153  ;;  %v1152_v42 = vpop.permute.xlu0 %1151  ;;  %5432 = vmatprep.subr.bf16.mxu0 %v5582_v4 }
  0xa9   : > { %v1159_v43 = vsel %vm1157_vm5, %v1148_v36, %v1154_v41  ;;  %v1158_v44 = vsel %vm1157_vm5, %v1146_v37, %v1152_v42 }
  0xaa   : > { %v1165_v45 = vmul.f32 %v1163_v40, %v1159_v43  ;;  %v1164_v46 = vmul.f32 %v1163_v40, %v1158_v44 }
  0xac   : > { %v1166_v48 = vpack.c.bf16 %v1165_v45, %v1164_v46  ;;  %v1170_v49 = vpop.permute.xlu1 %1169  ;;  %v1168_v50 = vpop.permute.xlu0 %1167 }
  0xae   : > { %v1287_v51 = vrot.slane %v1166_v48, 4 }
  0xb0   : > { %v1176_v53 = vpop.permute.xlu1 %1175  ;;  %v1174_v54 = vpop.permute.xlu0 %1173  ;;  %v1302_v55 = vsel %vm1098_vm0, %v1285_v38, %v1287_v51 }
  0xb1   : > { %v1181_v56 = vsel %vm1179_vm6, %v1170_v49, %v1176_v53  ;;  %v1180_v57 = vsel %vm1179_vm6, %v1168_v50, %v1174_v54  ;;  %5433 = vmatpush3.bf16.msra.mxu0 %v1302_v55 }
  0xb2   : > { %v1187_v58 = vmul.f32 %v1185_v52, %v1181_v56  ;;  %v1186_v59 = vmul.f32 %v1185_v52, %v1180_v57  ;;  %5434 = vmatprep.subr.bf16.mxu0 %v5582_v4  ;;  %v5503_v57 = vld [vmem:[%s8286_s1] sm:$0xff]  }
  0xb4   : > { %v1188_v61 = vpack.c.bf16 %v1187_v58, %v1186_v59  ;;  %v1199_v62 = vpop.permute.xlu1 %1198  ;;  %v1197_v63 = vpop.permute.xlu0 %1196  ;;  %v5504_v58 = vld [vmem:[%s8286_s1 + $0x8] sm:$0xff]   ;;  %v5505_v59 = vld [vmem:[%s8286_s1 + $0x10] ss:$0 sps:$4 sm:$0x33]   ;;  %s8250_s1 = smov 113  }
  0xb6   : > { %v1289_v0 = vrot.slane %v1188_v61, 6  ;;  %v5506_v61 = vld [vmem:[%s8287_s8 + $0x4] ss:$8 sps:$4 sm:$0xff]  }
  0xb7   : > { %1645 = vmatprep.subr.bf16.mxu1 %v5506_v61 }
  0xb8   : > { %v1205_v2 = vpop.permute.xlu1 %1204  ;;  %v1203_v3 = vpop.permute.xlu0 %1202  ;;  %v1306_v9 = vsel %vm1304_vm7, %v1287_v51, %v1289_v0  ;;  %v5512_v0 = vld [vmem:[%s8287_s8 + $0x24] ss:$8 sps:$4 sm:$0xff]  }
  0xb9   : > { %v1210_v13 = vsel %vm1208_vm8, %v1199_v62, %v1205_v2  ;;  %v1209_v14 = vsel %vm1208_vm8, %v1197_v63, %v1203_v3  ;;  %5435 = vmatpush3.bf16.msra.mxu0 %v1306_v9  ;;  %v5508_v62 = vld [vmem:[%s8287_s8] ss:$8 sps:$4 sm:$0xff]   ;;  %v5509_v63 = vld [vmem:[%s8287_s8 + $0x14] ss:$8 sps:$4 sm:$0xff]   ;;  %v5517_v3 = vld [vmem:[%s8287_s8 + $0x30] ss:$8 sps:$4 sm:$0xff]  }
  0xba   : > { %v1216_v16 = vmul.f32 %v1214_v1, %v1210_v13  ;;  %v1215_v17 = vmul.f32 %v1214_v1, %v1209_v14  ;;  %5436 = vmatprep.subr.bf16.mxu0 %v5582_v4  ;;  %1646 = vmatpush1.bf16.msra.mxu1 %v5508_v62  ;;  %v5514_v1 = vld [vmem:[%s8287_s8 + $0x20] ss:$8 sps:$4 sm:$0xff]   ;;  %v5515_v2 = vld [vmem:[%s8287_s8 + $0x34] ss:$8 sps:$4 sm:$0xff]   ;;  %v5518_v9 = vld [vmem:[%s8287_s8 + $0x44] ss:$8 sps:$4 sm:$0xff]  }
  0xbb   : > { %1647 = vmatprep.subr.bf16.mxu1 %v5509_v63  ;;  %v5520_v13 = vld [vmem:[%s8287_s8 + $0x40] ss:$8 sps:$4 sm:$0xff]   ;;  %v5521_v14 = vld [vmem:[%s8287_s8 + $0x54] ss:$8 sps:$4 sm:$0xff]  }
  0xbc   : > { %v1217_v20 = vpack.c.bf16 %v1216_v16, %v1215_v17  ;;  %v1221_v21 = vpop.permute.xlu1 %1220  ;;  %v1219_v22 = vpop.permute.xlu0 %1218  ;;  %v5523_v16 = vld [vmem:[%s8287_s8 + $0x50] ss:$8 sps:$4 sm:$0xff]   ;;  %v5524_v17 = vld [vmem:[%s8287_s8 + $0x64] ss:$8 sps:$4 sm:$0xff]  }
  0xbe   : > { %v1291_v23 = vrot.slane %v1217_v20, 2  ;;  %v5526_v20 = vld [vmem:[%s8287_s8 + $0x60] ss:$8 sps:$4 sm:$0xff]  }
  0xc0   : > { %v1227_v25 = vpop.permute.xlu1 %1226  ;;  %v1225_v26 = vpop.permute.xlu0 %1224  ;;  %v1310_v27 = vsel %vm1296_vm4, %v1195_v12, %v1291_v23 }
  0xc1   : > { %v1232_v28 = vsel %vm1230_vm9, %v1221_v21, %v1227_v25  ;;  %v1231_v29 = vsel %vm1230_vm9, %v1219_v22, %v1225_v26  ;;  %5437 = vmatpush3.bf16.msra.mxu0 %v1310_v27  ;;  %v5527_v21 = vld [vmem:[%s8287_s8 + $0x74] ss:$8 sps:$4 sm:$0xff]   ;;  %v5529_v22 = vld [vmem:[%s8287_s8 + $0x70] ss:$8 sps:$4 sm:$0xff]   ;;  %v5536_v27 = vld [vmem:[%s8287_s8 + $0xa4] ss:$8 sps:$4 sm:$0xff]  }
  0xc2   : > { %v1238_v30 = vmul.f32 %v1236_v24, %v1232_v28  ;;  %v1237_v31 = vmul.f32 %v1236_v24, %v1231_v29  ;;  %5438 = vmatprep.subr.bf16.mxu0 %v5582_v4  ;;  %v5532_v24 = vld [vmem:[%s8287_s8 + $0x80] ss:$8 sps:$4 sm:$0xff]   ;;  %v5533_v25 = vld [vmem:[%s8287_s8 + $0x94] ss:$8 sps:$4 sm:$0xff]   ;;  %v5535_v26 = vld [vmem:[%s8287_s8 + $0x90] ss:$8 sps:$4 sm:$0xff]  }
  0xc3   : > { %v5538_v28 = vld [vmem:[%s8287_s8 + $0xa0] ss:$8 sps:$4 sm:$0xff]   ;;  %v5539_v29 = vld [vmem:[%s8287_s8 + $0xb4] ss:$8 sps:$4 sm:$0xff]  }
  0xc4   : > { %v1239_v33 = vpack.c.bf16 %v1238_v30, %v1237_v31  ;;  %v1243_v35 = vpop.permute.xlu1 %1242  ;;  %v1241_v36 = vpop.permute.xlu0 %1240  ;;  %v5541_v30 = vld [vmem:[%s8287_s8 + $0xb0] ss:$8 sps:$4 sm:$0xff]   ;;  %v5542_v31 = vld [vmem:[%s8287_s8 + $0xc4] ss:$8 sps:$4 sm:$0xff]  }
  0xc6   : > { %v1293_v37 = vrot.slane %v1239_v33, 4  ;;  %v5544_v33 = vld [vmem:[%s8287_s8 + $0xc0] ss:$8 sps:$4 sm:$0xff]  }
  0xc8   : > { %v1249_v11 = vpop.permute.xlu1 %1248  ;;  %v1247_v12 = vpop.permute.xlu0 %1246  ;;  %v1313_v38 = vsel %vm1098_vm0, %v1291_v23, %v1293_v37  ;;  %v5530_v23 = vld [vmem:[%s8287_s8 + $0x84] ss:$8 sps:$4 sm:$0xff]  }
  0xc9   : > { %v1254_v39 = vsel %vm1252_vm10, %v1243_v35, %v1249_v11  ;;  %v1253_v40 = vsel %vm1252_vm10, %v1241_v36, %v1247_v12  ;;  %5439 = vmatpush3.bf16.msra.mxu0 %v1313_v38  ;;  %v5548_v12 = vld [vmem:[%s8287_s8 + $0xe4] ss:$8 sps:$4 sm:$0xff]  }
  0xca   : > { %v1260_v41 = vmul.f32 %v1258_v10, %v1254_v39  ;;  %v1259_v42 = vmul.f32 %v1258_v10, %v1253_v40  ;;  %5440 = vmatprep.subr.bf16.mxu0 %v5582_v4  ;;  %v5547_v10 = vld [vmem:[%s8287_s8 + $0xd0] ss:$8 sps:$4 sm:$0xff]   ;;  %v5550_v39 = vld [vmem:[%s8287_s8 + $0xe0] ss:$8 sps:$4 sm:$0xff]  }
  0xcc   : > { %v1261_v43 = vpack.c.bf16 %v1260_v41, %v1259_v42  ;;  %v1265_v44 = vpop.permute.xlu1 %1264  ;;  %v1263_v45 = vpop.permute.xlu0 %1262 }
  0xce   : > { %v1295_v46 = vrot.slane %v1261_v43, 6 }
  0xd0   : > { %v1271_v48 = vpop.permute.xlu1 %1270  ;;  %v1269_v49 = vpop.permute.xlu0 %1268  ;;  %v1316_v50 = vsel %vm1304_vm7, %v1293_v37, %v1295_v46  ;;  %v5545_v37 = vld [vmem:[%s8287_s8 + $0xd4] ss:$8 sps:$4 sm:$0xff]   ;;  %v5553_v46 = vld [vmem:[%s8287_s8 + $0xf0] ss:$8 sps:$4 sm:$0xff]  }
  0xd1   : > { %v1276_v51 = vsel %vm1274_vm11, %v1265_v44, %v1271_v48  ;;  %v1275_v52 = vsel %vm1274_vm11, %v1263_v45, %v1269_v49  ;;  %5441 = vmatpush3.bf16.msra.mxu0 %v1316_v50  ;;  %v5551_v44 = vld [vmem:[%s8287_s8 + $0xf4] ss:$8 sps:$4 sm:$0xff]  }
  0xd2   : > { %v1282_v53 = vmul.f32 %v5331_v8, %v1276_v51  ;;  %v1281_v54 = vmul.f32 %v5331_v8, %v1275_v52  ;;  %5442 = vmatprep.subr.bf16.mxu0 %v5582_v4 }
  0xd4   : > { %v1283_v55 = vpack.c.bf16 %v1282_v53, %v1281_v54  ;;  %v1474_v53 = vld [vmem:[%s8288_s2 + $0x8] sm:$0x1] }
  0xd6   : > { %v1347_v56 = vsel %vm1296_vm4, %v1283_v55, 0  ;;  %v8211_v55 = vmov 0  }
  0xd7   : > { %5443 = vmatpush3.bf16.msra.mxu0 %v1347_v56  ;;  %5501 = vset.pattern.permute.xlu0 %v8211_v55 }
  0xd8   : > { %5502 = vset.pattern.permute.xlu1 %v8211_v55 }
  0xda   : > { %5445 = vmatmul.mubr.msk.bf16.vlgmr.msra.gmra.mrb[0].mxu0 %vm1336_vm12, %v5503_v57 }
  0xdb   : > { %5448 = vmatprep.mubr.msk.bf16.mxu0 %vm5595_vm1, %v5582_v4 }
  0xe2   : > { %5449 = vmatmul.mubr.msk.bf16.gmra.mrb[4].mxu0 %vm1336_vm12, %v5504_v58 }
  0xe3   : > { %5452 = vmatprep.mubr.msk.bf16.mxu0 %vm5595_vm1, %v5582_v4  ;;  %v5511_v4 = vld [vmem:[%s8287_s8 + $0x10] ss:$8 sps:$4 sm:$0xff]   ;;  %vm3187_vm1 = vcmask 1042432  }
  0xe4   : > { %1648 = vmatpush1.bf16.msra.mxu1 %v5511_v4  ;;  %v1473_v4 = vld [vmem:[%s8288_s2] sm:$0xff]  ;;  %s8290_s2 = sld [smem:[#allocation14_spill]] }
  0xe5   : > { %1649 = vmatprep.subr.bf16.mxu1 %v5512_v0 }
  0xe8   : > { %1650 = vmatpush1.bf16.msra.mxu1 %v5514_v1 }
  0xe9   : > { %1651 = vmatprep.subr.bf16.mxu1 %v5515_v2 }
  0xea   : > { %5453 = vmatmul.mubr.msk.bf16.gmra.mrb[8].mxu0 %vm1336_vm12, %v5505_v59  ;;  %s807_s0 = scalar_lea.vmem %s8290_s2, %s5746_s28  ;;  %s845_s2 = scalar_lea.vmem %s8200_s24, %s5746_s28 }
  0xeb   : > { %1773 = vmatprep.mubr.bf16.mxu0 %v8211_v55  ;;  %s8310_s28 = smov 1  }
  0xec   : > { %1652 = vmatpush1.bf16.msra.mxu1 %v5517_v3 }
  0xed   : > { %1653 = vmatprep.subr.bf16.mxu1 %v5518_v9 }
  0xf0   : > { %1654 = vmatpush1.bf16.msra.mxu1 %v5520_v13 }
  0xf1   : > { %1655 = vmatprep.subr.bf16.mxu1 %v5521_v14 }
  0xf4   : > { %1656 = vmatpush1.bf16.msra.mxu1 %v5523_v16 }
  0xf5   : > { %1657 = vmatprep.subr.bf16.mxu1 %v5524_v17 }
  0xf8   : > { %1658 = vmatpush1.bf16.msra.mxu1 %v5526_v20 }
  0xf9   : > { %1659 = vmatprep.subr.bf16.mxu1 %v5527_v21 }
  0xfc   : > { %1660 = vmatpush1.bf16.msra.mxu1 %v5529_v22 }
  0xfd   : > { %1661 = vmatprep.subr.bf16.mxu1 %v5530_v23  ;;  %v5556_v23 = vld [vmem:[%s8289_s25 + $0x4] ss:$8 sps:$4 sm:$0xff]  }
  0xfe   : > { %1741 = vmatprep.subr.bf16.mxu0 %v5556_v23 }
 0x100   : > { %1662 = vmatpush1.bf16.msra.mxu1 %v5532_v24  ;;  %v5554_v24 = vld [vmem:[%s8289_s25] ss:$8 sps:$4 sm:$0xff]  }
 0x101   : > { %1663 = vmatprep.subr.bf16.mxu1 %v5533_v25  ;;  %1742 = vmatpush1.bf16.msra.mxu0 %v5554_v24  ;;  %v5557_v25 = vld [vmem:[%s8289_s25 + $0x10] ss:$8 sps:$4 sm:$0xff]  }
 0x104   : > { %1664 = vmatpush1.bf16.msra.mxu1 %v5535_v26  ;;  %v5559_v26 = vld [vmem:[%s8289_s25 + $0x14] ss:$8 sps:$4 sm:$0xff]  }
 0x105   : > { %1665 = vmatprep.subr.bf16.mxu1 %v5536_v27  ;;  %v5562_v27 = vld [vmem:[%s8289_s25 + $0x24] ss:$8 sps:$4 sm:$0xff]   ;;  %1743 = vmatprep.subr.bf16.mxu0 %v5559_v26  ;;  %v6069_v26 = vadd.s32 96, %v5759_v6 }
 0x106   : > { %1744 = vmatpush1.bf16.msra.mxu0 %v5557_v25 }
 0x107   : > { %1745 = vmatprep.subr.bf16.mxu0 %v5562_v27  ;;  %v6072_v27 = vadd.s32 104, %v5759_v6 }
 0x108   : > { %1666 = vmatpush1.bf16.msra.mxu1 %v5538_v28  ;;  %v5560_v28 = vld [vmem:[%s8289_s25 + $0x20] ss:$8 sps:$4 sm:$0xff]  }
 0x109   : > { %1667 = vmatprep.subr.bf16.mxu1 %v5539_v29  ;;  %v5563_v29 = vld [vmem:[%s8289_s25 + $0x30] ss:$8 sps:$4 sm:$0xff]  }
 0x10a   : > { %1746 = vmatpush1.bf16.msra.mxu0 %v5560_v28 }
 0x10c   : > { %1668 = vmatpush1.bf16.msra.mxu1 %v5541_v30  ;;  %v5565_v30 = vld [vmem:[%s8289_s25 + $0x34] ss:$8 sps:$4 sm:$0xff]  }
 0x10d   : > { %1669 = vmatprep.subr.bf16.mxu1 %v5542_v31  ;;  %1747 = vmatprep.subr.bf16.mxu0 %v5565_v30  ;;  %v1688_v31 = vld [vmem:[%s807_s0] sm:$0x7]  ;;  %s8311_s0 = smov 127  }
 0x10e   : > { %1748 = vmatpush1.bf16.msra.mxu0 %v5563_v29 }
 0x110   : > { %1670 = vmatpush1.bf16.msra.mxu1 %v5544_v33  ;;  %v1689_v33 = vpack.c.bf16 %v1688_v31, %v1688_v31 }
 0x111   : > { %1671 = vmatprep.subr.bf16.mxu1 %v5545_v37 }
 0x112   : > { %5378 = vmatmul.mubr.msk.bf16.vlgmr.msra.gmra.mrb[12].mxu0 %vm1434_vm15, %v1689_v33 }
 0x114   : > { %1672 = vmatpush1.bf16.msra.mxu1 %v5547_v10 }
 0x115   : > { %1673 = vmatprep.subr.bf16.mxu1 %v5548_v12 }
 0x118   : > { %1674 = vmatpush1.bf16.msra.mxu1 %v5550_v39 }
 0x119   : > { %1675 = vmatprep.subr.bf16.mxu1 %v5551_v44  ;;  %v6007_v44 = vadd.s32 8, %v5759_v6 }
 0x11b   : > { %v8294_v18 = vcvt.s32.f32 %v6007_v44 }
 0x11c   : > { %1676 = vmatpush1.bf16.msra.mxu1 %v5553_v46 }
 0x1ad   : > { %v1383_v35 = vpop.f32.mrb[0].mxu0 }
 0x1ae   : > { %v5446_v36 = vpop.f32.mrb[1].mxu0 }
 0x1af   : > { %v1386_v11 = vpop.f32.mrb[2].mxu0 }
 0x1b0   : > { %v5447_v38 = vpop.f32.mrb[3].mxu0  ;;  %v1408_v41 = vrot.slane %v1386_v11, 1 }
 0x1b5   : > { %v1391_v40 = vpop.f32.mrb[4].mxu0 }
 0x1b6   : > { %v1409_v42 = vrot.slane %v1391_v40, 1  ;;  %v5450_v43 = vpop.f32.mrb[5].mxu0  ;;  %v1418_v48 = vrot.slane %v1391_v40, 2 }
 0x1b7   : > { %v1394_v45 = vpop.f32.mrb[6].mxu0 }
 0x1b8   : > { %v1410_v8 = vsel %vm1407_vm13, %v1408_v41, %v1409_v42  ;;  %v1419_v49 = vrot.slane %v1394_v45, 2  ;;  %v5451_v50 = vpop.f32.mrb[7].mxu0  ;;  %v1425_v56 = vrot.slane %v1394_v45, 3 }
 0x1b9   : > { %v5496_v51 = vpack.i.bf16 %v1409_v42, %v1410_v8  ;;  %v6013_v8 = vadd.s32 16, %v5759_v6  ;;  %v6022_v50 = vadd.s32 40, %v5759_v6 }
 0x1ba   : > { %v1420_v52 = vsel %vm1296_vm4, %v1418_v48, %v1419_v49  ;;  %v6016_v48 = vadd.s32 24, %v5759_v6 }
 0x1bb   : > { %5497 = vrot.lane.b32.xlu1 %v5496_v51, %s5598_s4  ;;  %v6025_v51 = vadd.s32 48, %v5759_v6 }
 0x1bd   : > { %v1399_v54 = vpop.f32.mrb[8].mxu0 }
 0x1be   : > { %v1426_v57 = vrot.slane %v1399_v54, 3  ;;  %v5454_v58 = vpop.f32.mrb[9].mxu0  ;;  %v6031_v54 = vadd.s32 64, %v5759_v6 }
 0x1bf   : > { %v1402_v59 = vpop.f32.mrb[10].mxu0  ;;  %1482 = vperm.xlu1 %5502, %v1474_v53   ;;  %v8225_v58 = vcvt.s32.f32 %v6007_v44 }
 0x1c0   : > { %v1427_v61 = vsel %vm1424_vm14, %v1425_v56, %v1426_v57  ;;  %v5455_v62 = vpop.f32.mrb[11].mxu0  ;;  %v6034_v56 = vadd.s32 72, %v5759_v6  ;;  %v6039_v59 = vadd.s32 80, %v5759_v6 }
 0x1c1   : > { %v5491_v63 = vpack.i.bf16 %v1426_v57, %v1427_v61  ;;  %v901_v57 = vcvt.s32.f32 %v5759_v6  ;;  %v6042_v61 = vadd.s32 88, %v5759_v6 }
 0x1c3   : > { %5492 = vrot.lane.b32.xlu0 %v5491_v63, %s5598_s4  ;;  %v8220_v23 = vcvt.s32.f32 %v6042_v61  ;;  %s825_s4 = scalar_lea.vmem %s8316_s3, %s5743_s27  ;;  %s8256_s3 = smov 111  }
 0x1c7   : > { %1477 = vperm.xlu0 %5501, %v1473_v4   ;;  %v8222_v4 = vcvt.s32.f32 %v6013_v8 }
 0x1c9   : > { %v935_v24 = vadd.f32 0.5, %v8222_v4 }
 0x1cb   : > { %v967_v55 = vmul.f32 0.0625, %v935_v24 }
 0x1cd   : > { %v6102_v24 = vfloor.f32 %v967_v55 }
 0x22d   : > { %v5498_v0 = vpop.permute.xlu1 %5497 }
 0x22e   : > { %v5500_v1 = vunpack.i.h.bf16 %v5498_v0  ;;  %v5499_v2 = vunpack.i.l.bf16 %v5498_v0  ;;  %v8221_v0 = vcvt.s32.f32 %v6016_v48 }
 0x230   : > { %v1435_v3 = vsel %vm1434_vm15, %v1383_v35, %v5499_v2  ;;  %v1436_v9 = vsel %vm1434_vm15, %v1386_v11, %v5500_v1  ;;  %v5991_v35 = vand.u32 127, %v853_v5  ;;  %v8217_v2 = vcvt.s32.f32 %v6022_v50 }
 0x231   : > { %v1439_v13 = vpack.c.bf16 %v1436_v9, %v1435_v3  ;;  %v8216_v3 = vcvt.s32.f32 %v6025_v51  ;;  %v936_v25 = vadd.f32 0.5, %v8221_v0 }
 0x232   : > { %8291 = vst [vmem:[#allocation11_spill] sm:$0xff] %v5991_v35  ;;  %v856_v36 = vcvt.s32.f32 %v5991_v35  ;;  %v5995_v37 = vadd.s32 128, %v5991_v35  ;;  %v938_v29 = vadd.f32 0.5, %v8217_v2  ;;  %v8296_v35 = vcvt.s32.f32 %v6016_v48 }
 0x233   : > { %v939_v30 = vadd.f32 0.5, %v8216_v3 }
 0x234   : > { %v858_v10 = vadd.f32 0.5, %v856_v36  ;;  %v857_v11 = vcvt.s32.f32 %v5995_v37 }
 0x235   : > { %v5493_v14 = vpop.permute.xlu0 %5492 }
 0x236   : > { %v5495_v16 = vunpack.i.h.bf16 %v5493_v14  ;;  %v5494_v17 = vunpack.i.l.bf16 %v5493_v14  ;;  %v860_v12 = vmul.f32 0.0625, %v858_v10  ;;  %v859_v38 = vadd.f32 0.5, %v857_v11 }
 0x237   : > { %v8223_v10 = vcvt.s32.f32 %v6069_v26 }
 0x238   : > { %v1437_v20 = vsel %vm1434_vm15, %v1420_v52, %v5494_v17  ;;  %v1438_v21 = vsel %vm1434_vm15, %v1419_v49, %v5495_v16  ;;  %v6000_v39 = vfloor.f32 %v860_v12  ;;  %v861_v40 = vmul.f32 0.0625, %v859_v38 }
 0x239   : > { %v1440_v22 = vpack.c.bf16 %v1438_v21, %v1437_v20  ;;  %v6019_v49 = vadd.s32 32, %v5759_v6  ;;  %v6028_v52 = vadd.s32 56, %v5759_v6  ;;  %v8214_v16 = vcvt.s32.f32 %v6031_v54 }
 0x23a   : > { %v5379_v41 = vadd.f32 -8.0, %v6000_v39  ;;  %v6003_v42 = vfloor.f32 %v861_v40  ;;  %v864_v45 = vmul.f32 16.0, %v6000_v39  ;;  %v8213_v17 = vcvt.s32.f32 %v6034_v56 }
 0x23b   : > { %1677 = vmatprep.mubr.bf16.mxu1 %v1440_v22  ;;  %v8219_v1 = vcvt.s32.f32 %v6019_v49  ;;  %v8215_v9 = vcvt.s32.f32 %v6028_v52  ;;  %v933_v20 = vadd.f32 0.5, %v901_v57  ;;  %v934_v21 = vadd.f32 0.5, %v8225_v58 }
 0x23c   : > { %1678 = vmatmul.mubr.bf16.vlgmr.msra.gmra.mrb[0].mxu1 %v1439_v13  ;;  %v1785_v5 = vmul.f32 0.0625, %v5379_v41  ;;  %v5380_v43 = vadd.f32 -8.0, %v6003_v42  ;;  %v6044_v62 = vsub.f32 %v856_v36, %v864_v45  ;;  %v8218_v22 = vcvt.s32.f32 %v6039_v59 }
 0x23d   : > { %v937_v28 = vadd.f32 0.5, %v8219_v1  ;;  %v940_v31 = vadd.f32 0.5, %v8215_v9  ;;  %v941_v33 = vadd.f32 0.5, %v8214_v16  ;;  %v942_v36 = vadd.f32 0.5, %v8213_v17 }
 0x23e   : > { %v6010_v46 = vadd.f32 0.0001, %v1785_v5  ;;  %v1786_v53 = vmul.f32 0.0625, %v5380_v43  ;;  %v8224_v12 = vcvt.s32.f32 %v6072_v27  ;;  %v865_v38 = vmul.f32 16.0, %v6003_v42  ;;  %v1483_v44 = vpop.permute.xlu1 %1482 }
 0x23f   : > { %v943_v40 = vadd.f32 0.5, %v8218_v22  ;;  %v944_v41 = vadd.f32 0.5, %v8220_v23  ;;  %v965_v5 = vmul.f32 0.0625, %v933_v20  ;;  %v966_v43 = vmul.f32 0.0625, %v934_v21 }
 0x240   : > { %v6054_v14 = vadd.f32 0.0001, %v1786_v53  ;;  %v945_v45 = vadd.f32 0.5, %v8223_v10  ;;  %v946_v53 = vadd.f32 0.5, %v8224_v12  ;;  %v968_v13 = vmul.f32 0.0625, %v936_v25 }
 0x241   : > { %v969_v63 = vmul.f32 0.0625, %v937_v28  ;;  %v970_v17 = vmul.f32 0.0625, %v938_v29  ;;  %v971_v16 = vmul.f32 0.0625, %v939_v30  ;;  %v972_v9 = vmul.f32 0.0625, %v940_v31 }
 0x242   : > { %v973_v3 = vmul.f32 0.0625, %v941_v33  ;;  %v974_v2 = vmul.f32 0.0625, %v942_v36  ;;  %v975_v1 = vmul.f32 0.0625, %v943_v40  ;;  %v976_v23 = vmul.f32 0.0625, %v944_v41 }
 0x243   : > { %v977_v20 = vmul.f32 0.0625, %v945_v45  ;;  %v5600_v21 = vmov 1983009808   ;;  %v6098_v4 = vfloor.f32 %v965_v5  ;;  %v6100_v10 = vfloor.f32 %v966_v43 }
 0x244   : > { %v5100_v0 = vunpack.c.l.s4 %v5600_v21  ;;  %v978_v12 = vmul.f32 0.0625, %v946_v53  ;;  %v6104_v25 = vfloor.f32 %v968_v13  ;;  %v6106_v28 = vfloor.f32 %v969_v63 }
 0x245   : > { %v6108_v29 = vfloor.f32 %v970_v17  ;;  %v6110_v30 = vfloor.f32 %v971_v16  ;;  %v6112_v31 = vfloor.f32 %v972_v9  ;;  %v6114_v33 = vfloor.f32 %v973_v3 }
 0x246   : > { %v6116_v36 = vfloor.f32 %v974_v2  ;;  %v1794_v40 = vsub.f32 0.0, %v6054_v14  ;;  %v6119_v41 = vfloor.f32 %v975_v1  ;;  %v6121_v55 = vfloor.f32 %v976_v23  ;;  %v1478_v22 = vpop.permute.xlu0 %1477 }
 0x247   : > { %v6123_v13 = vfloor.f32 %v977_v20  ;;  %v5101_v63 = vunpack.c.0.s8 %v5100_v0  ;;  %v1029_v17 = vmul.f32 16.0, %v6098_v4  ;;  %v1030_v16 = vmul.f32 16.0, %v6100_v10 }
 0x248   : > { %v6127_v5 = vfloor.f32 %v978_v12  ;;  %v1031_v3 = vmul.f32 16.0, %v6102_v24  ;;  %v1032_v2 = vmul.f32 16.0, %v6104_v25  ;;  %v1033_v9 = vmul.f32 16.0, %v6106_v28 }
 0x249   : > { %8292 = vst [vmem:[#allocation12_spill] sm:$0xff] %v6123_v13  ;;  %v1034_v1 = vmul.f32 16.0, %v6108_v29  ;;  %v1035_v23 = vmul.f32 16.0, %v6110_v30  ;;  %v1036_v43 = vmul.f32 16.0, %v6112_v31  ;;  %v1037_v0 = vmul.f32 16.0, %v6114_v33 }
 0x24a   : > { %8293 = vst [vmem:[#allocation13_spill] sm:$0xff] %v6127_v5  ;;  %v1038_v45 = vmul.f32 16.0, %v6116_v36  ;;  %v867_v12 = vsub.f32 %v857_v11, %v865_v38  ;;  %v1039_v53 = vmul.f32 16.0, %v6119_v41  ;;  %v1040_v20 = vmul.f32 16.0, %v6121_v55 }
 0x24b   : > { %v1041_v21 = vmul.f32 16.0, %v6123_v13  ;;  %v6143_v58 = vsub.s32 %v5101_v63, %v5759_v6  ;;  %v6147_v32 = vsub.f32 %v901_v57, %v1029_v17  ;;  %v6151_v60 = vsub.f32 %v8294_v18, %v1030_v16 }
 0x24c   : > { %v1042_v37 = vmul.f32 16.0, %v6127_v5  ;;  %v8295_v11 = vcvt.s32.f32 %v6013_v8  ;;  %v6160_v7 = vsub.f32 %v8296_v35, %v1032_v2  ;;  %v8297_v63 = vcvt.s32.f32 %v6019_v49 }
 0x24d   : > { %v8298_v57 = vcvt.s32.f32 %v6022_v50  ;;  %v8299_v16 = vcvt.s32.f32 %v6025_v51  ;;  %v8300_v8 = vcvt.s32.f32 %v6028_v52  ;;  %v8301_v35 = vcvt.s32.f32 %v6031_v54 }
 0x24e   : > { %v6156_v38 = vsub.f32 %v8295_v11, %v1031_v3  ;;  %v6164_v13 = vsub.f32 %v8297_v63, %v1033_v9  ;;  %v8302_v49 = vcvt.s32.f32 %v6034_v56  ;;  %v6207_v63 = vadd.s32 112, %v5759_v6 }
 0x24f   : > { %v6168_v17 = vsub.f32 %v8298_v57, %v1034_v1  ;;  %v6172_v5 = vsub.f32 %v8299_v16, %v1035_v23  ;;  %v6176_v3 = vsub.f32 %v8300_v8, %v1036_v43  ;;  %v6180_v48 = vsub.f32 %v8301_v35, %v1037_v0 }
 0x250   : > { %v6184_v2 = vsub.f32 %v8302_v49, %v1038_v45  ;;  %v8303_v1 = vcvt.s32.f32 %v6039_v59  ;;  %v8304_v23 = vcvt.s32.f32 %v6042_v61  ;;  %v8305_v43 = vcvt.s32.f32 %v6069_v26 }
 0x251   : > { %v8306_v45 = vcvt.s32.f32 %v6072_v27  ;;  %v6210_v59 = vadd.s32 120, %v5759_v6  ;;  %v8307_v61 = vsub.f32 1.0, %v6010_v46  ;;  %v8308_v26 = vsub.f32 0.0, %v6010_v46 }
 0x252   : > { %v6190_v51 = vsub.f32 %v8303_v1, %v1039_v53  ;;  %v6194_v52 = vsub.f32 %v8304_v23, %v1040_v20  ;;  %v6198_v54 = vsub.f32 %v8305_v43, %v1041_v21 }
 0x253   : > { %v6204_v11 = vsub.f32 %v8306_v45, %v1042_v37  ;;  %v8309_v37 = vsub.f32 1.0, %v6054_v14 }
 0x30f   : > { %v1679_v18 = vpop.f32.mrb[0].mxu1 }
 0x310   : > { %v6186_v50 = vadd.f32 %v1679_v18, %v1478_v22  ;;  %v1681_v9 = vpop.f32.mrb[1].mxu1 }
 0x311   : > { %v6200_v0 = vadd.f32 %v1681_v9, %v1478_v22  ;;  %v1683_v56 = vpop.f32.mrb[2].mxu1 }
 0x312   : > { %v1791_v53 = vmul.f32 %v8307_v61, %v6186_v50  ;;  %v1795_v22 = vmul.f32 %v8308_v26, %v6186_v50  ;;  %v3179_v20 = vrot.slane %v6186_v50, 1  ;;  %v1684_v21 = vadd.f32 %v1683_v56, %v1483_v44  ;;  %v1685_v27 = vpop.f32.mrb[3].mxu1 }
 0x313   : > { %v1792_v57 = vmul.f32 %v8309_v37, %v6200_v0  ;;  %v1796_v18 = vmul.f32 %v1794_v40, %v6200_v0  ;;  %v3182_v16 = vrot.slane %v6200_v0, 1  ;;  %v1686_v8 = vadd.f32 %v1685_v27, %v1483_v44 }
 0x314   : > { %v1797_v35 = vadd.f32 %v1791_v53, %v6044_v62  ;;  %v1803_v49 = vadd.f32 %v1791_v53, %v6000_v39  ;;  %v2480_v46 = vadd.f32 %v1795_v22, %v6044_v62  ;;  %v2486_v9 = vadd.f32 %v1795_v22, %v6000_v39 }
 0x315   : > { %v6229_v50 = vsel %vm1304_vm7, %v1791_v53, %v1795_v22  ;;  %v1798_v1 = vadd.f32 %v1792_v57, %v867_v12  ;;  %v1804_v14 = vadd.f32 %v1792_v57, %v6003_v42  ;;  %v2481_v23 = vadd.f32 %v1796_v18, %v867_v12 }
 0x316   : > { %v1799_v43 = vmax.f32 %v1797_v35, 0.0  ;;  %v1805_v40 = vmax.f32 %v1803_v49, 0.0  ;;  %v2482_v56 = vmax.f32 %v2480_v46, 0.0  ;;  %v2488_v0 = vmax.f32 %v2486_v9, 0.0  ;;  %3203 = vrot.lane.b32.xlu1 %v6229_v50, %s8254_s7 }
 0x317   : > { %v1800_v44 = vmax.f32 %v1798_v1, 0.0  ;;  %v1806_v45 = vmax.f32 %v1804_v14, 0.0  ;;  %v2483_v62 = vmax.f32 %v2481_v23, 0.0  ;;  %v2487_v39 = vadd.f32 %v1796_v18, %v6003_v42 }
 0x318   : > { %v1801_v61 = vmin.f32 %v1799_v43, 15.0  ;;  %v1807_v26 = vmin.f32 %v1805_v40, 15.0  ;;  %v2484_v27 = vmin.f32 %v2482_v56, 15.0  ;;  %v2490_v37 = vmin.f32 %v2488_v0, 15.0 }
 0x319   : > { %v1802_v6 = vmin.f32 %v1800_v44, 15.0  ;;  %v1808_v12 = vmin.f32 %v1806_v45, 15.0  ;;  %v2485_v35 = vmin.f32 %v2483_v62, 15.0  ;;  %v2489_v49 = vmax.f32 %v2487_v39, 0.0 }
 0x31a   : > { %v6236_v46 = vrot.slane %v1801_v61, %v5789_v19  ;;  %v6239_v9 = vrot.slane %v1807_v26, %v5784_v15  ;;  %v6242_v1 = vrot.slane %v2484_v27, %v5794_v34  ;;  %v6245_v14 = vrot.slane %v2490_v37, %v5801_v47  ;;  %3240 = vrot.lane.b32.xlu1 %v6229_v50, %s8258_s30 }
 0x31b   : > { %v6254_v42 = vrot.slane %v1802_v6, %v5789_v19  ;;  %v6257_v23 = vrot.slane %v1808_v12, %v5784_v15  ;;  %v2491_v43 = vmin.f32 %v2489_v49, 15.0  ;;  %v6260_v40 = vrot.slane %v2485_v35, %v5794_v34 }
 0x31c   : > { %v6263_v56 = vsel %vm1304_vm7, %v1792_v57, %v1796_v18  ;;  %v5086_v0 = vcombine.low %v1791_v53, %v1792_v57  ;;  %v5098_v44 = vcombine.low %v1795_v22, %v1796_v18  ;;  %v3180_v45 = vrot.slane %v1684_v21, 1 }
 0x31d   : > { %v6266_v62 = vrot.slane %v2491_v43, %v5801_v47  ;;  %v3183_v39 = vrot.slane %v1686_v8, 1  ;;  %3209 = vrot.lane.b32.xlu0 %v6263_v56, %s8254_s7  ;;  %v1824_v6 = vsub.f32 %v6254_v42, %v6147_v32  ;;  %v1826_v61 = vsub.f32 %v6254_v42, %v6151_v60 }
 0x31e   : > { %5411 = vst.sshfl [vmem:[%s840_s6] sm:$0x33 pattern:$0x76325410] %v5086_v0  ;;  %v5105_v26 = vrot.slane %v5098_v44, %v6143_v58  ;;  %v6276_v53 = vsel %vm1407_vm13, %v3179_v20, %v3180_v45  ;;  %3277 = vrot.lane.b32.xlu1 %v6229_v50, %s8252_s9  ;;  %v2088_v22 = vsub.f32 %v6257_v23, %v6098_v4  ;;  %s8315_s6 = sld [smem:[#allocation17_spill]] }
 0x31f   : > { %v2090_v21 = vsub.f32 %v6257_v23, %v6100_v10  ;;  %v6289_v57 = vsel %vm1407_vm13, %v3182_v16, %v3183_v39  ;;  %v1888_v58 = vand.u32 2147483647, %v1824_v6  ;;  %v1890_v20 = vand.u32 2147483647, %v1826_v61 }
 0x320   : > { %v2507_v18 = vsub.f32 %v6260_v40, %v6147_v32  ;;  %v5106_v8 = vcombine.high %v5105_v26, %v5105_v26  ;;  %v2152_v27 = vand.u32 2147483647, %v2088_v22  ;;  %v2509_v12 = vsub.f32 %v6260_v40, %v6151_v60 }
 0x321   : > { %v2154_v37 = vand.u32 2147483647, %v2090_v21  ;;  %3246 = vrot.lane.b32.xlu0 %v6263_v56, %s8258_s30  ;;  %v1952_v35 = vsub.f32 1.0, %v1888_v58  ;;  %v1954_v49 = vsub.f32 1.0, %v1890_v20  ;;  %v2771_v16 = vsub.f32 %v6266_v62, %v6098_v4 }
 0x322   : > { %v2571_v43 = vand.u32 2147483647, %v2507_v18  ;;  %5108 = vst [vmem:[%s845_s2] sm:$0xf] %v5106_v8  ;;  %3314 = vrot.lane.b32.xlu1 %v6229_v50, %s8310_s28  ;;  %v2216_v0 = vsub.f32 1.0, %v2152_v27  ;;  %v2573_v45 = vand.u32 2147483647, %v2509_v12  ;;  %v2773_v39 = vsub.f32 %v6266_v62, %v6100_v10 }
 0x323   : > { %v2218_v44 = vsub.f32 1.0, %v2154_v37  ;;  %v2016_v6 = vmax.f32 %v1952_v35, 0.0  ;;  %v2018_v61 = vmax.f32 %v1954_v49, 0.0  ;;  %v2835_v22 = vand.u32 2147483647, %v2771_v16  ;;  %s8260_s2 = smov 112  }
 0x324   : > { %v2635_v26 = vsub.f32 1.0, %v2571_v43  ;;  %v2280_v21 = vmax.f32 %v2216_v0, 0.0  ;;  %v2637_v20 = vsub.f32 1.0, %v2573_v45  ;;  %v2837_v18 = vand.u32 2147483647, %v2773_v39  ;;  %s820_s29 = scalar_lea.vmem %s8315_s6, %s5743_s27  ;;  %s8331_s6 = smov 17  }
 0x325   : > { %v2282_v58 = vmax.f32 %v2218_v44, 0.0  ;;  %3283 = vrot.lane.b32.xlu0 %v6263_v56, %s8252_s9  ;;  %v2899_v47 = vsub.f32 1.0, %v2835_v22  ;;  %v1823_v27 = vsub.f32 %v6236_v46, %v6147_v32  ;;  %v1825_v37 = vsub.f32 %v6236_v46, %v6151_v60 }
 0x326   : > { %v2699_v8 = vmax.f32 %v2635_v26, 0.0  ;;  %3369 = vrot.lane.b32.xlu1 %v6229_v50, %s8311_s0  ;;  %v2344_v12 = vmul.f32 %v2280_v21, %v2016_v6  ;;  %v2701_v49 = vmax.f32 %v2637_v20, 0.0  ;;  %v2901_v43 = vsub.f32 1.0, %v2837_v18 }
 0x327   : > { %v2346_v35 = vmul.f32 %v2282_v58, %v2018_v61  ;;  %v2963_v16 = vmax.f32 %v2899_v47, 0.0  ;;  %v1887_v0 = vand.u32 2147483647, %v1823_v27  ;;  %v1889_v44 = vand.u32 2147483647, %v1825_v37 }
 0x328   : > { %v2087_v45 = vsub.f32 %v6239_v9, %v6098_v4  ;;  %v2965_v26 = vmax.f32 %v2901_v43, 0.0  ;;  %v2089_v22 = vsub.f32 %v6239_v9, %v6100_v10  ;;  %v2506_v34 = vsub.f32 %v6242_v1, %v6147_v32 }
 0x329   : > { %v2408_v39 = vpack.c.bf16 %v2346_v35, %v2344_v12  ;;  %3320 = vrot.lane.b32.xlu0 %v6263_v56, %s8310_s28  ;;  %v3027_v6 = vmul.f32 %v2963_v16, %v2699_v8  ;;  %v1951_v61 = vsub.f32 1.0, %v1887_v0  ;;  %v1953_v21 = vsub.f32 1.0, %v1889_v44 }
 0x32a   : > { %v2151_v47 = vand.u32 2147483647, %v2087_v45  ;;  %v3029_v58 = vmul.f32 %v2965_v26, %v2701_v49  ;;  %v2153_v20 = vand.u32 2147483647, %v2089_v22  ;;  %v2508_v18 = vsub.f32 %v6242_v1, %v6151_v60 }
 0x32b   : > { %2439 = vmatprep.subr.bf16.mxu0 %v2408_v39  ;;  %v2570_v27 = vand.u32 2147483647, %v2506_v34  ;;  %v2015_v37 = vmax.f32 %v1951_v61, 0.0  ;;  %v2017_v12 = vmax.f32 %v1953_v21, 0.0  ;;  %v2770_v32 = vsub.f32 %v6245_v14, %v6098_v4 }
 0x32c   : > { %v2215_v35 = vsub.f32 1.0, %v2151_v47  ;;  %v3091_v43 = vpack.c.bf16 %v3029_v58, %v3027_v6  ;;  %v2217_v15 = vsub.f32 1.0, %v2153_v20  ;;  %v2572_v19 = vand.u32 2147483647, %v2508_v18 }
 0x32d   : > { %v2634_v8 = vsub.f32 1.0, %v2570_v27  ;;  %3375 = vrot.lane.b32.xlu0 %v6263_v56, %s8311_s0  ;;  %v2772_v49 = vsub.f32 %v6245_v14, %v6100_v10  ;;  %v2834_v0 = vand.u32 2147483647, %v2770_v32  ;;  %v1828_v34 = vsub.f32 %v6254_v42, %v6156_v38 }
 0x32e   : > { %v2279_v16 = vmax.f32 %v2215_v35, 0.0  ;;  %3122 = vmatprep.subr.bf16.mxu1 %v3091_v43  ;;  %v2281_v60 = vmax.f32 %v2217_v15, 0.0  ;;  %v2636_v44 = vsub.f32 1.0, %v2572_v19  ;;  %v1830_v4 = vsub.f32 %v6254_v42, %v6160_v7 }
 0x32f   : > { %v2698_v45 = vmax.f32 %v2634_v8, 0.0  ;;  %v2836_v26 = vand.u32 2147483647, %v2772_v49  ;;  %v2898_v22 = vsub.f32 1.0, %v2834_v0  ;;  %v1892_v6 = vand.u32 2147483647, %v1828_v34 }
 0x330   : > { %v2343_v39 = vmul.f32 %v2279_v16, %v2015_v37  ;;  %v2345_v61 = vmul.f32 %v2281_v60, %v2017_v12  ;;  %v2700_v21 = vmax.f32 %v2636_v44, 0.0  ;;  %v1894_v47 = vand.u32 2147483647, %v1830_v4 }
 0x331   : > { %v2092_v10 = vsub.f32 %v6257_v23, %v6102_v24  ;;  %v2900_v58 = vsub.f32 1.0, %v2836_v26  ;;  %v2962_v20 = vmax.f32 %v2898_v22, 0.0  ;;  %v1956_v18 = vsub.f32 1.0, %v1892_v6 }
 0x332   : > { %v2094_v15 = vsub.f32 %v6257_v23, %v6104_v25  ;;  %v2407_v19 = vpack.c.bf16 %v2345_v61, %v2343_v39  ;;  %v1958_v27 = vsub.f32 1.0, %v1894_v47  ;;  %v2511_v37 = vsub.f32 %v6260_v40, %v6156_v38 }
 0x333   : > { %v2156_v35 = vand.u32 2147483647, %v2092_v10  ;;  %v2964_v32 = vmax.f32 %v2900_v58, 0.0  ;;  %v3026_v43 = vmul.f32 %v2962_v20, %v2698_v45  ;;  %v2020_v12 = vmax.f32 %v1956_v18, 0.0 }
 0x334   : > { %v2158_v8 = vand.u32 2147483647, %v2094_v15  ;;  %2440 = vmatpush1.bf16.msra.mxu0 %v2407_v19  ;;  %v2022_v16 = vmax.f32 %v1958_v27, 0.0  ;;  %v2513_v0 = vsub.f32 %v6260_v40, %v6160_v7  ;;  %v2575_v34 = vand.u32 2147483647, %v2511_v37 }
 0x335   : > { %v2220_v49 = vsub.f32 1.0, %v2156_v35  ;;  %v3028_v60 = vmul.f32 %v2964_v32, %v2700_v21  ;;  %v2775_v4 = vsub.f32 %v6266_v62, %v6102_v24  ;;  %v2777_v39 = vsub.f32 %v6266_v62, %v6104_v25 }
 0x336   : > { %v2222_v44 = vsub.f32 1.0, %v2158_v8  ;;  %v2577_v22 = vand.u32 2147483647, %v2513_v0  ;;  %v2639_v45 = vsub.f32 1.0, %v2575_v34  ;;  %v1827_v6 = vsub.f32 %v6236_v46, %v6156_v38 }
 0x337   : > { %v2284_v26 = vmax.f32 %v2220_v49, 0.0  ;;  %v3090_v61 = vpack.c.bf16 %v3028_v60, %v3026_v43  ;;  %v2839_v10 = vand.u32 2147483647, %v2775_v4  ;;  %v2841_v58 = vand.u32 2147483647, %v2777_v39 }
 0x338   : > { %v2286_v47 = vmax.f32 %v2222_v44, 0.0  ;;  %v2641_v18 = vsub.f32 1.0, %v2577_v22  ;;  %v2703_v21 = vmax.f32 %v2639_v45, 0.0  ;;  %v1829_v15 = vsub.f32 %v6236_v46, %v6160_v7 }
 0x339   : > { %v2348_v20 = vmul.f32 %v2284_v26, %v2020_v12  ;;  %3123 = vmatpush1.bf16.msra.mxu1 %v3090_v61  ;;  %v2903_v27 = vsub.f32 1.0, %v2839_v10  ;;  %v2905_v35 = vsub.f32 1.0, %v2841_v58  ;;  %v1891_v37 = vand.u32 2147483647, %v1827_v6 }
 0x33a   : > { %v2350_v19 = vmul.f32 %v2286_v47, %v2022_v16  ;;  %v2705_v32 = vmax.f32 %v2641_v18, 0.0  ;;  %v1893_v8 = vand.u32 2147483647, %v1829_v15  ;;  %v2091_v49 = vsub.f32 %v6239_v9, %v6102_v24 }
 0x33b   : > { %v2093_v43 = vsub.f32 %v6239_v9, %v6104_v25  ;;  %v2967_v12 = vmax.f32 %v2903_v27, 0.0  ;;  %v2969_v34 = vmax.f32 %v2905_v35, 0.0  ;;  %v1955_v60 = vsub.f32 1.0, %v1891_v37 }
 0x33c   : > { %v2410_v0 = vpack.c.bf16 %v2350_v19, %v2348_v20  ;;  %v1957_v44 = vsub.f32 1.0, %v1893_v8  ;;  %v2155_v4 = vand.u32 2147483647, %v2091_v49  ;;  %v2510_v16 = vsub.f32 %v6242_v1, %v6156_v38 }
 0x33d   : > { %v2157_v39 = vand.u32 2147483647, %v2093_v43  ;;  %v3031_v26 = vmul.f32 %v2967_v12, %v2703_v21  ;;  %v3033_v22 = vmul.f32 %v2969_v34, %v2705_v32  ;;  %v2019_v45 = vmax.f32 %v1955_v60, 0.0 }
 0x33e   : > { %2441 = vmatprep.subr.bf16.mxu0 %v2410_v0  ;;  %v2512_v6 = vsub.f32 %v6242_v1, %v6160_v7  ;;  %v2021_v61 = vmax.f32 %v1957_v44, 0.0  ;;  %v2219_v47 = vsub.f32 1.0, %v2155_v4  ;;  %v2574_v58 = vand.u32 2147483647, %v2510_v16 }
 0x33f   : > { %v2221_v10 = vsub.f32 1.0, %v2157_v39  ;;  %v3093_v20 = vpack.c.bf16 %v3033_v22, %v3031_v26  ;;  %v2774_v15 = vsub.f32 %v6245_v14, %v6102_v24  ;;  %v2776_v19 = vsub.f32 %v6245_v14, %v6104_v25 }
 0x340   : > { %v2576_v18 = vand.u32 2147483647, %v2512_v6  ;;  %v2283_v38 = vmax.f32 %v2219_v47, 0.0  ;;  %v2638_v21 = vsub.f32 1.0, %v2574_v58  ;;  %v1832_v35 = vsub.f32 %v6254_v42, %v6164_v13 }
 0x341   : > { %v2285_v27 = vmax.f32 %v2221_v10, 0.0  ;;  %3124 = vmatprep.subr.bf16.mxu1 %v3093_v20  ;;  %v2838_v37 = vand.u32 2147483647, %v2774_v15  ;;  %v2840_v32 = vand.u32 2147483647, %v2776_v19  ;;  %v1834_v8 = vsub.f32 %v6254_v42, %v6168_v17 }
 0x342   : > { %v2640_v7 = vsub.f32 1.0, %v2576_v18  ;;  %v2347_v49 = vmul.f32 %v2283_v38, %v2019_v45  ;;  %v2702_v0 = vmax.f32 %v2638_v21, 0.0  ;;  %v1896_v24 = vand.u32 2147483647, %v1832_v35 }
 0x343   : > { %v2349_v43 = vmul.f32 %v2285_v27, %v2021_v61  ;;  %v2902_v34 = vsub.f32 1.0, %v2838_v37  ;;  %v2904_v25 = vsub.f32 1.0, %v2840_v32  ;;  %v1898_v60 = vand.u32 2147483647, %v1834_v8 }
 0x344   : > { %v2704_v12 = vmax.f32 %v2640_v7, 0.0  ;;  %v1960_v4 = vsub.f32 1.0, %v1896_v24  ;;  %v2096_v39 = vsub.f32 %v6257_v23, %v6106_v28  ;;  %v2098_v16 = vsub.f32 %v6257_v23, %v6108_v29 }
 0x345   : > { %v2409_v44 = vpack.c.bf16 %v2349_v43, %v2347_v49  ;;  %v2966_v26 = vmax.f32 %v2902_v34, 0.0  ;;  %v2968_v22 = vmax.f32 %v2904_v25, 0.0  ;;  %v1962_v6 = vsub.f32 1.0, %v1898_v60 }
 0x346   : > { %v2515_v45 = vsub.f32 %v6260_v40, %v6164_v13  ;;  %v2024_v61 = vmax.f32 %v1960_v4, 0.0  ;;  %v2160_v47 = vand.u32 2147483647, %v2096_v39  ;;  %v2162_v10 = vand.u32 2147483647, %v2098_v16 }
 0x347   : > { %2442 = vmatpush1.bf16.msra.mxu0 %v2409_v44  ;;  %v2517_v58 = vsub.f32 %v6260_v40, %v6168_v17  ;;  %v3030_v20 = vmul.f32 %v2966_v26, %v2702_v0  ;;  %v3032_v18 = vmul.f32 %v2968_v22, %v2704_v12  ;;  %v2026_v15 = vmax.f32 %v1962_v6, 0.0 }
 0x348   : > { %v2579_v19 = vand.u32 2147483647, %v2515_v45  ;;  %v2224_v38 = vsub.f32 1.0, %v2160_v47  ;;  %v2226_v27 = vsub.f32 1.0, %v2162_v10  ;;  %v2779_v35 = vsub.f32 %v6266_v62, %v6106_v28 }
 0x349   : > { %v2581_v21 = vand.u32 2147483647, %v2517_v58  ;;  %v3092_v7 = vpack.c.bf16 %v3032_v18, %v3030_v20  ;;  %v2781_v32 = vsub.f32 %v6266_v62, %v6108_v29  ;;  %v1831_v8 = vsub.f32 %v6236_v46, %v6164_v13 }
 0x34a   : > { %v2643_v37 = vsub.f32 1.0, %v2579_v19  ;;  %v2288_v49 = vmax.f32 %v2224_v38, 0.0  ;;  %v2290_v43 = vmax.f32 %v2226_v27, 0.0  ;;  %v2843_v24 = vand.u32 2147483647, %v2779_v35 }
 0x34b   : > { %v2645_v0 = vsub.f32 1.0, %v2581_v21  ;;  %3125 = vmatpush1.bf16.msra.mxu1 %v3092_v7  ;;  %v2845_v34 = vand.u32 2147483647, %v2781_v32  ;;  %v1833_v25 = vsub.f32 %v6236_v46, %v6168_v17  ;;  %v1895_v60 = vand.u32 2147483647, %v1831_v8 }
 0x34c   : > { %v2707_v12 = vmax.f32 %v2643_v37, 0.0  ;;  %v2352_v44 = vmul.f32 %v2288_v49, %v2024_v61  ;;  %v2354_v4 = vmul.f32 %v2290_v43, %v2026_v15  ;;  %v2907_v16 = vsub.f32 1.0, %v2843_v24 }
 0x34d   : > { %v2709_v39 = vmax.f32 %v2645_v0, 0.0  ;;  %v2909_v26 = vsub.f32 1.0, %v2845_v34  ;;  %v1897_v22 = vand.u32 2147483647, %v1833_v25  ;;  %v1959_v6 = vsub.f32 1.0, %v1895_v60 }
 0x34e   : > { %v2095_v45 = vsub.f32 %v6239_v9, %v6106_v28  ;;  %v2412_v47 = vpack.c.bf16 %v2354_v4, %v2352_v44  ;;  %v2971_v10 = vmax.f32 %v2907_v16, 0.0  ;;  %v2097_v58 = vsub.f32 %v6239_v9, %v6108_v29 }
 0x34f   : > { %v2514_v20 = vsub.f32 %v6242_v1, %v6164_v13  ;;  %v2973_v18 = vmax.f32 %v2909_v26, 0.0  ;;  %v1961_v19 = vsub.f32 1.0, %v1897_v22  ;;  %v2023_v61 = vmax.f32 %v1959_v6, 0.0 }
 0x350   : > { %v2159_v15 = vand.u32 2147483647, %v2095_v45  ;;  %2443 = vmatprep.subr.bf16.mxu0 %v2412_v47  ;;  %v3035_v38 = vmul.f32 %v2971_v10, %v2707_v12  ;;  %v2161_v27 = vand.u32 2147483647, %v2097_v58  ;;  %v2516_v21 = vsub.f32 %v6242_v1, %v6168_v17 }
 0x351   : > { %v2578_v35 = vand.u32 2147483647, %v2514_v20  ;;  %v3037_v7 = vmul.f32 %v2973_v18, %v2709_v39  ;;  %v2025_v37 = vmax.f32 %v1961_v19, 0.0  ;;  %v2778_v8 = vsub.f32 %v6245_v14, %v6106_v28 }
 0x352   : > { %v2223_v32 = vsub.f32 1.0, %v2159_v15  ;;  %v2225_v49 = vsub.f32 1.0, %v2161_v27  ;;  %v2580_v43 = vand.u32 2147483647, %v2516_v21  ;;  %v2780_v0 = vsub.f32 %v6245_v14, %v6108_v29 }
 0x353   : > { %v2642_v13 = vsub.f32 1.0, %v2578_v35  ;;  %v3095_v24 = vpack.c.bf16 %v3037_v7, %v3035_v38  ;;  %v2842_v12 = vand.u32 2147483647, %v2778_v8  ;;  %v1836_v25 = vsub.f32 %v6254_v42, %v6172_v5 }
 0x354   : > { %v2287_v34 = vmax.f32 %v2223_v32, 0.0  ;;  %v2289_v17 = vmax.f32 %v2225_v49, 0.0  ;;  %v2644_v60 = vsub.f32 1.0, %v2580_v43  ;;  %v2844_v4 = vand.u32 2147483647, %v2780_v0 }
 0x355   : > { %v2706_v44 = vmax.f32 %v2642_v13, 0.0  ;;  %3126 = vmatprep.subr.bf16.mxu1 %v3095_v24  ;;  %v2906_v16 = vsub.f32 1.0, %v2842_v12  ;;  %v1838_v28 = vsub.f32 %v6254_v42, %v6176_v3  ;;  %v1900_v26 = vand.u32 2147483647, %v1836_v25 }
 0x356   : > { %v2351_v39 = vmul.f32 %v2287_v34, %v2023_v61  ;;  %v2353_v22 = vmul.f32 %v2289_v17, %v2025_v37  ;;  %v2708_v6 = vmax.f32 %v2644_v60, 0.0  ;;  %v2908_v29 = vsub.f32 1.0, %v2844_v4 }
 0x357   : > { %v2100_v45 = vsub.f32 %v6257_v23, %v6110_v30  ;;  %v2970_v47 = vmax.f32 %v2906_v16, 0.0  ;;  %v1902_v10 = vand.u32 2147483647, %v1838_v28  ;;  %v1964_v58 = vsub.f32 1.0, %v1900_v26 }
 0x358   : > { %v2102_v20 = vsub.f32 %v6257_v23, %v6112_v31  ;;  %v2411_v18 = vpack.c.bf16 %v2353_v22, %v2351_v39  ;;  %v2972_v19 = vmax.f32 %v2908_v29, 0.0  ;;  %v2519_v15 = vsub.f32 %v6260_v40, %v6172_v5 }
 0x359   : > { %v2164_v61 = vand.u32 2147483647, %v2100_v45  ;;  %v3034_v38 = vmul.f32 %v2970_v47, %v2706_v44  ;;  %v1966_v27 = vsub.f32 1.0, %v1902_v10  ;;  %v2028_v21 = vmax.f32 %v1964_v58, 0.0 }
 0x35a   : > { %v2166_v35 = vand.u32 2147483647, %v2102_v20  ;;  %2444 = vmatpush1.bf16.msra.mxu0 %v2411_v18  ;;  %v3036_v7 = vmul.f32 %v2972_v19, %v2708_v6  ;;  %v2521_v32 = vsub.f32 %v6260_v40, %v6176_v3  ;;  %v2583_v8 = vand.u32 2147483647, %v2519_v15 }
 0x35b   : > { %v2228_v37 = vsub.f32 1.0, %v2164_v61  ;;  %v2030_v49 = vmax.f32 %v1966_v27, 0.0  ;;  %v2783_v13 = vsub.f32 %v6266_v62, %v6110_v30  ;;  %v2785_v0 = vsub.f32 %v6266_v62, %v6112_v31 }
 0x35c   : > { %v2230_v43 = vsub.f32 1.0, %v2166_v35  ;;  %v3094_v24 = vpack.c.bf16 %v3036_v7, %v3034_v38  ;;  %v2585_v12 = vand.u32 2147483647, %v2521_v32  ;;  %v2647_v25 = vsub.f32 1.0, %v2583_v8 }
 0x35d   : > { %v2292_v34 = vmax.f32 %v2228_v37, 0.0  ;;  %v2847_v60 = vand.u32 2147483647, %v2783_v13  ;;  %v2849_v44 = vand.u32 2147483647, %v2785_v0  ;;  %v1835_v4 = vsub.f32 %v6236_v46, %v6172_v5 }
 0x35e   : > { %v2294_v17 = vmax.f32 %v2230_v43, 0.0  ;;  %3127 = vmatpush1.bf16.msra.mxu1 %v3094_v24  ;;  %v2649_v16 = vsub.f32 1.0, %v2585_v12  ;;  %v2711_v28 = vmax.f32 %v2647_v25, 0.0  ;;  %v1837_v26 = vsub.f32 %v6236_v46, %v6176_v3 }
 0x35f   : > { %v2356_v39 = vmul.f32 %v2292_v34, %v2028_v21  ;;  %v2911_v6 = vsub.f32 1.0, %v2847_v60  ;;  %v2913_v29 = vsub.f32 1.0, %v2849_v44  ;;  %v1899_v45 = vand.u32 2147483647, %v1835_v4 }
 0x360   : > { %v2358_v22 = vmul.f32 %v2294_v17, %v2030_v49  ;;  %v2713_v47 = vmax.f32 %v2649_v16, 0.0  ;;  %v1901_v10 = vand.u32 2147483647, %v1837_v26  ;;  %v2099_v58 = vsub.f32 %v6239_v9, %v6110_v30 }
 0x361   : > { %v2101_v20 = vsub.f32 %v6239_v9, %v6112_v31  ;;  %v2975_v19 = vmax.f32 %v2911_v6, 0.0  ;;  %v2977_v61 = vmax.f32 %v2913_v29, 0.0  ;;  %v1963_v15 = vsub.f32 1.0, %v1899_v45 }
 0x362   : > { %v2414_v18 = vpack.c.bf16 %v2358_v22, %v2356_v39  ;;  %v1965_v38 = vsub.f32 1.0, %v1901_v10  ;;  %v2163_v27 = vand.u32 2147483647, %v2099_v58  ;;  %v2518_v35 = vsub.f32 %v6242_v1, %v6172_v5 }
 0x363   : > { %v2165_v21 = vand.u32 2147483647, %v2101_v20  ;;  %v3039_v7 = vmul.f32 %v2975_v19, %v2711_v28  ;;  %v3041_v37 = vmul.f32 %v2977_v61, %v2713_v47  ;;  %v2027_v32 = vmax.f32 %v1963_v15, 0.0 }
 0x364   : > { %2445 = vmatprep.subr.bf16.mxu0 %v2414_v18  ;;  %v2520_v8 = vsub.f32 %v6242_v1, %v6176_v3  ;;  %v2029_v49 = vmax.f32 %v1965_v38, 0.0  ;;  %v2227_v43 = vsub.f32 1.0, %v2163_v27  ;;  %v2582_v0 = vand.u32 2147483647, %v2518_v35 }
 0x365   : > { %v2229_v13 = vsub.f32 1.0, %v2165_v21  ;;  %v3097_v24 = vpack.c.bf16 %v3041_v37, %v3039_v7  ;;  %v2782_v12 = vsub.f32 %v6245_v14, %v6110_v30  ;;  %v2784_v25 = vsub.f32 %v6245_v14, %v6112_v31 }
 0x366   : > { %v2584_v34 = vand.u32 2147483647, %v2520_v8  ;;  %v2291_v5 = vmax.f32 %v2227_v43, 0.0  ;;  %v2646_v60 = vsub.f32 1.0, %v2582_v0  ;;  %v1840_v44 = vsub.f32 %v6254_v42, %v6180_v48 }
 0x367   : > { %v2293_v17 = vmax.f32 %v2229_v13, 0.0  ;;  %3128 = vmatprep.subr.bf16.mxu1 %v3097_v24  ;;  %v2846_v4 = vand.u32 2147483647, %v2782_v12  ;;  %v2848_v39 = vand.u32 2147483647, %v2784_v25  ;;  %v1842_v16 = vsub.f32 %v6254_v42, %v6184_v2 }
 0x368   : > { %v2648_v3 = vsub.f32 1.0, %v2584_v34  ;;  %v2355_v28 = vmul.f32 %v2291_v5, %v2027_v32  ;;  %v2710_v22 = vmax.f32 %v2646_v60, 0.0  ;;  %v1904_v30 = vand.u32 2147483647, %v1840_v44 }
 0x369   : > { %v2357_v26 = vmul.f32 %v2293_v17, %v2029_v49  ;;  %v2910_v29 = vsub.f32 1.0, %v2846_v4  ;;  %v2912_v31 = vsub.f32 1.0, %v2848_v39  ;;  %v1906_v45 = vand.u32 2147483647, %v1842_v16 }
 0x36a   : > { %v2712_v6 = vmax.f32 %v2648_v3, 0.0  ;;  %v1968_v10 = vsub.f32 1.0, %v1904_v30  ;;  %v2104_v58 = vsub.f32 %v6257_v23, %v6114_v33  ;;  %v2106_v20 = vsub.f32 %v6257_v23, %v6116_v36 }
 0x36b   : > { %v2413_v47 = vpack.c.bf16 %v2357_v26, %v2355_v28  ;;  %v2974_v18 = vmax.f32 %v2910_v29, 0.0  ;;  %v2976_v19 = vmax.f32 %v2912_v31, 0.0  ;;  %v1970_v61 = vsub.f32 1.0, %v1906_v45 }
 0x36c   : > { %v2523_v15 = vsub.f32 %v6260_v40, %v6180_v48  ;;  %v2032_v38 = vmax.f32 %v1968_v10, 0.0  ;;  %v2168_v27 = vand.u32 2147483647, %v2104_v58  ;;  %v2170_v21 = vand.u32 2147483647, %v2106_v20 }
 0x36d   : > { %2446 = vmatpush1.bf16.msra.mxu0 %v2413_v47  ;;  %v2525_v35 = vsub.f32 %v6260_v40, %v6184_v2  ;;  %v3038_v7 = vmul.f32 %v2974_v18, %v2710_v22  ;;  %v3040_v37 = vmul.f32 %v2976_v19, %v2712_v6  ;;  %v2034_v32 = vmax.f32 %v1970_v61, 0.0 }
 0x36e   : > { %v2587_v8 = vand.u32 2147483647, %v2523_v15  ;;  %v2232_v49 = vsub.f32 1.0, %v2168_v27  ;;  %v2234_v43 = vsub.f32 1.0, %v2170_v21  ;;  %v2787_v0 = vsub.f32 %v6266_v62, %v6114_v33 }
 0x36f   : > { %v2589_v13 = vand.u32 2147483647, %v2525_v35  ;;  %v3096_v24 = vpack.c.bf16 %v3040_v37, %v3038_v7  ;;  %v2789_v12 = vsub.f32 %v6266_v62, %v6116_v36  ;;  %v1839_v25 = vsub.f32 %v6236_v46, %v6180_v48 }
 0x370   : > { %v2651_v34 = vsub.f32 1.0, %v2587_v8  ;;  %v2296_v5 = vmax.f32 %v2232_v49, 0.0  ;;  %v2298_v17 = vmax.f32 %v2234_v43, 0.0  ;;  %v2851_v44 = vand.u32 2147483647, %v2787_v0 }
 0x371   : > { %v2653_v60 = vsub.f32 1.0, %v2589_v13  ;;  %3129 = vmatpush1.bf16.msra.mxu1 %v3096_v24  ;;  %v2853_v4 = vand.u32 2147483647, %v2789_v12  ;;  %v1841_v39 = vsub.f32 %v6236_v46, %v6184_v2  ;;  %v1903_v16 = vand.u32 2147483647, %v1839_v25 }
 0x372   : > { %v2715_v3 = vmax.f32 %v2651_v34, 0.0  ;;  %v2360_v28 = vmul.f32 %v2296_v5, %v2032_v38  ;;  %v2362_v26 = vmul.f32 %v2298_v17, %v2034_v32  ;;  %v2915_v30 = vsub.f32 1.0, %v2851_v44 }
 0x373   : > { %v2717_v22 = vmax.f32 %v2653_v60, 0.0  ;;  %v2917_v6 = vsub.f32 1.0, %v2853_v4  ;;  %v1905_v29 = vand.u32 2147483647, %v1841_v39  ;;  %v1967_v31 = vsub.f32 1.0, %v1903_v16 }
 0x374   : > { %v2103_v45 = vsub.f32 %v6239_v9, %v6114_v33  ;;  %v2416_v47 = vpack.c.bf16 %v2362_v26, %v2360_v28  ;;  %v2979_v10 = vmax.f32 %v2915_v30, 0.0  ;;  %v2105_v58 = vsub.f32 %v6239_v9, %v6116_v36 }
 0x375   : > { %v2522_v20 = vsub.f32 %v6242_v1, %v6180_v48  ;;  %v2981_v18 = vmax.f32 %v2917_v6, 0.0  ;;  %v1969_v19 = vsub.f32 1.0, %v1905_v29  ;;  %v2031_v61 = vmax.f32 %v1967_v31, 0.0 }
 0x376   : > { %v2167_v15 = vand.u32 2147483647, %v2103_v45  ;;  %2447 = vmatprep.subr.bf16.mxu0 %v2416_v47  ;;  %v3043_v38 = vmul.f32 %v2979_v10, %v2715_v3  ;;  %v2169_v27 = vand.u32 2147483647, %v2105_v58  ;;  %v2524_v21 = vsub.f32 %v6242_v1, %v6184_v2 }
 0x377   : > { %v2586_v35 = vand.u32 2147483647, %v2522_v20  ;;  %v3045_v7 = vmul.f32 %v2981_v18, %v2717_v22  ;;  %v2033_v37 = vmax.f32 %v1969_v19, 0.0  ;;  %v2786_v8 = vsub.f32 %v6245_v14, %v6114_v33 }
 0x378   : > { %v2231_v32 = vsub.f32 1.0, %v2167_v15  ;;  %v2233_v49 = vsub.f32 1.0, %v2169_v27  ;;  %v2588_v43 = vand.u32 2147483647, %v2524_v21  ;;  %v2788_v13 = vsub.f32 %v6245_v14, %v6116_v36 }
 0x379   : > { %v2650_v48 = vsub.f32 1.0, %v2586_v35  ;;  %v3099_v0 = vpack.c.bf16 %v3045_v7, %v3043_v38  ;;  %v2850_v34 = vand.u32 2147483647, %v2786_v8  ;;  %v1844_v12 = vsub.f32 %v6254_v42, %v6190_v51 }
 0x37a   : > { %v2295_v24 = vmax.f32 %v2231_v32, 0.0  ;;  %v2297_v2 = vmax.f32 %v2233_v49, 0.0  ;;  %v2652_v25 = vsub.f32 1.0, %v2588_v43  ;;  %v2852_v17 = vand.u32 2147483647, %v2788_v13 }
 0x37b   : > { %v2714_v5 = vmax.f32 %v2650_v48, 0.0  ;;  %3130 = vmatprep.subr.bf16.mxu1 %v3099_v0  ;;  %v2914_v44 = vsub.f32 1.0, %v2850_v34  ;;  %v1846_v33 = vsub.f32 %v6254_v42, %v6194_v52  ;;  %v1908_v3 = vand.u32 2147483647, %v1844_v12 }
 0x37c   : > { %v2359_v60 = vmul.f32 %v2295_v24, %v2031_v61  ;;  %v2361_v4 = vmul.f32 %v2297_v2, %v2033_v37  ;;  %v2716_v39 = vmax.f32 %v2652_v25, 0.0  ;;  %v2916_v36 = vsub.f32 1.0, %v2852_v17 }
 0x37d   : > { %v2108_v16 = vsub.f32 %v6257_v23, %v6119_v41  ;;  %v2978_v28 = vmax.f32 %v2914_v44, 0.0  ;;  %v1910_v26 = vand.u32 2147483647, %v1846_v33  ;;  %v1972_v22 = vsub.f32 1.0, %v1908_v3 }
 0x37e   : > { %v2110_v30 = vsub.f32 %v6257_v23, %v6121_v55  ;;  %v2415_v6 = vpack.c.bf16 %v2361_v4, %v2359_v60  ;;  %v2980_v29 = vmax.f32 %v2916_v36, 0.0  ;;  %v2527_v45 = vsub.f32 %v6260_v40, %v6190_v51 }
 0x37f   : > { %v2172_v31 = vand.u32 2147483647, %v2108_v16  ;;  %v3042_v47 = vmul.f32 %v2978_v28, %v2714_v5  ;;  %v1974_v10 = vsub.f32 1.0, %v1910_v26  ;;  %v2036_v58 = vmax.f32 %v1972_v22, 0.0 }
 0x380   : > { %v2174_v20 = vand.u32 2147483647, %v2110_v30  ;;  %2448 = vmatpush1.bf16.msra.mxu0 %v2415_v6  ;;  %v3044_v18 = vmul.f32 %v2980_v29, %v2716_v39  ;;  %v2529_v61 = vsub.f32 %v6260_v40, %v6194_v52  ;;  %v2591_v15 = vand.u32 2147483647, %v2527_v45 }
 0x381   : > { %v2236_v19 = vsub.f32 1.0, %v2172_v31  ;;  %v2038_v38 = vmax.f32 %v1974_v10, 0.0  ;;  %v2791_v21 = vsub.f32 %v6266_v62, %v6119_v41  ;;  %v2793_v35 = vsub.f32 %v6266_v62, %v6121_v55 }
 0x382   : > { %v2238_v27 = vsub.f32 1.0, %v2174_v20  ;;  %v3098_v7 = vpack.c.bf16 %v3044_v18, %v3042_v47  ;;  %v2593_v32 = vand.u32 2147483647, %v2529_v61  ;;  %v2655_v8 = vsub.f32 1.0, %v2591_v15 }
 0x383   : > { %v2300_v37 = vmax.f32 %v2236_v19, 0.0  ;;  %v2855_v43 = vand.u32 2147483647, %v2791_v21  ;;  %v2857_v48 = vand.u32 2147483647, %v2793_v35  ;;  %v1843_v13 = vsub.f32 %v6236_v46, %v6190_v51 }
 0x384   : > { %v2302_v49 = vmax.f32 %v2238_v27, 0.0  ;;  %3131 = vmatpush1.bf16.msra.mxu1 %v3098_v7  ;;  %v2657_v24 = vsub.f32 1.0, %v2593_v32  ;;  %v2719_v34 = vmax.f32 %v2655_v8, 0.0  ;;  %v1845_v12 = vsub.f32 %v6236_v46, %v6194_v52 }
 0x385   : > { %v2364_v0 = vmul.f32 %v2300_v37, %v2036_v58  ;;  %v2919_v25 = vsub.f32 1.0, %v2855_v43  ;;  %v2921_v5 = vsub.f32 1.0, %v2857_v48  ;;  %v1907_v17 = vand.u32 2147483647, %v1843_v13 }
 0x386   : > { %v2366_v2 = vmul.f32 %v2302_v49, %v2038_v38  ;;  %v2721_v60 = vmax.f32 %v2657_v24, 0.0  ;;  %v1909_v44 = vand.u32 2147483647, %v1845_v12  ;;  %v2107_v33 = vsub.f32 %v6239_v9, %v6119_v41 }
 0x387   : > { %v2109_v3 = vsub.f32 %v6239_v9, %v6121_v55  ;;  %v2983_v39 = vmax.f32 %v2919_v25, 0.0  ;;  %v2985_v36 = vmax.f32 %v2921_v5, 0.0  ;;  %v1971_v16 = vsub.f32 1.0, %v1907_v17 }
 0x388   : > { %v2418_v4 = vpack.c.bf16 %v2366_v2, %v2364_v0  ;;  %v1973_v28 = vsub.f32 1.0, %v1909_v44  ;;  %v2171_v26 = vand.u32 2147483647, %v2107_v33  ;;  %v2526_v30 = vsub.f32 %v6242_v1, %v6190_v51  ;;  %v8313_v2 = vld [vmem:[#allocation13_spill] sm:$0xff] }
 0x389   : > { %v2173_v22 = vand.u32 2147483647, %v2109_v3  ;;  %v3047_v6 = vmul.f32 %v2983_v39, %v2719_v34  ;;  %v3049_v29 = vmul.f32 %v2985_v36, %v2721_v60  ;;  %v2035_v31 = vmax.f32 %v1971_v16, 0.0  ;;  %v8312_v34 = vld [vmem:[#allocation12_spill] sm:$0xff] }
 0x38a   : > { %2449 = vmatprep.subr.bf16.mxu0 %v2418_v4  ;;  %v2528_v45 = vsub.f32 %v6242_v1, %v6194_v52  ;;  %v2037_v47 = vmax.f32 %v1973_v28, 0.0  ;;  %v2235_v10 = vsub.f32 1.0, %v2171_v26  ;;  %v2590_v20 = vand.u32 2147483647, %v2526_v30 }
 0x38b   : > { %v2237_v58 = vsub.f32 1.0, %v2173_v22  ;;  %v3101_v18 = vpack.c.bf16 %v3049_v29, %v3047_v6  ;;  %v2790_v61 = vsub.f32 %v6245_v14, %v6119_v41  ;;  %v2792_v15 = vsub.f32 %v6245_v14, %v6121_v55 }
 0x38c   : > { %v2592_v19 = vand.u32 2147483647, %v2528_v45  ;;  %v2299_v51 = vmax.f32 %v2235_v10, 0.0  ;;  %v2654_v27 = vsub.f32 1.0, %v2590_v20  ;;  %v1848_v21 = vsub.f32 %v6254_v42, %v6198_v54 }
 0x38d   : > { %v2301_v38 = vmax.f32 %v2237_v58, 0.0  ;;  %3132 = vmatprep.subr.bf16.mxu1 %v3101_v18  ;;  %v2854_v35 = vand.u32 2147483647, %v2790_v61  ;;  %v2856_v7 = vand.u32 2147483647, %v2792_v15  ;;  %v1850_v37 = vsub.f32 %v6254_v42, %v6204_v11 }
 0x38e   : > { %v2656_v52 = vsub.f32 1.0, %v2592_v19  ;;  %v2363_v32 = vmul.f32 %v2299_v51, %v2035_v31  ;;  %v2718_v49 = vmax.f32 %v2654_v27, 0.0  ;;  %v1912_v41 = vand.u32 2147483647, %v1848_v21 }
 0x38f   : > { %v2365_v8 = vmul.f32 %v2301_v38, %v2037_v47  ;;  %v2918_v48 = vsub.f32 1.0, %v2854_v35  ;;  %v2920_v55 = vsub.f32 1.0, %v2856_v7  ;;  %v1914_v13 = vand.u32 2147483647, %v1850_v37 }
 0x390   : > { %v2720_v43 = vmax.f32 %v2656_v52, 0.0  ;;  %v1976_v24 = vsub.f32 1.0, %v1912_v41  ;;  %v2112_v12 = vsub.f32 %v6257_v23, %v8312_v34  ;;  %v2114_v25 = vsub.f32 %v6257_v23, %v8313_v2 }
 0x391   : > { %v2417_v0 = vpack.c.bf16 %v2365_v8, %v2363_v32  ;;  %v2982_v5 = vmax.f32 %v2918_v48, 0.0  ;;  %v2984_v17 = vmax.f32 %v2920_v55, 0.0  ;;  %v1978_v60 = vsub.f32 1.0, %v1914_v13 }
 0x392   : > { %v2531_v44 = vsub.f32 %v6260_v40, %v6198_v54  ;;  %v2040_v33 = vmax.f32 %v1976_v24, 0.0  ;;  %v2176_v3 = vand.u32 2147483647, %v2112_v12  ;;  %v2178_v4 = vand.u32 2147483647, %v2114_v25 }
 0x393   : > { %2450 = vmatpush1.bf16.msra.mxu0 %v2417_v0  ;;  %v2533_v39 = vsub.f32 %v6260_v40, %v6204_v11  ;;  %v3046_v36 = vmul.f32 %v2982_v5, %v2718_v49  ;;  %v3048_v16 = vmul.f32 %v2984_v17, %v2720_v43  ;;  %v2042_v28 = vmax.f32 %v1978_v60, 0.0 }
 0x394   : > { %v2595_v26 = vand.u32 2147483647, %v2531_v44  ;;  %v2240_v22 = vsub.f32 1.0, %v2176_v3  ;;  %v2242_v30 = vsub.f32 1.0, %v2178_v4  ;;  %v2795_v29 = vsub.f32 %v6266_v62, %v8312_v34 }
 0x395   : > { %v2597_v6 = vand.u32 2147483647, %v2533_v39  ;;  %v3100_v31 = vpack.c.bf16 %v3048_v16, %v3046_v36  ;;  %v2797_v47 = vsub.f32 %v6266_v62, %v8313_v2  ;;  %v1847_v10 = vsub.f32 %v6236_v46, %v6198_v54 }
 0x396   : > { %v2659_v45 = vsub.f32 1.0, %v2595_v26  ;;  %v2304_v58 = vmax.f32 %v2240_v22, 0.0  ;;  %v2306_v20 = vmax.f32 %v2242_v30, 0.0  ;;  %v2859_v19 = vand.u32 2147483647, %v2795_v29 }
 0x397   : > { %v2661_v18 = vsub.f32 1.0, %v2597_v6  ;;  %3133 = vmatpush1.bf16.msra.mxu1 %v3100_v31  ;;  %v2861_v15 = vand.u32 2147483647, %v2797_v47  ;;  %v1849_v51 = vsub.f32 %v6236_v46, %v6204_v11  ;;  %v1911_v38 = vand.u32 2147483647, %v1847_v10 }
 0x398   : > { %v2723_v61 = vmax.f32 %v2659_v45, 0.0  ;;  %v2368_v27 = vmul.f32 %v2304_v58, %v2040_v33  ;;  %v2370_v21 = vmul.f32 %v2306_v20, %v2042_v28  ;;  %v2923_v35 = vsub.f32 1.0, %v2859_v19 }
 0x399   : > { %v2725_v52 = vmax.f32 %v2661_v18, 0.0  ;;  %v2925_v7 = vsub.f32 1.0, %v2861_v15  ;;  %v1913_v37 = vand.u32 2147483647, %v1849_v51  ;;  %v1975_v32 = vsub.f32 1.0, %v1911_v38  ;;  %v8314_v18 = vld [vmem:[#allocation2_spill] sm:$0xff] }
 0x39a   : > { %v2111_v8 = vsub.f32 %v6239_v9, %v8312_v34  ;;  %v2420_v49 = vpack.c.bf16 %v2370_v21, %v2368_v27  ;;  %v2987_v41 = vmax.f32 %v2923_v35, 0.0  ;;  %v2113_v43 = vsub.f32 %v6239_v9, %v8313_v2 }
 0x39b   : > { %v2530_v48 = vsub.f32 %v6242_v1, %v6198_v54  ;;  %v2989_v55 = vmax.f32 %v2925_v7, 0.0  ;;  %v1977_v13 = vsub.f32 1.0, %v1913_v37  ;;  %v2039_v0 = vmax.f32 %v1975_v32, 0.0 }
 0x39c   : > { %v2175_v24 = vand.u32 2147483647, %v2111_v8  ;;  %2451 = vmatprep.subr.bf16.mxu0 %v2420_v49  ;;  %v3051_v12 = vmul.f32 %v2987_v41, %v2723_v61  ;;  %v2177_v25 = vand.u32 2147483647, %v2113_v43  ;;  %v2532_v5 = vsub.f32 %v6242_v1, %v6204_v11 }
 0x39d   : > { %v2594_v17 = vand.u32 2147483647, %v2530_v48  ;;  %v3053_v60 = vmul.f32 %v2989_v55, %v2725_v52  ;;  %v2041_v44 = vmax.f32 %v1977_v13, 0.0  ;;  %v2794_v3 = vsub.f32 %v6245_v14, %v8312_v34 }
 0x39e   : > { %v2239_v33 = vsub.f32 1.0, %v2175_v24  ;;  %v2241_v4 = vsub.f32 1.0, %v2177_v25  ;;  %v2596_v39 = vand.u32 2147483647, %v2532_v5  ;;  %v2796_v36 = vsub.f32 %v6245_v14, %v8313_v2 }
 0x39f   : > { %v2658_v54 = vsub.f32 1.0, %v2594_v17  ;;  %v3103_v16 = vpack.c.bf16 %v3053_v60, %v3051_v12  ;;  %v2858_v26 = vand.u32 2147483647, %v2794_v3  ;;  %v915_v22 = vcvt.s32.f32 %v6207_v63 }
 0x3a0   : > { %v2303_v28 = vmax.f32 %v2239_v33, 0.0  ;;  %v2305_v30 = vmax.f32 %v2241_v4, 0.0  ;;  %v2660_v11 = vsub.f32 1.0, %v2596_v39  ;;  %v2860_v29 = vand.u32 2147483647, %v2796_v36 }
 0x3a1   : > { %v2722_v6 = vmax.f32 %v2658_v54, 0.0  ;;  %3134 = vmatprep.subr.bf16.mxu1 %v3103_v16  ;;  %v2922_v45 = vsub.f32 1.0, %v2858_v26  ;;  %v916_v34 = vcvt.s32.f32 %v6210_v59  ;;  %v947_v47 = vadd.f32 0.5, %v915_v22 }
 0x3a2   : > { %v2367_v31 = vmul.f32 %v2303_v28, %v2039_v0  ;;  %v2369_v10 = vmul.f32 %v2305_v30, %v2041_v44  ;;  %v2724_v58 = vmax.f32 %v2660_v11, 0.0  ;;  %v2924_v20 = vsub.f32 1.0, %v2860_v29 }
 0x3a3   : > { %v6522_v2 = vadd.s32 128, %v8314_v18  ;;  %v2986_v19 = vmax.f32 %v2922_v45, 0.0  ;;  %v948_v61 = vadd.f32 0.5, %v916_v34  ;;  %v979_v15 = vmul.f32 0.0625, %v947_v47 }
 0x3a4   : > { %v6525_v63 = vadd.s32 136, %v8314_v18  ;;  %v2419_v51 = vpack.c.bf16 %v2369_v10, %v2367_v31  ;;  %v2988_v38 = vmax.f32 %v2924_v20, 0.0  ;;  %v6529_v21 = vadd.s32 144, %v8314_v18 }
 0x3a5   : > { %v917_v27 = vcvt.s32.f32 %v6522_v2  ;;  %v3050_v59 = vmul.f32 %v2986_v19, %v2722_v6  ;;  %v980_v52 = vmul.f32 0.0625, %v948_v61  ;;  %v6531_v35 = vfloor.f32 %v979_v15 }
 0x3a6   : > { %v918_v7 = vcvt.s32.f32 %v6525_v63  ;;  %2452 = vmatpush1.bf16.msra.mxu0 %v2419_v51  ;;  %v3052_v37 = vmul.f32 %v2988_v38, %v2724_v58  ;;  %v6539_v8 = vadd.s32 152, %v8314_v18  ;;  %v919_v49 = vcvt.s32.f32 %v6529_v21 }
 0x3a7   : > { %v6536_v32 = vadd.f32 0.5, %v917_v27  ;;  %v6542_v41 = vfloor.f32 %v980_v52  ;;  %v1043_v43 = vmul.f32 16.0, %v6531_v35  ;;  %v2116_v48 = vsub.f32 %v6257_v23, %v6531_v35 }
 0x3a8   : > { %v2799_v55 = vsub.f32 %v6266_v62, %v6531_v35  ;;  %v3102_v13 = vpack.c.bf16 %v3052_v37, %v3050_v59  ;;  %v2115_v0 = vsub.f32 %v6239_v9, %v6531_v35  ;;  %v2798_v24 = vsub.f32 %v6245_v14, %v6531_v35 }
 0x3a9   : > { %v6555_v12 = vadd.f32 0.5, %v918_v7  ;;  %v1044_v25 = vmul.f32 16.0, %v6542_v41  ;;  %v1075_v5 = vsub.f32 %v915_v22, %v1043_v43  ;;  %v2118_v17 = vsub.f32 %v6257_v23, %v6542_v41 }
 0x3aa   : > { %v2180_v60 = vand.u32 2147483647, %v2116_v48  ;;  %3135 = vmatpush1.bf16.msra.mxu1 %v3102_v13  ;;  %v2801_v44 = vsub.f32 %v6266_v62, %v6542_v41  ;;  %v2863_v33 = vand.u32 2147483647, %v2799_v55  ;;  %v2117_v3 = vsub.f32 %v6239_v9, %v6542_v41 }
 0x3ab   : > { %v2179_v4 = vand.u32 2147483647, %v2115_v0  ;;  %v1076_v39 = vsub.f32 %v916_v34, %v1044_v25  ;;  %v1852_v54 = vsub.f32 %v6254_v42, %v1075_v5  ;;  %v2182_v36 = vand.u32 2147483647, %v2118_v17 }
 0x3ac   : > { %v2244_v16 = vsub.f32 1.0, %v2180_v60  ;;  %v2535_v28 = vsub.f32 %v6260_v40, %v1075_v5  ;;  %v2865_v26 = vand.u32 2147483647, %v2801_v44  ;;  %v2927_v22 = vsub.f32 1.0, %v2863_v33 }
 0x3ad   : > { %v1851_v30 = vsub.f32 %v6236_v46, %v1075_v5  ;;  %v1854_v11 = vsub.f32 %v6254_v42, %v1076_v39  ;;  %v1916_v6 = vand.u32 2147483647, %v1852_v54  ;;  %v2246_v29 = vsub.f32 1.0, %v2182_v36 }
 0x3ae   : > { %v2308_v31 = vmax.f32 %v2244_v16, 0.0  ;;  %v2537_v45 = vsub.f32 %v6260_v40, %v1076_v39  ;;  %v2599_v47 = vand.u32 2147483647, %v2535_v28  ;;  %v2929_v10 = vsub.f32 1.0, %v2865_v26 }
 0x3af   : > { %v2991_v34 = vmax.f32 %v2927_v22, 0.0  ;;  %v1918_v58 = vand.u32 2147483647, %v1854_v11  ;;  %v1980_v20 = vsub.f32 1.0, %v1916_v6  ;;  %v2310_v19 = vmax.f32 %v2246_v29, 0.0 }
 0x3b0   : > { %v1853_v61 = vsub.f32 %v6236_v46, %v1076_v39  ;;  %v2601_v15 = vand.u32 2147483647, %v2537_v45  ;;  %v2663_v51 = vsub.f32 1.0, %v2599_v47  ;;  %v2993_v38 = vmax.f32 %v2929_v10, 0.0 }
 0x3b1   : > { %v1915_v59 = vand.u32 2147483647, %v1851_v30  ;;  %v1982_v52 = vsub.f32 1.0, %v1918_v58  ;;  %v2044_v35 = vmax.f32 %v1980_v20, 0.0  ;;  %v2181_v43 = vand.u32 2147483647, %v2117_v3 }
 0x3b2   : > { %v1917_v37 = vand.u32 2147483647, %v1853_v61  ;;  %v2665_v48 = vsub.f32 1.0, %v2601_v15  ;;  %v2727_v55 = vmax.f32 %v2663_v51, 0.0  ;;  %v2243_v0 = vsub.f32 1.0, %v2179_v4 }
 0x3b3   : > { %v1979_v13 = vsub.f32 1.0, %v1915_v59  ;;  %v2046_v25 = vmax.f32 %v1982_v52, 0.0  ;;  %v2372_v17 = vmul.f32 %v2308_v31, %v2044_v35  ;;  %v2245_v44 = vsub.f32 1.0, %v2181_v43 }
 0x3b4   : > { %v1981_v60 = vsub.f32 1.0, %v1917_v37  ;;  %v2729_v33 = vmax.f32 %v2665_v48, 0.0  ;;  %v3055_v54 = vmul.f32 %v2991_v34, %v2727_v55  ;;  %v2307_v16 = vmax.f32 %v2243_v0, 0.0 }
 0x3b5   : > { %v2043_v36 = vmax.f32 %v1979_v13, 0.0  ;;  %v2374_v28 = vmul.f32 %v2310_v19, %v2046_v25  ;;  %v2309_v22 = vmax.f32 %v2245_v44, 0.0  ;;  %v2534_v30 = vsub.f32 %v6242_v1, %v1075_v5 }
 0x3b6   : > { %v2045_v26 = vmax.f32 %v1981_v60, 0.0  ;;  %v3057_v11 = vmul.f32 %v2993_v38, %v2729_v33  ;;  %v2536_v3 = vsub.f32 %v6242_v1, %v1076_v39  ;;  %v2800_v4 = vsub.f32 %v6245_v14, %v6542_v41 }
 0x3b7   : > { %v2371_v6 = vmul.f32 %v2307_v16, %v2043_v36  ;;  %v2422_v29 = vpack.c.bf16 %v2374_v28, %v2372_v17  ;;  %v2598_v45 = vand.u32 2147483647, %v2534_v30  ;;  %v2862_v47 = vand.u32 2147483647, %v2798_v24 }
 0x3b8   : > { %v2373_v31 = vmul.f32 %v2309_v22, %v2045_v26  ;;  %v3105_v10 = vpack.c.bf16 %v3057_v11, %v3055_v54  ;;  %v2600_v34 = vand.u32 2147483647, %v2536_v3  ;;  %v2864_v58 = vand.u32 2147483647, %v2800_v4 }
 0x3b9   : > { %v981_v20 = vmul.f32 0.0625, %v6536_v32  ;;  %2453 = vmatprep.subr.bf16.mxu0 %v2422_v29  ;;  %v2662_v61 = vsub.f32 1.0, %v2598_v45  ;;  %v2926_v5 = vsub.f32 1.0, %v2862_v47  ;;  %v982_v15 = vmul.f32 0.0625, %v6555_v12 }
 0x3ba   : > { %v2421_v19 = vpack.c.bf16 %v2373_v31, %v2371_v6  ;;  %3136 = vmatprep.subr.bf16.mxu1 %v3105_v10  ;;  %v2664_v39 = vsub.f32 1.0, %v2600_v34  ;;  %v2928_v51 = vsub.f32 1.0, %v2864_v58  ;;  %v920_v41 = vcvt.s32.f32 %v6539_v8 }
 0x3bb   : > { %v6576_v38 = vfloor.f32 %v981_v20  ;;  %v2726_v24 = vmax.f32 %v2662_v61, 0.0  ;;  %v2990_v59 = vmax.f32 %v2926_v5, 0.0  ;;  %v6579_v52 = vfloor.f32 %v982_v15 }
 0x3bc   : > { %2454 = vmatpush1.bf16.msra.mxu0 %v2421_v19  ;;  %v6583_v32 = vadd.f32 0.5, %v919_v49  ;;  %v2728_v35 = vmax.f32 %v2664_v39, 0.0  ;;  %v2992_v37 = vmax.f32 %v2928_v51, 0.0 }
 0x3bd   : > { %v1045_v12 = vmul.f32 16.0, %v6576_v38  ;;  %v2120_v43 = vsub.f32 %v6257_v23, %v6576_v38  ;;  %v3054_v48 = vmul.f32 %v2990_v59, %v2726_v24  ;;  %v1046_v55 = vmul.f32 16.0, %v6579_v52 }
 0x3be   : > { %v2122_v13 = vsub.f32 %v6257_v23, %v6579_v52  ;;  %v2803_v0 = vsub.f32 %v6266_v62, %v6576_v38  ;;  %v3056_v25 = vmul.f32 %v2992_v37, %v2728_v35  ;;  %v2805_v44 = vsub.f32 %v6266_v62, %v6579_v52 }
 0x3bf   : > { %v1077_v17 = vsub.f32 %v917_v27, %v1045_v12  ;;  %v2184_v60 = vand.u32 2147483647, %v2120_v43  ;;  %v1078_v33 = vsub.f32 %v918_v7, %v1046_v55  ;;  %v2119_v16 = vsub.f32 %v6239_v9, %v6576_v38 }
 0x3c0   : > { %v2186_v54 = vand.u32 2147483647, %v2122_v13  ;;  %v2867_v36 = vand.u32 2147483647, %v2803_v0  ;;  %v3104_v28 = vpack.c.bf16 %v3056_v25, %v3054_v48  ;;  %v2869_v6 = vand.u32 2147483647, %v2805_v44 }
 0x3c1   : > { %v1856_v26 = vsub.f32 %v6254_v42, %v1077_v17  ;;  %v2248_v22 = vsub.f32 1.0, %v2184_v60  ;;  %v2539_v30 = vsub.f32 %v6260_v40, %v1077_v17  ;;  %v1858_v2 = vsub.f32 %v6254_v42, %v1078_v33 }
 0x3c2   : > { %v2250_v27 = vsub.f32 1.0, %v2186_v54  ;;  %v2541_v11 = vsub.f32 %v6260_v40, %v1078_v33  ;;  %3137 = vmatpush1.bf16.msra.mxu1 %v3104_v28  ;;  %v2931_v4 = vsub.f32 1.0, %v2867_v36  ;;  %v2933_v47 = vsub.f32 1.0, %v2869_v6 }
 0x3c3   : > { %v1920_v63 = vand.u32 2147483647, %v1856_v26  ;;  %v2312_v7 = vmax.f32 %v2248_v22, 0.0  ;;  %v2603_v3 = vand.u32 2147483647, %v2539_v30  ;;  %v1855_v20 = vsub.f32 %v6236_v46, %v1077_v17 }
 0x3c4   : > { %v1922_v29 = vand.u32 2147483647, %v1858_v2  ;;  %v2314_v31 = vmax.f32 %v2250_v27, 0.0  ;;  %v2605_v45 = vand.u32 2147483647, %v2541_v11  ;;  %v2995_v58 = vmax.f32 %v2931_v4, 0.0 }
 0x3c5   : > { %v1984_v10 = vsub.f32 1.0, %v1920_v63  ;;  %v2667_v34 = vsub.f32 1.0, %v2603_v3  ;;  %v2997_v5 = vmax.f32 %v2933_v47, 0.0  ;;  %v1857_v15 = vsub.f32 %v6236_v46, %v1078_v33 }
 0x3c6   : > { %v1986_v19 = vsub.f32 1.0, %v1922_v29  ;;  %v2669_v61 = vsub.f32 1.0, %v2605_v45  ;;  %v1919_v24 = vand.u32 2147483647, %v1855_v20  ;;  %v2121_v59 = vsub.f32 %v6239_v9, %v6579_v52 }
 0x3c7   : > { %v2048_v39 = vmax.f32 %v1984_v10, 0.0  ;;  %v2731_v51 = vmax.f32 %v2667_v34, 0.0  ;;  %v1921_v12 = vand.u32 2147483647, %v1857_v15  ;;  %v2183_v43 = vand.u32 2147483647, %v2119_v16 }
 0x3c8   : > { %v2050_v35 = vmax.f32 %v1986_v19, 0.0  ;;  %v2733_v37 = vmax.f32 %v2669_v61, 0.0  ;;  %v1983_v13 = vsub.f32 1.0, %v1919_v24  ;;  %v2185_v0 = vand.u32 2147483647, %v2121_v59 }
 0x3c9   : > { %v2376_v48 = vmul.f32 %v2312_v7, %v2048_v39  ;;  %v3059_v55 = vmul.f32 %v2995_v58, %v2731_v51  ;;  %v1985_v44 = vsub.f32 1.0, %v1921_v12  ;;  %v2247_v54 = vsub.f32 1.0, %v2183_v43 }
 0x3ca   : > { %v2378_v25 = vmul.f32 %v2314_v31, %v2050_v35  ;;  %v3061_v60 = vmul.f32 %v2997_v5, %v2733_v37  ;;  %v2047_v36 = vmax.f32 %v1983_v13, 0.0  ;;  %v2249_v28 = vsub.f32 1.0, %v2185_v0 }
 0x3cb   : > { %v2538_v26 = vsub.f32 %v6242_v1, %v1077_v17  ;;  %v2540_v22 = vsub.f32 %v6242_v1, %v1078_v33  ;;  %v2049_v27 = vmax.f32 %v1985_v44, 0.0  ;;  %v2311_v11 = vmax.f32 %v2247_v54, 0.0 }
 0x3cc   : > { %v2424_v30 = vpack.c.bf16 %v2378_v25, %v2376_v48  ;;  %v3107_v2 = vpack.c.bf16 %v3061_v60, %v3059_v55  ;;  %v2313_v6 = vmax.f32 %v2249_v28, 0.0  ;;  %v2802_v7 = vsub.f32 %v6245_v14, %v6576_v38 }
 0x3cd   : > { %v2602_v16 = vand.u32 2147483647, %v2538_v26  ;;  %v2604_v63 = vand.u32 2147483647, %v2540_v22  ;;  %v2375_v3 = vmul.f32 %v2311_v11, %v2047_v36  ;;  %v2804_v4 = vsub.f32 %v6245_v14, %v6579_v52 }
 0x3ce   : > { %2455 = vmatprep.subr.bf16.mxu0 %v2424_v30  ;;  %3138 = vmatprep.subr.bf16.mxu1 %v3107_v2  ;;  %v952_v17 = vadd.f32 0.5, %v920_v41  ;;  %v983_v33 = vmul.f32 0.0625, %v6583_v32  ;;  %v2377_v29 = vmul.f32 %v2313_v6, %v2049_v27  ;;  %v2866_v47 = vand.u32 2147483647, %v2802_v7 }
 0x3cf   : > { %v2666_v31 = vsub.f32 1.0, %v2602_v16  ;;  %v2668_v45 = vsub.f32 1.0, %v2604_v63  ;;  %v2868_v10 = vand.u32 2147483647, %v2804_v4  ;;  %v6621_v38 = vadd.s32 160, %v8314_v18 }
 0x3d0   : > { %v984_v34 = vmul.f32 0.0625, %v952_v17  ;;  %v6618_v58 = vfloor.f32 %v983_v33  ;;  %v2423_v20 = vpack.c.bf16 %v2377_v29, %v2375_v3  ;;  %v2930_v52 = vsub.f32 1.0, %v2866_v47 }
 0x3d1   : > { %v2730_v19 = vmax.f32 %v2666_v31, 0.0  ;;  %v2732_v61 = vmax.f32 %v2668_v45, 0.0  ;;  %v2932_v5 = vsub.f32 1.0, %v2868_v10 }
 0x3d2   : > { %v6623_v15 = vfloor.f32 %v984_v34  ;;  %v1047_v32 = vmul.f32 16.0, %v6618_v58  ;;  %v2124_v39 = vsub.f32 %v6257_v23, %v6618_v58  ;;  %2456 = vmatpush1.bf16.msra.mxu0 %v2423_v20  ;;  %v2994_v51 = vmax.f32 %v2930_v52, 0.0 }
 0x3d3   : > { %v2807_v24 = vsub.f32 %v6266_v62, %v6618_v58  ;;  %v2123_v59 = vsub.f32 %v6239_v9, %v6618_v58  ;;  %v2806_v35 = vsub.f32 %v6245_v14, %v6618_v58  ;;  %v2996_v37 = vmax.f32 %v2932_v5, 0.0 }
 0x3d4   : > { %v1048_v12 = vmul.f32 16.0, %v6623_v15  ;;  %v1079_v43 = vsub.f32 %v919_v49, %v1047_v32  ;;  %v2126_v48 = vsub.f32 %v6257_v23, %v6623_v15  ;;  %v3058_v55 = vmul.f32 %v2994_v51, %v2730_v19 }
 0x3d5   : > { %v2188_v13 = vand.u32 2147483647, %v2124_v39  ;;  %v2809_v0 = vsub.f32 %v6266_v62, %v6623_v15  ;;  %v2871_v25 = vand.u32 2147483647, %v2807_v24  ;;  %v3060_v60 = vmul.f32 %v2996_v37, %v2732_v61 }
 0x3d6   : > { %v1080_v44 = vsub.f32 %v920_v41, %v1048_v12  ;;  %v1860_v54 = vsub.f32 %v6254_v42, %v1079_v43  ;;  %v2190_v36 = vand.u32 2147483647, %v2126_v48  ;;  %v2543_v21 = vsub.f32 %v6260_v40, %v1079_v43 }
 0x3d7   : > { %v2252_v28 = vsub.f32 1.0, %v2188_v13  ;;  %v2873_v49 = vand.u32 2147483647, %v2809_v0  ;;  %v2935_v26 = vsub.f32 1.0, %v2871_v25  ;;  %v3106_v22 = vpack.c.bf16 %v3060_v60, %v3058_v55 }
 0x3d8   : > { %v1862_v30 = vsub.f32 %v6254_v42, %v1080_v44  ;;  %v1924_v2 = vand.u32 2147483647, %v1860_v54  ;;  %v2254_v27 = vsub.f32 1.0, %v2190_v36  ;;  %v2545_v6 = vsub.f32 %v6260_v40, %v1080_v44 }
 0x3d9   : > { %v2316_v11 = vmax.f32 %v2252_v28, 0.0  ;;  %v2607_v16 = vand.u32 2147483647, %v2543_v21  ;;  %v2937_v63 = vsub.f32 1.0, %v2873_v49  ;;  %3139 = vmatpush1.bf16.msra.mxu1 %v3106_v22  ;;  %v2999_v3 = vmax.f32 %v2935_v26, 0.0 }
 0x3da   : > { %v1926_v8 = vand.u32 2147483647, %v1862_v30  ;;  %v1988_v41 = vsub.f32 1.0, %v1924_v2  ;;  %v2318_v7 = vmax.f32 %v2254_v27, 0.0  ;;  %v2609_v4 = vand.u32 2147483647, %v2545_v6 }
 0x3db   : > { %v2671_v17 = vsub.f32 1.0, %v2607_v16  ;;  %v3001_v33 = vmax.f32 %v2937_v63, 0.0  ;;  %v1859_v29 = vsub.f32 %v6236_v46, %v1079_v43  ;;  %v1861_v47 = vsub.f32 %v6236_v46, %v1080_v44 }
 0x3dc   : > { %v1990_v31 = vsub.f32 1.0, %v1926_v8  ;;  %v2052_v45 = vmax.f32 %v1988_v41, 0.0  ;;  %v2125_v10 = vsub.f32 %v6239_v9, %v6623_v15  ;;  %v2673_v34 = vsub.f32 1.0, %v2609_v4 }
 0x3dd   : > { %v2735_v20 = vmax.f32 %v2671_v17, 0.0  ;;  %v1923_v19 = vand.u32 2147483647, %v1859_v29  ;;  %v2187_v61 = vand.u32 2147483647, %v2123_v59  ;;  %v2542_v0 = vsub.f32 %v6242_v1, %v1079_v43 }
 0x3de   : > { %v2054_v52 = vmax.f32 %v1990_v31, 0.0  ;;  %v2380_v5 = vmul.f32 %v2316_v11, %v2052_v45  ;;  %v1925_v32 = vand.u32 2147483647, %v1861_v47  ;;  %v2189_v39 = vand.u32 2147483647, %v2125_v10 }
 0x3df   : > { %v2737_v51 = vmax.f32 %v2673_v34, 0.0  ;;  %v3063_v24 = vmul.f32 %v2999_v3, %v2735_v20  ;;  %v1987_v37 = vsub.f32 1.0, %v1923_v19  ;;  %v2251_v12 = vsub.f32 1.0, %v2187_v61 }
 0x3e0   : > { %v2382_v48 = vmul.f32 %v2318_v7, %v2054_v52  ;;  %v1989_v55 = vsub.f32 1.0, %v1925_v32  ;;  %v2253_v13 = vsub.f32 1.0, %v2189_v39  ;;  %v2544_v36 = vsub.f32 %v6242_v1, %v1080_v44 }
 0x3e1   : > { %v3065_v25 = vmul.f32 %v3001_v33, %v2737_v51  ;;  %v2051_v60 = vmax.f32 %v1987_v37, 0.0  ;;  %v2315_v54 = vmax.f32 %v2251_v12, 0.0  ;;  %v2606_v49 = vand.u32 2147483647, %v2542_v0 }
 0x3e2   : > { %v2426_v28 = vpack.c.bf16 %v2382_v48, %v2380_v5  ;;  %v2053_v59 = vmax.f32 %v1989_v55, 0.0  ;;  %v2317_v21 = vmax.f32 %v2253_v13, 0.0  ;;  %v2608_v30 = vand.u32 2147483647, %v2544_v36 }
 0x3e3   : > { %v3109_v26 = vpack.c.bf16 %v3065_v25, %v3063_v24  ;;  %v2379_v22 = vmul.f32 %v2315_v54, %v2051_v60  ;;  %v2808_v2 = vsub.f32 %v6245_v14, %v6623_v15  ;;  %v2670_v11 = vsub.f32 1.0, %v2606_v49 }
 0x3e4   : > { %2457 = vmatprep.subr.bf16.mxu0 %v2426_v28  ;;  %v2381_v27 = vmul.f32 %v2317_v21, %v2053_v59  ;;  %v2870_v43 = vand.u32 2147483647, %v2806_v35  ;;  %v890_v6 = vadd.s32 168, %v8314_v18  ;;  %v2672_v44 = vsub.f32 1.0, %v2608_v30 }
 0x3e5   : > { %3140 = vmatprep.subr.bf16.mxu1 %v3109_v26  ;;  %v2872_v16 = vand.u32 2147483647, %v2808_v2  ;;  %v921_v63 = vcvt.s32.f32 %v6621_v38  ;;  %v6661_v8 = vadd.s32 176, %v8314_v18  ;;  %v2734_v7 = vmax.f32 %v2670_v11, 0.0 }
 0x3e6   : > { %v2425_v41 = vpack.c.bf16 %v2381_v27, %v2379_v22  ;;  %v2934_v15 = vsub.f32 1.0, %v2870_v43  ;;  %v922_v3 = vcvt.s32.f32 %v890_v6  ;;  %v2736_v4 = vmax.f32 %v2672_v44, 0.0 }
 0x3e7   : > { %v2936_v17 = vsub.f32 1.0, %v2872_v16  ;;  %v953_v33 = vadd.f32 0.5, %v921_v63  ;;  %v6664_v58 = vadd.s32 184, %v8314_v18  ;;  %v923_v31 = vcvt.s32.f32 %v6661_v8 }
 0x3e8   : > { %2458 = vmatpush1.bf16.msra.mxu0 %v2425_v41  ;;  %v2998_v35 = vmax.f32 %v2934_v15, 0.0  ;;  %v954_v29 = vadd.f32 0.5, %v922_v3  ;;  %v6668_v38 = vadd.s32 192, %v8314_v18  ;;  %v6672_v34 = vadd.s32 200, %v8314_v18 }
 0x3e9   : > { %v3000_v45 = vmax.f32 %v2936_v17, 0.0  ;;  %v985_v47 = vmul.f32 0.0625, %v953_v33  ;;  %v924_v10 = vcvt.s32.f32 %v6664_v58  ;;  %v955_v61 = vadd.f32 0.5, %v923_v31 }
 0x3ea   : > { %v3062_v20 = vmul.f32 %v2998_v35, %v2734_v7  ;;  %v986_v19 = vmul.f32 0.0625, %v954_v29  ;;  %v925_v52 = vcvt.s32.f32 %v6668_v38  ;;  %v926_v51 = vcvt.s32.f32 %v6672_v34 }
 0x3eb   : > { %v3064_v5 = vmul.f32 %v3000_v45, %v2736_v4  ;;  %v6677_v32 = vfloor.f32 %v985_v47  ;;  %v6681_v39 = vadd.f32 0.5, %v924_v10  ;;  %v6686_v37 = vmul.f32 0.0625, %v955_v61 }
 0x3ec   : > { %v6684_v24 = vfloor.f32 %v986_v19  ;;  %v6690_v12 = vadd.f32 0.5, %v925_v52  ;;  %v6693_v48 = vadd.s32 208, %v8314_v18 }
 0x3ed   : > { %v3108_v55 = vpack.c.bf16 %v3064_v5, %v3062_v20  ;;  %v1049_v13 = vmul.f32 16.0, %v6677_v32  ;;  %v2128_v0 = vsub.f32 %v6257_v23, %v6677_v32  ;;  %v2811_v25 = vsub.f32 %v6266_v62, %v6677_v32 }
 0x3ee   : > { %v1050_v60 = vmul.f32 16.0, %v6684_v24  ;;  %v2130_v54 = vsub.f32 %v6257_v23, %v6684_v24  ;;  %v2813_v36 = vsub.f32 %v6266_v62, %v6684_v24  ;;  %v2127_v28 = vsub.f32 %v6239_v9, %v6677_v32 }
 0x3ef   : > { %3141 = vmatpush1.bf16.msra.mxu1 %v3108_v55  ;;  %v1081_v59 = vsub.f32 %v921_v63, %v1049_v13  ;;  %v2192_v21 = vand.u32 2147483647, %v2128_v0  ;;  %v2875_v49 = vand.u32 2147483647, %v2811_v25  ;;  %v2129_v26 = vsub.f32 %v6239_v9, %v6684_v24 }
 0x3f0   : > { %v1082_v22 = vsub.f32 %v922_v3, %v1050_v60  ;;  %v2194_v30 = vand.u32 2147483647, %v2130_v54  ;;  %v2877_v2 = vand.u32 2147483647, %v2813_v36  ;;  %v2191_v27 = vand.u32 2147483647, %v2127_v28 }
 0x3f1   : > { %v1864_v11 = vsub.f32 %v6254_v42, %v1081_v59  ;;  %v2256_v43 = vsub.f32 1.0, %v2192_v21  ;;  %v2547_v6 = vsub.f32 %v6260_v40, %v1081_v59  ;;  %v2939_v44 = vsub.f32 1.0, %v2875_v49 }
 0x3f2   : > { %v1866_v16 = vsub.f32 %v6254_v42, %v1082_v22  ;;  %v2258_v41 = vsub.f32 1.0, %v2194_v30  ;;  %v2549_v63 = vsub.f32 %v6260_v40, %v1082_v22  ;;  %v2941_v7 = vsub.f32 1.0, %v2877_v2 }
 0x3f3   : > { %v1928_v15 = vand.u32 2147483647, %v1864_v11  ;;  %v2320_v4 = vmax.f32 %v2256_v43, 0.0  ;;  %v2611_v17 = vand.u32 2147483647, %v2547_v6  ;;  %v3003_v33 = vmax.f32 %v2939_v44, 0.0 }
 0x3f4   : > { %v1930_v3 = vand.u32 2147483647, %v1866_v16  ;;  %v2322_v35 = vmax.f32 %v2258_v41, 0.0  ;;  %v2613_v29 = vand.u32 2147483647, %v2549_v63  ;;  %v3005_v45 = vmax.f32 %v2941_v7, 0.0 }
 0x3f5   : > { %v1992_v47 = vsub.f32 1.0, %v1928_v15  ;;  %v2675_v20 = vsub.f32 1.0, %v2611_v17  ;;  %v1863_v19 = vsub.f32 %v6236_v46, %v1081_v59  ;;  %v1865_v61 = vsub.f32 %v6236_v46, %v1082_v22 }
 0x3f6   : > { %v1994_v5 = vsub.f32 1.0, %v1930_v3  ;;  %v2677_v55 = vsub.f32 1.0, %v2613_v29  ;;  %v2193_v13 = vand.u32 2147483647, %v2129_v26  ;;  %v2255_v0 = vsub.f32 1.0, %v2191_v27 }
 0x3f7   : > { %v2056_v25 = vmax.f32 %v1992_v47, 0.0  ;;  %v2739_v60 = vmax.f32 %v2675_v20, 0.0  ;;  %v1927_v54 = vand.u32 2147483647, %v1863_v19  ;;  %v1929_v36 = vand.u32 2147483647, %v1865_v61 }
 0x3f8   : > { %v2058_v28 = vmax.f32 %v1994_v5, 0.0  ;;  %v2741_v21 = vmax.f32 %v2677_v55, 0.0  ;;  %v2257_v49 = vsub.f32 1.0, %v2193_v13  ;;  %v2319_v30 = vmax.f32 %v2255_v0, 0.0 }
 0x3f9   : > { %v2384_v2 = vmul.f32 %v2320_v4, %v2056_v25  ;;  %v3067_v11 = vmul.f32 %v3003_v33, %v2739_v60  ;;  %v1991_v43 = vsub.f32 1.0, %v1927_v54  ;;  %v1993_v6 = vsub.f32 1.0, %v1929_v36 }
 0x3fa   : > { %v2386_v44 = vmul.f32 %v2322_v35, %v2058_v28  ;;  %v3069_v16 = vmul.f32 %v3005_v45, %v2741_v21  ;;  %v2321_v41 = vmax.f32 %v2257_v49, 0.0  ;;  %v2546_v63 = vsub.f32 %v6242_v1, %v1081_v59 }
 0x3fb   : > { %v2055_v7 = vmax.f32 %v1991_v43, 0.0  ;;  %v2057_v26 = vmax.f32 %v1993_v6, 0.0  ;;  %v2548_v27 = vsub.f32 %v6242_v1, %v1082_v22  ;;  %v2810_v15 = vsub.f32 %v6245_v14, %v6677_v32  ;;  %v6725_v32 = vpop.f32.mrb[12].mxu0 }
 0x3fc   : > { %v2428_v17 = vpack.c.bf16 %v2386_v44, %v2384_v2  ;;  %v3111_v3 = vpack.c.bf16 %v3069_v16, %v3067_v11  ;;  %v2610_v29 = vand.u32 2147483647, %v2546_v63  ;;  %v2812_v4 = vsub.f32 %v6245_v14, %v6684_v24  ;;  %v6731_v13 = vpop.f32.mrb[13].mxu0 }
 0x3fd   : > { %v2383_v33 = vmul.f32 %v2319_v30, %v2055_v7  ;;  %v2385_v47 = vmul.f32 %v2321_v41, %v2057_v26  ;;  %v2612_v35 = vand.u32 2147483647, %v2548_v27  ;;  %v2874_v45 = vand.u32 2147483647, %v2810_v15  ;;  %v1779_v54 = vpop.f32.mrb[14].mxu0 }
 0x3fe   : > { %2459 = vmatprep.subr.bf16.mxu0 %v2428_v17  ;;  %3142 = vmatprep.subr.bf16.mxu1 %v3111_v3  ;;  %v2674_v59 = vsub.f32 1.0, %v2610_v29  ;;  %v2876_v20 = vand.u32 2147483647, %v2812_v4  ;;  %v988_v19 = vmul.f32 0.0625, %v6681_v39  ;;  %v6723_v22 = vfloor.f32 %v6686_v37  ;;  %v1780_v43 = vpop.f32.mrb[15].mxu0 }
 0x3ff   : > { %v2427_v61 = vpack.c.bf16 %v2385_v47, %v2383_v33  ;;  %v2676_v5 = vsub.f32 1.0, %v2612_v35  ;;  %v2938_v55 = vsub.f32 1.0, %v2874_v45  ;;  %v6729_v24 = vadd.f32 0.5, %v926_v51 }
 0x400   : > { %v2738_v0 = vmax.f32 %v2674_v59, 0.0  ;;  %v2940_v25 = vsub.f32 1.0, %v2876_v20  ;;  %v6733_v60 = vfloor.f32 %v988_v19  ;;  %v1051_v39 = vmul.f32 16.0, %v6723_v22 }
 0x401   : > { %2460 = vmatpush1.bf16.msra.mxu0 %v2427_v61  ;;  %v2740_v37 = vmax.f32 %v2676_v5, 0.0  ;;  %v3002_v36 = vmax.f32 %v2938_v55, 0.0  ;;  %v2132_v28 = vsub.f32 %v6257_v23, %v6723_v22  ;;  %v2815_v21 = vsub.f32 %v6266_v62, %v6723_v22 }
 0x402   : > { %v3004_v49 = vmax.f32 %v2940_v25, 0.0  ;;  %v1052_v30 = vmul.f32 16.0, %v6733_v60  ;;  %v1083_v2 = vsub.f32 %v923_v31, %v1051_v39  ;;  %v2134_v11 = vsub.f32 %v6257_v23, %v6733_v60 }
 0x403   : > { %v3066_v6 = vmul.f32 %v3002_v36, %v2738_v0  ;;  %v2196_v44 = vand.u32 2147483647, %v2132_v28  ;;  %v2817_v16 = vsub.f32 %v6266_v62, %v6733_v60  ;;  %v2879_v41 = vand.u32 2147483647, %v2815_v21 }
 0x404   : > { %v3068_v63 = vmul.f32 %v3004_v49, %v2740_v37  ;;  %v1084_v7 = vsub.f32 %v924_v10, %v1052_v30  ;;  %v1868_v26 = vsub.f32 %v6254_v42, %v1083_v2  ;;  %v2198_v27 = vand.u32 2147483647, %v2134_v11 }
 0x405   : > { %v2260_v15 = vsub.f32 1.0, %v2196_v44  ;;  %v2551_v8 = vsub.f32 %v6260_v40, %v1083_v2  ;;  %v2881_v31 = vand.u32 2147483647, %v2817_v16  ;;  %v2943_v17 = vsub.f32 1.0, %v2879_v41 }
 0x406   : > { %v3110_v3 = vpack.c.bf16 %v3068_v63, %v3066_v6  ;;  %v1870_v29 = vsub.f32 %v6254_v42, %v1084_v7  ;;  %v1932_v4 = vand.u32 2147483647, %v1868_v26  ;;  %v2262_v33 = vsub.f32 1.0, %v2198_v27 }
 0x407   : > { %v2324_v47 = vmax.f32 %v2260_v15, 0.0  ;;  %v2553_v35 = vsub.f32 %v6260_v40, %v1084_v7  ;;  %v2615_v45 = vand.u32 2147483647, %v2551_v8  ;;  %v2945_v59 = vsub.f32 1.0, %v2881_v31 }
 0x408   : > { %3143 = vmatpush1.bf16.msra.mxu1 %v3110_v3  ;;  %v1934_v58 = vand.u32 2147483647, %v1870_v29  ;;  %v1996_v10 = vsub.f32 1.0, %v1932_v4  ;;  %v2326_v20 = vmax.f32 %v2262_v33, 0.0  ;;  %v3007_v19 = vmax.f32 %v2943_v17, 0.0 }
 0x409   : > { %v2617_v61 = vand.u32 2147483647, %v2553_v35  ;;  %v2679_v5 = vsub.f32 1.0, %v2615_v45  ;;  %v3009_v55 = vmax.f32 %v2945_v59, 0.0  ;;  %v1867_v0 = vsub.f32 %v6236_v46, %v1083_v2 }
 0x40a   : > { %v1998_v25 = vsub.f32 1.0, %v1934_v58  ;;  %v2060_v39 = vmax.f32 %v1996_v10, 0.0  ;;  %v1869_v54 = vsub.f32 %v6236_v46, %v1084_v7  ;;  %v2131_v37 = vsub.f32 %v6239_v9, %v6723_v22 }
 0x40b   : > { %v2681_v36 = vsub.f32 1.0, %v2617_v61  ;;  %v2743_v28 = vmax.f32 %v2679_v5, 0.0  ;;  %v1931_v21 = vand.u32 2147483647, %v1867_v0  ;;  %v2133_v49 = vsub.f32 %v6239_v9, %v6733_v60 }
 0x40c   : > { %v2062_v30 = vmax.f32 %v1998_v25, 0.0  ;;  %v2388_v11 = vmul.f32 %v2324_v47, %v2060_v39  ;;  %v1933_v43 = vand.u32 2147483647, %v1869_v54  ;;  %v2195_v6 = vand.u32 2147483647, %v2131_v37 }
 0x40d   : > { %v2745_v44 = vmax.f32 %v2681_v36, 0.0  ;;  %v3071_v16 = vmul.f32 %v3007_v19, %v2743_v28  ;;  %v1995_v41 = vsub.f32 1.0, %v1931_v21  ;;  %v2197_v63 = vand.u32 2147483647, %v2133_v49 }
 0x40e   : > { %v2390_v26 = vmul.f32 %v2326_v20, %v2062_v30  ;;  %v1997_v27 = vsub.f32 1.0, %v1933_v43  ;;  %v2259_v15 = vsub.f32 1.0, %v2195_v6  ;;  %v2550_v8 = vsub.f32 %v6242_v1, %v1083_v2 }
 0x40f   : > { %v3073_v31 = vmul.f32 %v3009_v55, %v2745_v44  ;;  %v2059_v17 = vmax.f32 %v1995_v41, 0.0  ;;  %v2261_v3 = vsub.f32 1.0, %v2197_v63  ;;  %v2552_v29 = vsub.f32 %v6242_v1, %v1084_v7 }
 0x410   : > { %v2430_v4 = vpack.c.bf16 %v2390_v26, %v2388_v11  ;;  %v2061_v33 = vmax.f32 %v1997_v27, 0.0  ;;  %v2323_v35 = vmax.f32 %v2259_v15, 0.0  ;;  %v2614_v47 = vand.u32 2147483647, %v2550_v8 }
 0x411   : > { %v3113_v45 = vpack.c.bf16 %v3073_v31, %v3071_v16  ;;  %v2325_v59 = vmax.f32 %v2261_v3, 0.0  ;;  %v2616_v58 = vand.u32 2147483647, %v2552_v29  ;;  %v2814_v10 = vsub.f32 %v6245_v14, %v6723_v22 }
 0x412   : > { %2461 = vmatprep.subr.bf16.mxu0 %v2430_v4  ;;  %v2387_v20 = vmul.f32 %v2323_v35, %v2059_v17  ;;  %v2678_v19 = vsub.f32 1.0, %v2614_v47  ;;  %v2816_v2 = vsub.f32 %v6245_v14, %v6733_v60  ;;  %v989_v61 = vmul.f32 0.0625, %v6690_v12 }
 0x413   : > { %3144 = vmatprep.subr.bf16.mxu1 %v3113_v45  ;;  %v2389_v7 = vmul.f32 %v2325_v59, %v2061_v33  ;;  %v2680_v5 = vsub.f32 1.0, %v2616_v58  ;;  %v2878_v55 = vand.u32 2147483647, %v2814_v10  ;;  %v990_v0 = vmul.f32 0.0625, %v6729_v24 }
 0x414   : > { %v2742_v25 = vmax.f32 %v2678_v19, 0.0  ;;  %v2880_v39 = vand.u32 2147483647, %v2816_v2  ;;  %v6767_v54 = vfloor.f32 %v989_v61  ;;  %v6770_v22 = vadd.s32 216, %v8314_v18 }
 0x415   : > { %v2429_v37 = vpack.c.bf16 %v2389_v7, %v2387_v20  ;;  %v2744_v36 = vmax.f32 %v2680_v5, 0.0  ;;  %v2942_v28 = vsub.f32 1.0, %v2878_v55  ;;  %v6772_v21 = vfloor.f32 %v990_v0 }
 0x416   : > { %v2944_v60 = vsub.f32 1.0, %v2880_v39  ;;  %v1053_v12 = vmul.f32 16.0, %v6767_v54  ;;  %v2136_v49 = vsub.f32 %v6257_v23, %v6767_v54  ;;  %v2819_v24 = vsub.f32 %v6266_v62, %v6767_v54 }
 0x417   : > { %2462 = vmatpush1.bf16.msra.mxu0 %v2429_v37  ;;  %v3006_v30 = vmax.f32 %v2942_v28, 0.0  ;;  %v1054_v11 = vmul.f32 16.0, %v6772_v21  ;;  %v2138_v43 = vsub.f32 %v6257_v23, %v6772_v21  ;;  %v2821_v6 = vsub.f32 %v6266_v62, %v6772_v21 }
 0x418   : > { %v3008_v44 = vmax.f32 %v2944_v60, 0.0  ;;  %v1085_v16 = vsub.f32 %v925_v52, %v1053_v12  ;;  %v2200_v41 = vand.u32 2147483647, %v2136_v49  ;;  %v2883_v63 = vand.u32 2147483647, %v2819_v24 }
 0x419   : > { %v3070_v26 = vmul.f32 %v3006_v30, %v2742_v25  ;;  %v1086_v27 = vsub.f32 %v926_v51, %v1054_v11  ;;  %v2202_v15 = vand.u32 2147483647, %v2138_v43  ;;  %v2885_v8 = vand.u32 2147483647, %v2821_v6 }
 0x41a   : > { %v3072_v31 = vmul.f32 %v3008_v44, %v2744_v36  ;;  %v1872_v17 = vsub.f32 %v6254_v42, %v1085_v16  ;;  %v2264_v3 = vsub.f32 1.0, %v2200_v41  ;;  %v2555_v29 = vsub.f32 %v6260_v40, %v1085_v16 }
 0x41b   : > { %v1874_v4 = vsub.f32 %v6254_v42, %v1086_v27  ;;  %v2266_v33 = vsub.f32 1.0, %v2202_v15  ;;  %v2557_v38 = vsub.f32 %v6260_v40, %v1086_v27  ;;  %v2947_v52 = vsub.f32 1.0, %v2883_v63 }
 0x41c   : > { %v3112_v35 = vpack.c.bf16 %v3072_v31, %v3070_v26  ;;  %v1936_v47 = vand.u32 2147483647, %v1872_v17  ;;  %v2328_v45 = vmax.f32 %v2264_v3, 0.0  ;;  %v2619_v59 = vand.u32 2147483647, %v2555_v29 }
 0x41d   : > { %v1938_v34 = vand.u32 2147483647, %v1874_v4  ;;  %v2330_v51 = vmax.f32 %v2266_v33, 0.0  ;;  %v2621_v58 = vand.u32 2147483647, %v2557_v38  ;;  %v2949_v10 = vsub.f32 1.0, %v2885_v8 }
 0x41e   : > { %3145 = vmatpush1.bf16.msra.mxu1 %v3112_v35  ;;  %v2000_v20 = vsub.f32 1.0, %v1936_v47  ;;  %v2683_v19 = vsub.f32 1.0, %v2619_v59  ;;  %v3011_v2 = vmax.f32 %v2947_v52, 0.0  ;;  %v1871_v61 = vsub.f32 %v6236_v46, %v1085_v16 }
 0x41f   : > { %v2002_v7 = vsub.f32 1.0, %v1938_v34  ;;  %v2685_v5 = vsub.f32 1.0, %v2621_v58  ;;  %v3013_v55 = vmax.f32 %v2949_v10, 0.0  ;;  %v1873_v0 = vsub.f32 %v6236_v46, %v1086_v27 }
 0x420   : > { %v2064_v25 = vmax.f32 %v2000_v20, 0.0  ;;  %v2747_v39 = vmax.f32 %v2683_v19, 0.0  ;;  %v1935_v37 = vand.u32 2147483647, %v1871_v61  ;;  %v2135_v36 = vsub.f32 %v6239_v9, %v6767_v54 }
 0x421   : > { %v2066_v28 = vmax.f32 %v2002_v7, 0.0  ;;  %v2749_v60 = vmax.f32 %v2685_v5, 0.0  ;;  %v1937_v12 = vand.u32 2147483647, %v1873_v0  ;;  %v2137_v49 = vsub.f32 %v6239_v9, %v6772_v21 }
 0x422   : > { %v2392_v24 = vmul.f32 %v2328_v45, %v2064_v25  ;;  %v3075_v30 = vmul.f32 %v3011_v2, %v2747_v39  ;;  %v1999_v11 = vsub.f32 1.0, %v1935_v37  ;;  %v2199_v43 = vand.u32 2147483647, %v2135_v36 }
 0x423   : > { %v2394_v6 = vmul.f32 %v2330_v51, %v2066_v28  ;;  %v3077_v44 = vmul.f32 %v3013_v55, %v2749_v60  ;;  %v2001_v41 = vsub.f32 1.0, %v1937_v12  ;;  %v2201_v63 = vand.u32 2147483647, %v2137_v49 }
 0x424   : > { %v2063_v26 = vmax.f32 %v1999_v11, 0.0  ;;  %v2263_v15 = vsub.f32 1.0, %v2199_v43  ;;  %v2554_v8 = vsub.f32 %v6242_v1, %v1085_v16  ;;  %v2556_v31 = vsub.f32 %v6242_v1, %v1086_v27 }
 0x425   : > { %v2432_v17 = vpack.c.bf16 %v2394_v6, %v2392_v24  ;;  %v3115_v3 = vpack.c.bf16 %v3077_v44, %v3075_v30  ;;  %v2065_v29 = vmax.f32 %v2001_v41, 0.0  ;;  %v2265_v4 = vsub.f32 1.0, %v2201_v63 }
 0x426   : > { %v2327_v33 = vmax.f32 %v2263_v15, 0.0  ;;  %v2618_v38 = vand.u32 2147483647, %v2554_v8  ;;  %v2620_v52 = vand.u32 2147483647, %v2556_v31  ;;  %v2818_v35 = vsub.f32 %v6245_v14, %v6767_v54 }
 0x427   : > { %2463 = vmatprep.subr.bf16.mxu0 %v2432_v17  ;;  %3146 = vmatprep.subr.bf16.mxu1 %v3115_v3  ;;  %v2329_v47 = vmax.f32 %v2265_v4, 0.0  ;;  %v2820_v45 = vsub.f32 %v6245_v14, %v6772_v21  ;;  %v927_v16 = vcvt.s32.f32 %v6693_v48  ;;  %v928_v27 = vcvt.s32.f32 %v6770_v22 }
 0x428   : > { %v2391_v59 = vmul.f32 %v2327_v33, %v2063_v26  ;;  %v2682_v34 = vsub.f32 1.0, %v2618_v38  ;;  %v2684_v51 = vsub.f32 1.0, %v2620_v52  ;;  %v2882_v58 = vand.u32 2147483647, %v2818_v35 }
 0x429   : > { %v2393_v10 = vmul.f32 %v2329_v47, %v2065_v29  ;;  %v2884_v20 = vand.u32 2147483647, %v2820_v45  ;;  %v959_v19 = vadd.f32 0.5, %v927_v16  ;;  %v960_v2 = vadd.f32 0.5, %v928_v27 }
 0x42a   : > { %v2746_v61 = vmax.f32 %v2682_v34, 0.0  ;;  %v2748_v54 = vmax.f32 %v2684_v51, 0.0  ;;  %v2946_v7 = vsub.f32 1.0, %v2882_v58  ;;  %v6807_v5 = vadd.s32 224, %v8314_v18 }
 0x42b   : > { %v2431_v55 = vpack.c.bf16 %v2393_v10, %v2391_v59  ;;  %v2948_v21 = vsub.f32 1.0, %v2884_v20  ;;  %v991_v0 = vmul.f32 0.0625, %v959_v19  ;;  %v992_v48 = vmul.f32 0.0625, %v960_v2 }
 0x42c   : > { %v3010_v25 = vmax.f32 %v2946_v7, 0.0  ;;  %v6810_v22 = vadd.s32 232, %v8314_v18  ;;  %v929_v39 = vcvt.s32.f32 %v6807_v5  ;;  %v6814_v37 = vadd.s32 240, %v8314_v18 }
 0x42d   : > { %2464 = vmatpush1.bf16.msra.mxu0 %v2431_v55  ;;  %v3012_v36 = vmax.f32 %v2948_v21, 0.0  ;;  %v6816_v28 = vfloor.f32 %v991_v0  ;;  %v6818_v60 = vfloor.f32 %v992_v48  ;;  %v6821_v12 = vadd.s32 248, %v8314_v18 }
 0x42e   : > { %v3074_v49 = vmul.f32 %v3010_v25, %v2746_v61  ;;  %v930_v24 = vcvt.s32.f32 %v6810_v22  ;;  %v6826_v30 = vadd.f32 0.5, %v929_v39  ;;  %v931_v11 = vcvt.s32.f32 %v6814_v37 }
 0x42f   : > { %v3076_v43 = vmul.f32 %v3012_v36, %v2748_v54  ;;  %v1055_v6 = vmul.f32 16.0, %v6816_v28  ;;  %v1056_v44 = vmul.f32 16.0, %v6818_v60  ;;  %v2140_v41 = vsub.f32 %v6257_v23, %v6816_v28 }
 0x430   : > { %v2142_v18 = vsub.f32 %v6257_v23, %v6818_v60  ;;  %v2823_v63 = vsub.f32 %v6266_v62, %v6816_v28  ;;  %v2825_v26 = vsub.f32 %v6266_v62, %v6818_v60  ;;  %v2139_v15 = vsub.f32 %v6239_v9, %v6816_v28 }
 0x431   : > { %v3114_v8 = vpack.c.bf16 %v3076_v43, %v3074_v49  ;;  %v1087_v31 = vsub.f32 %v927_v16, %v1055_v6  ;;  %v1088_v17 = vsub.f32 %v928_v27, %v1056_v44  ;;  %v2204_v3 = vand.u32 2147483647, %v2140_v41 }
 0x432   : > { %v2206_v29 = vand.u32 2147483647, %v2142_v18  ;;  %v2887_v4 = vand.u32 2147483647, %v2823_v63  ;;  %v2889_v33 = vand.u32 2147483647, %v2825_v26  ;;  %v2141_v38 = vsub.f32 %v6239_v9, %v6818_v60 }
 0x433   : > { %3147 = vmatpush1.bf16.msra.mxu1 %v3114_v8  ;;  %v1876_v52 = vsub.f32 %v6254_v42, %v1087_v31  ;;  %v1878_v35 = vsub.f32 %v6254_v42, %v1088_v17  ;;  %v2268_v47 = vsub.f32 1.0, %v2204_v3  ;;  %v2559_v45 = vsub.f32 %v6260_v40, %v1087_v31 }
 0x434   : > { %v2270_v59 = vsub.f32 1.0, %v2206_v29  ;;  %v2561_v34 = vsub.f32 %v6260_v40, %v1088_v17  ;;  %v2951_v16 = vsub.f32 1.0, %v2887_v4  ;;  %v2953_v27 = vsub.f32 1.0, %v2889_v33 }
 0x435   : > { %v1940_v51 = vand.u32 2147483647, %v1876_v52  ;;  %v1942_v58 = vand.u32 2147483647, %v1878_v35  ;;  %v2332_v10 = vmax.f32 %v2268_v47, 0.0  ;;  %v1875_v20 = vsub.f32 %v6236_v46, %v1087_v31 }
 0x436   : > { %v2334_v19 = vmax.f32 %v2270_v59, 0.0  ;;  %v2623_v2 = vand.u32 2147483647, %v2559_v45  ;;  %v2625_v61 = vand.u32 2147483647, %v2561_v34  ;;  %v3015_v54 = vmax.f32 %v2951_v16, 0.0 }
 0x437   : > { %v2004_v7 = vsub.f32 1.0, %v1940_v51  ;;  %v2006_v55 = vsub.f32 1.0, %v1942_v58  ;;  %v3017_v21 = vmax.f32 %v2953_v27, 0.0  ;;  %v1877_v0 = vsub.f32 %v6236_v46, %v1088_v17 }
 0x438   : > { %v2687_v48 = vsub.f32 1.0, %v2623_v2  ;;  %v2689_v25 = vsub.f32 1.0, %v2625_v61  ;;  %v1939_v36 = vand.u32 2147483647, %v1875_v20  ;;  %v2203_v49 = vand.u32 2147483647, %v2139_v15 }
 0x439   : > { %v2068_v43 = vmax.f32 %v2004_v7, 0.0  ;;  %v2070_v6 = vmax.f32 %v2006_v55, 0.0  ;;  %v1941_v44 = vand.u32 2147483647, %v1877_v0  ;;  %v2205_v41 = vand.u32 2147483647, %v2141_v38 }
 0x43a   : > { %v2751_v18 = vmax.f32 %v2687_v48, 0.0  ;;  %v2753_v63 = vmax.f32 %v2689_v25, 0.0  ;;  %v2003_v26 = vsub.f32 1.0, %v1939_v36  ;;  %v2267_v8 = vsub.f32 1.0, %v2203_v49 }
 0x43b   : > { %v2396_v3 = vmul.f32 %v2332_v10, %v2068_v43  ;;  %v2398_v29 = vmul.f32 %v2334_v19, %v2070_v6  ;;  %v2005_v4 = vsub.f32 1.0, %v1941_v44  ;;  %v2269_v33 = vsub.f32 1.0, %v2205_v41 }
 0x43c   : > { %v3079_v52 = vmul.f32 %v3015_v54, %v2751_v18  ;;  %v3081_v35 = vmul.f32 %v3017_v21, %v2753_v63  ;;  %v2067_v47 = vmax.f32 %v2003_v26, 0.0  ;;  %v2331_v45 = vmax.f32 %v2267_v8, 0.0 }
 0x43d   : > { %v2434_v59 = vpack.c.bf16 %v2398_v29, %v2396_v3  ;;  %v2069_v34 = vmax.f32 %v2005_v4, 0.0  ;;  %v2333_v16 = vmax.f32 %v2269_v33, 0.0  ;;  %v2558_v15 = vsub.f32 %v6242_v1, %v1087_v31 }
 0x43e   : > { %v3117_v27 = vpack.c.bf16 %v3081_v35, %v3079_v52  ;;  %v2395_v51 = vmul.f32 %v2331_v45, %v2067_v47  ;;  %v2560_v38 = vsub.f32 %v6242_v1, %v1088_v17  ;;  %v2822_v58 = vsub.f32 %v6245_v14, %v6816_v28 }
 0x43f   : > { %2465 = vmatprep.subr.bf16.mxu0 %v2434_v59  ;;  %v2397_v10 = vmul.f32 %v2333_v16, %v2069_v34  ;;  %v2622_v20 = vand.u32 2147483647, %v2558_v15  ;;  %v2824_v19 = vsub.f32 %v6245_v14, %v6818_v60  ;;  %v962_v2 = vadd.f32 0.5, %v930_v24 }
 0x440   : > { %3148 = vmatprep.subr.bf16.mxu1 %v3117_v27  ;;  %v2624_v61 = vand.u32 2147483647, %v2560_v38  ;;  %v2886_v54 = vand.u32 2147483647, %v2822_v58  ;;  %v993_v31 = vmul.f32 0.0625, %v6826_v30  ;;  %v932_v7 = vcvt.s32.f32 %v6821_v12 }
 0x441   : > { %v2433_v17 = vpack.c.bf16 %v2397_v10, %v2395_v51  ;;  %v2686_v55 = vsub.f32 1.0, %v2622_v20  ;;  %v2888_v21 = vand.u32 2147483647, %v2824_v19  ;;  %v994_v28 = vmul.f32 0.0625, %v962_v2 }
 0x442   : > { %v2688_v0 = vsub.f32 1.0, %v2624_v61  ;;  %v2950_v48 = vsub.f32 1.0, %v2886_v54  ;;  %v6859_v25 = vfloor.f32 %v993_v31  ;;  %v6863_v60 = vadd.f32 0.5, %v931_v11 }
 0x443   : > { %2466 = vmatpush1.bf16.msra.mxu0 %v2433_v17  ;;  %v2750_v36 = vmax.f32 %v2686_v55, 0.0  ;;  %v2952_v49 = vsub.f32 1.0, %v2888_v21  ;;  %v6865_v43 = vfloor.f32 %v994_v28  ;;  %v6869_v30 = vadd.f32 0.5, %v932_v7 }
 0x444   : > { %v2752_v6 = vmax.f32 %v2688_v0, 0.0  ;;  %v3014_v44 = vmax.f32 %v2950_v48, 0.0  ;;  %v1057_v41 = vmul.f32 16.0, %v6859_v25  ;;  %v2144_v18 = vsub.f32 %v6257_v23, %v6859_v25 }
 0x445   : > { %v3016_v63 = vmax.f32 %v2952_v49, 0.0  ;;  %v1058_v26 = vmul.f32 16.0, %v6865_v43  ;;  %v2146_v8 = vsub.f32 %v6257_v23, %v6865_v43  ;;  %v2827_v3 = vsub.f32 %v6266_v62, %v6859_v25 }
 0x446   : > { %v3078_v29 = vmul.f32 %v3014_v44, %v2750_v36  ;;  %v1089_v4 = vsub.f32 %v929_v39, %v1057_v41  ;;  %v2208_v33 = vand.u32 2147483647, %v2144_v18  ;;  %v2829_v52 = vsub.f32 %v6266_v62, %v6865_v43 }
 0x447   : > { %v3080_v35 = vmul.f32 %v3016_v63, %v2752_v6  ;;  %v1090_v47 = vsub.f32 %v930_v24, %v1058_v26  ;;  %v2210_v45 = vand.u32 2147483647, %v2146_v8  ;;  %v2891_v59 = vand.u32 2147483647, %v2827_v3 }
 0x448   : > { %v1880_v34 = vsub.f32 %v6254_v42, %v1089_v4  ;;  %v2272_v16 = vsub.f32 1.0, %v2208_v33  ;;  %v2563_v15 = vsub.f32 %v6260_v40, %v1089_v4  ;;  %v2893_v27 = vand.u32 2147483647, %v2829_v52 }
 0x449   : > { %v3116_v51 = vpack.c.bf16 %v3080_v35, %v3078_v29  ;;  %v1882_v5 = vsub.f32 %v6254_v42, %v1090_v47  ;;  %v2274_v39 = vsub.f32 1.0, %v2210_v45  ;;  %v2565_v38 = vsub.f32 %v6260_v40, %v1090_v47 }
 0x44a   : > { %v1944_v58 = vand.u32 2147483647, %v1880_v34  ;;  %v2336_v10 = vmax.f32 %v2272_v16, 0.0  ;;  %v2627_v20 = vand.u32 2147483647, %v2563_v15  ;;  %v2955_v19 = vsub.f32 1.0, %v2891_v59 }
 0x44b   : > { %3149 = vmatpush1.bf16.msra.mxu1 %v3116_v51  ;;  %v1946_v22 = vand.u32 2147483647, %v1882_v5  ;;  %v2338_v24 = vmax.f32 %v2274_v39, 0.0  ;;  %v2629_v2 = vand.u32 2147483647, %v2565_v38  ;;  %v2957_v61 = vsub.f32 1.0, %v2893_v27 }
 0x44c   : > { %v2008_v54 = vsub.f32 1.0, %v1944_v58  ;;  %v2691_v31 = vsub.f32 1.0, %v2627_v20  ;;  %v3019_v17 = vmax.f32 %v2955_v19, 0.0  ;;  %v1879_v55 = vsub.f32 %v6236_v46, %v1089_v4 }
 0x44d   : > { %v2010_v21 = vsub.f32 1.0, %v1946_v22  ;;  %v2693_v28 = vsub.f32 1.0, %v2629_v2  ;;  %v3021_v0 = vmax.f32 %v2957_v61, 0.0  ;;  %v1881_v48 = vsub.f32 %v6236_v46, %v1090_v47  ;;  %v6907_v2 = vld [vmem:[%s820_s29] sm:$0xff] }
 0x44e   : > { %v2072_v36 = vmax.f32 %v2008_v54, 0.0  ;;  %v2755_v49 = vmax.f32 %v2691_v31, 0.0  ;;  %v1943_v6 = vand.u32 2147483647, %v1879_v55  ;;  %v2143_v44 = vsub.f32 %v6239_v9, %v6859_v25 }
 0x44f   : > { %v2074_v41 = vmax.f32 %v2010_v21, 0.0  ;;  %v2757_v18 = vmax.f32 %v2693_v28, 0.0  ;;  %v1945_v63 = vand.u32 2147483647, %v1881_v48  ;;  %v2145_v26 = vsub.f32 %v6239_v9, %v6865_v43 }
 0x450   : > { %v2400_v8 = vmul.f32 %v2336_v10, %v2072_v36  ;;  %v3083_v3 = vmul.f32 %v3019_v17, %v2755_v49  ;;  %v2007_v29 = vsub.f32 1.0, %v1943_v6  ;;  %v2207_v33 = vand.u32 2147483647, %v2143_v44 }
 0x451   : > { %v2402_v52 = vmul.f32 %v2338_v24, %v2074_v41  ;;  %v3085_v35 = vmul.f32 %v3021_v0, %v2757_v18  ;;  %v2009_v45 = vsub.f32 1.0, %v1945_v63  ;;  %v2209_v59 = vand.u32 2147483647, %v2145_v26 }
 0x452   : > { %v2071_v34 = vmax.f32 %v2007_v29, 0.0  ;;  %v2271_v16 = vsub.f32 1.0, %v2207_v33  ;;  %v2562_v15 = vsub.f32 %v6242_v1, %v1089_v4  ;;  %v2564_v27 = vsub.f32 %v6242_v1, %v1090_v47 }
 0x453   : > { %v2436_v51 = vpack.c.bf16 %v2402_v52, %v2400_v8  ;;  %v3119_v5 = vpack.c.bf16 %v3085_v35, %v3083_v3  ;;  %v2073_v39 = vmax.f32 %v2009_v45, 0.0  ;;  %v2273_v38 = vsub.f32 1.0, %v2209_v59 }
 0x454   : > { %v2335_v58 = vmax.f32 %v2271_v16, 0.0  ;;  %v2626_v10 = vand.u32 2147483647, %v2562_v15  ;;  %v2628_v20 = vand.u32 2147483647, %v2564_v27  ;;  %v2826_v19 = vsub.f32 %v6245_v14, %v6859_v25 }
 0x455   : > { %2467 = vmatprep.subr.bf16.mxu0 %v2436_v51  ;;  %3150 = vmatprep.subr.bf16.mxu1 %v3119_v5  ;;  %v2337_v22 = vmax.f32 %v2273_v38, 0.0  ;;  %v2828_v4 = vsub.f32 %v6245_v14, %v6865_v43  ;;  %v995_v47 = vmul.f32 0.0625, %v6863_v60  ;;  %v996_v24 = vmul.f32 0.0625, %v6869_v30 }
 0x456   : > { %v2399_v61 = vmul.f32 %v2335_v58, %v2071_v34  ;;  %v2690_v54 = vsub.f32 1.0, %v2626_v10  ;;  %v2692_v31 = vsub.f32 1.0, %v2628_v20  ;;  %v2890_v17 = vand.u32 2147483647, %v2826_v19 }
 0x457   : > { %v2401_v55 = vmul.f32 %v2337_v22, %v2073_v39  ;;  %v2892_v21 = vand.u32 2147483647, %v2828_v4  ;;  %v6909_v28 = vfloor.f32 %v995_v47  ;;  %v6911_v25 = vfloor.f32 %v996_v24 }
 0x458   : > { %v2754_v0 = vmax.f32 %v2690_v54, 0.0  ;;  %v2756_v48 = vmax.f32 %v2692_v31, 0.0  ;;  %v2954_v36 = vsub.f32 1.0, %v2890_v17  ;;  %v6915_v60 = vcombine.high %v6907_v2, %v6907_v2 }
 0x459   : > { %v2435_v43 = vpack.c.bf16 %v2401_v55, %v2399_v61  ;;  %v2956_v30 = vsub.f32 1.0, %v2892_v21  ;;  %v1059_v49 = vmul.f32 16.0, %v6909_v28  ;;  %v1060_v6 = vmul.f32 16.0, %v6911_v25 }
 0x45a   : > { %v3018_v44 = vmax.f32 %v2954_v36, 0.0  ;;  %v2148_v41 = vsub.f32 %v6257_v23, %v6909_v28  ;;  %v2150_v18 = vsub.f32 %v6257_v23, %v6911_v25  ;;  %v2831_v63 = vsub.f32 %v6266_v62, %v6909_v28 }
 0x45b   : > { %2468 = vmatpush1.bf16.msra.mxu0 %v2435_v43  ;;  %v3020_v26 = vmax.f32 %v2956_v30, 0.0  ;;  %v1091_v8 = vsub.f32 %v931_v11, %v1059_v49  ;;  %v1092_v3 = vsub.f32 %v932_v7, %v1060_v6  ;;  %v2833_v29 = vsub.f32 %v6266_v62, %v6911_v25 }
 0x45c   : > { %v3082_v33 = vmul.f32 %v3018_v44, %v2754_v0  ;;  %v2212_v52 = vand.u32 2147483647, %v2148_v41  ;;  %v2214_v35 = vand.u32 2147483647, %v2150_v18  ;;  %v2895_v45 = vand.u32 2147483647, %v2831_v63 }
 0x45d   : > { %v3084_v59 = vmul.f32 %v3020_v26, %v2756_v48  ;;  %v1884_v23 = vsub.f32 %v6254_v42, %v1091_v8  ;;  %v1886_v34 = vsub.f32 %v6254_v42, %v1092_v3  ;;  %v2567_v16 = vsub.f32 %v6260_v40, %v1091_v8 }
 0x45e   : > { %v2276_v15 = vsub.f32 1.0, %v2212_v52  ;;  %v2278_v37 = vsub.f32 1.0, %v2214_v35  ;;  %v2569_v11 = vsub.f32 %v6260_v40, %v1092_v3  ;;  %v2897_v12 = vand.u32 2147483647, %v2833_v29 }
 0x45f   : > { %v3118_v7 = vpack.c.bf16 %v3084_v59, %v3082_v33  ;;  %v1948_v27 = vand.u32 2147483647, %v1884_v23  ;;  %v1950_v51 = vand.u32 2147483647, %v1886_v34  ;;  %v2631_v62 = vand.u32 2147483647, %v2567_v16 }
 0x460   : > { %v2340_v5 = vmax.f32 %v2276_v15, 0.0  ;;  %v2342_v39 = vmax.f32 %v2278_v37, 0.0  ;;  %v2633_v38 = vand.u32 2147483647, %v2569_v11  ;;  %v2959_v58 = vsub.f32 1.0, %v2895_v45  ;;  %v2492_v34 = vld [vmem:[%s825_s4] sm:$0xff] }
 0x461   : > { %3151 = vmatpush1.bf16.msra.mxu1 %v3118_v7  ;;  %v2012_v10 = vsub.f32 1.0, %v1948_v27  ;;  %v2014_v20 = vsub.f32 1.0, %v1950_v51  ;;  %v2695_v19 = vsub.f32 1.0, %v2631_v62  ;;  %v2961_v42 = vsub.f32 1.0, %v2897_v12  ;;  %s8329_s4 = smov 113  }
 0x462   : > { %v2697_v22 = vsub.f32 1.0, %v2633_v38  ;;  %v3023_v4 = vmax.f32 %v2959_v58, 0.0  ;;  %v1883_v47 = vsub.f32 %v6236_v46, %v1091_v8  ;;  %v1885_v40 = vsub.f32 %v6236_v46, %v1092_v3 }
 0x463   : > { %v2076_v24 = vmax.f32 %v2012_v10, 0.0  ;;  %v2078_v61 = vmax.f32 %v2014_v20, 0.0  ;;  %v2759_v54 = vmax.f32 %v2695_v19, 0.0  ;;  %v3025_v31 = vmax.f32 %v2961_v42, 0.0 }
 0x464   : > { %v2761_v17 = vmax.f32 %v2697_v22, 0.0  ;;  %v1947_v55 = vand.u32 2147483647, %v1883_v47  ;;  %v1949_v21 = vand.u32 2147483647, %v1885_v40  ;;  %v2147_v0 = vsub.f32 %v6239_v9, %v6909_v28 }
 0x465   : > { %v2404_v48 = vmul.f32 %v2340_v5, %v2076_v24  ;;  %v2406_v36 = vmul.f32 %v2342_v39, %v2078_v61  ;;  %v3087_v43 = vmul.f32 %v3023_v4, %v2759_v54  ;;  %v2149_v30 = vsub.f32 %v6239_v9, %v6911_v25 }
 0x466   : > { %v3089_v49 = vmul.f32 %v3025_v31, %v2761_v17  ;;  %v2011_v6 = vsub.f32 1.0, %v1947_v55  ;;  %v2013_v46 = vsub.f32 1.0, %v1949_v21  ;;  %v2211_v44 = vand.u32 2147483647, %v2147_v0  ;;  %v8319_v21 = vld [vmem:[#allocation3_spill] sm:$0xff] }
 0x467   : > { %v2438_v41 = vpack.c.bf16 %v2406_v36, %v2404_v48  ;;  %v2213_v18 = vand.u32 2147483647, %v2149_v30  ;;  %v2566_v63 = vsub.f32 %v6242_v1, %v1091_v8  ;;  %v2568_v26 = vsub.f32 %v6242_v1, %v1092_v3 }
 0x468   : > { %v3121_v29 = vpack.c.bf16 %v3089_v49, %v3087_v43  ;;  %v2075_v33 = vmax.f32 %v2011_v6, 0.0  ;;  %v2077_v52 = vmax.f32 %v2013_v46, 0.0  ;;  %v2275_v35 = vsub.f32 1.0, %v2211_v44 }
 0x469   : > { %2469 = vmatprep.subr.bf16.mxu0 %v2438_v41  ;;  %v2277_v9 = vsub.f32 1.0, %v2213_v18  ;;  %v2630_v45 = vand.u32 2147483647, %v2566_v63  ;;  %v2632_v59 = vand.u32 2147483647, %v2568_v26  ;;  %v2830_v23 = vsub.f32 %v6245_v14, %v6909_v28  ;;  %v3198_v63 = vld [vmem:[%s8189_s13] sm:$0xff] }
 0x46a   : > { %3152 = vmatprep.subr.bf16.mxu1 %v3121_v29  ;;  %v2339_v16 = vmax.f32 %v2275_v35, 0.0  ;;  %v2832_v15 = vsub.f32 %v6245_v14, %v6911_v25  ;;  %v1814_v1 = vpack.c.bf16 %v6915_v60, %v6915_v60  ;;  %v2494_v27 = vcombine.high %v2492_v34, %v2492_v34  ;;  %v3197_v26 = vld [vmem:[%s8188_s12] sm:$0xff]  ;;  %v3210_v29 = vpop.permute.xlu0 %3209 }
 0x46b   : > { %v2341_v8 = vmax.f32 %v2277_v9, 0.0  ;;  %v2694_v3 = vsub.f32 1.0, %v2630_v45  ;;  %v2696_v37 = vsub.f32 1.0, %v2632_v59  ;;  %v2894_v11 = vand.u32 2147483647, %v2830_v23 }
 0x46c   : > { %v2403_v12 = vmul.f32 %v2339_v16, %v2075_v33  ;;  %v2896_v7 = vand.u32 2147483647, %v2832_v15  ;;  %2471 = vmatprep.mubr.bf16.mxu0 %v1814_v1  ;;  %v2497_v38 = vpack.c.bf16 %v2494_v27, %v2494_v27  ;;  %v1813_v25 = vpack.c.bf16 %v6907_v2, %v6907_v2  ;;  %v6959_v2 = vld [vmem:[%s8318_s10] sm:$0xff]  ;;  %v3204_v33 = vpop.permute.xlu1 %3203 }
 0x46d   : > { %v2405_v51 = vmul.f32 %v2341_v8, %v2077_v52  ;;  %v2758_v62 = vmax.f32 %v2694_v3, 0.0  ;;  %v2958_v28 = vsub.f32 1.0, %v2894_v11  ;;  %v2760_v5 = vmax.f32 %v2696_v37, 0.0 }
 0x46e   : > { %v2960_v39 = vsub.f32 1.0, %v2896_v7  ;;  %3154 = vmatprep.mubr.bf16.mxu1 %v2497_v38  ;;  %v2496_v42 = vpack.c.bf16 %v2492_v34, %v2492_v34  ;;  %v8317_v22 = vmov 0   ;;  %v6970_v0 = vrot.slane %v6959_v2, %v8319_v21  ;;  %v3247_v52 = vpop.permute.xlu0 %3246 }
 0x46f   : > { %v2437_v58 = vpack.c.bf16 %v2405_v51, %v2403_v12  ;;  %v3022_v10 = vmax.f32 %v2958_v28, 0.0  ;;  %v8320_v51 = vld [vmem:[#allocation11_spill] sm:$0xff]  ;;  %v8321_v28 = vld [vmem:[#allocation5_spill] sm:$0xff] }
 0x470   : > { %v3024_v14 = vmax.f32 %v2960_v39, 0.0  ;;  %v3241_v35 = vpop.permute.xlu1 %3240  ;;  %vm3211_vm3 = vcmp.lt.s32.totalorder %v8320_v51, 17  ;;  %v7088_v39 = vld [vmem:[%s8318_s10 + $0x8] sm:$0xff]  ;;  %vm3248_vm5 = vcmp.lt.s32.totalorder %v8320_v51, 16  ;;  %vm3285_vm6 = vcmp.lt.s32.totalorder %v8320_v51, 15 }
 0x471   : > { %2470 = vmatpush1.bf16.msra.mxu0 %v2437_v58  ;;  %v3086_v60 = vmul.f32 %v3022_v10, %v2758_v62  ;;  %v3217_v38 = vsel %vm3211_vm3, %v3210_v29, %v3204_v33  ;;  %v7097_v10 = vrot.slane %v7088_v39, %v8321_v28  ;;  %vm3322_vm8 = vcmp.lt.s32.totalorder %v8320_v51, 1 }
 0x472   : > { %v3088_v20 = vmul.f32 %v3024_v14, %v2760_v5  ;;  %v3284_v9 = vpop.permute.xlu0 %3283  ;;  %v7083_v5 = vrot.slane %v6959_v2, %v8321_v28  ;;  %v8322_v14 = vld [vmem:[#allocation4_spill] sm:$0xff]  ;;  %vm3377_vm9 = vcmp.lt.s32.totalorder %v8320_v51, 127  ;;  %vm3414_vm10 = vcmp.lt.s32.totalorder %v8320_v51, 113 }
 0x473   : > { %vm3451_vm11 = vcmp.lt.s32.totalorder %v8320_v51, 112  ;;  %vm3488_vm12 = vcmp.lt.s32.totalorder %v8320_v51, 111  ;;  %v4888_v51 = vld [vmem:[%s8195_s19] sm:$0x3] }
 0x474   : > { %v3120_v19 = vpack.c.bf16 %v3088_v20, %v3086_v60  ;;  %2472 = vmatmul.mubr.bf16.vlgmr.msra.gmra.mrb[16].mxu0 %v1813_v25  ;;  %v3278_v45 = vpop.permute.xlu1 %3277  ;;  %v7101_v25 = vrot.slane %v7088_v39, %v8322_v14  ;;  %v3214_v60 = vsel %vm3211_vm3, %v3204_v33, %v3210_v29  ;;  %v7156_v29 = vrot.slane %v7088_v39, %v8319_v21 }
 0x476   : > { %3153 = vmatpush1.bf16.msra.mxu1 %v3120_v19  ;;  %v7060_v59 = vpop.permute.xlu0 %3320  ;;  %v7106_v19 = vmul.f32 %v7083_v5, %v3217_v38 }
 0x478   : > { %v7062_v23 = vpop.permute.xlu1 %3314  ;;  %v3234_v33 = vpack.c.bf16 %v7106_v19, %v7106_v19 }
 0x479   : > { %3155 = vmatmul.mubr.bf16.vlgmr.msra.gmra.mrb[4].mxu1 %v2496_v42  ;;  %v3251_v42 = vsel %vm3248_vm5, %v3241_v35, %v3247_v52 }
 0x47a   : > { %3883 = vmatprep.mubr.bf16.mxu1 %v8317_v22  ;;  %v7064_v34 = vpop.permute.xlu0 %3375 }
 0x47c   : > { %v7066_v15 = vpop.permute.xlu1 %3369 }
 0x47d   : > { %v3380_v19 = vsel %vm3377_vm9, %v7066_v15, %v7064_v34 }
 0x547   : > { %v2473_v4 = vpop.f32.mrb[16].mxu0 }
 0x548   : > { %v3171_v47 = vrot.slane %v2473_v4, 1  ;;  %v2475_v40 = vpop.f32.mrb[17].mxu0  ;;  %v7112_v4 = vrot.slane %v6959_v2, %v8322_v14 }
 0x549   : > { %v3172_v24 = vrot.slane %v2475_v40, 1  ;;  %v2477_v61 = vpop.f32.mrb[18].mxu0 }
 0x54a   : > { %v3192_v54 = vsel %vm3187_vm1, %v3171_v47, %v6276_v53  ;;  %v2478_v31 = vpop.f32.mrb[19].mxu0  ;;  %v8324_v61 = vld [vmem:[#allocation7_spill] sm:$0xff] }
 0x54b   : > { %v6965_v17 = vsel %vm3187_vm1, %v3172_v24, %v6289_v57  ;;  %3201 = vrot.lane.b32.xlu0 %v3192_v54, %s8254_s7  ;;  %v6976_v57 = vmul.f32 %v6970_v0, %v3192_v54 }
 0x54c   : > { %v3156_v55 = vpop.f32.mrb[4].mxu1 }
 0x54d   : > { %v3165_v48 = vrot.slane %v3156_v55, 5  ;;  %v3158_v36 = vpop.f32.mrb[5].mxu1  ;;  %v7130_v55 = vrot.slane %v7088_v39, %v8324_v61 }
 0x54e   : > { %v3166_v43 = vrot.slane %v3158_v36, 5  ;;  %v3160_v30 = vpop.f32.mrb[6].mxu1 }
 0x54f   : > { %v3188_v49 = vsel %vm3187_vm1, %v6725_v32, %v3165_v48  ;;  %v3161_v53 = vpop.f32.mrb[7].mxu1  ;;  %3238 = vrot.lane.b32.xlu0 %v3192_v54, %s8258_s30  ;;  %v7133_v48 = vmul.f32 %v7097_v10, %v3214_v60  ;;  %v8325_v30 = vld [vmem:[#allocation8_spill] sm:$0xff] }
 0x550   : > { %v3190_v6 = vsel %vm1407_vm13, %v3188_v49, %v3171_v47  ;;  %v3189_v46 = vsel %vm3187_vm1, %v6731_v13, %v3166_v43  ;;  %v7044_v13 = vld [vmem:[%s8187_s11] sm:$0xff]  ;;  %v7141_v49 = vrot.slane %v6959_v2, %v8325_v30  ;;  %v7145_v53 = vrot.slane %v7088_v39, %v8325_v30 }
 0x551   : > { %v6982_v44 = vsel %vm1407_vm13, %v3189_v46, %v3172_v24  ;;  %3199 = vrot.lane.b32.xlu1 %v3190_v6, %s8254_s7  ;;  %v6986_v41 = vmul.f32 %v6970_v0, %v3190_v6  ;;  %v5384_v18 = vcombine.high %v7044_v13, %v7044_v13  ;;  %v8323_v47 = vld [vmem:[#allocation6_spill] sm:$0xff]  ;;  %v3268_v46 = vmul.f32 %v7101_v25, %v3251_v42 }
 0x552   : > { %v7116_v40 = vrot.slane %v6959_v2, %v8323_v47  ;;  %v7120_v24 = vrot.slane %v7088_v39, %v8323_v47  ;;  %v3235_v21 = vpack.c.bf16 %v7133_v48, %v7133_v48  ;;  %v3291_v47 = vsel %vm3285_vm6, %v3284_v9, %v3278_v45 }
 0x553   : > { %3275 = vrot.lane.b32.xlu0 %v3192_v54, %s8252_s9  ;;  %5386 = vmatprep.mubr.msk.bf16.mxu0 %vm3639_vm2, %v5384_v18  ;;  %v3272_v42 = vpack.c.bf16 %v3268_v46, %v3268_v46  ;;  %v3288_v48 = vsel %vm3285_vm6, %v3278_v45, %v3284_v9 }
 0x555   : > { %3236 = vrot.lane.b32.xlu1 %v3190_v6, %s8258_s30 }
 0x557   : > { %3312 = vrot.lane.b32.xlu0 %v3192_v54, %s8310_s28 }
 0x559   : > { %3273 = vrot.lane.b32.xlu1 %v3190_v6, %s8252_s9 }
 0x55b   : > { %3367 = vrot.lane.b32.xlu0 %v3192_v54, %s8311_s0 }
 0x55d   : > { %3310 = vrot.lane.b32.xlu1 %v3190_v6, %s8310_s28 }
 0x55f   : > { %3404 = vrot.lane.b32.xlu0 %v3192_v54, %s8250_s1 }
 0x561   : > { %3365 = vrot.lane.b32.xlu1 %v3190_v6, %s8311_s0 }
 0x563   : > { %3207 = vrot.lane.b32.xlu0 %v6965_v17, %s8254_s7 }
 0x565   : > { %3402 = vrot.lane.b32.xlu1 %v3190_v6, %s8250_s1 }
 0x567   : > { %3244 = vrot.lane.b32.xlu0 %v6965_v17, %s8258_s30 }
 0x569   : > { %3205 = vrot.lane.b32.xlu1 %v6982_v44, %s8254_s7 }
 0x56b   : > { %3281 = vrot.lane.b32.xlu0 %v6965_v17, %s8252_s9 }
 0x56d   : > { %3242 = vrot.lane.b32.xlu1 %v6982_v44, %s8258_s30 }
 0x56f   : > { %3318 = vrot.lane.b32.xlu0 %v6965_v17, %s8310_s28 }
 0x571   : > { %3279 = vrot.lane.b32.xlu1 %v6982_v44, %s8252_s9 }
 0x573   : > { %3373 = vrot.lane.b32.xlu0 %v6965_v17, %s8311_s0 }
 0x575   : > { %3316 = vrot.lane.b32.xlu1 %v6982_v44, %s8310_s28 }
 0x577   : > { %3410 = vrot.lane.b32.xlu0 %v6965_v17, %s8250_s1 }
 0x579   : > { %3406 = vrot.lane.b32.xlu1 %v6229_v50, %s8250_s1 }
 0x57b   : > { %3412 = vrot.lane.b32.xlu0 %v6263_v56, %s8250_s1 }
 0x57d   : > { %3439 = vrot.lane.b32.xlu1 %v3190_v6, %s8260_s2 }
 0x57f   : > { %3441 = vrot.lane.b32.xlu0 %v3192_v54, %s8260_s2 }
 0x581   : > { %3371 = vrot.lane.b32.xlu1 %v6982_v44, %s8311_s0 }
 0x583   : > { %3447 = vrot.lane.b32.xlu0 %v6965_v17, %s8260_s2 }
 0x585   : > { %3408 = vrot.lane.b32.xlu1 %v6982_v44, %s8250_s1  ;;  %s8330_s1 = smov 15  }
 0x587   : > { %3449 = vrot.lane.b32.xlu0 %v6263_v56, %s8260_s2 }
 0x589   : > { %3445 = vrot.lane.b32.xlu1 %v6982_v44, %s8260_s2 }
 0x58b   : > { %3478 = vrot.lane.b32.xlu0 %v3192_v54, %s8256_s3  ;;  %v7124_v54 = vrot.slane %v6959_v2, %v8324_v61 }
 0x58d   : > { %3443 = vrot.lane.b32.xlu1 %v6229_v50, %s8260_s2 }
 0x58f   : > { %3484 = vrot.lane.b32.xlu0 %v6965_v17, %s8256_s3 }
 0x591   : > { %3476 = vrot.lane.b32.xlu1 %v3190_v6, %s8256_s3  ;;  %v3254_v6 = vsel %vm3248_vm5, %v3247_v52, %v3241_v35 }
 0x592   : > { %v3267_v14 = vmul.f32 %v7112_v4, %v3254_v6 }
 0x593   : > { %3486 = vrot.lane.b32.xlu0 %v6263_v56, %s8256_s3 }
 0x595   : > { %3482 = vrot.lane.b32.xlu1 %v6982_v44, %s8256_s3 }
 0x597   : > { %3694 = vperm.xlu0 %5501, %v3198_v63   ;;  %v8326_v63 = vld [vmem:[#allocation9_spill] sm:$0xff] }
 0x599   : > { %3480 = vrot.lane.b32.xlu1 %v6229_v50, %s8256_s3 }
 0x59d   : > { %3630 = vperm.xlu1 %5502, %v3197_v26   ;;  %v7152_v26 = vrot.slane %v6959_v2, %v8326_v63 }
 0x5bd   : > { %v3202_v16 = vpop.permute.xlu0 %3201 }
 0x5c1   : > { %v3239_v1 = vpop.permute.xlu0 %3238 }
 0x5c3   : > { %v3200_v8 = vpop.permute.xlu1 %3199 }
 0x5c5   : > { %v3276_v3 = vpop.permute.xlu0 %3275 }
 0x5c7   : > { %v7068_v37 = vpop.permute.xlu1 %3236 }
 0x5c9   : > { %v7070_v11 = vpop.permute.xlu0 %3312 }
 0x5cb   : > { %v7072_v12 = vpop.permute.xlu1 %3273 }
 0x5cd   : > { %v7074_v7 = vpop.permute.xlu0 %3367 }
 0x5cf   : > { %v7076_v27 = vpop.permute.xlu1 %3310 }
 0x5d1   : > { %v7079_v62 = vpop.permute.xlu0 %3404 }
 0x5d3   : > { %v7093_v58 = vpop.permute.xlu1 %3365 }
 0x5d5   : > { %v3208_v20 = vpop.permute.xlu0 %3207 }
 0x5d6   : > { %v3213_v36 = vsel %vm3211_vm3, %v3202_v16, %v3208_v20  ;;  %v3216_v43 = vsel %vm3211_vm3, %v3208_v20, %v3202_v16 }
 0x5d7   : > { %v7126_v31 = vpop.permute.xlu1 %3402  ;;  %v3228_v16 = vmul.f32 %v7083_v5, %v3216_v43  ;;  %v3229_v52 = vmul.f32 %v7097_v10, %v3213_v36 }
 0x5d9   : > { %v3245_v18 = vpop.permute.xlu0 %3244 }
 0x5da   : > { %v3250_v28 = vsel %vm3248_vm5, %v3239_v1, %v3245_v18  ;;  %v3253_v38 = vsel %vm3248_vm5, %v3245_v18, %v3239_v1 }
 0x5db   : > { %v3206_v35 = vpop.permute.xlu1 %3205  ;;  %v3265_v43 = vmul.f32 %v7112_v4, %v3253_v38  ;;  %v3266_v30 = vmul.f32 %v7101_v25, %v3250_v28 }
 0x5dc   : > { %v3212_v60 = vsel %vm3211_vm3, %v3200_v8, %v3206_v35  ;;  %v3215_v20 = vsel %vm3211_vm3, %v3206_v35, %v3200_v8 }
 0x5dd   : > { %v3226_v61 = vmul.f32 %v7083_v5, %v3215_v20  ;;  %v3227_v36 = vmul.f32 %v7097_v10, %v3212_v60  ;;  %v3282_v1 = vpop.permute.xlu0 %3281  ;;  %v3271_v60 = vpack.c.bf16 %v3267_v14, %v3267_v14  ;;  %v3304_v20 = vmul.f32 %v7116_v40, %v3291_v47 }
 0x5de   : > { %v3287_v18 = vsel %vm3285_vm6, %v3276_v3, %v3282_v1  ;;  %v3290_v35 = vsel %vm3285_vm6, %v3282_v1, %v3276_v3  ;;  %v3325_v14 = vsel %vm3322_vm8, %v7062_v23, %v7060_v59  ;;  %v3328_v47 = vsel %vm3322_vm8, %v7060_v59, %v7062_v23 }
 0x5df   : > { %v3232_v6 = vpack.c.bf16 %v3228_v16, %v3226_v61  ;;  %v3243_v8 = vpop.permute.xlu1 %3242  ;;  %v3233_v46 = vpack.c.bf16 %v3229_v52, %v3227_v36  ;;  %v3522_v16 = vrot.slane %v3272_v42, 6  ;;  %v3305_v52 = vmul.f32 %v7120_v24, %v3288_v48 }
 0x5e0   : > { %v3249_v9 = vsel %vm3248_vm5, %v7068_v37, %v3243_v8  ;;  %v3252_v45 = vsel %vm3248_vm5, %v3243_v8, %v7068_v37  ;;  %v3302_v37 = vmul.f32 %v7116_v40, %v3290_v35  ;;  %v3303_v42 = vmul.f32 %v7120_v24, %v3287_v18 }
 0x5e1   : > { %v3263_v28 = vmul.f32 %v7112_v4, %v3252_v45  ;;  %v3264_v38 = vmul.f32 %v7101_v25, %v3249_v9  ;;  %3649 = vmatprep.subr.bf16.mxu0 %v3233_v46  ;;  %v3319_v3 = vpop.permute.xlu0 %3318  ;;  %v3520_v46 = vrot.slane %v3271_v60, 6  ;;  %v3308_v9 = vpack.c.bf16 %v3304_v20, %v3304_v20 }
 0x5e2   : > { %3650 = vmatpush1.bf16.msra.mxu0 %v3232_v6  ;;  %v3324_v48 = vsel %vm3322_vm8, %v7070_v11, %v3319_v3  ;;  %v3327_v8 = vsel %vm3322_vm8, %v3319_v3, %v7070_v11  ;;  %v3309_v11 = vpack.c.bf16 %v3305_v52, %v3305_v52 }
 0x5e3   : > { %v3269_v61 = vpack.c.bf16 %v3265_v43, %v3263_v28  ;;  %v3270_v36 = vpack.c.bf16 %v3266_v30, %v3264_v38  ;;  %v3280_v1 = vpop.permute.xlu1 %3279  ;;  %v3339_v60 = vmul.f32 %v7124_v54, %v3327_v8  ;;  %v3340_v45 = vmul.f32 %v7130_v55, %v3324_v48 }
 0x5e4   : > { %v3286_v59 = vsel %vm3285_vm6, %v7072_v12, %v3280_v1  ;;  %v3289_v23 = vsel %vm3285_vm6, %v3280_v1, %v7072_v12 }
 0x5e5   : > { %v3518_v43 = vrot.slane %v3269_v61, 6  ;;  %v3300_v30 = vmul.f32 %v7116_v40, %v3289_v23  ;;  %v3301_v6 = vmul.f32 %v7120_v24, %v3286_v59  ;;  %v3519_v18 = vrot.slane %v3270_v36, 6  ;;  %v3374_v35 = vpop.permute.xlu0 %3373 }
 0x5e6   : > { %v3341_v61 = vmul.f32 %v7124_v54, %v3328_v47  ;;  %v3342_v36 = vmul.f32 %v7130_v55, %v3325_v14 }
 0x5e7   : > { %v3306_v28 = vpack.c.bf16 %v3302_v37, %v3300_v30  ;;  %v3307_v38 = vpack.c.bf16 %v3303_v42, %v3301_v6  ;;  %v3317_v3 = vpop.permute.xlu1 %3316  ;;  %v3586_v32 = vsel %vm1304_vm7, %v3235_v21, %v3519_v18  ;;  %v3582_v12 = vsel %vm1304_vm7, %v3234_v33, %v3518_v43 }
 0x5e8   : > { %v3323_v20 = vsel %vm3322_vm8, %v7076_v27, %v3317_v3  ;;  %v3326_v52 = vsel %vm3322_vm8, %v3317_v3, %v7076_v27  ;;  %3651 = vmatprep.subr.bf16.mxu0 %v3586_v32  ;;  %v3383_v37 = vsel %vm3377_vm9, %v7064_v34, %v7066_v15  ;;  %v3521_v32 = vsel %vm1304_vm7, %v3518_v43, %v3520_v46 }
 0x5e9   : > { %v3529_v21 = vrot.slane %v3306_v28, 4  ;;  %v3337_v33 = vmul.f32 %v7124_v54, %v3326_v52  ;;  %v3338_v47 = vmul.f32 %v7130_v55, %v3323_v20  ;;  %3652 = vmatpush1.bf16.msra.mxu0 %v3582_v12  ;;  %v3411_v14 = vpop.permute.xlu0 %3410  ;;  %v3530_v42 = vrot.slane %v3307_v38, 4 }
 0x5ea   : > { %v7250_v27 = vmul.f32 %v7156_v29, %v6263_v56  ;;  %v3523_v59 = vsel %vm1304_vm7, %v3519_v18, %v3522_v16  ;;  %v3531_v30 = vrot.slane %v3308_v9, 4  ;;  %v3533_v6 = vrot.slane %v3309_v11, 4 }
 0x5eb   : > { %v3343_v1 = vpack.c.bf16 %v3339_v60, %v3337_v33  ;;  %v3344_v48 = vpack.c.bf16 %v3340_v45, %v3338_v47  ;;  %v3407_v8 = vpop.permute.xlu1 %3406  ;;  %v3590_v23 = vsel %vm1098_vm0, %v3521_v32, %v3529_v21  ;;  %v3346_v28 = vpack.c.bf16 %v3342_v36, %v3342_v36  ;;  %v8327_v45 = vld [vmem:[#allocation10_spill] sm:$0xff] }
 0x5ec   : > { %v3594_v3 = vsel %vm1098_vm0, %v3523_v59, %v3530_v42  ;;  %v3345_v34 = vpack.c.bf16 %v3341_v61, %v3341_v61  ;;  %v7256_v15 = vmul.f32 %v7141_v49, %v3380_v19  ;;  %v3534_v60 = vsel %vm1098_vm0, %v3530_v42, %v3533_v6 }
 0x5ed   : > { %v3540_v46 = vrot.slane %v3343_v1, 2  ;;  %3653 = vmatprep.subr.bf16.mxu0 %v3594_v3  ;;  %v3541_v56 = vrot.slane %v3344_v48, 2  ;;  %v3413_v43 = vpop.permute.xlu0 %3412  ;;  %v3532_v16 = vsel %vm1098_vm0, %v3529_v21, %v3531_v30  ;;  %v3356_v18 = vmul.f32 %v7156_v29, %v6982_v44 }
 0x5ee   : > { %3654 = vmatpush1.bf16.msra.mxu0 %v3590_v23  ;;  %v3358_v9 = vmul.f32 %v7156_v29, %v6965_v17  ;;  %v7266_v11 = vrot.slane %v7088_v39, %v8326_v63  ;;  %v7270_v38 = vrot.slane %v6959_v2, %v8327_v45  ;;  %v7278_v44 = vrot.slane %v7088_v39, %v8327_v45 }
 0x5ef   : > { %v7272_v12 = vpop.permute.xlu1 %3439  ;;  %v3602_v61 = vsel %vm1296_vm4, %v3534_v60, %v3541_v56  ;;  %v3598_v36 = vsel %vm1296_vm4, %v3532_v16, %v3540_v46  ;;  %v3544_v20 = vrot.slane %v3346_v28, 2  ;;  %v3379_v17 = vsel %vm3377_vm9, %v7074_v7, %v3374_v35 }
 0x5f0   : > { %3655 = vmatprep.subr.bf16.mxu0 %v3602_v61  ;;  %v3397_v2 = vmul.f32 %v7145_v53, %v3383_v37  ;;  %v3382_v63 = vsel %vm3377_vm9, %v3374_v35, %v7074_v7  ;;  %v3364_v19 = vpack.c.bf16 %v7250_v27, %v7250_v27  ;;  %v3359_v39 = vmul.f32 %v6970_v0, %v6229_v50 }
 0x5f1   : > { %v3442_v52 = vpop.permute.xlu0 %3441  ;;  %v3542_v21 = vrot.slane %v3345_v34, 2  ;;  %v3400_v33 = vpack.c.bf16 %v7256_v15, %v7256_v15  ;;  %v3545_v47 = vsel %vm1296_vm4, %v3541_v56, %v3544_v20  ;;  %v3362_v42 = vpack.c.bf16 %v3358_v9, %v3356_v18 }
 0x5f2   : > { %3656 = vmatpush1.bf16.msra.mxu0 %v3598_v36  ;;  %v3394_v37 = vmul.f32 %v7141_v49, %v3379_v17  ;;  %v3416_v7 = vsel %vm3414_vm10, %v7079_v62, %v3411_v14  ;;  %v3419_v35 = vsel %vm3414_vm10, %v3411_v14, %v7079_v62  ;;  %v3395_v32 = vmul.f32 %v7145_v53, %v3382_v63 }
 0x5f3   : > { %3657 = vmatprep.subr.bf16.mxu0 %v3545_v47  ;;  %v3372_v50 = vpop.permute.xlu1 %3371  ;;  %v3417_v27 = vsel %vm3414_vm10, %v3407_v8, %v3413_v43  ;;  %v3420_v62 = vsel %vm3414_vm10, %v3413_v43, %v3407_v8  ;;  %v3543_v23 = vsel %vm1296_vm4, %v3540_v46, %v3542_v21  ;;  %v3401_v6 = vpack.c.bf16 %v3397_v2, %v3397_v2 }
 0x5f4   : > { %v3378_v1 = vsel %vm3377_vm9, %v7093_v58, %v3372_v50  ;;  %v3381_v48 = vsel %vm3377_vm9, %v3372_v50, %v7093_v58  ;;  %v3431_v28 = vmul.f32 %v7152_v26, %v3416_v7  ;;  %v3432_v3 = vmul.f32 %v7266_v11, %v3419_v35 }
 0x5f5   : > { %v3392_v14 = vmul.f32 %v7141_v49, %v3378_v1  ;;  %v3393_v59 = vmul.f32 %v7145_v53, %v3381_v48  ;;  %v3448_v30 = vpop.permute.xlu0 %3447  ;;  %v3363_v34 = vpack.c.bf16 %v3359_v39, %v3359_v39  ;;  %v3433_v46 = vmul.f32 %v7152_v26, %v3417_v27 }
 0x5f6   : > { %3658 = vmatpush1.bf16.msra.mxu0 %v3543_v23  ;;  %v3453_v8 = vsel %vm3451_vm11, %v3442_v52, %v3448_v30  ;;  %v3456_v43 = vsel %vm3451_vm11, %v3448_v30, %v3442_v52  ;;  %v3434_v60 = vmul.f32 %v7266_v11, %v3420_v62  ;;  %v3554_v17 = vrot.slane %v3400_v33, 6 }
 0x5f7   : > { %v3398_v15 = vpack.c.bf16 %v3394_v37, %v3392_v14  ;;  %v3399_v56 = vpack.c.bf16 %v3395_v32, %v3393_v59  ;;  %3659 = vmatprep.subr.bf16.mxu0 %v3362_v42  ;;  %v3409_v58 = vpop.permute.xlu1 %3408  ;;  %v3556_v2 = vrot.slane %v3401_v6, 6  ;;  %v8328_v63 = vpack.c.bf16 %v6976_v57, %v6986_v41 }
 0x5f8   : > { %v3415_v16 = vsel %vm3414_vm10, %v7126_v31, %v3409_v58  ;;  %v3418_v18 = vsel %vm3414_vm10, %v3409_v58, %v7126_v31  ;;  %v3468_v52 = vmul.f32 %v7270_v38, %v3453_v8  ;;  %v3469_v39 = vmul.f32 %v7278_v44, %v3456_v43 }
 0x5f9   : > { %v3552_v9 = vrot.slane %v3398_v15, 6  ;;  %v3429_v45 = vmul.f32 %v7152_v26, %v3415_v16  ;;  %v3430_v61 = vmul.f32 %v7266_v11, %v3418_v18  ;;  %v3553_v36 = vrot.slane %v3399_v56, 6  ;;  %v3450_v20 = vpop.permute.xlu0 %3449 }
 0x5fa   : > { %3660 = vmatpush1.bf16.msra.mxu0 %v8328_v63  ;;  %v3437_v7 = vpack.c.bf16 %v3433_v46, %v3433_v46  ;;  %v3438_v35 = vpack.c.bf16 %v3434_v60, %v3434_v60 }
 0x5fb   : > { %v3435_v21 = vpack.c.bf16 %v3431_v28, %v3429_v45  ;;  %v3436_v47 = vpack.c.bf16 %v3432_v3, %v3430_v61  ;;  %v3446_v31 = vpop.permute.xlu1 %3445  ;;  %v3610_v42 = vsel %vm1304_vm7, %v3364_v19, %v3553_v36  ;;  %v3606_v37 = vsel %vm1304_vm7, %v3363_v34, %v3552_v9  ;;  %v7366_v61 = vld [vmem:[%s8318_s10 + $0x10] ss:$0 sm:$0xff] }
 0x5fc   : > { %v3452_v33 = vsel %vm3451_vm11, %v7272_v12, %v3446_v31  ;;  %v3455_v57 = vsel %vm3451_vm11, %v3446_v31, %v7272_v12  ;;  %3661 = vmatprep.subr.bf16.mxu0 %v3610_v42  ;;  %v3557_v1 = vsel %vm1304_vm7, %v3553_v36, %v3556_v2  ;;  %v3555_v48 = vsel %vm1304_vm7, %v3552_v9, %v3554_v17  ;;  %v7371_v36 = vld [vmem:[%s8318_s10 + $0x18] ss:$0 sm:$0xff] }
 0x5fd   : > { %v3562_v41 = vrot.slane %v3435_v21, 4  ;;  %v3466_v50 = vmul.f32 %v7270_v38, %v3452_v33  ;;  %v3467_v32 = vmul.f32 %v7278_v44, %v3455_v57  ;;  %v3563_v27 = vrot.slane %v3436_v47, 4  ;;  %v3479_v19 = vpop.permute.xlu0 %3478 }
 0x5fe   : > { %3662 = vmatpush1.bf16.msra.mxu0 %v3606_v37  ;;  %v3564_v30 = vrot.slane %v3437_v7, 4  ;;  %v3566_v6 = vrot.slane %v3438_v35, 4 }
 0x5ff   : > { %v3472_v62 = vpack.c.bf16 %v3468_v52, %v3466_v50  ;;  %v3473_v14 = vpack.c.bf16 %v3469_v39, %v3467_v32  ;;  %v3444_v59 = vpop.permute.xlu1 %3443  ;;  %v3618_v12 = vsel %vm1098_vm0, %v3557_v1, %v3563_v27  ;;  %v3614_v23 = vsel %vm1098_vm0, %v3555_v48, %v3562_v41 }
 0x600   : > { %v3454_v28 = vsel %vm3451_vm11, %v3444_v59, %v3450_v20  ;;  %v3457_v3 = vsel %vm3451_vm11, %v3450_v20, %v3444_v59  ;;  %3663 = vmatprep.subr.bf16.mxu0 %v3618_v12  ;;  %v3567_v43 = vsel %vm1098_vm0, %v3563_v27, %v3566_v6  ;;  %v3565_v46 = vsel %vm1098_vm0, %v3562_v41, %v3564_v30 }
 0x601   : > { %v3572_v34 = vrot.slane %v3472_v62, 2  ;;  %v3470_v15 = vmul.f32 %v7270_v38, %v3454_v28  ;;  %v3471_v56 = vmul.f32 %v7278_v44, %v3457_v3  ;;  %v3573_v58 = vrot.slane %v3473_v14, 2  ;;  %v3485_v8 = vpop.permute.xlu0 %3484 }
 0x602   : > { %3664 = vmatpush1.bf16.msra.mxu0 %v3614_v23  ;;  %v3490_v20 = vsel %vm3488_vm12, %v3479_v19, %v3485_v8  ;;  %v3493_v17 = vsel %vm3488_vm12, %v3485_v8, %v3479_v19  ;;  %v5383_v59 = vcombine.low %v7044_v13, %v7044_v13  ;;  %v3702_v13 = vld [vmem:[%s8191_s15] sm:$0xff] }
 0x603   : > { %v3474_v60 = vpack.c.bf16 %v3470_v15, %v3470_v15  ;;  %v3475_v16 = vpack.c.bf16 %v3471_v56, %v3471_v56  ;;  %v3477_v18 = vpop.permute.xlu1 %3476  ;;  %v3626_v9 = vsel %vm1296_vm4, %v3567_v43, %v3573_v58  ;;  %v3622_v45 = vsel %vm1296_vm4, %v3565_v46, %v3572_v34  ;;  %v3703_v46 = vld [vmem:[%s8192_s16] sm:$0xff] }
 0x604   : > { %3665 = vmatprep.subr.bf16.mxu0 %v3626_v9  ;;  %v3505_v52 = vmul.f32 %v7366_v61, %v3490_v20  ;;  %v3506_v39 = vmul.f32 %v7371_v36, %v3493_v17 }
 0x605   : > { %v3574_v2 = vrot.slane %v3474_v60, 2  ;;  %v3576_v63 = vrot.slane %v3475_v16, 2  ;;  %v3487_v33 = vpop.permute.xlu0 %3486 }
 0x606   : > { %3666 = vmatpush1.bf16.msra.mxu0 %v3622_v45 }
 0x607   : > { %v3483_v21 = vpop.permute.xlu1 %3482  ;;  %v3577_v47 = vsel %vm1296_vm4, %v3573_v58, %v3576_v63  ;;  %v3575_v31 = vsel %vm1296_vm4, %v3572_v34, %v3574_v2 }
 0x608   : > { %v3489_v42 = vsel %vm3488_vm12, %v3477_v18, %v3483_v21  ;;  %v3492_v37 = vsel %vm3488_vm12, %v3483_v21, %v3477_v18  ;;  %3667 = vmatprep.subr.bf16.mxu0 %v3577_v47 }
 0x609   : > { %v3503_v7 = vmul.f32 %v7366_v61, %v3489_v42  ;;  %v3504_v35 = vmul.f32 %v7371_v36, %v3492_v37 }
 0x60a   : > { %3668 = vmatpush1.bf16.msra.mxu0 %v3575_v31 }
 0x60b   : > { %v3509_v57 = vpack.c.bf16 %v3505_v52, %v3503_v7  ;;  %v3481_v41 = vpop.permute.xlu1 %3480  ;;  %v3510_v50 = vpack.c.bf16 %v3506_v39, %v3504_v35 }
 0x60c   : > { %v3491_v32 = vsel %vm3488_vm12, %v3481_v41, %v3487_v33  ;;  %v3494_v27 = vsel %vm3488_vm12, %v3487_v33, %v3481_v41 }
 0x60d   : > { %v3507_v19 = vmul.f32 %v7366_v61, %v3491_v32  ;;  %v3508_v1 = vmul.f32 %v7371_v36, %v3494_v27  ;;  %3669 = vmatprep.subr.bf16.mxu0 %v3510_v50 }
 0x60e   : > { %3670 = vmatpush1.bf16.msra.mxu0 %v3509_v57 }
 0x60f   : > { %v3511_v48 = vpack.c.bf16 %v3507_v19, %v3507_v19  ;;  %v3512_v62 = vpack.c.bf16 %v3508_v1, %v3508_v1 }
 0x611   : > { %5385 = vmatprep.subr.msk.bf16.mxu0 %vm1304_vm7, %v3512_v62  ;;  %v3644_v14 = vsel %vm1304_vm7, %v3511_v48, 0  ;;  %vm3841_vm7 = vcmask 588800  }
 0x612   : > { %3672 = vmatpush1.bf16.msra.mxu0 %v3644_v14 }
 0x615   : > { %3682 = vmatmul.mubr.bf16.vlgmr.msra.gmra.mrb[20].mxu0 %v5383_v59 }
 0x616   : > { %4278 = vmatprep.mubr.bf16.mxu0 %v8317_v22  ;;  %v3695_v28 = vpop.permute.xlu0 %3694 }
 0x61c   : > { %v3631_v12 = vpop.permute.xlu1 %3630 }
 0x6e8   : > { %v3683_v23 = vpop.f32.mrb[20].mxu0 }
 0x6e9   : > { %v3684_v30 = vadd.f32 %v3683_v23, %v3631_v12  ;;  %v3685_v6 = vpop.f32.mrb[21].mxu0 }
 0x6ea   : > { %v3686_v3 = vadd.f32 %v3685_v6, %v3631_v12  ;;  %v3687_v34 = vpop.f32.mrb[22].mxu0 }
 0x6eb   : > { %vm3690_vm4 = vcmp.ge.f32.partialorder %v3684_v30, 0.0  ;;  %v3697_v15 = vmul.f32 %v3695_v28, %v3684_v30  ;;  %v3688_v56 = vpop.f32.mrb[23].mxu0 }
 0x6ec   : > { %vm3691_vm13 = vcmp.ge.f32.partialorder %v3686_v3, 0.0  ;;  %v3698_v58 = vmul.f32 %v3695_v28, %v3686_v3 }
 0x6ed   : > { %v7398_v8 = vsel %vm3690_vm4, %v3684_v30, %v3697_v15 }
 0x6ee   : > { %v7400_v43 = vsel %vm3691_vm13, %v3686_v3, %v3698_v58  ;;  %3714 = vrot.lane.b32.xlu1 %v7398_v8, %s8258_s30 }
 0x6ef   : > { %3716 = vrot.lane.b32.xlu0 %v7400_v43, %s8258_s30 }
 0x6f2   : > { %3704 = vrot.lane.b32.xlu1 %v7398_v8, %s8254_s7 }
 0x6f3   : > { %3706 = vrot.lane.b32.xlu0 %v7400_v43, %s8254_s7 }
 0x6f6   : > { %3734 = vrot.lane.b32.xlu1 %v7398_v8, %s8310_s28 }
 0x6f7   : > { %3736 = vrot.lane.b32.xlu0 %v7400_v43, %s8310_s28 }
 0x6fa   : > { %3724 = vrot.lane.b32.xlu1 %v7398_v8, %s8252_s9 }
 0x6fb   : > { %3726 = vrot.lane.b32.xlu0 %v7400_v43, %s8252_s9  ;;  %s8333_s9 = smov 16  }
 0x6fe   : > { %3748 = vrot.lane.b32.xlu1 %v7398_v8, %s8311_s0 }
 0x6ff   : > { %3750 = vrot.lane.b32.xlu0 %v7400_v43, %s8311_s0 }
 0x702   : > { %3768 = vrot.lane.b32.xlu1 %v7398_v8, %s8260_s2 }
 0x703   : > { %3770 = vrot.lane.b32.xlu0 %v7400_v43, %s8260_s2 }
 0x706   : > { %3758 = vrot.lane.b32.xlu1 %v7398_v8, %s8329_s4 }
 0x707   : > { %3760 = vrot.lane.b32.xlu0 %v7400_v43, %s8329_s4 }
 0x70a   : > { %3778 = vrot.lane.b32.xlu1 %v7398_v8, %s8256_s3 }
 0x70b   : > { %3780 = vrot.lane.b32.xlu0 %v7400_v43, %s8256_s3 }
 0x70e   : > { %3838 = vperm.xlu1 %5502, %v3702_v13  }
 0x70f   : > { %3896 = vperm.xlu0 %5501, %v3703_v46  }
 0x760   : > { %v3715_v60 = vpop.permute.xlu1 %3714 }
 0x761   : > { %v3717_v16 = vpop.permute.xlu0 %3716 }
 0x762   : > { %v3718_v18 = vsel %vm3248_vm5, %v3715_v60, %v3717_v16  ;;  %v3719_v9 = vsel %vm3248_vm5, %v3717_v16, %v3715_v60  ;;  %v3745_v60 = vmul.f32 %v7400_v43, %v7156_v29  ;;  %v3744_v16 = vmul.f32 %v7398_v8, %v6970_v0 }
 0x763   : > { %v3720_v45 = vmul.f32 %v3719_v9, %v7112_v4  ;;  %v3721_v20 = vmul.f32 %v3718_v18, %v7101_v25 }
 0x764   : > { %v3705_v17 = vpop.permute.xlu1 %3704 }
 0x765   : > { %v3722_v2 = vpack.c.bf16 %v3720_v45, %v3720_v45  ;;  %v3723_v63 = vpack.c.bf16 %v3721_v20, %v3721_v20  ;;  %v3707_v52 = vpop.permute.xlu0 %3706 }
 0x766   : > { %v3708_v39 = vsel %vm3211_vm3, %v3705_v17, %v3707_v52  ;;  %v3709_v21 = vsel %vm3211_vm3, %v3707_v52, %v3705_v17 }
 0x767   : > { %v3710_v47 = vmul.f32 %v3709_v21, %v7083_v5  ;;  %v3711_v31 = vmul.f32 %v3708_v39, %v7097_v10  ;;  %v3790_v37 = vrot.slane %v3722_v2, 4  ;;  %v3791_v7 = vrot.slane %v3723_v63, 4 }
 0x768   : > { %v3735_v42 = vpop.permute.xlu1 %3734 }
 0x769   : > { %v3712_v35 = vpack.c.bf16 %v3710_v47, %v3710_v47  ;;  %v3713_v33 = vpack.c.bf16 %v3711_v31, %v3711_v31  ;;  %v3737_v57 = vpop.permute.xlu0 %3736  ;;  %v3747_v47 = vpack.c.bf16 %v3745_v60, %v3745_v60  ;;  %v3746_v31 = vpack.c.bf16 %v3744_v16, %v3744_v16  ;;  %v3701_v16 = vld [vmem:[%s8190_s14] sm:$0xf] }
 0x76a   : > { %v3738_v41 = vsel %vm3322_vm8, %v3735_v42, %v3737_v57  ;;  %v3739_v50 = vsel %vm3322_vm8, %v3737_v57, %v3735_v42 }
 0x76b   : > { %v3740_v32 = vmul.f32 %v3739_v50, %v7124_v54  ;;  %v3741_v27 = vmul.f32 %v3738_v41, %v7130_v55  ;;  %v3810_v19 = vsel %vm1098_vm0, %v3713_v33, %v3791_v7  ;;  %v3806_v1 = vsel %vm1098_vm0, %v3712_v35, %v3790_v37 }
 0x76c   : > { %3851 = vmatprep.subr.bf16.mxu1 %v3810_v19  ;;  %v3725_v48 = vpop.permute.xlu1 %3724 }
 0x76d   : > { %v3742_v62 = vpack.c.bf16 %v3740_v32, %v3740_v32  ;;  %v3743_v14 = vpack.c.bf16 %v3741_v27, %v3741_v27  ;;  %v3727_v59 = vpop.permute.xlu0 %3726  ;;  %3852 = vmatpush1.bf16.msra.mxu1 %v3806_v1 }
 0x76e   : > { %v3728_v12 = vsel %vm3285_vm6, %v3725_v48, %v3727_v59  ;;  %v3729_v23 = vsel %vm3285_vm6, %v3727_v59, %v3725_v48 }
 0x76f   : > { %v3730_v30 = vmul.f32 %v3729_v23, %v7116_v40  ;;  %v3731_v6 = vmul.f32 %v3728_v12, %v7120_v24  ;;  %v3794_v3 = vrot.slane %v3742_v62, 4  ;;  %v3795_v34 = vrot.slane %v3743_v14, 4 }
 0x770   : > { %v3749_v28 = vpop.permute.xlu1 %3748 }
 0x771   : > { %v3732_v15 = vpack.c.bf16 %v3730_v30, %v3730_v30  ;;  %v3733_v56 = vpack.c.bf16 %v3731_v6, %v3731_v6  ;;  %v3751_v58 = vpop.permute.xlu0 %3750 }
 0x772   : > { %v3752_v13 = vsel %vm3377_vm9, %v3749_v28, %v3751_v58  ;;  %v3753_v46 = vsel %vm3377_vm9, %v3751_v58, %v3749_v28 }
 0x773   : > { %v3754_v18 = vmul.f32 %v3752_v13, %v7141_v49  ;;  %v3755_v9 = vmul.f32 %v3753_v46, %v7145_v53  ;;  %v3818_v45 = vsel %vm1098_vm0, %v3733_v56, %v3795_v34  ;;  %v3814_v20 = vsel %vm1098_vm0, %v3732_v15, %v3794_v3 }
 0x774   : > { %3853 = vmatprep.subr.bf16.mxu1 %v3818_v45  ;;  %v3769_v17 = vpop.permute.xlu1 %3768 }
 0x775   : > { %v3756_v2 = vpack.c.bf16 %v3754_v18, %v3754_v18  ;;  %v3757_v63 = vpack.c.bf16 %v3755_v9, %v3755_v9  ;;  %v3771_v52 = vpop.permute.xlu0 %3770  ;;  %3854 = vmatpush1.bf16.msra.mxu1 %v3814_v20 }
 0x776   : > { %v3772_v39 = vsel %vm3451_vm11, %v3769_v17, %v3771_v52  ;;  %v3773_v21 = vsel %vm3451_vm11, %v3771_v52, %v3769_v17 }
 0x777   : > { %v3798_v42 = vrot.slane %v3756_v2, 4  ;;  %v3799_v37 = vrot.slane %v3757_v63, 4  ;;  %v3774_v7 = vmul.f32 %v3772_v39, %v7270_v38  ;;  %v3775_v35 = vmul.f32 %v3773_v21, %v7278_v44 }
 0x778   : > { %v3759_v33 = vpop.permute.xlu1 %3758 }
 0x779   : > { %v3776_v57 = vpack.c.bf16 %v3774_v7, %v3774_v7  ;;  %v3777_v41 = vpack.c.bf16 %v3775_v35, %v3775_v35  ;;  %v3761_v50 = vpop.permute.xlu0 %3760  ;;  %v3826_v32 = vsel %vm1098_vm0, %v3747_v47, %v3799_v37  ;;  %v3822_v27 = vsel %vm1098_vm0, %v3746_v31, %v3798_v42  ;;  %v3904_v42 = vld [vmem:[%s8194_s18] sm:$0xff] }
 0x77a   : > { %v3762_v19 = vsel %vm3414_vm10, %v3759_v33, %v3761_v50  ;;  %v3763_v1 = vsel %vm3414_vm10, %v3761_v50, %v3759_v33  ;;  %3855 = vmatprep.subr.bf16.mxu1 %v3826_v32 }
 0x77b   : > { %v3764_v48 = vmul.f32 %v3762_v19, %v7152_v26  ;;  %v3765_v62 = vmul.f32 %v3763_v1, %v7266_v11  ;;  %3856 = vmatpush1.bf16.msra.mxu1 %v3822_v27  ;;  %v3802_v59 = vrot.slane %v3776_v57, 4  ;;  %v3803_v12 = vrot.slane %v3777_v41, 4 }
 0x77c   : > { %v3779_v14 = vpop.permute.xlu1 %3778 }
 0x77d   : > { %v3766_v23 = vpack.c.bf16 %v3764_v48, %v3764_v48  ;;  %v3767_v30 = vpack.c.bf16 %v3765_v62, %v3765_v62  ;;  %v3781_v6 = vpop.permute.xlu0 %3780 }
 0x77e   : > { %v3782_v28 = vsel %vm3488_vm12, %v3779_v14, %v3781_v6  ;;  %v3783_v3 = vsel %vm3488_vm12, %v3781_v6, %v3779_v14 }
 0x77f   : > { %v3784_v34 = vmul.f32 %v7366_v61, %v3782_v28  ;;  %v3785_v15 = vmul.f32 %v7371_v36, %v3783_v3  ;;  %v3834_v56 = vsel %vm1098_vm0, %v3767_v30, %v3803_v12  ;;  %v3830_v58 = vsel %vm1098_vm0, %v3766_v23, %v3802_v59 }
 0x780   : > { %3857 = vmatprep.subr.bf16.mxu1 %v3834_v56 }
 0x781   : > { %v3786_v13 = vpack.c.bf16 %v3784_v34, %v3784_v34  ;;  %v3787_v46 = vpack.c.bf16 %v3785_v15, %v3785_v15  ;;  %3858 = vmatpush1.bf16.msra.mxu1 %v3830_v58 }
 0x783   : > { %5387 = vmatprep.subr.msk.bf16.mxu1 %vm1098_vm0, %v3787_v46  ;;  %v3846_v60 = vsel %vm1098_vm0, %v3786_v13, 0 }
 0x785   : > { %3860 = vmatpush1.bf16.msra.mxu1 %v3846_v60 }
 0x788   : > { %5388 = vmatmul.mubr.msk.bf16.vlgmr.msra.gmra.mrb[8].mxu1 %vm3841_vm7, %v3701_v16 }
 0x789   : > { %4083 = vmatprep.mubr.bf16.mxu1 %v8317_v22 }
 0x78d   : > { %v3839_v18 = vpop.permute.xlu1 %3838 }
 0x78e   : > { %v3897_v17 = vpop.permute.xlu0 %3896 }
 0x85b   : > { %v3885_v9 = vpop.f32.mrb[8].mxu1 }
 0x85c   : > { %v3886_v45 = vadd.f32 %v3885_v9, %v3839_v18  ;;  %v3887_v20 = vpop.f32.mrb[9].mxu1 }
 0x85d   : > { %v3888_v2 = vadd.f32 %v3887_v20, %v3839_v18  ;;  %v3889_v63 = vpop.f32.mrb[10].mxu1 }
 0x85e   : > { %vm3892_vm14 = vcmp.ge.f32.partialorder %v3886_v45, 0.0  ;;  %v3899_v52 = vmul.f32 %v3897_v17, %v3886_v45  ;;  %v3890_v39 = vpop.f32.mrb[11].mxu1 }
 0x85f   : > { %vm3893_vm15 = vcmp.ge.f32.partialorder %v3888_v2, 0.0  ;;  %v3900_v21 = vmul.f32 %v3897_v17, %v3888_v2 }
 0x860   : > { %v7507_v47 = vsel %vm3892_vm14, %v3886_v45, %v3899_v52 }
 0x861   : > { %v7509_v31 = vsel %vm3893_vm15, %v3888_v2, %v3900_v21  ;;  %3915 = vrot.lane.b32.xlu1 %v7507_v47, %s8258_s30 }
 0x862   : > { %3917 = vrot.lane.b32.xlu0 %v7509_v31, %s8258_s30 }
 0x865   : > { %3905 = vrot.lane.b32.xlu1 %v7507_v47, %s8254_s7 }
 0x866   : > { %3907 = vrot.lane.b32.xlu0 %v7509_v31, %s8254_s7 }
 0x869   : > { %3935 = vrot.lane.b32.xlu1 %v7507_v47, %s8310_s28 }
 0x86a   : > { %3937 = vrot.lane.b32.xlu0 %v7509_v31, %s8310_s28 }
 0x86d   : > { %3925 = vrot.lane.b32.xlu1 %v7507_v47, %s8330_s1 }
 0x86e   : > { %3927 = vrot.lane.b32.xlu0 %v7509_v31, %s8330_s1 }
 0x871   : > { %3949 = vrot.lane.b32.xlu1 %v7507_v47, %s8311_s0 }
 0x872   : > { %3951 = vrot.lane.b32.xlu0 %v7509_v31, %s8311_s0 }
 0x875   : > { %3969 = vrot.lane.b32.xlu1 %v7507_v47, %s8260_s2 }
 0x876   : > { %3971 = vrot.lane.b32.xlu0 %v7509_v31, %s8260_s2 }
 0x879   : > { %3959 = vrot.lane.b32.xlu1 %v7507_v47, %s8329_s4 }
 0x87a   : > { %3961 = vrot.lane.b32.xlu0 %v7509_v31, %s8329_s4 }
 0x87d   : > { %3979 = vrot.lane.b32.xlu1 %v7507_v47, %s8256_s3 }
 0x87e   : > { %3981 = vrot.lane.b32.xlu0 %v7509_v31, %s8256_s3 }
 0x881   : > { %4039 = vperm.xlu1 %5502, %v3904_v42  }
 0x8d3   : > { %v3916_v37 = vpop.permute.xlu1 %3915 }
 0x8d4   : > { %v3918_v7 = vpop.permute.xlu0 %3917 }
 0x8d5   : > { %v3919_v35 = vsel %vm3248_vm5, %v3916_v37, %v3918_v7  ;;  %v3920_v33 = vsel %vm3248_vm5, %v3918_v7, %v3916_v37 }
 0x8d6   : > { %v3921_v57 = vmul.f32 %v3920_v33, %v7112_v4  ;;  %v3922_v41 = vmul.f32 %v3919_v35, %v7101_v25  ;;  %v3946_v35 = vmul.f32 %v7509_v31, %v7156_v29  ;;  %v3945_v33 = vmul.f32 %v7507_v47, %v6970_v0 }
 0x8d7   : > { %v3906_v50 = vpop.permute.xlu1 %3905 }
 0x8d8   : > { %v3923_v32 = vpack.c.bf16 %v3921_v57, %v3921_v57  ;;  %v3924_v27 = vpack.c.bf16 %v3922_v41, %v3922_v41  ;;  %v3908_v19 = vpop.permute.xlu0 %3907 }
 0x8d9   : > { %v3909_v1 = vsel %vm3211_vm3, %v3906_v50, %v3908_v19  ;;  %v3910_v48 = vsel %vm3211_vm3, %v3908_v19, %v3906_v50 }
 0x8da   : > { %v3911_v62 = vmul.f32 %v3910_v48, %v7083_v5  ;;  %v3912_v14 = vmul.f32 %v3909_v1, %v7097_v10  ;;  %v3991_v12 = vrot.slane %v3923_v32, 4  ;;  %v3992_v23 = vrot.slane %v3924_v27, 4 }
 0x8db   : > { %v3936_v59 = vpop.permute.xlu1 %3935 }
 0x8dc   : > { %v3913_v30 = vpack.c.bf16 %v3911_v62, %v3911_v62  ;;  %v3914_v6 = vpack.c.bf16 %v3912_v14, %v3912_v14  ;;  %v3938_v28 = vpop.permute.xlu0 %3937  ;;  %v3948_v62 = vpack.c.bf16 %v3946_v35, %v3946_v35  ;;  %v3947_v14 = vpack.c.bf16 %v3945_v33, %v3945_v33  ;;  %v3903_v33 = vld [vmem:[%s8193_s17] sm:$0xf] }
 0x8dd   : > { %v3939_v3 = vsel %vm3322_vm8, %v3936_v59, %v3938_v28  ;;  %v3940_v34 = vsel %vm3322_vm8, %v3938_v28, %v3936_v59 }
 0x8de   : > { %v3941_v15 = vmul.f32 %v3940_v34, %v7124_v54  ;;  %v3942_v56 = vmul.f32 %v3939_v3, %v7130_v55  ;;  %v4011_v58 = vsel %vm1098_vm0, %v3914_v6, %v3992_v23  ;;  %v4007_v13 = vsel %vm1098_vm0, %v3913_v30, %v3991_v12 }
 0x8df   : > { %4051 = vmatprep.subr.bf16.mxu1 %v4011_v58  ;;  %v3926_v46 = vpop.permute.xlu1 %3925 }
 0x8e0   : > { %v3943_v60 = vpack.c.bf16 %v3941_v15, %v3941_v15  ;;  %v3944_v16 = vpack.c.bf16 %v3942_v56, %v3942_v56  ;;  %v3928_v18 = vpop.permute.xlu0 %3927  ;;  %4052 = vmatpush1.bf16.msra.mxu1 %v4007_v13 }
 0x8e1   : > { %v3929_v9 = vsel %vm3285_vm6, %v3926_v46, %v3928_v18  ;;  %v3930_v45 = vsel %vm3285_vm6, %v3928_v18, %v3926_v46 }
 0x8e2   : > { %v3931_v20 = vmul.f32 %v3930_v45, %v7116_v40  ;;  %v3932_v17 = vmul.f32 %v3929_v9, %v7120_v24  ;;  %v3995_v63 = vrot.slane %v3943_v60, 4  ;;  %v3996_v52 = vrot.slane %v3944_v16, 4 }
 0x8e3   : > { %v3950_v2 = vpop.permute.xlu1 %3949 }
 0x8e4   : > { %v3933_v39 = vpack.c.bf16 %v3931_v20, %v3931_v20  ;;  %v3934_v21 = vpack.c.bf16 %v3932_v17, %v3932_v17  ;;  %v3952_v42 = vpop.permute.xlu0 %3951 }
 0x8e5   : > { %v3953_v37 = vsel %vm3377_vm9, %v3950_v2, %v3952_v42  ;;  %v3954_v7 = vsel %vm3377_vm9, %v3952_v42, %v3950_v2 }
 0x8e6   : > { %v3955_v57 = vmul.f32 %v3953_v37, %v7141_v49  ;;  %v3956_v41 = vmul.f32 %v3954_v7, %v7145_v53  ;;  %v4019_v50 = vsel %vm1098_vm0, %v3934_v21, %v3996_v52  ;;  %v4015_v32 = vsel %vm1098_vm0, %v3933_v39, %v3995_v63 }
 0x8e7   : > { %4053 = vmatprep.subr.bf16.mxu1 %v4019_v50  ;;  %v3970_v27 = vpop.permute.xlu1 %3969 }
 0x8e8   : > { %v3957_v19 = vpack.c.bf16 %v3955_v57, %v3955_v57  ;;  %v3958_v1 = vpack.c.bf16 %v3956_v41, %v3956_v41  ;;  %v3972_v48 = vpop.permute.xlu0 %3971  ;;  %4054 = vmatpush1.bf16.msra.mxu1 %v4015_v32 }
 0x8e9   : > { %v3973_v31 = vsel %vm3451_vm11, %v3970_v27, %v3972_v48  ;;  %v3974_v47 = vsel %vm3451_vm11, %v3972_v48, %v3970_v27 }
 0x8ea   : > { %v3999_v59 = vrot.slane %v3957_v19, 4  ;;  %v4000_v12 = vrot.slane %v3958_v1, 4  ;;  %v3975_v23 = vmul.f32 %v3973_v31, %v7270_v38  ;;  %v3976_v30 = vmul.f32 %v3974_v47, %v7278_v44 }
 0x8eb   : > { %v3960_v6 = vpop.permute.xlu1 %3959 }
 0x8ec   : > { %v3977_v28 = vpack.c.bf16 %v3975_v23, %v3975_v23  ;;  %v3978_v3 = vpack.c.bf16 %v3976_v30, %v3976_v30  ;;  %v3962_v34 = vpop.permute.xlu0 %3961  ;;  %v4027_v15 = vsel %vm1098_vm0, %v3948_v62, %v4000_v12  ;;  %v4023_v56 = vsel %vm1098_vm0, %v3947_v14, %v3999_v59 }
 0x8ed   : > { %v3963_v58 = vsel %vm3414_vm10, %v3960_v6, %v3962_v34  ;;  %v3964_v13 = vsel %vm3414_vm10, %v3962_v34, %v3960_v6  ;;  %4055 = vmatprep.subr.bf16.mxu1 %v4027_v15 }
 0x8ee   : > { %v3965_v46 = vmul.f32 %v3963_v58, %v7152_v26  ;;  %v3966_v60 = vmul.f32 %v3964_v13, %v7266_v11  ;;  %4056 = vmatpush1.bf16.msra.mxu1 %v4023_v56  ;;  %v4003_v18 = vrot.slane %v3977_v28, 4  ;;  %v4004_v9 = vrot.slane %v3978_v3, 4 }
 0x8ef   : > { %v3980_v16 = vpop.permute.xlu1 %3979 }
 0x8f0   : > { %v3967_v45 = vpack.c.bf16 %v3965_v46, %v3965_v46  ;;  %v3968_v20 = vpack.c.bf16 %v3966_v60, %v3966_v60  ;;  %v3982_v17 = vpop.permute.xlu0 %3981 }
 0x8f1   : > { %v3983_v2 = vsel %vm3488_vm12, %v3980_v16, %v3982_v17  ;;  %v3984_v63 = vsel %vm3488_vm12, %v3982_v17, %v3980_v16 }
 0x8f2   : > { %v3985_v52 = vmul.f32 %v7366_v61, %v3983_v2  ;;  %v3986_v39 = vmul.f32 %v7371_v36, %v3984_v63  ;;  %v4035_v21 = vsel %vm1098_vm0, %v3968_v20, %v4004_v9  ;;  %v4031_v42 = vsel %vm1098_vm0, %v3967_v45, %v4003_v18 }
 0x8f3   : > { %4057 = vmatprep.subr.bf16.mxu1 %v4035_v21 }
 0x8f4   : > { %v3987_v37 = vpack.c.bf16 %v3985_v52, %v3985_v52  ;;  %v3988_v7 = vpack.c.bf16 %v3986_v39, %v3986_v39  ;;  %4058 = vmatpush1.bf16.msra.mxu1 %v4031_v42 }
 0x8f6   : > { %5389 = vmatprep.subr.msk.bf16.mxu1 %vm1098_vm0, %v3988_v7  ;;  %v4046_v35 = vsel %vm1098_vm0, %v3987_v37, 0 }
 0x8f8   : > { %4060 = vmatpush1.bf16.msra.mxu1 %v4046_v35 }
 0x8fb   : > { %5390 = vmatmul.mubr.msk.bf16.vlgmr.msra.gmra.mrb[12].mxu1 %vm3841_vm7, %v3903_v33 }
 0x8fc   : > { %4480 = vmatprep.mubr.bf16.mxu1 %v8317_v22 }
 0x900   : > { %v4040_v57 = vpop.permute.xlu1 %4039 }
 0x9ce   : > { %v4085_v41 = vpop.f32.mrb[12].mxu1 }
 0x9cf   : > { %v4086_v50 = vadd.f32 %v4085_v41, %v4040_v57  ;;  %v4087_v32 = vpop.f32.mrb[13].mxu1 }
 0x9d0   : > { %v4088_v27 = vadd.f32 %v4087_v32, %v4040_v57  ;;  %v4089_v19 = vpop.f32.mrb[14].mxu1 }
 0x9d1   : > { %v7614_v1 = vadd.f32 %v4086_v50, %v7398_v8  ;;  %v4090_v48 = vpop.f32.mrb[15].mxu1  ;;  %v5392_v8 = vld [vmem:[%s8191_s15 + $0x8] sm:$0xff] }
 0x9d2   : > { %v7617_v31 = vadd.f32 %v4088_v27, %v7400_v43  ;;  %v5393_v43 = vld [vmem:[%s8192_s16 + $0x8] sm:$0xff] }
 0x9d3   : > { %4110 = vrot.lane.b32.xlu0 %v7614_v1, %s8258_s30 }
 0x9d4   : > { %4112 = vrot.lane.b32.xlu1 %v7617_v31, %s8258_s30 }
 0x9d7   : > { %4100 = vrot.lane.b32.xlu0 %v7614_v1, %s8254_s7 }
 0x9d8   : > { %4102 = vrot.lane.b32.xlu1 %v7617_v31, %s8254_s7 }
 0x9db   : > { %4130 = vrot.lane.b32.xlu0 %v7614_v1, %s8310_s28 }
 0x9dc   : > { %4132 = vrot.lane.b32.xlu1 %v7617_v31, %s8310_s28 }
 0x9df   : > { %4120 = vrot.lane.b32.xlu0 %v7614_v1, %s8330_s1 }
 0x9e0   : > { %4122 = vrot.lane.b32.xlu1 %v7617_v31, %s8330_s1 }
 0x9e3   : > { %4144 = vrot.lane.b32.xlu0 %v7614_v1, %s8311_s0 }
 0x9e4   : > { %4146 = vrot.lane.b32.xlu1 %v7617_v31, %s8311_s0 }
 0x9e7   : > { %4164 = vrot.lane.b32.xlu0 %v7614_v1, %s8260_s2 }
 0x9e8   : > { %4166 = vrot.lane.b32.xlu1 %v7617_v31, %s8260_s2 }
 0x9eb   : > { %4154 = vrot.lane.b32.xlu0 %v7614_v1, %s8329_s4 }
 0x9ec   : > { %4156 = vrot.lane.b32.xlu1 %v7617_v31, %s8329_s4 }
 0x9ef   : > { %4174 = vrot.lane.b32.xlu0 %v7614_v1, %s8256_s3 }
 0x9f0   : > { %4176 = vrot.lane.b32.xlu1 %v7617_v31, %s8256_s3 }
 0x9f3   : > { %4234 = vperm.xlu0 %5501, %v5392_v8  }
 0x9f4   : > { %4291 = vperm.xlu1 %5502, %v5393_v43  }
 0xa45   : > { %v4111_v47 = vpop.permute.xlu0 %4110 }
 0xa46   : > { %v4113_v62 = vpop.permute.xlu1 %4112 }
 0xa47   : > { %v4114_v14 = vsel %vm3248_vm5, %v4111_v47, %v4113_v62  ;;  %v4115_v59 = vsel %vm3248_vm5, %v4113_v62, %v4111_v47  ;;  %v4141_v47 = vmul.f32 %v7617_v31, %v7156_v29  ;;  %v4140_v62 = vmul.f32 %v7614_v1, %v6970_v0 }
 0xa48   : > { %v4116_v12 = vmul.f32 %v4115_v59, %v7112_v4  ;;  %v4117_v23 = vmul.f32 %v4114_v14, %v7101_v25 }
 0xa49   : > { %v4101_v30 = vpop.permute.xlu0 %4100 }
 0xa4a   : > { %v4118_v6 = vpack.c.bf16 %v4116_v12, %v4116_v12  ;;  %v4119_v28 = vpack.c.bf16 %v4117_v23, %v4117_v23  ;;  %v4103_v3 = vpop.permute.xlu1 %4102 }
 0xa4b   : > { %v4104_v34 = vsel %vm3211_vm3, %v4101_v30, %v4103_v3  ;;  %v4105_v15 = vsel %vm3211_vm3, %v4103_v3, %v4101_v30 }
 0xa4c   : > { %v4106_v56 = vmul.f32 %v4105_v15, %v7083_v5  ;;  %v4107_v58 = vmul.f32 %v4104_v34, %v7097_v10  ;;  %v4186_v46 = vrot.slane %v4118_v6, 4  ;;  %v4187_v60 = vrot.slane %v4119_v28, 4 }
 0xa4d   : > { %v4131_v13 = vpop.permute.xlu0 %4130 }
 0xa4e   : > { %v4108_v16 = vpack.c.bf16 %v4106_v56, %v4106_v56  ;;  %v4109_v18 = vpack.c.bf16 %v4107_v58, %v4107_v58  ;;  %v4133_v9 = vpop.permute.xlu1 %4132  ;;  %v4143_v56 = vpack.c.bf16 %v4141_v47, %v4141_v47  ;;  %v4142_v58 = vpack.c.bf16 %v4140_v62, %v4140_v62  ;;  %v5391_v62 = vld [vmem:[%s8190_s14 + $0x4] sm:$0xf] }
 0xa4f   : > { %v4134_v45 = vsel %vm3322_vm8, %v4131_v13, %v4133_v9  ;;  %v4135_v20 = vsel %vm3322_vm8, %v4133_v9, %v4131_v13 }
 0xa50   : > { %v4136_v17 = vmul.f32 %v4135_v20, %v7124_v54  ;;  %v4137_v2 = vmul.f32 %v4134_v45, %v7130_v55  ;;  %v4206_v63 = vsel %vm1098_vm0, %v4109_v18, %v4187_v60  ;;  %v4202_v52 = vsel %vm1098_vm0, %v4108_v16, %v4186_v46 }
 0xa51   : > { %4246 = vmatprep.subr.bf16.mxu0 %v4206_v63  ;;  %v4121_v39 = vpop.permute.xlu0 %4120 }
 0xa52   : > { %v4138_v21 = vpack.c.bf16 %v4136_v17, %v4136_v17  ;;  %v4139_v42 = vpack.c.bf16 %v4137_v2, %v4137_v2  ;;  %v4123_v37 = vpop.permute.xlu1 %4122  ;;  %4247 = vmatpush1.bf16.msra.mxu0 %v4202_v52 }
 0xa53   : > { %v4124_v7 = vsel %vm3285_vm6, %v4121_v39, %v4123_v37  ;;  %v4125_v35 = vsel %vm3285_vm6, %v4123_v37, %v4121_v39 }
 0xa54   : > { %v4126_v33 = vmul.f32 %v4125_v35, %v7116_v40  ;;  %v4127_v57 = vmul.f32 %v4124_v7, %v7120_v24  ;;  %v4190_v50 = vrot.slane %v4138_v21, 4  ;;  %v4191_v32 = vrot.slane %v4139_v42, 4 }
 0xa55   : > { %v4145_v41 = vpop.permute.xlu0 %4144 }
 0xa56   : > { %v4128_v27 = vpack.c.bf16 %v4126_v33, %v4126_v33  ;;  %v4129_v19 = vpack.c.bf16 %v4127_v57, %v4127_v57  ;;  %v4147_v48 = vpop.permute.xlu1 %4146 }
 0xa57   : > { %v4148_v8 = vsel %vm3377_vm9, %v4145_v41, %v4147_v48  ;;  %v4149_v43 = vsel %vm3377_vm9, %v4147_v48, %v4145_v41 }
 0xa58   : > { %v4150_v14 = vmul.f32 %v4148_v8, %v7141_v49  ;;  %v4151_v59 = vmul.f32 %v4149_v43, %v7145_v53  ;;  %v4214_v12 = vsel %vm1098_vm0, %v4129_v19, %v4191_v32  ;;  %v4210_v23 = vsel %vm1098_vm0, %v4128_v27, %v4190_v50 }
 0xa59   : > { %4248 = vmatprep.subr.bf16.mxu0 %v4214_v12  ;;  %v4165_v30 = vpop.permute.xlu0 %4164 }
 0xa5a   : > { %v4152_v6 = vpack.c.bf16 %v4150_v14, %v4150_v14  ;;  %v4153_v28 = vpack.c.bf16 %v4151_v59, %v4151_v59  ;;  %v4167_v3 = vpop.permute.xlu1 %4166  ;;  %4249 = vmatpush1.bf16.msra.mxu0 %v4210_v23 }
 0xa5b   : > { %v4168_v34 = vsel %vm3451_vm11, %v4165_v30, %v4167_v3  ;;  %v4169_v15 = vsel %vm3451_vm11, %v4167_v3, %v4165_v30 }
 0xa5c   : > { %v4194_v13 = vrot.slane %v4152_v6, 4  ;;  %v4195_v46 = vrot.slane %v4153_v28, 4  ;;  %v4170_v60 = vmul.f32 %v4168_v34, %v7270_v38  ;;  %v4171_v16 = vmul.f32 %v4169_v15, %v7278_v44 }
 0xa5d   : > { %v4155_v18 = vpop.permute.xlu0 %4154 }
 0xa5e   : > { %v4172_v9 = vpack.c.bf16 %v4170_v60, %v4170_v60  ;;  %v4173_v45 = vpack.c.bf16 %v4171_v16, %v4171_v16  ;;  %v4157_v20 = vpop.permute.xlu1 %4156  ;;  %v4222_v17 = vsel %vm1098_vm0, %v4143_v56, %v4195_v46  ;;  %v4218_v2 = vsel %vm1098_vm0, %v4142_v58, %v4194_v13  ;;  %v5397_v56 = vld [vmem:[%s8194_s18 + $0x8] sm:$0xff] }
 0xa5f   : > { %v4158_v63 = vsel %vm3414_vm10, %v4155_v18, %v4157_v20  ;;  %v4159_v52 = vsel %vm3414_vm10, %v4157_v20, %v4155_v18  ;;  %4250 = vmatprep.subr.bf16.mxu0 %v4222_v17 }
 0xa60   : > { %v4160_v39 = vmul.f32 %v4158_v63, %v7152_v26  ;;  %v4161_v21 = vmul.f32 %v4159_v52, %v7266_v11  ;;  %4251 = vmatpush1.bf16.msra.mxu0 %v4218_v2  ;;  %v4198_v37 = vrot.slane %v4172_v9, 4  ;;  %v4199_v7 = vrot.slane %v4173_v45, 4 }
 0xa61   : > { %v4175_v42 = vpop.permute.xlu0 %4174 }
 0xa62   : > { %v4162_v35 = vpack.c.bf16 %v4160_v39, %v4160_v39  ;;  %v4163_v33 = vpack.c.bf16 %v4161_v21, %v4161_v21  ;;  %v4177_v57 = vpop.permute.xlu1 %4176 }
 0xa63   : > { %v4178_v41 = vsel %vm3488_vm12, %v4175_v42, %v4177_v57  ;;  %v4179_v50 = vsel %vm3488_vm12, %v4177_v57, %v4175_v42 }
 0xa64   : > { %v4180_v32 = vmul.f32 %v7366_v61, %v4178_v41  ;;  %v4181_v27 = vmul.f32 %v7371_v36, %v4179_v50  ;;  %v4230_v19 = vsel %vm1098_vm0, %v4163_v33, %v4199_v7  ;;  %v4226_v48 = vsel %vm1098_vm0, %v4162_v35, %v4198_v37 }
 0xa65   : > { %4252 = vmatprep.subr.bf16.mxu0 %v4230_v19 }
 0xa66   : > { %v4182_v8 = vpack.c.bf16 %v4180_v32, %v4180_v32  ;;  %v4183_v43 = vpack.c.bf16 %v4181_v27, %v4181_v27  ;;  %4253 = vmatpush1.bf16.msra.mxu0 %v4226_v48 }
 0xa68   : > { %5394 = vmatprep.subr.msk.bf16.mxu0 %vm1098_vm0, %v4183_v43  ;;  %v4241_v47 = vsel %vm1098_vm0, %v4182_v8, 0 }
 0xa6a   : > { %4255 = vmatpush1.bf16.msra.mxu0 %v4241_v47 }
 0xa6d   : > { %5395 = vmatmul.mubr.msk.bf16.vlgmr.msra.gmra.mrb[24].mxu0 %vm3841_vm7, %v5391_v62 }
 0xa6e   : > { %4675 = vmatprep.mubr.bf16.mxu0 %v8317_v22 }
 0xa72   : > { %v4235_v61 = vpop.permute.xlu0 %4234 }
 0xa73   : > { %v4292_v12 = vpop.permute.xlu1 %4291 }
 0xb40   : > { %v4280_v36 = vpop.f32.mrb[24].mxu0 }
 0xb41   : > { %v4281_v14 = vadd.f32 %v4280_v36, %v4235_v61  ;;  %v4282_v59 = vpop.f32.mrb[25].mxu0 }
 0xb42   : > { %v4283_v23 = vadd.f32 %v4282_v59, %v4235_v61  ;;  %v4284_v30 = vpop.f32.mrb[26].mxu0 }
 0xb43   : > { %vm4287_vm1 = vcmp.ge.f32.partialorder %v4281_v14, 0.0  ;;  %v4294_v6 = vmul.f32 %v4292_v12, %v4281_v14  ;;  %v4285_v28 = vpop.f32.mrb[27].mxu0 }
 0xb44   : > { %vm4288_vm2 = vcmp.ge.f32.partialorder %v4283_v23, 0.0  ;;  %v4295_v3 = vmul.f32 %v4292_v12, %v4283_v23 }
 0xb45   : > { %v7724_v34 = vsel %vm4287_vm1, %v4281_v14, %v4294_v6 }
 0xb46   : > { %v7726_v15 = vsel %vm4288_vm2, %v4283_v23, %v4295_v3  ;;  %4312 = vrot.lane.b32.xlu0 %v7724_v34, %s8258_s30 }
 0xb47   : > { %4314 = vrot.lane.b32.xlu1 %v7726_v15, %s8258_s30 }
 0xb4a   : > { %4302 = vrot.lane.b32.xlu0 %v7724_v34, %s8331_s6 }
 0xb4b   : > { %4304 = vrot.lane.b32.xlu1 %v7726_v15, %s8331_s6 }
 0xb4e   : > { %4332 = vrot.lane.b32.xlu0 %v7724_v34, %s8310_s28 }
 0xb4f   : > { %4334 = vrot.lane.b32.xlu1 %v7726_v15, %s8310_s28 }
 0xb52   : > { %4322 = vrot.lane.b32.xlu0 %v7724_v34, %s8330_s1 }
 0xb53   : > { %4324 = vrot.lane.b32.xlu1 %v7726_v15, %s8330_s1 }
 0xb56   : > { %4346 = vrot.lane.b32.xlu0 %v7724_v34, %s8311_s0 }
 0xb57   : > { %4348 = vrot.lane.b32.xlu1 %v7726_v15, %s8311_s0 }
 0xb5a   : > { %4366 = vrot.lane.b32.xlu0 %v7724_v34, %s8260_s2 }
 0xb5b   : > { %4368 = vrot.lane.b32.xlu1 %v7726_v15, %s8260_s2 }
 0xb5e   : > { %4356 = vrot.lane.b32.xlu0 %v7724_v34, %s8329_s4 }
 0xb5f   : > { %4358 = vrot.lane.b32.xlu1 %v7726_v15, %s8329_s4 }
 0xb62   : > { %4376 = vrot.lane.b32.xlu0 %v7724_v34, %s8256_s3 }
 0xb63   : > { %4378 = vrot.lane.b32.xlu1 %v7726_v15, %s8256_s3  ;;  %s8332_s3 = smov 111  }
 0xb66   : > { %4436 = vperm.xlu0 %5501, %v5397_v56  }
 0xbb8   : > { %v4313_v58 = vpop.permute.xlu0 %4312 }
 0xbb9   : > { %v4315_v13 = vpop.permute.xlu1 %4314 }
 0xbba   : > { %v4316_v46 = vsel %vm3248_vm5, %v4313_v58, %v4315_v13  ;;  %v4317_v60 = vsel %vm3248_vm5, %v4315_v13, %v4313_v58  ;;  %v4343_v58 = vmul.f32 %v7726_v15, %v7156_v29  ;;  %v4342_v13 = vmul.f32 %v7724_v34, %v6970_v0 }
 0xbbb   : > { %v4318_v16 = vmul.f32 %v4317_v60, %v7112_v4  ;;  %v4319_v18 = vmul.f32 %v4316_v46, %v7101_v25 }
 0xbbc   : > { %v4303_v9 = vpop.permute.xlu0 %4302 }
 0xbbd   : > { %v4320_v45 = vpack.c.bf16 %v4318_v16, %v4318_v16  ;;  %v4321_v20 = vpack.c.bf16 %v4319_v18, %v4319_v18  ;;  %v4305_v17 = vpop.permute.xlu1 %4304 }
 0xbbe   : > { %v4306_v2 = vsel %vm3211_vm3, %v4303_v9, %v4305_v17  ;;  %v4307_v63 = vsel %vm3211_vm3, %v4305_v17, %v4303_v9 }
 0xbbf   : > { %v4308_v52 = vmul.f32 %v4307_v63, %v7083_v5  ;;  %v4309_v39 = vmul.f32 %v4306_v2, %v7097_v10  ;;  %v4388_v42 = vrot.slane %v4320_v45, 4  ;;  %v4389_v37 = vrot.slane %v4321_v20, 4 }
 0xbc0   : > { %v4333_v21 = vpop.permute.xlu0 %4332  ;;  %v4345_v2 = vpack.c.bf16 %v4343_v58, %v4343_v58  ;;  %v4344_v63 = vpack.c.bf16 %v4342_v13, %v4342_v13  ;;  %v5396_v13 = vld [vmem:[%s8193_s17 + $0x4] sm:$0xf] }
 0xbc1   : > { %v4310_v7 = vpack.c.bf16 %v4308_v52, %v4308_v52  ;;  %v4311_v35 = vpack.c.bf16 %v4309_v39, %v4309_v39  ;;  %v4335_v33 = vpop.permute.xlu1 %4334 }
 0xbc2   : > { %v4336_v57 = vsel %vm3322_vm8, %v4333_v21, %v4335_v33  ;;  %v4337_v41 = vsel %vm3322_vm8, %v4335_v33, %v4333_v21 }
 0xbc3   : > { %v4338_v50 = vmul.f32 %v4337_v41, %v7124_v54  ;;  %v4339_v32 = vmul.f32 %v4336_v57, %v7130_v55  ;;  %v4408_v27 = vsel %vm1098_vm0, %v4311_v35, %v4389_v37  ;;  %v4404_v19 = vsel %vm1098_vm0, %v4310_v7, %v4388_v42 }
 0xbc4   : > { %4448 = vmatprep.subr.bf16.mxu1 %v4408_v27  ;;  %v4323_v48 = vpop.permute.xlu0 %4322 }
 0xbc5   : > { %v4340_v8 = vpack.c.bf16 %v4338_v50, %v4338_v50  ;;  %v4341_v43 = vpack.c.bf16 %v4339_v32, %v4339_v32  ;;  %v4325_v47 = vpop.permute.xlu1 %4324  ;;  %4449 = vmatpush1.bf16.msra.mxu1 %v4404_v19 }
 0xbc6   : > { %v4326_v62 = vsel %vm3285_vm6, %v4323_v48, %v4325_v47  ;;  %v4327_v61 = vsel %vm3285_vm6, %v4325_v47, %v4323_v48 }
 0xbc7   : > { %v4328_v36 = vmul.f32 %v4327_v61, %v7116_v40  ;;  %v4329_v14 = vmul.f32 %v4326_v62, %v7120_v24  ;;  %v4392_v12 = vrot.slane %v4340_v8, 4  ;;  %v4393_v23 = vrot.slane %v4341_v43, 4 }
 0xbc8   : > { %v4347_v59 = vpop.permute.xlu0 %4346 }
 0xbc9   : > { %v4330_v30 = vpack.c.bf16 %v4328_v36, %v4328_v36  ;;  %v4331_v6 = vpack.c.bf16 %v4329_v14, %v4329_v14  ;;  %v4349_v28 = vpop.permute.xlu1 %4348 }
 0xbca   : > { %v4350_v3 = vsel %vm3377_vm9, %v4347_v59, %v4349_v28  ;;  %v4351_v56 = vsel %vm3377_vm9, %v4349_v28, %v4347_v59  ;;  %v7822_v59 = vld [vmem:[%s8318_s10 + $0x10] ss:$0 sm:$0xff] }
 0xbcb   : > { %v4352_v46 = vmul.f32 %v4350_v3, %v7141_v49  ;;  %v4353_v60 = vmul.f32 %v4351_v56, %v7145_v53  ;;  %v4416_v16 = vsel %vm1098_vm0, %v4331_v6, %v4393_v23  ;;  %v4412_v18 = vsel %vm1098_vm0, %v4330_v30, %v4392_v12  ;;  %v7828_v23 = vld [vmem:[%s8318_s10 + $0x18] ss:$0 sm:$0xff] }
 0xbcc   : > { %4450 = vmatprep.subr.bf16.mxu1 %v4416_v16  ;;  %v4367_v9 = vpop.permute.xlu0 %4366 }
 0xbcd   : > { %v4354_v45 = vpack.c.bf16 %v4352_v46, %v4352_v46  ;;  %v4355_v20 = vpack.c.bf16 %v4353_v60, %v4353_v60  ;;  %v4369_v17 = vpop.permute.xlu1 %4368  ;;  %4451 = vmatpush1.bf16.msra.mxu1 %v4412_v18 }
 0xbce   : > { %v4370_v15 = vsel %vm3451_vm11, %v4367_v9, %v4369_v17  ;;  %v4371_v34 = vsel %vm3451_vm11, %v4369_v17, %v4367_v9 }
 0xbcf   : > { %v4396_v52 = vrot.slane %v4354_v45, 4  ;;  %v4397_v39 = vrot.slane %v4355_v20, 4  ;;  %v4372_v21 = vmul.f32 %v4370_v15, %v7270_v38  ;;  %v4373_v42 = vmul.f32 %v4371_v34, %v7278_v44 }
 0xbd0   : > { %v4357_v37 = vpop.permute.xlu0 %4356 }
 0xbd1   : > { %v4374_v7 = vpack.c.bf16 %v4372_v21, %v4372_v21  ;;  %v4375_v35 = vpack.c.bf16 %v4373_v42, %v4373_v42  ;;  %v4359_v33 = vpop.permute.xlu1 %4358  ;;  %v4424_v57 = vsel %vm1098_vm0, %v4345_v2, %v4397_v39  ;;  %v4420_v41 = vsel %vm1098_vm0, %v4344_v63, %v4396_v52 }
 0xbd2   : > { %v4360_v50 = vsel %vm3414_vm10, %v4357_v37, %v4359_v33  ;;  %v4361_v32 = vsel %vm3414_vm10, %v4359_v33, %v4357_v37  ;;  %4452 = vmatprep.subr.bf16.mxu1 %v4424_v57 }
 0xbd3   : > { %v4362_v27 = vmul.f32 %v4360_v50, %v7152_v26  ;;  %v4363_v19 = vmul.f32 %v4361_v32, %v7266_v11  ;;  %4453 = vmatpush1.bf16.msra.mxu1 %v4420_v41  ;;  %v4400_v8 = vrot.slane %v4374_v7, 4  ;;  %v4401_v43 = vrot.slane %v4375_v35, 4 }
 0xbd4   : > { %v4377_v48 = vpop.permute.xlu0 %4376 }
 0xbd5   : > { %v4364_v47 = vpack.c.bf16 %v4362_v27, %v4362_v27  ;;  %v4365_v62 = vpack.c.bf16 %v4363_v19, %v4363_v19  ;;  %v4379_v61 = vpop.permute.xlu1 %4378 }
 0xbd6   : > { %v4380_v36 = vsel %vm3488_vm12, %v4377_v48, %v4379_v61  ;;  %v4381_v14 = vsel %vm3488_vm12, %v4379_v61, %v4377_v48 }
 0xbd7   : > { %v4382_v12 = vmul.f32 %v7822_v59, %v4380_v36  ;;  %v4383_v30 = vmul.f32 %v7828_v23, %v4381_v14  ;;  %v4432_v6 = vsel %vm1098_vm0, %v4365_v62, %v4401_v43  ;;  %v4428_v28 = vsel %vm1098_vm0, %v4364_v47, %v4400_v8 }
 0xbd8   : > { %4454 = vmatprep.subr.bf16.mxu1 %v4432_v6 }
 0xbd9   : > { %v4384_v3 = vpack.c.bf16 %v4382_v12, %v4382_v12  ;;  %v4385_v56 = vpack.c.bf16 %v4383_v30, %v4383_v30  ;;  %4455 = vmatpush1.bf16.msra.mxu1 %v4428_v28 }
 0xbdb   : > { %5398 = vmatprep.subr.msk.bf16.mxu1 %vm1098_vm0, %v4385_v56  ;;  %v4443_v58 = vsel %vm1098_vm0, %v4384_v3, 0 }
 0xbdd   : > { %4457 = vmatpush1.bf16.msra.mxu1 %v4443_v58 }
 0xbe0   : > { %5399 = vmatmul.mubr.msk.bf16.vlgmr.msra.gmra.mrb[16].mxu1 %vm3841_vm7, %v5396_v13 }
 0xbe1   : > { %4877 = vmatprep.mubr.bf16.mxu1 %v8317_v22 }
 0xbe5   : > { %v4437_v46 = vpop.permute.xlu0 %4436 }
 0xcb3   : > { %v4482_v60 = vpop.f32.mrb[16].mxu1 }
 0xcb4   : > { %v4483_v16 = vadd.f32 %v4482_v60, %v4437_v46  ;;  %v4484_v18 = vpop.f32.mrb[17].mxu1 }
 0xcb5   : > { %v4485_v9 = vadd.f32 %v4484_v18, %v4437_v46  ;;  %v4486_v45 = vpop.f32.mrb[18].mxu1 }
 0xcb6   : > { %v7841_v20 = vadd.f32 %v4483_v16, %v7614_v1  ;;  %v4487_v17 = vpop.f32.mrb[19].mxu1  ;;  %v5401_v1 = vld [vmem:[%s8191_s15 + $0x10] sm:$0xff] }
 0xcb7   : > { %v7844_v15 = vadd.f32 %v4485_v9, %v7617_v31  ;;  %v5402_v31 = vld [vmem:[%s8192_s16 + $0x10] sm:$0xff] }
 0xcb8   : > { %4507 = vrot.lane.b32.xlu1 %v7841_v20, %s8258_s30 }
 0xcb9   : > { %4509 = vrot.lane.b32.xlu0 %v7844_v15, %s8258_s30  ;;  %s5417_s30 = sshll.u32 %s8336_s26, 4 }
 0xcba   : > { %s835_s10 = scalar_lea.vmem %s8198_s22, %s5417_s30 }
 0xcbc   : > { %4497 = vrot.lane.b32.xlu1 %v7841_v20, %s8331_s6 }
 0xcbd   : > { %4499 = vrot.lane.b32.xlu0 %v7844_v15, %s8331_s6 }
 0xcc0   : > { %4527 = vrot.lane.b32.xlu1 %v7841_v20, %s8310_s28 }
 0xcc1   : > { %4529 = vrot.lane.b32.xlu0 %v7844_v15, %s8310_s28 }
 0xcc4   : > { %4517 = vrot.lane.b32.xlu1 %v7841_v20, %s8330_s1 }
 0xcc5   : > { %4519 = vrot.lane.b32.xlu0 %v7844_v15, %s8330_s1 }
 0xcc8   : > { %4541 = vrot.lane.b32.xlu1 %v7841_v20, %s8311_s0 }
 0xcc9   : > { %4543 = vrot.lane.b32.xlu0 %v7844_v15, %s8311_s0 }
 0xccc   : > { %4561 = vrot.lane.b32.xlu1 %v7841_v20, %s8260_s2 }
 0xccd   : > { %4563 = vrot.lane.b32.xlu0 %v7844_v15, %s8260_s2 }
 0xcd0   : > { %4551 = vrot.lane.b32.xlu1 %v7841_v20, %s8329_s4 }
 0xcd1   : > { %4553 = vrot.lane.b32.xlu0 %v7844_v15, %s8329_s4 }
 0xcd4   : > { %4571 = vrot.lane.b32.xlu1 %v7841_v20, %s8332_s3 }
 0xcd5   : > { %4573 = vrot.lane.b32.xlu0 %v7844_v15, %s8332_s3 }
 0xcd8   : > { %4631 = vperm.xlu1 %5502, %v5401_v1  }
 0xcd9   : > { %4688 = vperm.xlu0 %5501, %v5402_v31  }
 0xd2a   : > { %v4508_v34 = vpop.permute.xlu1 %4507 }
 0xd2b   : > { %v4510_v2 = vpop.permute.xlu0 %4509 }
 0xd2c   : > { %v4511_v63 = vsel %vm3248_vm5, %v4508_v34, %v4510_v2  ;;  %v4512_v52 = vsel %vm3248_vm5, %v4510_v2, %v4508_v34  ;;  %v4538_v34 = vmul.f32 %v7844_v15, %v7156_v29  ;;  %v4537_v2 = vmul.f32 %v7841_v20, %v6970_v0 }
 0xd2d   : > { %v4513_v39 = vmul.f32 %v4512_v52, %v7112_v4  ;;  %v4514_v21 = vmul.f32 %v4511_v63, %v7101_v25 }
 0xd2e   : > { %v4498_v42 = vpop.permute.xlu1 %4497 }
 0xd2f   : > { %v4515_v37 = vpack.c.bf16 %v4513_v39, %v4513_v39  ;;  %v4516_v7 = vpack.c.bf16 %v4514_v21, %v4514_v21  ;;  %v4500_v35 = vpop.permute.xlu0 %4499 }
 0xd30   : > { %v4501_v33 = vsel %vm3211_vm3, %v4498_v42, %v4500_v35  ;;  %v4502_v57 = vsel %vm3211_vm3, %v4500_v35, %v4498_v42 }
 0xd31   : > { %v4503_v41 = vmul.f32 %v4502_v57, %v7083_v5  ;;  %v4504_v50 = vmul.f32 %v4501_v33, %v7097_v10  ;;  %v4583_v27 = vrot.slane %v4515_v37, 4  ;;  %v4584_v19 = vrot.slane %v4516_v7, 4 }
 0xd32   : > { %v4528_v32 = vpop.permute.xlu1 %4527 }
 0xd33   : > { %v4505_v48 = vpack.c.bf16 %v4503_v41, %v4503_v41  ;;  %v4506_v8 = vpack.c.bf16 %v4504_v50, %v4504_v50  ;;  %v4530_v43 = vpop.permute.xlu0 %4529  ;;  %v4540_v41 = vpack.c.bf16 %v4538_v34, %v4538_v34  ;;  %v4539_v50 = vpack.c.bf16 %v4537_v2, %v4537_v2  ;;  %v5400_v2 = vld [vmem:[%s8190_s14 + $0x8] sm:$0xf] }
 0xd34   : > { %v4531_v47 = vsel %vm3322_vm8, %v4528_v32, %v4530_v43  ;;  %v4532_v62 = vsel %vm3322_vm8, %v4530_v43, %v4528_v32 }
 0xd35   : > { %v4533_v61 = vmul.f32 %v4532_v62, %v7124_v54  ;;  %v4534_v36 = vmul.f32 %v4531_v47, %v7130_v55  ;;  %v4603_v14 = vsel %vm1098_vm0, %v4506_v8, %v4584_v19  ;;  %v4599_v12 = vsel %vm1098_vm0, %v4505_v48, %v4583_v27 }
 0xd36   : > { %4643 = vmatprep.subr.bf16.mxu0 %v4603_v14  ;;  %v4518_v30 = vpop.permute.xlu1 %4517 }
 0xd37   : > { %v4535_v6 = vpack.c.bf16 %v4533_v61, %v4533_v61  ;;  %v4536_v28 = vpack.c.bf16 %v4534_v36, %v4534_v36  ;;  %v4520_v3 = vpop.permute.xlu0 %4519  ;;  %4644 = vmatpush1.bf16.msra.mxu0 %v4599_v12 }
 0xd38   : > { %v4521_v56 = vsel %vm3285_vm6, %v4518_v30, %v4520_v3  ;;  %v4522_v58 = vsel %vm3285_vm6, %v4520_v3, %v4518_v30 }
 0xd39   : > { %v4523_v13 = vmul.f32 %v4522_v58, %v7116_v40  ;;  %v4524_v46 = vmul.f32 %v4521_v56, %v7120_v24  ;;  %v4587_v16 = vrot.slane %v4535_v6, 4  ;;  %v4588_v18 = vrot.slane %v4536_v28, 4 }
 0xd3a   : > { %v4542_v60 = vpop.permute.xlu1 %4541 }
 0xd3b   : > { %v4525_v9 = vpack.c.bf16 %v4523_v13, %v4523_v13  ;;  %v4526_v45 = vpack.c.bf16 %v4524_v46, %v4524_v46  ;;  %v4544_v17 = vpop.permute.xlu0 %4543 }
 0xd3c   : > { %v4545_v1 = vsel %vm3377_vm9, %v4542_v60, %v4544_v17  ;;  %v4546_v31 = vsel %vm3377_vm9, %v4544_v17, %v4542_v60 }
 0xd3d   : > { %v4547_v63 = vmul.f32 %v4545_v1, %v7141_v49  ;;  %v4548_v52 = vmul.f32 %v4546_v31, %v7145_v53  ;;  %v4611_v39 = vsel %vm1098_vm0, %v4526_v45, %v4588_v18  ;;  %v4607_v21 = vsel %vm1098_vm0, %v4525_v9, %v4587_v16 }
 0xd3e   : > { %4645 = vmatprep.subr.bf16.mxu0 %v4611_v39  ;;  %v4562_v42 = vpop.permute.xlu1 %4561 }
 0xd3f   : > { %v4549_v37 = vpack.c.bf16 %v4547_v63, %v4547_v63  ;;  %v4550_v7 = vpack.c.bf16 %v4548_v52, %v4548_v52  ;;  %v4564_v35 = vpop.permute.xlu0 %4563  ;;  %4646 = vmatpush1.bf16.msra.mxu0 %v4607_v21 }
 0xd40   : > { %v4565_v33 = vsel %vm3451_vm11, %v4562_v42, %v4564_v35  ;;  %v4566_v57 = vsel %vm3451_vm11, %v4564_v35, %v4562_v42 }
 0xd41   : > { %v4591_v32 = vrot.slane %v4549_v37, 4  ;;  %v4592_v27 = vrot.slane %v4550_v7, 4  ;;  %v4567_v19 = vmul.f32 %v4565_v33, %v7270_v38  ;;  %v4568_v48 = vmul.f32 %v4566_v57, %v7278_v44 }
 0xd42   : > { %v4552_v8 = vpop.permute.xlu1 %4551 }
 0xd43   : > { %v4569_v43 = vpack.c.bf16 %v4567_v19, %v4567_v19  ;;  %v4570_v47 = vpack.c.bf16 %v4568_v48, %v4568_v48  ;;  %v4554_v62 = vpop.permute.xlu0 %4553  ;;  %v4619_v61 = vsel %vm1098_vm0, %v4540_v41, %v4592_v27  ;;  %v4615_v36 = vsel %vm1098_vm0, %v4539_v50, %v4591_v32 }
 0xd44   : > { %v4555_v14 = vsel %vm3414_vm10, %v4552_v8, %v4554_v62  ;;  %v4556_v12 = vsel %vm3414_vm10, %v4554_v62, %v4552_v8  ;;  %4647 = vmatprep.subr.bf16.mxu0 %v4619_v61 }
 0xd45   : > { %v4557_v30 = vmul.f32 %v4555_v14, %v7152_v26  ;;  %v4558_v6 = vmul.f32 %v4556_v12, %v7266_v11  ;;  %4648 = vmatpush1.bf16.msra.mxu0 %v4615_v36  ;;  %v4595_v3 = vrot.slane %v4569_v43, 4  ;;  %v4596_v56 = vrot.slane %v4570_v47, 4 }
 0xd46   : > { %v4572_v28 = vpop.permute.xlu1 %4571 }
 0xd47   : > { %v4559_v58 = vpack.c.bf16 %v4557_v30, %v4557_v30  ;;  %v4560_v13 = vpack.c.bf16 %v4558_v6, %v4558_v6  ;;  %v4574_v46 = vpop.permute.xlu0 %4573 }
 0xd48   : > { %v4575_v60 = vsel %vm3488_vm12, %v4572_v28, %v4574_v46  ;;  %v4576_v16 = vsel %vm3488_vm12, %v4574_v46, %v4572_v28 }
 0xd49   : > { %v4577_v18 = vmul.f32 %v7822_v59, %v4575_v60  ;;  %v4578_v9 = vmul.f32 %v7828_v23, %v4576_v16  ;;  %v4627_v45 = vsel %vm1098_vm0, %v4560_v13, %v4596_v56  ;;  %v4623_v17 = vsel %vm1098_vm0, %v4559_v58, %v4595_v3 }
 0xd4a   : > { %4649 = vmatprep.subr.bf16.mxu0 %v4627_v45 }
 0xd4b   : > { %v4579_v1 = vpack.c.bf16 %v4577_v18, %v4577_v18  ;;  %v4580_v31 = vpack.c.bf16 %v4578_v9, %v4578_v9  ;;  %4650 = vmatpush1.bf16.msra.mxu0 %v4623_v17 }
 0xd4d   : > { %5403 = vmatprep.subr.msk.bf16.mxu0 %vm1098_vm0, %v4580_v31  ;;  %v4638_v34 = vsel %vm1098_vm0, %v4579_v1, 0 }
 0xd4f   : > { %4652 = vmatpush1.bf16.msra.mxu0 %v4638_v34 }
 0xd52   : > { %5404 = vmatmul.mubr.msk.bf16.vlgmr.msra.gmra.mrb[28].mxu0 %vm3841_vm7, %v5400_v2 }
 0xd53   : > { %5068 = vmatprep.mubr.bf16.mxu0 %v8317_v22  ;;  %v5406_v22 = vld [vmem:[%s8194_s18 + $0x10] sm:$0xff] }
 0xd57   : > { %v4632_v63 = vpop.permute.xlu1 %4631 }
 0xd58   : > { %v4689_v42 = vpop.permute.xlu0 %4688 }
 0xe25   : > { %v4677_v52 = vpop.f32.mrb[28].mxu0 }
 0xe26   : > { %v4678_v39 = vadd.f32 %v4677_v52, %v4632_v63  ;;  %v4679_v21 = vpop.f32.mrb[29].mxu0 }
 0xe27   : > { %v4680_v37 = vadd.f32 %v4679_v21, %v4632_v63  ;;  %v4681_v7 = vpop.f32.mrb[30].mxu0 }
 0xe28   : > { %vm4684_vm4 = vcmp.ge.f32.partialorder %v4678_v39, 0.0  ;;  %v4691_v35 = vmul.f32 %v4689_v42, %v4678_v39  ;;  %v4682_v33 = vpop.f32.mrb[31].mxu0 }
 0xe29   : > { %vm4685_vm13 = vcmp.ge.f32.partialorder %v4680_v37, 0.0  ;;  %v4692_v57 = vmul.f32 %v4689_v42, %v4680_v37 }
 0xe2a   : > { %v7951_v41 = vsel %vm4684_vm4, %v4678_v39, %v4691_v35 }
 0xe2b   : > { %v7953_v50 = vsel %vm4685_vm13, %v4680_v37, %v4692_v57  ;;  %4709 = vrot.lane.b32.xlu1 %v7951_v41, %s8333_s9 }
 0xe2c   : > { %4711 = vrot.lane.b32.xlu0 %v7953_v50, %s8333_s9 }
 0xe2f   : > { %4699 = vrot.lane.b32.xlu1 %v7951_v41, %s8331_s6 }
 0xe30   : > { %4701 = vrot.lane.b32.xlu0 %v7953_v50, %s8331_s6 }
 0xe33   : > { %4729 = vrot.lane.b32.xlu1 %v7951_v41, %s8310_s28 }
 0xe34   : > { %4731 = vrot.lane.b32.xlu0 %v7953_v50, %s8310_s28 }
 0xe37   : > { %4719 = vrot.lane.b32.xlu1 %v7951_v41, %s8330_s1 }
 0xe38   : > { %4721 = vrot.lane.b32.xlu0 %v7953_v50, %s8330_s1 }
 0xe3b   : > { %4743 = vrot.lane.b32.xlu1 %v7951_v41, %s8311_s0 }
 0xe3c   : > { %4745 = vrot.lane.b32.xlu0 %v7953_v50, %s8311_s0 }
 0xe3f   : > { %4763 = vrot.lane.b32.xlu1 %v7951_v41, %s8260_s2 }
 0xe40   : > { %4765 = vrot.lane.b32.xlu0 %v7953_v50, %s8260_s2 }
 0xe43   : > { %4753 = vrot.lane.b32.xlu1 %v7951_v41, %s8329_s4 }
 0xe44   : > { %4755 = vrot.lane.b32.xlu0 %v7953_v50, %s8329_s4 }
 0xe47   : > { %4773 = vrot.lane.b32.xlu1 %v7951_v41, %s8332_s3 }
 0xe48   : > { %4775 = vrot.lane.b32.xlu0 %v7953_v50, %s8332_s3 }
 0xe4b   : > { %4833 = vperm.xlu1 %5502, %v5406_v22  }
 0xe9d   : > { %v4710_v32 = vpop.permute.xlu1 %4709 }
 0xe9e   : > { %v4712_v27 = vpop.permute.xlu0 %4711 }
 0xe9f   : > { %v4713_v19 = vsel %vm3248_vm5, %v4710_v32, %v4712_v27  ;;  %v4714_v48 = vsel %vm3248_vm5, %v4712_v27, %v4710_v32  ;;  %v4740_v27 = vmul.f32 %v7953_v50, %v7156_v29 }
 0xea0   : > { %v4715_v8 = vmul.f32 %v4714_v48, %v7112_v4  ;;  %v4716_v43 = vmul.f32 %v4713_v19, %v7101_v25  ;;  %v4739_v19 = vmul.f32 %v7951_v41, %v6970_v0 }
 0xea1   : > { %v4700_v47 = vpop.permute.xlu1 %4699 }
 0xea2   : > { %v4717_v62 = vpack.c.bf16 %v4715_v8, %v4715_v8  ;;  %v4718_v61 = vpack.c.bf16 %v4716_v43, %v4716_v43  ;;  %v4702_v36 = vpop.permute.xlu0 %4701 }
 0xea3   : > { %v4703_v14 = vsel %vm3211_vm3, %v4700_v47, %v4702_v36  ;;  %v4704_v12 = vsel %vm3211_vm3, %v4702_v36, %v4700_v47 }
 0xea4   : > { %v4705_v30 = vmul.f32 %v4704_v12, %v7083_v5  ;;  %v4706_v6 = vmul.f32 %v4703_v14, %v7097_v10  ;;  %v4785_v3 = vrot.slane %v4717_v62, 4  ;;  %v4786_v56 = vrot.slane %v4718_v61, 4 }
 0xea5   : > { %v4730_v28 = vpop.permute.xlu1 %4729  ;;  %v4742_v12 = vpack.c.bf16 %v4740_v27, %v4740_v27  ;;  %v5405_v27 = vld [vmem:[%s8193_s17 + $0x8] sm:$0xf] }
 0xea6   : > { %v4707_v58 = vpack.c.bf16 %v4705_v30, %v4705_v30  ;;  %v4708_v13 = vpack.c.bf16 %v4706_v6, %v4706_v6  ;;  %v4732_v46 = vpop.permute.xlu0 %4731  ;;  %v4741_v30 = vpack.c.bf16 %v4739_v19, %v4739_v19 }
 0xea7   : > { %v4733_v60 = vsel %vm3322_vm8, %v4730_v28, %v4732_v46  ;;  %v4734_v16 = vsel %vm3322_vm8, %v4732_v46, %v4730_v28 }
 0xea8   : > { %v4735_v18 = vmul.f32 %v4734_v16, %v7124_v54  ;;  %v4736_v9 = vmul.f32 %v4733_v60, %v7130_v55  ;;  %v4805_v45 = vsel %vm1098_vm0, %v4708_v13, %v4786_v56  ;;  %v4801_v17 = vsel %vm1098_vm0, %v4707_v58, %v4785_v3 }
 0xea9   : > { %4845 = vmatprep.subr.bf16.mxu1 %v4805_v45  ;;  %v4720_v1 = vpop.permute.xlu1 %4719 }
 0xeaa   : > { %v4737_v31 = vpack.c.bf16 %v4735_v18, %v4735_v18  ;;  %v4738_v34 = vpack.c.bf16 %v4736_v9, %v4736_v9  ;;  %v4722_v2 = vpop.permute.xlu0 %4721  ;;  %4846 = vmatpush1.bf16.msra.mxu1 %v4801_v17 }
 0xeab   : > { %v4723_v63 = vsel %vm3285_vm6, %v4720_v1, %v4722_v2  ;;  %v4724_v52 = vsel %vm3285_vm6, %v4722_v2, %v4720_v1 }
 0xeac   : > { %v4725_v39 = vmul.f32 %v4724_v52, %v7116_v40  ;;  %v4726_v21 = vmul.f32 %v4723_v63, %v7120_v24  ;;  %v4789_v37 = vrot.slane %v4737_v31, 4  ;;  %v4790_v7 = vrot.slane %v4738_v34, 4 }
 0xead   : > { %v4744_v42 = vpop.permute.xlu1 %4743 }
 0xeae   : > { %v4727_v35 = vpack.c.bf16 %v4725_v39, %v4725_v39  ;;  %v4728_v33 = vpack.c.bf16 %v4726_v21, %v4726_v21  ;;  %v4746_v57 = vpop.permute.xlu0 %4745 }
 0xeaf   : > { %v4747_v22 = vsel %vm3377_vm9, %v4744_v42, %v4746_v57  ;;  %v4748_v32 = vsel %vm3377_vm9, %v4746_v57, %v4744_v42 }
 0xeb0   : > { %v4749_v48 = vmul.f32 %v4747_v22, %v7141_v49  ;;  %v4750_v8 = vmul.f32 %v4748_v32, %v7145_v53  ;;  %v4813_v43 = vsel %vm1098_vm0, %v4728_v33, %v4790_v7  ;;  %v4809_v47 = vsel %vm1098_vm0, %v4727_v35, %v4789_v37 }
 0xeb1   : > { %4847 = vmatprep.subr.bf16.mxu1 %v4813_v43  ;;  %v4764_v62 = vpop.permute.xlu1 %4763 }
 0xeb2   : > { %v4751_v61 = vpack.c.bf16 %v4749_v48, %v4749_v48  ;;  %v4752_v36 = vpack.c.bf16 %v4750_v8, %v4750_v8  ;;  %v4766_v14 = vpop.permute.xlu0 %4765  ;;  %4848 = vmatpush1.bf16.msra.mxu1 %v4809_v47 }
 0xeb3   : > { %v4767_v50 = vsel %vm3451_vm11, %v4764_v62, %v4766_v14  ;;  %v4768_v41 = vsel %vm3451_vm11, %v4766_v14, %v4764_v62 }
 0xeb4   : > { %v4793_v6 = vrot.slane %v4751_v61, 4  ;;  %v4794_v28 = vrot.slane %v4752_v36, 4  ;;  %v4769_v3 = vmul.f32 %v4767_v50, %v7270_v38  ;;  %v4770_v56 = vmul.f32 %v4768_v41, %v7278_v44 }
 0xeb5   : > { %v4754_v58 = vpop.permute.xlu1 %4753 }
 0xeb6   : > { %v4771_v13 = vpack.c.bf16 %v4769_v3, %v4769_v3  ;;  %v4772_v46 = vpack.c.bf16 %v4770_v56, %v4770_v56  ;;  %v4756_v60 = vpop.permute.xlu0 %4755  ;;  %v4821_v16 = vsel %vm1098_vm0, %v4742_v12, %v4794_v28  ;;  %v4817_v18 = vsel %vm1098_vm0, %v4741_v30, %v4793_v6 }
 0xeb7   : > { %v4757_v9 = vsel %vm3414_vm10, %v4754_v58, %v4756_v60  ;;  %v4758_v45 = vsel %vm3414_vm10, %v4756_v60, %v4754_v58  ;;  %4849 = vmatprep.subr.bf16.mxu1 %v4821_v16 }
 0xeb8   : > { %v4759_v17 = vmul.f32 %v4757_v9, %v7152_v26  ;;  %v4760_v1 = vmul.f32 %v4758_v45, %v7266_v11  ;;  %4850 = vmatpush1.bf16.msra.mxu1 %v4817_v18  ;;  %v4797_v34 = vrot.slane %v4771_v13, 4  ;;  %v4798_v2 = vrot.slane %v4772_v46, 4 }
 0xeb9   : > { %v4774_v31 = vpop.permute.xlu1 %4773 }
 0xeba   : > { %v4761_v63 = vpack.c.bf16 %v4759_v17, %v4759_v17  ;;  %v4762_v52 = vpack.c.bf16 %v4760_v1, %v4760_v1  ;;  %v4776_v39 = vpop.permute.xlu0 %4775 }
 0xebb   : > { %v4777_v21 = vsel %vm3488_vm12, %v4774_v31, %v4776_v39  ;;  %v4778_v42 = vsel %vm3488_vm12, %v4776_v39, %v4774_v31 }
 0xebc   : > { %v4779_v37 = vmul.f32 %v7822_v59, %v4777_v21  ;;  %v4780_v7 = vmul.f32 %v7828_v23, %v4778_v42  ;;  %v4829_v35 = vsel %vm1098_vm0, %v4762_v52, %v4798_v2  ;;  %v4825_v33 = vsel %vm1098_vm0, %v4761_v63, %v4797_v34 }
 0xebd   : > { %4851 = vmatprep.subr.bf16.mxu1 %v4829_v35 }
 0xebe   : > { %v4781_v57 = vpack.c.bf16 %v4779_v37, %v4779_v37  ;;  %v4782_v22 = vpack.c.bf16 %v4780_v7, %v4780_v7  ;;  %4852 = vmatpush1.bf16.msra.mxu1 %v4825_v33 }
 0xec0   : > { %5407 = vmatprep.subr.msk.bf16.mxu1 %vm1098_vm0, %v4782_v22  ;;  %v4840_v32 = vsel %vm1098_vm0, %v4781_v57, 0 }
 0xec2   : > { %4854 = vmatpush1.bf16.msra.mxu1 %v4840_v32 }
 0xec5   : > { %5408 = vmatmul.mubr.msk.bf16.vlgmr.msra.gmra.mrb[20].mxu1 %vm3841_vm7, %v5405_v27 }
 0xeca   : > { %v4834_v19 = vpop.permute.xlu1 %4833 }
 0xf98   : > { %v4879_v48 = vpop.f32.mrb[20].mxu1 }
 0xf99   : > { %v4880_v8 = vadd.f32 %v4879_v48, %v4834_v19  ;;  %v4881_v43 = vpop.f32.mrb[21].mxu1 }
 0xf9a   : > { %v4882_v47 = vadd.f32 %v4881_v43, %v4834_v19  ;;  %v4883_v62 = vpop.f32.mrb[22].mxu1 }
 0xf9b   : > { %v8061_v61 = vadd.f32 %v4880_v8, %v7841_v20  ;;  %v4884_v36 = vpop.f32.mrb[23].mxu1  ;;  %v4889_v20 = vld [vmem:[%s8196_s20] sm:$0x7] }
 0xf9c   : > { %v8064_v14 = vadd.f32 %v4882_v47, %v7844_v15 }
 0xf9d   : > { %5082 = vst [vmem:[%s835_s10] sm:$0xff] %v8061_v61  ;;  %4900 = vrot.lane.b32.xlu0 %v8061_v61, %s8333_s9 }
 0xf9e   : > { %5083 = vst [vmem:[%s835_s10 + $0x8] sm:$0xff] %v8064_v14  ;;  %4902 = vrot.lane.b32.xlu1 %v8064_v14, %s8333_s9  ;;  %s8334_s10 = smov 112   ;;  %v4931_v48 = vmul.f32 %v8064_v14, %v7156_v29 }
 0xfa1   : > { %4890 = vrot.lane.b32.xlu0 %v8061_v61, %s8331_s6 }
 0xfa2   : > { %4892 = vrot.lane.b32.xlu1 %v8064_v14, %s8331_s6 }
 0xfa5   : > { %4920 = vrot.lane.b32.xlu0 %v8061_v61, %s8310_s28 }
 0xfa6   : > { %4922 = vrot.lane.b32.xlu1 %v8064_v14, %s8310_s28 }
 0xfa9   : > { %4910 = vrot.lane.b32.xlu0 %v8061_v61, %s8330_s1 }
 0xfaa   : > { %4912 = vrot.lane.b32.xlu1 %v8064_v14, %s8330_s1  ;;  %s830_s1 = scalar_lea.vmem %s8197_s21, %s5743_s27 }
 0xfad   : > { %4934 = vrot.lane.b32.xlu0 %v8061_v61, %s8311_s0 }
 0xfae   : > { %4936 = vrot.lane.b32.xlu1 %v8064_v14, %s8311_s0 }
 0xfb1   : > { %4954 = vrot.lane.b32.xlu0 %v8061_v61, %s8334_s10 }
 0xfb2   : > { %4956 = vrot.lane.b32.xlu1 %v8064_v14, %s8334_s10 }
 0xfb5   : > { %4944 = vrot.lane.b32.xlu0 %v8061_v61, %s8329_s4 }
 0xfb6   : > { %4946 = vrot.lane.b32.xlu1 %v8064_v14, %s8329_s4 }
 0xfb9   : > { %4964 = vrot.lane.b32.xlu0 %v8061_v61, %s8332_s3 }
 0xfba   : > { %4966 = vrot.lane.b32.xlu1 %v8064_v14, %s8332_s3 }
 0xfbd   : > { %5024 = vperm.xlu0 %5501, %v4889_v20  }
0x100f   : > { %v4901_v15 = vpop.permute.xlu0 %4900 }
0x1010   : > { %v4903_v50 = vpop.permute.xlu1 %4902 }
0x1011   : > { %v4904_v41 = vsel %vm3248_vm5, %v4901_v15, %v4903_v50  ;;  %v4905_v12 = vsel %vm3248_vm5, %v4903_v50, %v4901_v15 }
0x1012   : > { %v4906_v30 = vmul.f32 %v4905_v12, %v7112_v4  ;;  %v4907_v6 = vmul.f32 %v4904_v41, %v7101_v25 }
0x1013   : > { %v4891_v28 = vpop.permute.xlu0 %4890 }
0x1014   : > { %v4908_v3 = vpack.c.bf16 %v4906_v30, %v4906_v30  ;;  %v4909_v56 = vpack.c.bf16 %v4907_v6, %v4907_v6  ;;  %v4893_v58 = vpop.permute.xlu1 %4892 }
0x1015   : > { %v4894_v13 = vsel %vm3211_vm3, %v4891_v28, %v4893_v58  ;;  %v4895_v46 = vsel %vm3211_vm3, %v4893_v58, %v4891_v28 }
0x1016   : > { %v4896_v60 = vmul.f32 %v4895_v46, %v7083_v5  ;;  %v4897_v16 = vmul.f32 %v4894_v13, %v7097_v10  ;;  %v4976_v9 = vrot.slane %v4908_v3, 4  ;;  %v4977_v45 = vrot.slane %v4909_v56, 4 }
0x1017   : > { %v4921_v18 = vpop.permute.xlu0 %4920 }
0x1018   : > { %v4898_v4 = vpack.c.bf16 %v4896_v60, %v4896_v60  ;;  %v4899_v17 = vpack.c.bf16 %v4897_v16, %v4897_v16  ;;  %v4923_v25 = vpop.permute.xlu1 %4922 }
0x1019   : > { %v4924_v1 = vsel %vm3322_vm8, %v4921_v18, %v4923_v25  ;;  %v4925_v31 = vsel %vm3322_vm8, %v4923_v25, %v4921_v18 }
0x101a   : > { %v4926_v34 = vmul.f32 %v4925_v31, %v7124_v54  ;;  %v4927_v2 = vmul.f32 %v4924_v1, %v7130_v55  ;;  %v4996_v5 = vsel %vm1098_vm0, %v4899_v17, %v4977_v45  ;;  %v4992_v10 = vsel %vm1098_vm0, %v4898_v4, %v4976_v9 }
0x101b   : > { %5036 = vmatprep.subr.bf16.mxu0 %v4996_v5  ;;  %v4911_v63 = vpop.permute.xlu0 %4910 }
0x101c   : > { %v4928_v52 = vpack.c.bf16 %v4926_v34, %v4926_v34  ;;  %v4929_v39 = vpack.c.bf16 %v4927_v2, %v4927_v2  ;;  %v4913_v21 = vpop.permute.xlu1 %4912  ;;  %5037 = vmatpush1.bf16.msra.mxu0 %v4992_v10 }
0x101d   : > { %v4914_v42 = vsel %vm3285_vm6, %v4911_v63, %v4913_v21  ;;  %v4915_v37 = vsel %vm3285_vm6, %v4913_v21, %v4911_v63 }
0x101e   : > { %v4916_v54 = vmul.f32 %v4915_v37, %v7116_v40  ;;  %v4917_v55 = vmul.f32 %v4914_v42, %v7120_v24  ;;  %v4980_v35 = vrot.slane %v4928_v52, 4  ;;  %v4981_v33 = vrot.slane %v4929_v39, 4 }
0x101f   : > { %v4935_v7 = vpop.permute.xlu0 %4934  ;;  %v4930_v40 = vmul.f32 %v8061_v61, %v6970_v0  ;;  %v4933_v61 = vpack.c.bf16 %v4931_v48, %v4931_v48 }
0x1020   : > { %v4918_v57 = vpack.c.bf16 %v4916_v54, %v4916_v54  ;;  %v4919_v22 = vpack.c.bf16 %v4917_v55, %v4917_v55  ;;  %v4937_v32 = vpop.permute.xlu1 %4936 }
0x1021   : > { %v4938_v27 = vsel %vm3377_vm9, %v4935_v7, %v4937_v32  ;;  %v4939_v19 = vsel %vm3377_vm9, %v4937_v32, %v4935_v7 }
0x1022   : > { %v4940_v24 = vmul.f32 %v4938_v27, %v7141_v49  ;;  %v4941_v8 = vmul.f32 %v4939_v19, %v7145_v53  ;;  %v5004_v43 = vsel %vm1098_vm0, %v4919_v22, %v4981_v33  ;;  %v5000_v47 = vsel %vm1098_vm0, %v4918_v57, %v4980_v35 }
0x1023   : > { %5038 = vmatprep.subr.bf16.mxu0 %v5004_v43  ;;  %v4955_v62 = vpop.permute.xlu0 %4954  ;;  %v4932_v49 = vpack.c.bf16 %v4930_v40, %v4930_v40 }
0x1024   : > { %v4942_v36 = vpack.c.bf16 %v4940_v24, %v4940_v24  ;;  %v4943_v20 = vpack.c.bf16 %v4941_v8, %v4941_v8  ;;  %v4957_v15 = vpop.permute.xlu1 %4956  ;;  %5039 = vmatpush1.bf16.msra.mxu0 %v5000_v47 }
0x1025   : > { %v4958_v29 = vsel %vm3451_vm11, %v4955_v62, %v4957_v15  ;;  %v4959_v0 = vsel %vm3451_vm11, %v4957_v15, %v4955_v62 }
0x1026   : > { %v4984_v14 = vrot.slane %v4942_v36, 4  ;;  %v4985_v53 = vrot.slane %v4943_v20, 4  ;;  %v4960_v50 = vmul.f32 %v4958_v29, %v7270_v38  ;;  %v4961_v41 = vmul.f32 %v4959_v0, %v7278_v44 }
0x1027   : > { %v4945_v12 = vpop.permute.xlu0 %4944 }
0x1028   : > { %v4962_v30 = vpack.c.bf16 %v4960_v50, %v4960_v50  ;;  %v4963_v6 = vpack.c.bf16 %v4961_v41, %v4961_v41  ;;  %v4947_v28 = vpop.permute.xlu1 %4946  ;;  %v5012_v3 = vsel %vm1098_vm0, %v4933_v61, %v4985_v53  ;;  %v5008_v56 = vsel %vm1098_vm0, %v4932_v49, %v4984_v14 }
0x1029   : > { %v4948_v58 = vsel %vm3414_vm10, %v4945_v12, %v4947_v28  ;;  %v4949_v13 = vsel %vm3414_vm10, %v4947_v28, %v4945_v12  ;;  %5040 = vmatprep.subr.bf16.mxu0 %v5012_v3 }
0x102a   : > { %v4950_v46 = vmul.f32 %v4948_v58, %v7152_v26  ;;  %v4951_v38 = vmul.f32 %v4949_v13, %v7266_v11  ;;  %5041 = vmatpush1.bf16.msra.mxu0 %v5008_v56  ;;  %v4988_v60 = vrot.slane %v4962_v30, 4  ;;  %v4989_v16 = vrot.slane %v4963_v6, 4 }
0x102b   : > { %v4965_v44 = vpop.permute.xlu0 %4964 }
0x102c   : > { %v4952_v18 = vpack.c.bf16 %v4950_v46, %v4950_v46  ;;  %v4953_v9 = vpack.c.bf16 %v4951_v38, %v4951_v38  ;;  %v4967_v45 = vpop.permute.xlu1 %4966 }
0x102d   : > { %v4968_v4 = vsel %vm3488_vm12, %v4965_v44, %v4967_v45  ;;  %v4969_v17 = vsel %vm3488_vm12, %v4967_v45, %v4965_v44 }
0x102e   : > { %v4970_v25 = vmul.f32 %v7822_v59, %v4968_v4  ;;  %v4971_v1 = vmul.f32 %v7828_v23, %v4969_v17  ;;  %v5020_v26 = vsel %vm1098_vm0, %v4953_v9, %v4989_v16  ;;  %v5016_v11 = vsel %vm1098_vm0, %v4952_v18, %v4988_v60 }
0x102f   : > { %5042 = vmatprep.subr.bf16.mxu0 %v5020_v26 }
0x1030   : > { %v4972_v31 = vpack.c.bf16 %v4970_v25, %v4970_v25  ;;  %v4973_v34 = vpack.c.bf16 %v4971_v1, %v4971_v1  ;;  %5043 = vmatpush1.bf16.msra.mxu0 %v5016_v11 }
0x1032   : > { %5409 = vmatprep.subr.msk.bf16.mxu0 %vm1098_vm0, %v4973_v34  ;;  %v5031_v2 = vsel %vm1098_vm0, %v4972_v31, 0 }
0x1034   : > { %5045 = vmatpush1.bf16.msra.mxu0 %v5031_v2 }
0x1037   : > { %5410 = vmatmul.mubr.msk.bf16.vlgmr.msra.gmra.mrb[32].mxu0 %vm3841_vm7, %v4888_v51 }
0x103c   : > { %v5025_v59 = vpop.permute.xlu0 %5024 }
0x110a   : > { %v5070_v23 = vpop.f32.mrb[32].mxu0 }
0x110b   : > { %v5071_v5 = vadd.f32 %v5070_v23, %v5025_v59  ;;  %v5072_v10 = vpop.f32.mrb[33].mxu0 }
0x110c   : > { %v5073_v63 = vadd.f32 %v5072_v10, %v5025_v59  ;;  %v5074_v52 = vpop.f32.mrb[34].mxu0 }
0x110d   : > { %v5075_v39 = vpop.f32.mrb[35].mxu0 }
0x110e   : > { %v5079_v21 = vcombine.low %v5071_v5, %v5073_v63 }
0x1110   : > { %5081 = vst [vmem:[%s830_s1] sm:$0x77] %v5079_v21 }
0x1111 PF: > { %s35_s5 = sadd.s32 1, %s5578_s5  }
0x1112   : > { %p32_p4 = scmp.ge.s32.totalorder %s35_s5, 4  }
0x1114   :  { %34 = sbr.rel (!%p32_p4) target bundleno = 12 (0xc), region = 192 }

</bundles_post_ra>
